<compile_context>
chip_gen: v7x
topology: tpu7x:2x2x1
jax: 0.10.0
libtpu: 0.0.40
codegen_flags: <defaults>
</compile_context>

<pallas_src>
import math
from functools import partial

import numpy as np
import jax
import jax.numpy as jnp
from jax.experimental import pallas as pl
from jax.experimental.pallas import tpu as pltpu

_LANE = 128

# For "2x nearest upsample then 3x3 SAME conv": which original 3x3 kernel rows
# (ky) / cols (kx) fold onto tap d in {0,1} of output phase a in {0,1}.
_FOLD = {(0, 0): (0,), (0, 1): (1, 2), (1, 0): (0, 1), (1, 1): (2,)}


def _round_up(x, m):
    return (x + m - 1) // m * m


def _layer_band_matrix_np(w, b, wsp, pad_out):
    """Fold (2x nearest upsample -> 3x3 SAME conv) of one layer into a band matrix.

    Returns (numpy, f32):
      band: (3*Pin, 2*Pout) — maps the lane-stacked window
            [padded_row_p | padded_row_{p+1} | padded_row_{p+2}]
            (each flattened & lane-padded to Pin = roundup((wsp+2)*cin, 128)) to
            [out_row_{2p} | out_row_{2p+1}] (each flattened & lane-padded to Pout,
            already in the next layer's zero-padded-row format when pad_out).
      bias: (1, 2*Pout) — bias broadcast over valid output pixels, zero on the
            spatial-pad / lane-pad columns so padding stays exactly 0 after ReLU.
    """
    w = np.asarray(w, np.float32)
    b = np.asarray(b, np.float32)
    cin, cout = w.shape[2], w.shape[3]
    pin = _round_up((wsp + 2) * cin, _LANE)
    off = 1 if pad_out else 0
    pout = _round_up((2 * wsp + 2 * off) * cout, _LANE)
    band = np.zeros((3 * pin, 2 * pout), np.float32)
    bias = np.zeros((1, 2 * pout), np.float32)
    for a in (0, 1):                       # output row phase  -> N block
        for dy in (0, 1):                  # vertical tap      -> K block (a + dy)
            for bp in (0, 1):              # output column phase
                for dx in (0, 1):          # horizontal tap
                    eff = np.zeros((cin, cout), np.float32)
                    for ky in _FOLD[(a, dy)]:
                        for kx in _FOLD[(bp, dx)]:
                            eff += w[ky, kx]
                    for j in range(wsp):
                        krow = (a + dy) * pin + (j + bp + dx) * cin
                        ncol = a * pout + (2 * j + bp + off) * cout
                        band[krow:krow + cin, ncol:ncol + cout] += eff
        for c in range(2 * wsp):
            ncol = a * pout + (c + off) * cout
            bias[0, ncol:ncol + cout] = b
    return band, bias


def prepare_decoder_ops(params, w0):
    """One-time weight preprocessing — hoisted out of the jitted forward path."""
    ops = []
    wsp = w0
    n = len(params)
    for li, (w, b) in enumerate(params):
        band, bias = _layer_band_matrix_np(w, b, wsp, pad_out=(li < n - 1))
        ops.append(jnp.asarray(band, dtype=jnp.bfloat16))   # bf16 MXU operand
        ops.append(jnp.asarray(bias, dtype=jnp.float32))    # f32 VPU epilogue
        wsp *= 2
    return tuple(ops)


def _upconv_layer(act, band_ref, bias_ref, last):
    """One decoder layer, entirely in VMEM/vregs.

    act: (B, h+2, Pin) zero-padded activation rows (Pin lane-dense).
    Returns (B, 2h+2, Pout) padded rows for the next layer, or (B, 2h, Pout)
    output rows when `last`.
    """
    bblk, hp2, pin = act.shape
    h = hp2 - 2
    pout = band_ref.shape[1] // 2
    # 3 consecutive padded rows stacked on the lane/K axis; batch stacked on M.
    lhs = jnp.concatenate(
        [act[:, 0:h, :], act[:, 1:h + 1, :], act[:, 2:h + 2, :]], axis=-1)
    lhs = lhs.reshape(bblk * h, 3 * pin).astype(jnp.bfloat16)
    # ONE MXU matmul per layer: both row phases + both vertical taps fused,
    # f32 accumulation inside the MXU.
    y = jnp.dot(lhs, band_ref[...], preferred_element_type=jnp.float32)
    y = jnp.maximum(y + bias_ref[...], 0.0)            # f32 bias + ReLU (v5e-safe)
    # De-fuse the two row phases (aligned 128-lane slices) and interleave rows.
    # TODO(synk): this last sublane interleave could be folded into the next
    # layer's band matrices, but only at the cost of a second matmul per layer.
    y0 = y[:, :pout]
    y1 = y[:, pout:]
    y = jnp.concatenate([y0[:, None, :], y1[:, None, :]], axis=1)
    y = y.reshape(bblk, 2 * h, pout)
    if last:
        return y
    zrow = jnp.zeros((bblk, 1, pout), jnp.float32)      # next layer's top/bottom pad
    return jnp.concatenate([zrow, y, zrow], axis=1)


def _decoder_kernel(a_ref, *rest):
    *op_refs, o_ref = rest
    n_layers = len(op_refs) // 2
    act = a_ref[...]                                    # (B, H0+2, Pin0) bf16
    for li in range(n_layers):
        act = _upconv_layer(act, op_refs[2 * li], op_refs[2 * li + 1],
                            last=(li == n_layers - 1))
    o_ref[...] = act.astype(o_ref.dtype)                # lane-dense (256-lane) store


@partial(jax.jit, static_argnames=("c_out",))
def decoder_forward(x_nchw, ops, *, c_out):
    """Decoder.forward: x -> layer1 -> layer2 -> layer3 -> layer4 (one pallas_call)."""
    B, C0, H0, W0 = x_nchw.shape
    n_layers = len(ops) // 2
    HF, WF = H0 * 2 ** n_layers, W0 * 2 ** n_layers
    pin0 = _round_up((W0 + 2) * C0, _LANE)
    pout_last = ops[-2].shape[1] // 2

    # Tiny input relayout (few KB): NCHW -> zero-padded rows with (W, C) fused and
    # lane-padded on the last axis, bf16 MXU operand.
    x = jnp.transpose(x_nchw, (0, 2, 3, 1))
    x = jnp.pad(x, ((0, 0), (1, 1), (1, 1), (0, 0)))
    a0 = x.reshape(B, H0 + 2, (W0 + 2) * C0)
    a0 = jnp.pad(a0, ((0, 0), (0, 0), (0, pin0 - (W0 + 2) * C0))).astype(jnp.bfloat16)

    in_specs = [pl.BlockSpec((B, H0 + 2, pin0), lambda i: (i, 0, 0))]
    for op in ops:
        # Grid-invariant band/bias blocks, fully resident across the grid.
        in_specs.append(pl.BlockSpec(op.shape, lambda i, nd=op.ndim: (0,) * nd))

    out = pl.pallas_call(
        _decoder_kernel,
        out_shape=jax.ShapeDtypeStruct((B, HF, pout_last), jnp.float32),
        grid=(1,),                       # whole batch stacked onto the matmul M dim
        in_specs=in_specs,
        out_specs=pl.BlockSpec((B, HF, pout_last), lambda i: (i, 0, 0)),
        compiler_params=pltpu.CompilerParams(
            dimension_semantics=("parallel",),
            vmem_limit_bytes=32 * 1024 * 1024),   # conservative; fits v7x's 64 MiB
    )(a0, *ops)

    # Lane-dense (B, H, W*C) -> NHWC -> NCHW (drop any lane padding of the tail).
    out = out[..., :WF * c_out].reshape(B, HF, WF, c_out)
    return jnp.transpose(out, (0, 3, 1, 2))


def init_decoder_params(key, channels):
    """Deterministic synthetic weights for the 4 decoder layers."""
    params = []
    for i in range(4):
        cin, cout = channels[i], channels[i + 1]
        key, k_w, k_b = jax.random.split(key, 3)
        fan_in = 3 * 3 * cin
        w = jax.random.normal(k_w, (3, 3, cin, cout), jnp.float32) / math.sqrt(fan_in)
        b = 0.01 * jax.random.normal(k_b, (cout,), jnp.float32)
        params.append((w, b))
    return params


def decoder_reference(x_nchw, params):
    """Pure-JAX f32 reference for correctness checking."""
    x = jnp.transpose(x_nchw, (0, 2, 3, 1))
    for w, b in params:
        x = jnp.repeat(jnp.repeat(x, 2, axis=1), 2, axis=2)
        y = jax.lax.conv_general_dilated(
            x, w, window_strides=(1, 1), padding="SAME",
            dimension_numbers=("NHWC", "HWIO", "NHWC"),
            precision=jax.lax.Precision.HIGHEST,
        )
        x = jnp.maximum(y + b, 0.0)
    return jnp.transpose(x, (0, 3, 1, 2))


if __name__ == "__main__":
    key = jax.random.PRNGKey(0)
    k_x, k_p = jax.random.split(key)

    # Small FCRN-decoder-like config: channels halve, spatial doubles per layer.
    B, C0, H0, W0 = 2, 32, 4, 4
    channels = [32, 16, 8, 4, 4]

    x = jax.random.normal(k_x, (B, C0, H0, W0), jnp.float32)
    params = init_decoder_params(k_p, channels)

    # One-time weight preprocessing, hoisted out of the jitted forward.
    ops = prepare_decoder_ops(params, W0)

    out = jax.block_until_ready(decoder_forward(x, ops, c_out=channels[-1]))
    assert out.shape == (B, channels[-1], H0 * 16, W0 * 16), out.shape

    ref = jax.block_until_ready(decoder_reference(x, params))
    # bf16 MXU operands (with f32 accumulation) => looser tolerance than pure f32.
    max_err = float(jnp.max(jnp.abs(out - ref)))
    assert jnp.allclose(out, ref, rtol=2e-2, atol=2e-2), f"max abs err {max_err}"

    print("KERNEL_OK")
</pallas_src>

<mosaic_0001>
module attributes {stable_mosaic.version = 11 : i64} {
  func.func @_decoder_kernel(%arg0: i32, %arg1: memref<2x6x256xbf16, #tpu.memory_space<vmem>>, %arg2: memref<768x512xbf16, #tpu.memory_space<vmem>>, %arg3: memref<1x512xf32, #tpu.memory_space<vmem>>, %arg4: memref<768x512xbf16, #tpu.memory_space<vmem>>, %arg5: memref<1x512xf32, #tpu.memory_space<vmem>>, %arg6: memref<768x512xbf16, #tpu.memory_space<vmem>>, %arg7: memref<1x512xf32, #tpu.memory_space<vmem>>, %arg8: memref<768x512xbf16, #tpu.memory_space<vmem>>, %arg9: memref<1x512xf32, #tpu.memory_space<vmem>>, %arg10: memref<2x64x256xf32, #tpu.memory_space<vmem>>) attributes {dimension_semantics = [#tpu.dimension_semantics<parallel>], iteration_bounds = array<i64: 1>, scalar_prefetch = 0 : i64, scratch_operands = 0 : i64, tpu.core_type = #tpu.core_type<tc>, window_params = [{transform_indices = @transform_0, window_bounds = array<i64: 2, 6, 256>}, {pipeline_mode = #tpu.pipeline_mode<synchronous>, transform_indices = @transform_1, window_bounds = array<i64: 768, 512>}, {pipeline_mode = #tpu.pipeline_mode<synchronous>, transform_indices = @transform_2, window_bounds = array<i64: 1, 512>}, {pipeline_mode = #tpu.pipeline_mode<synchronous>, transform_indices = @transform_3, window_bounds = array<i64: 768, 512>}, {pipeline_mode = #tpu.pipeline_mode<synchronous>, transform_indices = @transform_4, window_bounds = array<i64: 1, 512>}, {pipeline_mode = #tpu.pipeline_mode<synchronous>, transform_indices = @transform_5, window_bounds = array<i64: 768, 512>}, {pipeline_mode = #tpu.pipeline_mode<synchronous>, transform_indices = @transform_6, window_bounds = array<i64: 1, 512>}, {pipeline_mode = #tpu.pipeline_mode<synchronous>, transform_indices = @transform_7, window_bounds = array<i64: 768, 512>}, {pipeline_mode = #tpu.pipeline_mode<synchronous>, transform_indices = @transform_8, window_bounds = array<i64: 1, 512>}, {transform_indices = @transform_9, window_bounds = array<i64: 2, 64, 256>}]} {
    %c0 = arith.constant 0 : index
    %c0_0 = arith.constant 0 : index
    %c0_1 = arith.constant 0 : index
    %0 = vector.load %arg1[%c0, %c0_0, %c0_1] : memref<2x6x256xbf16, #tpu.memory_space<vmem>>, vector<2x6x256xbf16>
    %1 = vector.extract_strided_slice %0 {offsets = [0, 0, 0], sizes = [2, 4, 256], strides = [1, 1, 1]} : vector<2x6x256xbf16> to vector<2x4x256xbf16>
    %2 = vector.extract_strided_slice %0 {offsets = [0, 1, 0], sizes = [2, 4, 256], strides = [1, 1, 1]} : vector<2x6x256xbf16> to vector<2x4x256xbf16>
    %3 = vector.extract_strided_slice %0 {offsets = [0, 2, 0], sizes = [2, 4, 256], strides = [1, 1, 1]} : vector<2x6x256xbf16> to vector<2x4x256xbf16>
    %4 = tpu.concatenate %1, %2, %3 in 2 : vector<2x4x256xbf16>, vector<2x4x256xbf16>, vector<2x4x256xbf16> -> vector<2x4x768xbf16>
    %5 = vector.shape_cast %4 : vector<2x4x768xbf16> to vector<8x768xbf16>
    %c0_2 = arith.constant 0 : index
    %c0_3 = arith.constant 0 : index
    %6 = vector.load %arg2[%c0_2, %c0_3] : memref<768x512xbf16, #tpu.memory_space<vmem>>, vector<768x512xbf16>
    %cst = arith.constant dense<0.000000e+00> : vector<8x512xf32>
    %7 = tpu.matmul %5, %6, %cst {dimension_numbers = #tpu.dot_dimension_numbers<[1], [0], [0], [1], [0, 0, 1, 1], [], []>} : vector<8x768xbf16>, vector<768x512xbf16>, vector<8x512xf32> -> vector<8x512xf32>
    %c0_4 = arith.constant 0 : index
    %c0_5 = arith.constant 0 : index
    %8 = vector.load %arg3[%c0_4, %c0_5] : memref<1x512xf32, #tpu.memory_space<vmem>>, vector<1x512xf32>
    %9 = vector.broadcast %8 : vector<1x512xf32> to vector<8x512xf32>
    %10 = arith.addf %7, %9 : vector<8x512xf32>
    %cst_6 = arith.constant 0.000000e+00 : f32
    %11 = vector.broadcast %cst_6 : f32 to vector<8x512xf32>
    %12 = arith.maximumf %10, %11 : vector<8x512xf32>
    %13 = vector.extract_strided_slice %12 {offsets = [0, 0], sizes = [8, 256], strides = [1, 1]} : vector<8x512xf32> to vector<8x256xf32>
    %14 = vector.extract_strided_slice %12 {offsets = [0, 256], sizes = [8, 256], strides = [1, 1]} : vector<8x512xf32> to vector<8x256xf32>
    %15 = vector.shape_cast %13 : vector<8x256xf32> to vector<8x1x256xf32>
    %16 = vector.shape_cast %14 : vector<8x256xf32> to vector<8x1x256xf32>
    %17 = tpu.concatenate %15, %16 in 1 : vector<8x1x256xf32>, vector<8x1x256xf32> -> vector<8x2x256xf32>
    %18 = vector.shape_cast %17 : vector<8x2x256xf32> to vector<2x8x256xf32>
    %cst_7 = arith.constant 0.000000e+00 : f32
    %19 = vector.broadcast %cst_7 : f32 to vector<2x1x256xf32>
    %20 = tpu.concatenate %19, %18, %19 in 1 : vector<2x1x256xf32>, vector<2x8x256xf32>, vector<2x1x256xf32> -> vector<2x10x256xf32>
    %21 = vector.extract_strided_slice %20 {offsets = [0, 0, 0], sizes = [2, 8, 256], strides = [1, 1, 1]} : vector<2x10x256xf32> to vector<2x8x256xf32>
    %22 = vector.extract_strided_slice %20 {offsets = [0, 1, 0], sizes = [2, 8, 256], strides = [1, 1, 1]} : vector<2x10x256xf32> to vector<2x8x256xf32>
    %23 = vector.extract_strided_slice %20 {offsets = [0, 2, 0], sizes = [2, 8, 256], strides = [1, 1, 1]} : vector<2x10x256xf32> to vector<2x8x256xf32>
    %24 = tpu.concatenate %21, %22, %23 in 2 : vector<2x8x256xf32>, vector<2x8x256xf32>, vector<2x8x256xf32> -> vector<2x8x768xf32>
    %25 = vector.shape_cast %24 : vector<2x8x768xf32> to vector<16x768xf32>
    %26 = arith.truncf %25 : vector<16x768xf32> to vector<16x768xbf16>
    %c0_8 = arith.constant 0 : index
    %c0_9 = arith.constant 0 : index
    %27 = vector.load %arg4[%c0_8, %c0_9] : memref<768x512xbf16, #tpu.memory_space<vmem>>, vector<768x512xbf16>
    %cst_10 = arith.constant dense<0.000000e+00> : vector<16x512xf32>
    %28 = tpu.matmul %26, %27, %cst_10 {dimension_numbers = #tpu.dot_dimension_numbers<[1], [0], [0], [1], [0, 0, 1, 1], [], []>} : vector<16x768xbf16>, vector<768x512xbf16>, vector<16x512xf32> -> vector<16x512xf32>
    %c0_11 = arith.constant 0 : index
    %c0_12 = arith.constant 0 : index
    %29 = vector.load %arg5[%c0_11, %c0_12] : memref<1x512xf32, #tpu.memory_space<vmem>>, vector<1x512xf32>
    %30 = vector.broadcast %29 : vector<1x512xf32> to vector<16x512xf32>
    %31 = arith.addf %28, %30 : vector<16x512xf32>
    %cst_13 = arith.constant 0.000000e+00 : f32
    %32 = vector.broadcast %cst_13 : f32 to vector<16x512xf32>
    %33 = arith.maximumf %31, %32 : vector<16x512xf32>
    %34 = vector.extract_strided_slice %33 {offsets = [0, 0], sizes = [16, 256], strides = [1, 1]} : vector<16x512xf32> to vector<16x256xf32>
    %35 = vector.extract_strided_slice %33 {offsets = [0, 256], sizes = [16, 256], strides = [1, 1]} : vector<16x512xf32> to vector<16x256xf32>
    %36 = vector.shape_cast %34 : vector<16x256xf32> to vector<16x1x256xf32>
    %37 = vector.shape_cast %35 : vector<16x256xf32> to vector<16x1x256xf32>
    %38 = tpu.concatenate %36, %37 in 1 : vector<16x1x256xf32>, vector<16x1x256xf32> -> vector<16x2x256xf32>
    %39 = vector.shape_cast %38 : vector<16x2x256xf32> to vector<2x16x256xf32>
    %cst_14 = arith.constant 0.000000e+00 : f32
    %40 = vector.broadcast %cst_14 : f32 to vector<2x1x256xf32>
    %41 = tpu.concatenate %40, %39, %40 in 1 : vector<2x1x256xf32>, vector<2x16x256xf32>, vector<2x1x256xf32> -> vector<2x18x256xf32>
    %42 = vector.extract_strided_slice %41 {offsets = [0, 0, 0], sizes = [2, 16, 256], strides = [1, 1, 1]} : vector<2x18x256xf32> to vector<2x16x256xf32>
    %43 = vector.extract_strided_slice %41 {offsets = [0, 1, 0], sizes = [2, 16, 256], strides = [1, 1, 1]} : vector<2x18x256xf32> to vector<2x16x256xf32>
    %44 = vector.extract_strided_slice %41 {offsets = [0, 2, 0], sizes = [2, 16, 256], strides = [1, 1, 1]} : vector<2x18x256xf32> to vector<2x16x256xf32>
    %45 = tpu.concatenate %42, %43, %44 in 2 : vector<2x16x256xf32>, vector<2x16x256xf32>, vector<2x16x256xf32> -> vector<2x16x768xf32>
    %46 = vector.shape_cast %45 : vector<2x16x768xf32> to vector<32x768xf32>
    %47 = arith.truncf %46 : vector<32x768xf32> to vector<32x768xbf16>
    %c0_15 = arith.constant 0 : index
    %c0_16 = arith.constant 0 : index
    %48 = vector.load %arg6[%c0_15, %c0_16] : memref<768x512xbf16, #tpu.memory_space<vmem>>, vector<768x512xbf16>
    %cst_17 = arith.constant dense<0.000000e+00> : vector<32x512xf32>
    %49 = tpu.matmul %47, %48, %cst_17 {dimension_numbers = #tpu.dot_dimension_numbers<[1], [0], [0], [1], [0, 0, 1, 1], [], []>} : vector<32x768xbf16>, vector<768x512xbf16>, vector<32x512xf32> -> vector<32x512xf32>
    %c0_18 = arith.constant 0 : index
    %c0_19 = arith.constant 0 : index
    %50 = vector.load %arg7[%c0_18, %c0_19] : memref<1x512xf32, #tpu.memory_space<vmem>>, vector<1x512xf32>
    %51 = vector.broadcast %50 : vector<1x512xf32> to vector<32x512xf32>
    %52 = arith.addf %49, %51 : vector<32x512xf32>
    %cst_20 = arith.constant 0.000000e+00 : f32
    %53 = vector.broadcast %cst_20 : f32 to vector<32x512xf32>
    %54 = arith.maximumf %52, %53 : vector<32x512xf32>
    %55 = vector.extract_strided_slice %54 {offsets = [0, 0], sizes = [32, 256], strides = [1, 1]} : vector<32x512xf32> to vector<32x256xf32>
    %56 = vector.extract_strided_slice %54 {offsets = [0, 256], sizes = [32, 256], strides = [1, 1]} : vector<32x512xf32> to vector<32x256xf32>
    %57 = vector.shape_cast %55 : vector<32x256xf32> to vector<32x1x256xf32>
    %58 = vector.shape_cast %56 : vector<32x256xf32> to vector<32x1x256xf32>
    %59 = tpu.concatenate %57, %58 in 1 : vector<32x1x256xf32>, vector<32x1x256xf32> -> vector<32x2x256xf32>
    %60 = vector.shape_cast %59 : vector<32x2x256xf32> to vector<2x32x256xf32>
    %cst_21 = arith.constant 0.000000e+00 : f32
    %61 = vector.broadcast %cst_21 : f32 to vector<2x1x256xf32>
    %62 = tpu.concatenate %61, %60, %61 in 1 : vector<2x1x256xf32>, vector<2x32x256xf32>, vector<2x1x256xf32> -> vector<2x34x256xf32>
    %63 = vector.extract_strided_slice %62 {offsets = [0, 0, 0], sizes = [2, 32, 256], strides = [1, 1, 1]} : vector<2x34x256xf32> to vector<2x32x256xf32>
    %64 = vector.extract_strided_slice %62 {offsets = [0, 1, 0], sizes = [2, 32, 256], strides = [1, 1, 1]} : vector<2x34x256xf32> to vector<2x32x256xf32>
    %65 = vector.extract_strided_slice %62 {offsets = [0, 2, 0], sizes = [2, 32, 256], strides = [1, 1, 1]} : vector<2x34x256xf32> to vector<2x32x256xf32>
    %66 = tpu.concatenate %63, %64, %65 in 2 : vector<2x32x256xf32>, vector<2x32x256xf32>, vector<2x32x256xf32> -> vector<2x32x768xf32>
    %67 = vector.shape_cast %66 : vector<2x32x768xf32> to vector<64x768xf32>
    %68 = arith.truncf %67 : vector<64x768xf32> to vector<64x768xbf16>
    %c0_22 = arith.constant 0 : index
    %c0_23 = arith.constant 0 : index
    %69 = vector.load %arg8[%c0_22, %c0_23] : memref<768x512xbf16, #tpu.memory_space<vmem>>, vector<768x512xbf16>
    %cst_24 = arith.constant dense<0.000000e+00> : vector<64x512xf32>
    %70 = tpu.matmul %68, %69, %cst_24 {dimension_numbers = #tpu.dot_dimension_numbers<[1], [0], [0], [1], [0, 0, 1, 1], [], []>} : vector<64x768xbf16>, vector<768x512xbf16>, vector<64x512xf32> -> vector<64x512xf32>
    %c0_25 = arith.constant 0 : index
    %c0_26 = arith.constant 0 : index
    %71 = vector.load %arg9[%c0_25, %c0_26] : memref<1x512xf32, #tpu.memory_space<vmem>>, vector<1x512xf32>
    %72 = vector.broadcast %71 : vector<1x512xf32> to vector<64x512xf32>
    %73 = arith.addf %70, %72 : vector<64x512xf32>
    %cst_27 = arith.constant 0.000000e+00 : f32
    %74 = vector.broadcast %cst_27 : f32 to vector<64x512xf32>
    %75 = arith.maximumf %73, %74 : vector<64x512xf32>
    %76 = vector.extract_strided_slice %75 {offsets = [0, 0], sizes = [64, 256], strides = [1, 1]} : vector<64x512xf32> to vector<64x256xf32>
    %77 = vector.extract_strided_slice %75 {offsets = [0, 256], sizes = [64, 256], strides = [1, 1]} : vector<64x512xf32> to vector<64x256xf32>
    %78 = vector.shape_cast %76 : vector<64x256xf32> to vector<64x1x256xf32>
    %79 = vector.shape_cast %77 : vector<64x256xf32> to vector<64x1x256xf32>
    %80 = tpu.concatenate %78, %79 in 1 : vector<64x1x256xf32>, vector<64x1x256xf32> -> vector<64x2x256xf32>
    %81 = vector.shape_cast %80 : vector<64x2x256xf32> to vector<2x64x256xf32>
    %c0_28 = arith.constant 0 : index
    %c0_29 = arith.constant 0 : index
    %c0_30 = arith.constant 0 : index
    %82 = vector.load %arg10[%c0_28, %c0_29, %c0_30] : memref<2x64x256xf32, #tpu.memory_space<vmem>>, vector<2x64x256xf32>
    tpu.vector_store %arg10[%c0_28, %c0_29, %c0_30], %81 {strides = array<i32>} : memref<2x64x256xf32, #tpu.memory_space<vmem>>, vector<2x64x256xf32>,
    return
  }
  func.func @transform_0(%arg0: i32) -> (i32, i32, i32) {
    %c0_i32 = arith.constant 0 : i32
    %c0_i32_0 = arith.constant 0 : i32
    %c0_i32_1 = arith.constant 0 : i32
    return %arg0, %c0_i32, %c0_i32_0 : i32, i32, i32
  }
  func.func @transform_1(%arg0: i32) -> (i32, i32) {
    %c0_i32 = arith.constant 0 : i32
    %c0_i32_0 = arith.constant 0 : i32
    %c0_i32_1 = arith.constant 0 : i32
    return %c0_i32, %c0_i32_0 : i32, i32
  }
  func.func @transform_2(%arg0: i32) -> (i32, i32) {
    %c0_i32 = arith.constant 0 : i32
    %c0_i32_0 = arith.constant 0 : i32
    %c0_i32_1 = arith.constant 0 : i32
    return %c0_i32, %c0_i32_0 : i32, i32
  }
  func.func @transform_3(%arg0: i32) -> (i32, i32) {
    %c0_i32 = arith.constant 0 : i32
    %c0_i32_0 = arith.constant 0 : i32
    %c0_i32_1 = arith.constant 0 : i32
    return %c0_i32, %c0_i32_0 : i32, i32
  }
  func.func @transform_4(%arg0: i32) -> (i32, i32) {
    %c0_i32 = arith.constant 0 : i32
    %c0_i32_0 = arith.constant 0 : i32
    %c0_i32_1 = arith.constant 0 : i32
    return %c0_i32, %c0_i32_0 : i32, i32
  }
  func.func @transform_5(%arg0: i32) -> (i32, i32) {
    %c0_i32 = arith.constant 0 : i32
    %c0_i32_0 = arith.constant 0 : i32
    %c0_i32_1 = arith.constant 0 : i32
    return %c0_i32, %c0_i32_0 : i32, i32
  }
  func.func @transform_6(%arg0: i32) -> (i32, i32) {
    %c0_i32 = arith.constant 0 : i32
    %c0_i32_0 = arith.constant 0 : i32
    %c0_i32_1 = arith.constant 0 : i32
    return %c0_i32, %c0_i32_0 : i32, i32
  }
  func.func @transform_7(%arg0: i32) -> (i32, i32) {
    %c0_i32 = arith.constant 0 : i32
    %c0_i32_0 = arith.constant 0 : i32
    %c0_i32_1 = arith.constant 0 : i32
    return %c0_i32, %c0_i32_0 : i32, i32
  }
  func.func @transform_8(%arg0: i32) -> (i32, i32) {
    %c0_i32 = arith.constant 0 : i32
    %c0_i32_0 = arith.constant 0 : i32
    %c0_i32_1 = arith.constant 0 : i32
    return %c0_i32, %c0_i32_0 : i32, i32
  }
  func.func @transform_9(%arg0: i32) -> (i32, i32, i32) {
    %c0_i32 = arith.constant 0 : i32
    %c0_i32_0 = arith.constant 0 : i32
    %c0_i32_1 = arith.constant 0 : i32
    return %arg0, %c0_i32, %c0_i32_0 : i32, i32, i32
  }
}

</mosaic_0001>

<bundles_post_ra>
// kernel: decoder_forward.1
= control target key start
LH: loop header
LB: loop body
LE: loop exit
PB: predicated region body
PF: predicated region fallthrough
CT: control target
= control target key end

     0   :  { %14 = vsyncpa [#allocation3], 0  ;;  %s17455_s0 = inlined_call_operand.vmem [shape: bf16[2,6,256], index: 0, kind: input, shape index: {}]   ;;  %s17456_s1 = inlined_call_operand.hbm [shape: bf16[768,512], index: 1, kind: input, shape index: {}]   ;;  %s17457_s2 = inlined_call_operand.vmem [shape: f32[1,512], index: 2, kind: input, shape index: {}]   ;;  %s17458_s3 = inlined_call_operand.hbm [shape: bf16[768,512], index: 3, kind: input, shape index: {}]   ;;  %s17459_s4 = inlined_call_operand.vmem [shape: f32[1,512], index: 4, kind: input, shape index: {}]   ;;  %s17460_s5 = inlined_call_operand.hbm [shape: bf16[768,512], index: 5, kind: input, shape index: {}]   ;;  %s17461_s6 = inlined_call_operand.vmem [shape: f32[1,512], index: 6, kind: input, shape index: {}]   ;;  %s17462_s7 = inlined_call_operand.hbm [shape: bf16[768,512], index: 7, kind: input, shape index: {}]   ;;  %s17463_s8 = inlined_call_operand.vmem [shape: f32[1,512], index: 8, kind: input, shape index: {}]   ;;  %s17464_s9 = inlined_call_operand.vmem [shape: f32[2,64,256], index: 9, kind: output, shape index: {}]  }
   0x1   :  { %15 = vsyncpa [#allocation5], 0 }
   0x2   :  { %16 = vsyncpa [#allocation8], 0  ;;  %s14911_s30 = smov [#allocation4]   ;;  %s14912_s11 = smov [#allocation2]  }
   0x3   :  { %s38_s10 = sshll.u32 %s14911_s30, 4  ;;  %s24_s12 = sshll.u32 %s14912_s11, 4  ;;  %s39_s10 = int_to_ptr.vmem [resolvable:$true] %s38_s10  ;;  %s14970_s12 = int_to_ptr.vmem [resolvable:$true] %s24_s12 }
   0x4   :  { %s14817_s15 = scalar_lea.hbm %s17458_s3, 24576 }
   0x5   :  { %p14818_p0 = scmp.ne.s32.totalorder %s17458_s3, %s14817_s15  ;;  %p14821_p1 = scmp.lt.u32.totalorder %s14817_s15, %s17458_s3 }
   0x7   :  { %p14823_p2 = pnand %p14821_p1, %p14818_p0 }
   0x9   :  { %14826 = shalt.err (!%p14823_p2)
}
   0xa   :  { %s14827_s20 = scalar_lea.vmem %s39_s10, 24576  ;;  %p14832_p4 = scmp.lt.s32.totalorder %s39_s10, %s39_s10 }
   0xb   :  { %p14828_p3 = scmp.ne.s32.totalorder %s39_s10, %s14827_s20  ;;  %p14833_p5 = scmp.lt.s32.totalorder %s14827_s20, %s14827_s20 }
   0xd   :  { %p14834_p6 = por %p14833_p5, %p14832_p4 }
   0xf   :  { %p14835_p7 = pnand %p14834_p6, %p14828_p3 }
  0x11   :  { %14838 = shalt.err (!%p14835_p7)
}
  0x12   :  { %s14913_s21 = smov 256   ;;  %s14914_s22 = smov 16  }
  0x13   :  { %44 = dma.hbm_to_vmem [thread:$0]  %s17458_s3, 24576, %s39_s10, [#allocation5], %s14913_s21, %s14913_s21, %s14914_s22  }
  0x14   :  { %s14839_s27 = scalar_lea.hbm %s17456_s1, 24576 }
  0x15   :  { %p14840_p8 = scmp.ne.s32.totalorder %s17456_s1, %s14839_s27  ;;  %p14843_p9 = scmp.lt.u32.totalorder %s14839_s27, %s17456_s1 }
  0x17   :  { %p14845_p10 = pnand %p14843_p9, %p14840_p8 }
  0x19   :  { %14848 = shalt.err (!%p14845_p10)
}
  0x1a   :  { %s14849_s13 = scalar_lea.vmem %s14970_s12, 24576  ;;  %p14854_p12 = scmp.lt.s32.totalorder %s14970_s12, %s14970_s12 }
  0x1b   :  { %p14850_p11 = scmp.ne.s32.totalorder %s14970_s12, %s14849_s13  ;;  %p14855_p13 = scmp.lt.s32.totalorder %s14849_s13, %s14849_s13 }
  0x1d   :  { %p14856_p0 = por %p14855_p13, %p14854_p12 }
  0x1f   :  { %p14857_p1 = pnand %p14856_p0, %p14850_p11 }
  0x21   :  { %14860 = shalt.err (!%p14857_p1)
}
  0x22   :  { %30 = dma.hbm_to_vmem [thread:$0]  %s17456_s1, 24576, %s14970_s12, [#allocation3], %s14913_s21, %s14913_s21, %s14914_s22  }
  0x23   :  { %s14915_s14 = smov [#allocation6]   ;;  %s14916_s16 = smov [#allocation7]  }
  0x24   :  { %s52_s15 = sshll.u32 %s14915_s14, 4  ;;  %s66_s17 = sshll.u32 %s14916_s16, 4  ;;  %s53_s15 = int_to_ptr.vmem [resolvable:$true] %s52_s15  ;;  %s15007_s17 = int_to_ptr.vmem [resolvable:$true] %s66_s17 }
  0x25   :  { %s14861_s20 = scalar_lea.hbm %s17460_s5, 24576 }
  0x26   :  { %p14862_p2 = scmp.ne.s32.totalorder %s17460_s5, %s14861_s20  ;;  %p14865_p3 = scmp.lt.u32.totalorder %s14861_s20, %s17460_s5 }
  0x28   :  { %p14867_p4 = pnand %p14865_p3, %p14862_p2 }
  0x2a   :  { %14870 = shalt.err (!%p14867_p4)
}
  0x2b   :  { %s14871_s1 = scalar_lea.vmem %s53_s15, 24576  ;;  %p14876_p6 = scmp.lt.s32.totalorder %s53_s15, %s53_s15 }
  0x2c   :  { %p14872_p5 = scmp.ne.s32.totalorder %s53_s15, %s14871_s1  ;;  %p14877_p7 = scmp.lt.s32.totalorder %s14871_s1, %s14871_s1 }
  0x2e   :  { %p14878_p8 = por %p14877_p7, %p14876_p6 }
  0x30   :  { %p14879_p9 = pnand %p14878_p8, %p14872_p5 }
  0x32   :  { %14882 = shalt.err (!%p14879_p9)
}
  0x33   :  { %58 = dma.hbm_to_vmem [thread:$0]  %s17460_s5, 24576, %s53_s15, [#allocation5], %s14913_s21, %s14913_s21, %s14914_s22  }
  0x34   :  { %s14883_s30 = scalar_lea.hbm %s17462_s7, 24576 }
  0x35   :  { %p14884_p10 = scmp.ne.s32.totalorder %s17462_s7, %s14883_s30  ;;  %p14887_p11 = scmp.lt.u32.totalorder %s14883_s30, %s17462_s7 }
  0x37   :  { %p14889_p12 = pnand %p14887_p11, %p14884_p10 }
  0x39   :  { %14892 = shalt.err (!%p14889_p12)
}
  0x3a   :  { %s14893_s14 = scalar_lea.vmem %s15007_s17, 24576  ;;  %p14898_p0 = scmp.lt.s32.totalorder %s15007_s17, %s15007_s17 }
  0x3b   :  { %p14894_p13 = scmp.ne.s32.totalorder %s15007_s17, %s14893_s14  ;;  %p14899_p1 = scmp.lt.s32.totalorder %s14893_s14, %s14893_s14 }
  0x3d   :  { %p14900_p2 = por %p14899_p1, %p14898_p0 }
  0x3f   :  { %p14901_p3 = pnand %p14900_p2, %p14894_p13 }
  0x41   :  { %14904 = shalt.err (!%p14901_p3)
}
  0x42   :  { %72 = dma.hbm_to_vmem [thread:$0]  %s17462_s7, 24576, %s15007_s17, [#allocation8], %s14913_s21, %s14913_s21, %s14914_s22  }
  0x43   :  { %14905 = dma.done.wait [#allocation3], 24576  }
  0x44   :  { %14906 = vsyncadd [#allocation3], 4294942720 }
  0x45   :  { %14907 = dma.done.wait [#allocation5], 49152  }
  0x46   :  { %14908 = vsyncadd [#allocation5], 4294918144 }
  0x47   :  { %14909 = dma.done.wait [#allocation8], 24576  }
  0x48   :  { %14910 = vsyncadd [#allocation8], 4294942720  ;;  %v13661_v0 = vld [vmem:[#allocation2 + $0x4] ss:$16 sps:$4 sm:$0xff]   ;;  %v13663_v1 = vld [vmem:[#allocation2 + $0xc] ss:$16 sps:$4 sm:$0xff]   ;;  %v136_v38 = vlaneseq }
  0x49   :  { %1388 = vmatprep.subr.bf16.mxu0 %v13661_v0  ;;  %v13665_v2 = vld [vmem:[#allocation2] ss:$16 sps:$4 sm:$0xff]   ;;  %v13666_v3 = vld [vmem:[#allocation2 + $0x8] ss:$16 sps:$4 sm:$0xff]   ;;  %1511 = vmatprep.subr.bf16.mxu1 %v13663_v1  ;;  %v13667_v4 = vld [vmem:[#allocation2 + $0x24] ss:$16 sps:$4 sm:$0xff]  }
  0x4a   :  { %1389 = vmatpush1.bf16.msra.mxu0 %v13665_v2  ;;  %1512 = vmatpush1.bf16.msra.mxu1 %v13666_v3  ;;  %v13669_v5 = vld [vmem:[#allocation2 + $0x2c] ss:$16 sps:$4 sm:$0xff]   ;;  %v13671_v6 = vld [vmem:[#allocation2 + $0x20] ss:$16 sps:$4 sm:$0xff]   ;;  %v13672_v7 = vld [vmem:[#allocation2 + $0x28] ss:$16 sps:$4 sm:$0xff]  }
  0x4b   :  { %1390 = vmatprep.subr.bf16.mxu0 %v13667_v4  ;;  %1513 = vmatprep.subr.bf16.mxu1 %v13669_v5  ;;  %v13673_v8 = vld [vmem:[#allocation2 + $0x44] ss:$16 sps:$4 sm:$0xff]   ;;  %v13675_v9 = vld [vmem:[#allocation2 + $0x4c] ss:$16 sps:$4 sm:$0xff]   ;;  %v13677_v10 = vld [vmem:[#allocation2 + $0x40] ss:$16 sps:$4 sm:$0xff]  }
  0x4c   :  { %v13678_v11 = vld [vmem:[#allocation2 + $0x48] ss:$16 sps:$4 sm:$0xff]   ;;  %v13679_v12 = vld [vmem:[#allocation2 + $0x64] ss:$16 sps:$4 sm:$0xff]   ;;  %v13681_v13 = vld [vmem:[#allocation2 + $0x6c] ss:$16 sps:$4 sm:$0xff]  }
  0x4d   :  { %v13683_v14 = vld [vmem:[#allocation2 + $0x60] ss:$16 sps:$4 sm:$0xff]   ;;  %v13684_v15 = vld [vmem:[#allocation2 + $0x68] ss:$16 sps:$4 sm:$0xff]   ;;  %v13685_v16 = vld [vmem:[#allocation2 + $0x84] ss:$16 sps:$4 sm:$0xff]  }
  0x4e   :  { %1391 = vmatpush1.bf16.msra.mxu0 %v13671_v6  ;;  %1514 = vmatpush1.bf16.msra.mxu1 %v13672_v7  ;;  %v13687_v17 = vld [vmem:[#allocation2 + $0x8c] ss:$16 sps:$4 sm:$0xff]   ;;  %v13689_v18 = vld [vmem:[#allocation2 + $0x80] ss:$16 sps:$4 sm:$0xff]   ;;  %v13690_v19 = vld [vmem:[#allocation2 + $0x88] ss:$16 sps:$4 sm:$0xff]  }
  0x4f   :  { %1392 = vmatprep.subr.bf16.mxu0 %v13673_v8  ;;  %1515 = vmatprep.subr.bf16.mxu1 %v13675_v9  ;;  %v13691_v20 = vld [vmem:[#allocation2 + $0xa4] ss:$16 sps:$4 sm:$0xff]   ;;  %v13693_v21 = vld [vmem:[#allocation2 + $0xac] ss:$16 sps:$4 sm:$0xff]   ;;  %v13695_v22 = vld [vmem:[#allocation2 + $0xa0] ss:$16 sps:$4 sm:$0xff]  }
  0x50   :  { %v13696_v23 = vld [vmem:[#allocation2 + $0xa8] ss:$16 sps:$4 sm:$0xff]   ;;  %v13697_v24 = vld [vmem:[#allocation2 + $0xc4] ss:$16 sps:$4 sm:$0xff]   ;;  %v13699_v25 = vld [vmem:[#allocation2 + $0xcc] ss:$16 sps:$4 sm:$0xff]  }
  0x51   :  { %v13701_v26 = vld [vmem:[#allocation2 + $0xc0] ss:$16 sps:$4 sm:$0xff]   ;;  %v13702_v27 = vld [vmem:[#allocation2 + $0xc8] ss:$16 sps:$4 sm:$0xff]   ;;  %v13703_v28 = vld [vmem:[#allocation2 + $0xe4] ss:$16 sps:$4 sm:$0xff]  }
  0x52   :  { %1393 = vmatpush1.bf16.msra.mxu0 %v13677_v10  ;;  %1516 = vmatpush1.bf16.msra.mxu1 %v13678_v11  ;;  %v13705_v29 = vld [vmem:[#allocation2 + $0xec] ss:$16 sps:$4 sm:$0xff]   ;;  %v13707_v30 = vld [vmem:[#allocation2 + $0xe0] ss:$16 sps:$4 sm:$0xff]   ;;  %v13708_v31 = vld [vmem:[#allocation2 + $0xe8] ss:$16 sps:$4 sm:$0xff]  }
  0x53   :  { %1394 = vmatprep.subr.bf16.mxu0 %v13679_v12  ;;  %1517 = vmatprep.subr.bf16.mxu1 %v13681_v13  ;;  %v13709_v32 = vld [vmem:[#allocation2 + $0x104] ss:$16 sps:$4 sm:$0xff]   ;;  %v13711_v33 = vld [vmem:[#allocation2 + $0x10c] ss:$16 sps:$4 sm:$0xff]   ;;  %v13713_v34 = vld [vmem:[#allocation2 + $0x100] ss:$16 sps:$4 sm:$0xff]  }
  0x54   :  { %v13714_v35 = vld [vmem:[#allocation2 + $0x108] ss:$16 sps:$4 sm:$0xff]   ;;  %v14917_v36 = vmov 1983009808   ;;  %v13715_v39 = vld [vmem:[#allocation2 + $0x124] ss:$16 sps:$4 sm:$0xff]  }
  0x55   :  { %v134_v37 = vunpack.c.l.s4 %v14917_v36  ;;  %v13717_v40 = vld [vmem:[#allocation2 + $0x12c] ss:$16 sps:$4 sm:$0xff]   ;;  %v13719_v41 = vld [vmem:[#allocation2 + $0x120] ss:$16 sps:$4 sm:$0xff]   ;;  %v15044_v43 = vshrl.u32 %v136_v38, 7  ;;  %vm1902_vm0 = vcmask 1040384  }
  0x56   :  { %1395 = vmatpush1.bf16.msra.mxu0 %v13683_v14  ;;  %1518 = vmatpush1.bf16.msra.mxu1 %v13684_v15  ;;  %v13720_v44 = vld [vmem:[#allocation2 + $0x128] ss:$16 sps:$4 sm:$0xff]   ;;  %v13721_v45 = vld [vmem:[#allocation2 + $0x144] ss:$16 sps:$4 sm:$0xff]   ;;  %v13723_v46 = vld [vmem:[#allocation2 + $0x14c] ss:$16 sps:$4 sm:$0xff]  }
  0x57   :  { %1396 = vmatprep.subr.bf16.mxu0 %v13685_v16  ;;  %1519 = vmatprep.subr.bf16.mxu1 %v13687_v17  ;;  %v135_v42 = vunpack.c.0.s8 %v134_v37  ;;  %v13725_v47 = vld [vmem:[#allocation2 + $0x140] ss:$16 sps:$4 sm:$0xff]   ;;  %v13726_v48 = vld [vmem:[#allocation2 + $0x148] ss:$16 sps:$4 sm:$0xff]   ;;  %v13727_v50 = vld [vmem:[#allocation2 + $0x164] ss:$16 sps:$4 sm:$0xff]  }
  0x58   :  { %v13729_v51 = vld [vmem:[#allocation2 + $0x16c] ss:$16 sps:$4 sm:$0xff]   ;;  %v87_v52 = vld [vmem:[%s17455_s0] sm:$0x77]  ;;  %v13732_v58 = vld [vmem:[#allocation2 + $0x168] ss:$16 sps:$4 sm:$0xff]  }
  0x59   :  { %v15047_v49 = vsub.s32 %v135_v42, %v15044_v43  ;;  %v88_v53 = vld [vmem:[%s17455_s0 + $0x8] sm:$0x77]  ;;  %v12606_v54 = vcombine.low %v87_v52, %v87_v52  ;;  %v12607_v55 = vcombine.high %v87_v52, %v87_v52  ;;  %v13731_v57 = vld [vmem:[#allocation2 + $0x160] ss:$16 sps:$4 sm:$0xff]   ;;  %v13733_v60 = vld [vmem:[#allocation2 + $0x184] ss:$16 sps:$4 sm:$0xff]  }
  0x5a   :  { %1397 = vmatpush1.bf16.msra.mxu0 %v13689_v18  ;;  %1520 = vmatpush1.bf16.msra.mxu1 %v13690_v19  ;;  %v13735_v61 = vld [vmem:[#allocation2 + $0x18c] ss:$16 sps:$4 sm:$0xff]   ;;  %v12608_v62 = vcombine.low %v88_v53, %v88_v53  ;;  %v12609_v2 = vcombine.high %v88_v53, %v88_v53  ;;  %v13737_v5 = vld [vmem:[#allocation2 + $0x180] ss:$16 sps:$4 sm:$0xff]   ;;  %v13738_v6 = vld [vmem:[#allocation2 + $0x188] ss:$16 sps:$4 sm:$0xff]  }
  0x5b   :  { %1398 = vmatprep.subr.bf16.mxu0 %v13691_v20  ;;  %1521 = vmatprep.subr.bf16.mxu1 %v13693_v21  ;;  %v139_v56 = vrot.slane %v87_v52, %v15047_v49  ;;  %v164_v59 = vrot.slane %v88_v53, %v15047_v49  ;;  %v100_v0 = vshrl.u32 %v12606_v54, 16  ;;  %v102_v1 = vshll.u32 %v12606_v54, 16  ;;  %v13739_v9 = vld [vmem:[#allocation2 + $0x1a4] ss:$16 sps:$4 sm:$0xff]   ;;  %v13741_v10 = vld [vmem:[#allocation2 + $0x1ac] ss:$16 sps:$4 sm:$0xff]   ;;  %vm15180_vm1 = vmneg %vm1902_vm0 }
  0x5c   :  { %v107_v3 = vshrl.u32 %v12607_v55, 16  ;;  %v109_v4 = vshll.u32 %v12607_v55, 16  ;;  %v114_v14 = vshrl.u32 %v12608_v62, 16  ;;  %v116_v15 = vshll.u32 %v12608_v62, 16  ;;  %v13743_v19 = vld [vmem:[#allocation2 + $0x1a0] ss:$16 sps:$4 sm:$0xff]   ;;  %vm15187_vm2 = vmpackc.low %vm15180_vm1, %vm15180_vm1 }
  0x5d   :  { %v12610_v63 = vcombine.low %v139_v56, %v164_v59  ;;  %v104_v8 = vrot.slane %v102_v1, 1  ;;  %v121_v17 = vshrl.u32 %v12609_v2, 16  ;;  %v123_v18 = vshll.u32 %v12609_v2, 16  ;;  %v13744_v20 = vld [vmem:[#allocation2 + $0x1a8] ss:$16 sps:$4 sm:$0xff]  }
  0x5e   :  { %1399 = vmatpush1.bf16.msra.mxu0 %v13695_v22  ;;  %1522 = vmatpush1.bf16.msra.mxu1 %v13696_v23  ;;  %v111_v11 = vrot.slane %v109_v4, 1  ;;  %v118_v21 = vrot.slane %v116_v15, 1  ;;  %v13745_v22 = vld [vmem:[#allocation2 + $0x1c4] ss:$16 sps:$4 sm:$0xff]   ;;  %v13747_v23 = vld [vmem:[#allocation2 + $0x1cc] ss:$16 sps:$4 sm:$0xff]  }
  0x5f   :  { %1400 = vmatprep.subr.bf16.mxu0 %v13697_v24  ;;  %1523 = vmatprep.subr.bf16.mxu1 %v13699_v25  ;;  %v15058_v7 = vrot.slane %v12610_v63, %v15047_v49  ;;  %v105_v13 = vor.u32 %v104_v8, %v100_v0  ;;  %v125_v24 = vrot.slane %v123_v18, 1  ;;  %v13753_v36 = vld [vmem:[#allocation2 + $0x1ec] ss:$16 sps:$4 sm:$0xff]   ;;  %v13761_v52 = vld [vmem:[#allocation2 + $0x200] ss:$16 sps:$4 sm:$0xff]   ;;  %vm2059_vm3 = vcmask 1046528  }
  0x60   :  { %v112_v16 = vor.u32 %v111_v11, %v107_v3  ;;  %v13764_v53 = vld [vmem:[#allocation2 + $0x208] ss:$16 sps:$4 sm:$0xff]   ;;  %v13775_v59 = vld [vmem:[#allocation2 + $0x244] ss:$16 sps:$4 sm:$0xff]   ;;  %v13784_v0 = vld [vmem:[#allocation2 + $0x26c] ss:$16 sps:$4 sm:$0xff]  }
  0x61   :  { %v411_v12 = vcombine.high %v15058_v7, %v15058_v7  ;;  %v13781_v63 = vld [vmem:[#allocation2 + $0x264] ss:$16 sps:$4 sm:$0xff]   ;;  %v13779_v1 = vld [vmem:[#allocation2 + $0x260] ss:$16 sps:$4 sm:$0xff]   ;;  %v13790_v4 = vld [vmem:[#allocation2 + $0x28c] ss:$16 sps:$4 sm:$0xff]  }
  0x62   :  { %1401 = vmatpush1.bf16.msra.mxu0 %v13701_v26  ;;  %1524 = vmatpush1.bf16.msra.mxu1 %v13702_v27  ;;  %v132_v25 = vcombine.low %v105_v13, %v112_v16  ;;  %v119_v26 = vor.u32 %v118_v21, %v114_v14  ;;  %v127_v27 = vrot.slane %v12606_v54, 1  ;;  %v13769_v54 = vld [vmem:[#allocation2 + $0x224] ss:$16 sps:$4 sm:$0xff]   ;;  %v13796_v8 = vld [vmem:[#allocation2 + $0x2ac] ss:$16 sps:$4 sm:$0xff]   ;;  %vm2076_vm4 = vcmask 1045504  }
  0x63   :  { %1402 = vmatprep.subr.bf16.mxu0 %v13703_v28  ;;  %1525 = vmatprep.subr.bf16.mxu1 %v13705_v29  ;;  %v128_v28 = vrot.slane %v12607_v55, 1  ;;  %v126_v29 = vor.u32 %v125_v24, %v121_v17  ;;  %v13772_v55 = vld [vmem:[#allocation2 + $0x22c] ss:$16 sps:$4 sm:$0xff]   ;;  %v13787_v3 = vld [vmem:[#allocation2 + $0x284] ss:$16 sps:$4 sm:$0xff]   ;;  %vm14919_vm5 = vmmov 1  }
  0x64   :  { %1420 = vmatprep.mubr.bf16.mxu0 %v411_v12  ;;  %1543 = vmatprep.mubr.bf16.mxu1 %v411_v12  ;;  %v146_v37 = vrot.slane %v132_v25, %v15047_v49  ;;  %v13799_v11 = vld [vmem:[#allocation2 + $0x2c4] ss:$16 sps:$4 sm:$0xff]   ;;  %v13802_v12 = vld [vmem:[#allocation2 + $0x2cc] ss:$16 sps:$4 sm:$0xff]   ;;  %v13797_v13 = vld [vmem:[#allocation2 + $0x2c0] ss:$16 sps:$4 sm:$0xff]  }
  0x65   :  { %v157_v38 = vcombine.low %v119_v26, %v126_v29  ;;  %v13800_v14 = vld [vmem:[#allocation2 + $0x2c8] ss:$16 sps:$4 sm:$0xff]   ;;  %v13805_v15 = vld [vmem:[#allocation2 + $0x2e4] ss:$16 sps:$4 sm:$0xff]   ;;  %v13808_v16 = vld [vmem:[#allocation2 + $0x2ec] ss:$16 sps:$4 sm:$0xff]  }
  0x66   :  { %1403 = vmatpush1.bf16.msra.mxu0 %v13707_v30  ;;  %1526 = vmatpush1.bf16.msra.mxu1 %v13708_v31  ;;  %v129_v30 = vrot.slane %v12608_v62, 1  ;;  %v130_v31 = vrot.slane %v12609_v2, 1  ;;  %v13776_v62 = vld [vmem:[#allocation2 + $0x248] ss:$16 sps:$4 sm:$0xff]   ;;  %v13803_v17 = vld [vmem:[#allocation2 + $0x2e0] ss:$16 sps:$4 sm:$0xff]   ;;  %vm15440_vm6 = vmpackc.low %vm14919_vm5, %vm15180_vm1 }
  0x67   :  { %1404 = vmatprep.subr.bf16.mxu0 %v13709_v32  ;;  %1527 = vmatprep.subr.bf16.mxu1 %v13711_v33  ;;  %v13749_v32 = vld [vmem:[#allocation2 + $0x1c0] ss:$16 sps:$4 sm:$0xff]   ;;  %v13750_v33 = vld [vmem:[#allocation2 + $0x1c8] ss:$16 sps:$4 sm:$0xff]   ;;  %v13820_v24 = vld [vmem:[#allocation2 + $0x32c] ss:$16 sps:$4 sm:$0xff]  }
  0x68   :  { %v13782_v2 = vld [vmem:[#allocation2 + $0x268] ss:$16 sps:$4 sm:$0xff]   ;;  %v13809_v21 = vld [vmem:[#allocation2 + $0x300] ss:$16 sps:$4 sm:$0xff]  }
  0x69   :  { %v13806_v18 = vld [vmem:[#allocation2 + $0x2e8] ss:$16 sps:$4 sm:$0xff]   ;;  %v13815_v25 = vld [vmem:[#allocation2 + $0x320] ss:$16 sps:$4 sm:$0xff]  }
  0x6a   :  { %1405 = vmatpush1.bf16.msra.mxu0 %v13713_v34  ;;  %1528 = vmatpush1.bf16.msra.mxu1 %v13714_v35  ;;  %v148_v34 = vcombine.low %v127_v27, %v128_v28  ;;  %v13751_v35 = vld [vmem:[#allocation2 + $0x1e4] ss:$16 sps:$4 sm:$0xff]   ;;  %v13818_v26 = vld [vmem:[#allocation2 + $0x328] ss:$16 sps:$4 sm:$0xff]   ;;  %v13826_v28 = vld [vmem:[#allocation2 + $0x34c] ss:$16 sps:$4 sm:$0xff]  }
  0x6b   :  { %1406 = vmatprep.subr.bf16.mxu0 %v13715_v39  ;;  %1529 = vmatprep.subr.bf16.mxu1 %v13717_v40  ;;  %v173_v39 = vcombine.low %v129_v30, %v130_v31  ;;  %v13823_v27 = vld [vmem:[#allocation2 + $0x344] ss:$16 sps:$4 sm:$0xff]   ;;  %v13821_v29 = vld [vmem:[#allocation2 + $0x340] ss:$16 sps:$4 sm:$0xff]   ;;  %v13824_v30 = vld [vmem:[#allocation2 + $0x348] ss:$16 sps:$4 sm:$0xff]  }
  0x6c   :  { %v155_v40 = vrot.slane %v148_v34, %v15047_v49  ;;  %v13829_v31 = vld [vmem:[#allocation2 + $0x364] ss:$16 sps:$4 sm:$0xff]   ;;  %v13830_v34 = vld [vmem:[#allocation2 + $0x368] ss:$16 sps:$4 sm:$0xff]  }
  0x6d   :  { %v180_v42 = vrot.slane %v173_v39, %v15047_v49  ;;  %v13841_v39 = vld [vmem:[#allocation2 + $0x3a4] ss:$16 sps:$4 sm:$0xff]  }
  0x6e   :  { %1407 = vmatpush1.bf16.msra.mxu0 %v13719_v41  ;;  %1530 = vmatpush1.bf16.msra.mxu1 %v13720_v44  ;;  %v171_v41 = vrot.slane %v157_v38, %v15047_v49  ;;  %v13755_v44 = vld [vmem:[#allocation2 + $0x1e0] ss:$16 sps:$4 sm:$0xff]   ;;  %v13836_v38 = vld [vmem:[#allocation2 + $0x388] ss:$16 sps:$4 sm:$0xff]  }
  0x6f   :  { %1408 = vmatprep.subr.bf16.mxu0 %v13721_v45  ;;  %1531 = vmatprep.subr.bf16.mxu1 %v13723_v46  ;;  %v13756_v45 = vld [vmem:[#allocation2 + $0x1e8] ss:$16 sps:$4 sm:$0xff]   ;;  %v13763_v46 = vld [vmem:[#allocation2 + $0x204] ss:$16 sps:$4 sm:$0xff]  }
  0x72   :  { %1409 = vmatpush1.bf16.msra.mxu0 %v13725_v47  ;;  %1532 = vmatpush1.bf16.msra.mxu1 %v13726_v48  ;;  %v13766_v47 = vld [vmem:[#allocation2 + $0x20c] ss:$16 sps:$4 sm:$0xff]   ;;  %v12611_v48 = vcombine.low %v146_v37, %v171_v41  ;;  %v13833_v37 = vld [vmem:[#allocation2 + $0x380] ss:$16 sps:$4 sm:$0xff]  }
  0x73   :  { %1410 = vmatprep.subr.bf16.mxu0 %v13727_v50  ;;  %1533 = vmatprep.subr.bf16.mxu1 %v13729_v51  ;;  %v15066_v50 = vcombine.low %v155_v40, %v180_v42  ;;  %v13844_v40 = vld [vmem:[#allocation2 + $0x3ac] ss:$16 sps:$4 sm:$0xff]   ;;  %v13839_v41 = vld [vmem:[#allocation2 + $0x3a0] ss:$16 sps:$4 sm:$0xff]   ;;  %v13842_v42 = vld [vmem:[#allocation2 + $0x3a8] ss:$16 sps:$4 sm:$0xff]  }
  0x74   :  { %v15069_v51 = vrot.slane %v12611_v48, %v15047_v49  ;;  %v13853_v48 = vld [vmem:[#allocation2 + $0x3e4] ss:$16 sps:$4 sm:$0xff]  }
  0x76   :  { %1411 = vmatpush1.bf16.msra.mxu0 %v13731_v57  ;;  %1534 = vmatpush1.bf16.msra.mxu1 %v13732_v58  ;;  %v412_v56 = vcombine.high %v15069_v51, %v15069_v51  ;;  %v13767_v57 = vld [vmem:[#allocation2 + $0x220] ss:$16 sps:$4 sm:$0xff]   ;;  %v13770_v58 = vld [vmem:[#allocation2 + $0x228] ss:$16 sps:$4 sm:$0xff]  }
  0x77   :  { %1412 = vmatprep.subr.bf16.mxu0 %v13733_v60  ;;  %1535 = vmatprep.subr.bf16.mxu1 %v13735_v61  ;;  %v13778_v60 = vld [vmem:[#allocation2 + $0x24c] ss:$16 sps:$4 sm:$0xff]   ;;  %v13773_v61 = vld [vmem:[#allocation2 + $0x240] ss:$16 sps:$4 sm:$0xff]  }
  0x7a   :  { %1413 = vmatpush1.bf16.msra.mxu0 %v13737_v5  ;;  %1536 = vmatpush1.bf16.msra.mxu1 %v13738_v6  ;;  %v13785_v5 = vld [vmem:[#allocation2 + $0x280] ss:$16 sps:$4 sm:$0xff]   ;;  %v13788_v6 = vld [vmem:[#allocation2 + $0x288] ss:$16 sps:$4 sm:$0xff]  }
  0x7b   :  { %1414 = vmatprep.subr.bf16.mxu0 %v13739_v9  ;;  %1537 = vmatprep.subr.bf16.mxu1 %v13741_v10  ;;  %v13791_v9 = vld [vmem:[#allocation2 + $0x2a0] ss:$16 sps:$4 sm:$0xff]   ;;  %v13794_v10 = vld [vmem:[#allocation2 + $0x2a8] ss:$16 sps:$4 sm:$0xff]  }
  0x7e   :  { %1415 = vmatpush1.bf16.msra.mxu0 %v13743_v19  ;;  %1538 = vmatpush1.bf16.msra.mxu1 %v13744_v20  ;;  %v13811_v19 = vld [vmem:[#allocation2 + $0x304] ss:$16 sps:$4 sm:$0xff]   ;;  %v13814_v20 = vld [vmem:[#allocation2 + $0x30c] ss:$16 sps:$4 sm:$0xff]  }
  0x7f   :  { %1416 = vmatprep.subr.bf16.mxu0 %v13745_v22  ;;  %1539 = vmatprep.subr.bf16.mxu1 %v13747_v23  ;;  %v13812_v22 = vld [vmem:[#allocation2 + $0x308] ss:$16 sps:$4 sm:$0xff]   ;;  %v13817_v23 = vld [vmem:[#allocation2 + $0x324] ss:$16 sps:$4 sm:$0xff]  }
  0x82   :  { %1417 = vmatpush1.bf16.msra.mxu0 %v13749_v32  ;;  %1540 = vmatpush1.bf16.msra.mxu1 %v13750_v33  ;;  %v13832_v32 = vld [vmem:[#allocation2 + $0x36c] ss:$16 sps:$4 sm:$0xff]   ;;  %v13827_v33 = vld [vmem:[#allocation2 + $0x360] ss:$16 sps:$4 sm:$0xff]  }
  0x83   :  { %1418 = vmatprep.subr.bf16.mxu0 %v13751_v35  ;;  %1541 = vmatprep.subr.bf16.mxu1 %v13753_v36  ;;  %v13835_v35 = vld [vmem:[#allocation2 + $0x384] ss:$16 sps:$4 sm:$0xff]   ;;  %v13838_v36 = vld [vmem:[#allocation2 + $0x38c] ss:$16 sps:$4 sm:$0xff]  }
  0x86   :  { %1419 = vmatpush1.bf16.msra.mxu0 %v13755_v44  ;;  %1542 = vmatpush1.bf16.msra.mxu1 %v13756_v45  ;;  %v13847_v44 = vld [vmem:[#allocation2 + $0x3c4] ss:$16 sps:$4 sm:$0xff]   ;;  %v13850_v45 = vld [vmem:[#allocation2 + $0x3cc] ss:$16 sps:$4 sm:$0xff]  }
  0x87   :  { %1429 = vmatprep.subr.bf16.mxu0 %v13763_v46  ;;  %1552 = vmatprep.subr.bf16.mxu1 %v13766_v47  ;;  %v13845_v46 = vld [vmem:[#allocation2 + $0x3c0] ss:$16 sps:$4 sm:$0xff]   ;;  %v13848_v47 = vld [vmem:[#allocation2 + $0x3c8] ss:$16 sps:$4 sm:$0xff]  }
  0x89   :  { %1421 = vmatmul.mubr.bf16.vlgmr.msra.gmra.mrb[0].mxu0 %v15058_v7  ;;  %1544 = vmatmul.mubr.bf16.vlgmr.msra.gmra.mrb[0].mxu1 %v15058_v7  ;;  %v13793_v7 = vld [vmem:[#allocation2 + $0x2a4] ss:$16 sps:$4 sm:$0xff]  }
  0x8a   :  { %1430 = vmatpush1.bf16.msra.mxu0 %v13761_v52  ;;  %1553 = vmatpush1.bf16.msra.mxu1 %v13764_v53  ;;  %v13856_v52 = vld [vmem:[#allocation2 + $0x3ec] ss:$16 sps:$4 sm:$0xff]   ;;  %v13851_v53 = vld [vmem:[#allocation2 + $0x3e0] ss:$16 sps:$4 sm:$0xff]  }
  0x8b   :  { %1431 = vmatprep.subr.bf16.mxu0 %v13769_v54  ;;  %1554 = vmatprep.subr.bf16.mxu1 %v13772_v55  ;;  %v13854_v54 = vld [vmem:[#allocation2 + $0x3e8] ss:$16 sps:$4 sm:$0xff]   ;;  %v13859_v55 = vld [vmem:[#allocation2 + $0x404] ss:$16 sps:$4 sm:$0xff]  }
  0x8c   :  { %1461 = vmatprep.mubr.bf16.mxu0 %v412_v56  ;;  %1584 = vmatprep.mubr.bf16.mxu1 %v412_v56  ;;  %v13862_v56 = vld [vmem:[#allocation2 + $0x40c] ss:$16 sps:$4 sm:$0xff]  }
  0x8e   :  { %1432 = vmatpush1.bf16.msra.mxu0 %v13767_v57  ;;  %1555 = vmatpush1.bf16.msra.mxu1 %v13770_v58  ;;  %v15077_v57 = vrot.slane %v15066_v50, %v15047_v49  ;;  %v13857_v58 = vld [vmem:[#allocation2 + $0x400] ss:$16 sps:$4 sm:$0xff]   ;;  %v13866_v50 = vld [vmem:[#allocation2 + $0x428] ss:$16 sps:$4 sm:$0xff]  }
  0x8f   :  { %1433 = vmatprep.subr.bf16.mxu0 %v13775_v59  ;;  %1556 = vmatprep.subr.bf16.mxu1 %v13778_v60  ;;  %v13860_v59 = vld [vmem:[#allocation2 + $0x408] ss:$16 sps:$4 sm:$0xff]   ;;  %v13865_v60 = vld [vmem:[#allocation2 + $0x424] ss:$16 sps:$4 sm:$0xff]  }
  0x92   :  { %1434 = vmatpush1.bf16.msra.mxu0 %v13773_v61  ;;  %1557 = vmatpush1.bf16.msra.mxu1 %v13776_v62  ;;  %v13868_v61 = vld [vmem:[#allocation2 + $0x42c] ss:$16 sps:$4 sm:$0xff]   ;;  %v421_v62 = vcombine.high %v15077_v57, %v15077_v57 }
  0x93   :  { %1435 = vmatprep.subr.bf16.mxu0 %v13781_v63  ;;  %1558 = vmatprep.subr.bf16.mxu1 %v13784_v0  ;;  %v13863_v63 = vld [vmem:[#allocation2 + $0x420] ss:$16 sps:$4 sm:$0xff]   ;;  %v13871_v0 = vld [vmem:[#allocation2 + $0x444] ss:$16 sps:$4 sm:$0xff]  }
  0x96   :  { %1436 = vmatpush1.bf16.msra.mxu0 %v13779_v1  ;;  %1559 = vmatpush1.bf16.msra.mxu1 %v13782_v2  ;;  %v13874_v1 = vld [vmem:[#allocation2 + $0x44c] ss:$16 sps:$4 sm:$0xff]   ;;  %v13869_v2 = vld [vmem:[#allocation2 + $0x440] ss:$16 sps:$4 sm:$0xff]  }
  0x97   :  { %1437 = vmatprep.subr.bf16.mxu0 %v13787_v3  ;;  %1560 = vmatprep.subr.bf16.mxu1 %v13790_v4  ;;  %v13872_v3 = vld [vmem:[#allocation2 + $0x448] ss:$16 sps:$4 sm:$0xff]   ;;  %v13877_v4 = vld [vmem:[#allocation2 + $0x464] ss:$16 sps:$4 sm:$0xff]  }
  0x9a   :  { %1438 = vmatpush1.bf16.msra.mxu0 %v13785_v5  ;;  %1561 = vmatpush1.bf16.msra.mxu1 %v13788_v6  ;;  %v13880_v5 = vld [vmem:[#allocation2 + $0x46c] ss:$16 sps:$4 sm:$0xff]   ;;  %v13878_v6 = vld [vmem:[#allocation2 + $0x468] ss:$16 sps:$4 sm:$0xff]  }
  0x9b   :  { %1439 = vmatprep.subr.bf16.mxu0 %v13793_v7  ;;  %1562 = vmatprep.subr.bf16.mxu1 %v13796_v8  ;;  %v13883_v7 = vld [vmem:[#allocation2 + $0x484] ss:$16 sps:$4 sm:$0xff]   ;;  %v13886_v8 = vld [vmem:[#allocation2 + $0x48c] ss:$16 sps:$4 sm:$0xff]  }
  0x9e   :  { %1440 = vmatpush1.bf16.msra.mxu0 %v13791_v9  ;;  %1563 = vmatpush1.bf16.msra.mxu1 %v13794_v10  ;;  %v13881_v9 = vld [vmem:[#allocation2 + $0x480] ss:$16 sps:$4 sm:$0xff]   ;;  %v13884_v10 = vld [vmem:[#allocation2 + $0x488] ss:$16 sps:$4 sm:$0xff]  }
  0x9f   :  { %1441 = vmatprep.subr.bf16.mxu0 %v13799_v11  ;;  %1564 = vmatprep.subr.bf16.mxu1 %v13802_v12  ;;  %v13889_v11 = vld [vmem:[#allocation2 + $0x4a4] ss:$16 sps:$4 sm:$0xff]   ;;  %v13892_v12 = vld [vmem:[#allocation2 + $0x4ac] ss:$16 sps:$4 sm:$0xff]  }
  0xa2   :  { %1442 = vmatpush1.bf16.msra.mxu0 %v13797_v13  ;;  %1565 = vmatpush1.bf16.msra.mxu1 %v13800_v14  ;;  %v13887_v13 = vld [vmem:[#allocation2 + $0x4a0] ss:$16 sps:$4 sm:$0xff]   ;;  %v13890_v14 = vld [vmem:[#allocation2 + $0x4a8] ss:$16 sps:$4 sm:$0xff]  }
  0xa3   :  { %1443 = vmatprep.subr.bf16.mxu0 %v13805_v15  ;;  %1566 = vmatprep.subr.bf16.mxu1 %v13808_v16  ;;  %v13895_v15 = vld [vmem:[#allocation2 + $0x4c4] ss:$16 sps:$4 sm:$0xff]   ;;  %v13898_v16 = vld [vmem:[#allocation2 + $0x4cc] ss:$16 sps:$4 sm:$0xff]  }
  0xa6   :  { %1444 = vmatpush1.bf16.msra.mxu0 %v13803_v17  ;;  %1567 = vmatpush1.bf16.msra.mxu1 %v13806_v18  ;;  %v13893_v17 = vld [vmem:[#allocation2 + $0x4c0] ss:$16 sps:$4 sm:$0xff]   ;;  %v13896_v18 = vld [vmem:[#allocation2 + $0x4c8] ss:$16 sps:$4 sm:$0xff]  }
  0xa7   :  { %1445 = vmatprep.subr.bf16.mxu0 %v13811_v19  ;;  %1568 = vmatprep.subr.bf16.mxu1 %v13814_v20  ;;  %v13901_v19 = vld [vmem:[#allocation2 + $0x4e4] ss:$16 sps:$4 sm:$0xff]   ;;  %v13904_v20 = vld [vmem:[#allocation2 + $0x4ec] ss:$16 sps:$4 sm:$0xff]  }
  0xaa   :  { %1446 = vmatpush1.bf16.msra.mxu0 %v13809_v21  ;;  %1569 = vmatpush1.bf16.msra.mxu1 %v13812_v22  ;;  %v13899_v21 = vld [vmem:[#allocation2 + $0x4e0] ss:$16 sps:$4 sm:$0xff]   ;;  %v13902_v22 = vld [vmem:[#allocation2 + $0x4e8] ss:$16 sps:$4 sm:$0xff]  }
  0xab   :  { %1447 = vmatprep.subr.bf16.mxu0 %v13817_v23  ;;  %1570 = vmatprep.subr.bf16.mxu1 %v13820_v24  ;;  %v13907_v23 = vld [vmem:[#allocation2 + $0x504] ss:$16 sps:$4 sm:$0xff]   ;;  %v13910_v24 = vld [vmem:[#allocation2 + $0x50c] ss:$16 sps:$4 sm:$0xff]  }
  0xae   :  { %1448 = vmatpush1.bf16.msra.mxu0 %v13815_v25  ;;  %1571 = vmatpush1.bf16.msra.mxu1 %v13818_v26  ;;  %v13905_v25 = vld [vmem:[#allocation2 + $0x500] ss:$16 sps:$4 sm:$0xff]   ;;  %v13908_v26 = vld [vmem:[#allocation2 + $0x508] ss:$16 sps:$4 sm:$0xff]  }
  0xaf   :  { %1449 = vmatprep.subr.bf16.mxu0 %v13823_v27  ;;  %1572 = vmatprep.subr.bf16.mxu1 %v13826_v28  ;;  %v13913_v27 = vld [vmem:[#allocation2 + $0x524] ss:$16 sps:$4 sm:$0xff]   ;;  %v13916_v28 = vld [vmem:[#allocation2 + $0x52c] ss:$16 sps:$4 sm:$0xff]  }
  0xb2   :  { %1450 = vmatpush1.bf16.msra.mxu0 %v13821_v29  ;;  %1573 = vmatpush1.bf16.msra.mxu1 %v13824_v30  ;;  %v13911_v29 = vld [vmem:[#allocation2 + $0x520] ss:$16 sps:$4 sm:$0xff]   ;;  %v13914_v30 = vld [vmem:[#allocation2 + $0x528] ss:$16 sps:$4 sm:$0xff]  }
  0xb3   :  { %1451 = vmatprep.subr.bf16.mxu0 %v13829_v31  ;;  %1574 = vmatprep.subr.bf16.mxu1 %v13832_v32  ;;  %v13919_v31 = vld [vmem:[#allocation2 + $0x544] ss:$16 sps:$4 sm:$0xff]   ;;  %v13922_v32 = vld [vmem:[#allocation2 + $0x54c] ss:$16 sps:$4 sm:$0xff]  }
  0xb6   :  { %1452 = vmatpush1.bf16.msra.mxu0 %v13827_v33  ;;  %1575 = vmatpush1.bf16.msra.mxu1 %v13830_v34  ;;  %v13917_v33 = vld [vmem:[#allocation2 + $0x540] ss:$16 sps:$4 sm:$0xff]   ;;  %v13920_v34 = vld [vmem:[#allocation2 + $0x548] ss:$16 sps:$4 sm:$0xff]  }
  0xb7   :  { %1453 = vmatprep.subr.bf16.mxu0 %v13835_v35  ;;  %1576 = vmatprep.subr.bf16.mxu1 %v13838_v36  ;;  %v13925_v35 = vld [vmem:[#allocation2 + $0x564] ss:$16 sps:$4 sm:$0xff]   ;;  %v13928_v36 = vld [vmem:[#allocation2 + $0x56c] ss:$16 sps:$4 sm:$0xff]  }
  0xba   :  { %1454 = vmatpush1.bf16.msra.mxu0 %v13833_v37  ;;  %1577 = vmatpush1.bf16.msra.mxu1 %v13836_v38  ;;  %v13923_v37 = vld [vmem:[#allocation2 + $0x560] ss:$16 sps:$4 sm:$0xff]   ;;  %v13926_v38 = vld [vmem:[#allocation2 + $0x568] ss:$16 sps:$4 sm:$0xff]  }
  0xbb   :  { %1455 = vmatprep.subr.bf16.mxu0 %v13841_v39  ;;  %1578 = vmatprep.subr.bf16.mxu1 %v13844_v40  ;;  %v13931_v39 = vld [vmem:[#allocation2 + $0x584] ss:$16 sps:$4 sm:$0xff]   ;;  %v13934_v40 = vld [vmem:[#allocation2 + $0x58c] ss:$16 sps:$4 sm:$0xff]  }
  0xbe   :  { %1456 = vmatpush1.bf16.msra.mxu0 %v13839_v41  ;;  %1579 = vmatpush1.bf16.msra.mxu1 %v13842_v42  ;;  %v13929_v41 = vld [vmem:[#allocation2 + $0x580] ss:$16 sps:$4 sm:$0xff]   ;;  %v13932_v42 = vld [vmem:[#allocation2 + $0x588] ss:$16 sps:$4 sm:$0xff]  }
  0xbf   :  { %1457 = vmatprep.subr.bf16.mxu0 %v13847_v44  ;;  %1580 = vmatprep.subr.bf16.mxu1 %v13850_v45  ;;  %v13937_v44 = vld [vmem:[#allocation2 + $0x5a4] ss:$16 sps:$4 sm:$0xff]   ;;  %v13940_v45 = vld [vmem:[#allocation2 + $0x5ac] ss:$16 sps:$4 sm:$0xff]  }
  0xc2   :  { %1458 = vmatpush1.bf16.msra.mxu0 %v13845_v46  ;;  %1581 = vmatpush1.bf16.msra.mxu1 %v13848_v47  ;;  %v13935_v46 = vld [vmem:[#allocation2 + $0x5a0] ss:$16 sps:$4 sm:$0xff]   ;;  %v13938_v47 = vld [vmem:[#allocation2 + $0x5a8] ss:$16 sps:$4 sm:$0xff]  }
  0xc3   :  { %1459 = vmatprep.subr.bf16.mxu0 %v13853_v48  ;;  %1582 = vmatprep.subr.bf16.mxu1 %v13856_v52  ;;  %v13943_v48 = vld [vmem:[#allocation2 + $0x5c4] ss:$16 sps:$4 sm:$0xff]   ;;  %v13946_v52 = vld [vmem:[#allocation2 + $0x5cc] ss:$16 sps:$4 sm:$0xff]  }
  0xc6   :  { %1460 = vmatpush1.bf16.msra.mxu0 %v13851_v53  ;;  %1583 = vmatpush1.bf16.msra.mxu1 %v13854_v54  ;;  %v13941_v53 = vld [vmem:[#allocation2 + $0x5c0] ss:$16 sps:$4 sm:$0xff]   ;;  %v13944_v54 = vld [vmem:[#allocation2 + $0x5c8] ss:$16 sps:$4 sm:$0xff]  }
  0xc7   :  { %1470 = vmatprep.subr.bf16.mxu0 %v13859_v55  ;;  %1593 = vmatprep.subr.bf16.mxu1 %v13862_v56  ;;  %v13949_v55 = vld [vmem:[#allocation2 + $0x5e4] ss:$16 sps:$4 sm:$0xff]   ;;  %v13952_v56 = vld [vmem:[#allocation2 + $0x5ec] ss:$16 sps:$4 sm:$0xff]  }
  0xc9   :  { %1462 = vmatmul.mubr.bf16.vlgmr.msra.gmra.mrb[0].mxu0 %v15069_v51  ;;  %1585 = vmatmul.mubr.bf16.vlgmr.msra.gmra.mrb[0].mxu1 %v15069_v51  ;;  %v13875_v51 = vld [vmem:[#allocation2 + $0x460] ss:$16 sps:$4 sm:$0xff]  }
  0xca   :  { %1471 = vmatpush1.bf16.msra.mxu0 %v13857_v58  ;;  %1594 = vmatpush1.bf16.msra.mxu1 %v13860_v59  ;;  %v13947_v58 = vld [vmem:[#allocation2 + $0x5e0] ss:$16 sps:$4 sm:$0xff]   ;;  %v13950_v59 = vld [vmem:[#allocation2 + $0x5e8] ss:$16 sps:$4 sm:$0xff]  }
  0xcb   :  { %1472 = vmatprep.subr.bf16.mxu0 %v13865_v60  ;;  %1595 = vmatprep.subr.bf16.mxu1 %v13868_v61  ;;  %v13955_v60 = vld [vmem:[#allocation4 + $0x4] ss:$16 sps:$4 sm:$0xff]   ;;  %v13958_v61 = vld [vmem:[#allocation4 + $0xc] ss:$16 sps:$4 sm:$0xff]  }
  0xcc   :  { %1502 = vmatprep.mubr.bf16.mxu0 %v421_v62  ;;  %1625 = vmatprep.mubr.bf16.mxu1 %v421_v62  ;;  %v13953_v62 = vld [vmem:[#allocation4] ss:$16 sps:$4 sm:$0xff]  }
  0xce   :  { %1473 = vmatpush1.bf16.msra.mxu0 %v13863_v63  ;;  %1596 = vmatpush1.bf16.msra.mxu1 %v13866_v50  ;;  %v13956_v63 = vld [vmem:[#allocation4 + $0x8] ss:$16 sps:$4 sm:$0xff]   ;;  %v13961_v50 = vld [vmem:[#allocation4 + $0x24] ss:$16 sps:$4 sm:$0xff]  }
  0xcf   :  { %1474 = vmatprep.subr.bf16.mxu0 %v13871_v0  ;;  %1597 = vmatprep.subr.bf16.mxu1 %v13874_v1  ;;  %v13964_v0 = vld [vmem:[#allocation4 + $0x2c] ss:$16 sps:$4 sm:$0xff]   ;;  %v13959_v1 = vld [vmem:[#allocation4 + $0x20] ss:$16 sps:$4 sm:$0xff]  }
  0xd2   :  { %1475 = vmatpush1.bf16.msra.mxu0 %v13869_v2  ;;  %1598 = vmatpush1.bf16.msra.mxu1 %v13872_v3  ;;  %v13962_v2 = vld [vmem:[#allocation4 + $0x28] ss:$16 sps:$4 sm:$0xff]   ;;  %v13967_v3 = vld [vmem:[#allocation4 + $0x44] ss:$16 sps:$4 sm:$0xff]  }
  0xd3   :  { %1476 = vmatprep.subr.bf16.mxu0 %v13877_v4  ;;  %1599 = vmatprep.subr.bf16.mxu1 %v13880_v5  ;;  %v13970_v4 = vld [vmem:[#allocation4 + $0x4c] ss:$16 sps:$4 sm:$0xff]   ;;  %v13965_v5 = vld [vmem:[#allocation4 + $0x40] ss:$16 sps:$4 sm:$0xff]  }
  0xd6   :  { %1477 = vmatpush1.bf16.msra.mxu0 %v13875_v51  ;;  %1600 = vmatpush1.bf16.msra.mxu1 %v13878_v6  ;;  %v13968_v51 = vld [vmem:[#allocation4 + $0x48] ss:$16 sps:$4 sm:$0xff]   ;;  %v13973_v6 = vld [vmem:[#allocation4 + $0x64] ss:$16 sps:$4 sm:$0xff]  }
  0xd7   :  { %1478 = vmatprep.subr.bf16.mxu0 %v13883_v7  ;;  %1601 = vmatprep.subr.bf16.mxu1 %v13886_v8  ;;  %v13976_v7 = vld [vmem:[#allocation4 + $0x6c] ss:$16 sps:$4 sm:$0xff]   ;;  %v13971_v8 = vld [vmem:[#allocation4 + $0x60] ss:$16 sps:$4 sm:$0xff]  }
  0xda   :  { %1479 = vmatpush1.bf16.msra.mxu0 %v13881_v9  ;;  %1602 = vmatpush1.bf16.msra.mxu1 %v13884_v10  ;;  %v13974_v9 = vld [vmem:[#allocation4 + $0x68] ss:$16 sps:$4 sm:$0xff]   ;;  %v13979_v10 = vld [vmem:[#allocation4 + $0x84] ss:$16 sps:$4 sm:$0xff]  }
  0xdb   :  { %1480 = vmatprep.subr.bf16.mxu0 %v13889_v11  ;;  %1603 = vmatprep.subr.bf16.mxu1 %v13892_v12  ;;  %v13982_v11 = vld [vmem:[#allocation4 + $0x8c] ss:$16 sps:$4 sm:$0xff]   ;;  %v13980_v12 = vld [vmem:[#allocation4 + $0x88] ss:$16 sps:$4 sm:$0xff]  }
  0xde   :  { %1481 = vmatpush1.bf16.msra.mxu0 %v13887_v13  ;;  %1604 = vmatpush1.bf16.msra.mxu1 %v13890_v14  ;;  %v13985_v13 = vld [vmem:[#allocation4 + $0xa4] ss:$16 sps:$4 sm:$0xff]   ;;  %v13988_v14 = vld [vmem:[#allocation4 + $0xac] ss:$16 sps:$4 sm:$0xff]  }
  0xdf   :  { %1482 = vmatprep.subr.bf16.mxu0 %v13895_v15  ;;  %1605 = vmatprep.subr.bf16.mxu1 %v13898_v16  ;;  %v13983_v15 = vld [vmem:[#allocation4 + $0xa0] ss:$16 sps:$4 sm:$0xff]   ;;  %v13986_v16 = vld [vmem:[#allocation4 + $0xa8] ss:$16 sps:$4 sm:$0xff]  }
  0xe2   :  { %1483 = vmatpush1.bf16.msra.mxu0 %v13893_v17  ;;  %1606 = vmatpush1.bf16.msra.mxu1 %v13896_v18  ;;  %v13991_v17 = vld [vmem:[#allocation4 + $0xc4] ss:$16 sps:$4 sm:$0xff]   ;;  %v13994_v18 = vld [vmem:[#allocation4 + $0xcc] ss:$16 sps:$4 sm:$0xff]  }
  0xe3   :  { %1484 = vmatprep.subr.bf16.mxu0 %v13901_v19  ;;  %1607 = vmatprep.subr.bf16.mxu1 %v13904_v20  ;;  %v13989_v19 = vld [vmem:[#allocation4 + $0xc0] ss:$16 sps:$4 sm:$0xff]   ;;  %v13992_v20 = vld [vmem:[#allocation4 + $0xc8] ss:$16 sps:$4 sm:$0xff]  }
  0xe6   :  { %1485 = vmatpush1.bf16.msra.mxu0 %v13899_v21  ;;  %1608 = vmatpush1.bf16.msra.mxu1 %v13902_v22  ;;  %v13997_v21 = vld [vmem:[#allocation4 + $0xe4] ss:$16 sps:$4 sm:$0xff]   ;;  %v14000_v22 = vld [vmem:[#allocation4 + $0xec] ss:$16 sps:$4 sm:$0xff]  }
  0xe7   :  { %1486 = vmatprep.subr.bf16.mxu0 %v13907_v23  ;;  %1609 = vmatprep.subr.bf16.mxu1 %v13910_v24  ;;  %v13995_v23 = vld [vmem:[#allocation4 + $0xe0] ss:$16 sps:$4 sm:$0xff]   ;;  %v13998_v24 = vld [vmem:[#allocation4 + $0xe8] ss:$16 sps:$4 sm:$0xff]  }
  0xea   :  { %1487 = vmatpush1.bf16.msra.mxu0 %v13905_v25  ;;  %1610 = vmatpush1.bf16.msra.mxu1 %v13908_v26  ;;  %v14003_v25 = vld [vmem:[#allocation4 + $0x104] ss:$16 sps:$4 sm:$0xff]   ;;  %v14006_v26 = vld [vmem:[#allocation4 + $0x10c] ss:$16 sps:$4 sm:$0xff]  }
  0xeb   :  { %1488 = vmatprep.subr.bf16.mxu0 %v13913_v27  ;;  %1611 = vmatprep.subr.bf16.mxu1 %v13916_v28  ;;  %v14001_v27 = vld [vmem:[#allocation4 + $0x100] ss:$16 sps:$4 sm:$0xff]   ;;  %v14004_v28 = vld [vmem:[#allocation4 + $0x108] ss:$16 sps:$4 sm:$0xff]  }
  0xee   :  { %1489 = vmatpush1.bf16.msra.mxu0 %v13911_v29  ;;  %1612 = vmatpush1.bf16.msra.mxu1 %v13914_v30  ;;  %v14009_v29 = vld [vmem:[#allocation4 + $0x124] ss:$16 sps:$4 sm:$0xff]   ;;  %v14012_v30 = vld [vmem:[#allocation4 + $0x12c] ss:$16 sps:$4 sm:$0xff]  }
  0xef   :  { %1490 = vmatprep.subr.bf16.mxu0 %v13919_v31  ;;  %1613 = vmatprep.subr.bf16.mxu1 %v13922_v32  ;;  %v14007_v31 = vld [vmem:[#allocation4 + $0x120] ss:$16 sps:$4 sm:$0xff]   ;;  %v14010_v32 = vld [vmem:[#allocation4 + $0x128] ss:$16 sps:$4 sm:$0xff]  }
  0xf2   :  { %1491 = vmatpush1.bf16.msra.mxu0 %v13917_v33  ;;  %1614 = vmatpush1.bf16.msra.mxu1 %v13920_v34  ;;  %v14015_v33 = vld [vmem:[#allocation4 + $0x144] ss:$16 sps:$4 sm:$0xff]   ;;  %v14018_v34 = vld [vmem:[#allocation4 + $0x14c] ss:$16 sps:$4 sm:$0xff]  }
  0xf3   :  { %1492 = vmatprep.subr.bf16.mxu0 %v13925_v35  ;;  %1615 = vmatprep.subr.bf16.mxu1 %v13928_v36  ;;  %v14013_v35 = vld [vmem:[#allocation4 + $0x140] ss:$16 sps:$4 sm:$0xff]   ;;  %v14016_v36 = vld [vmem:[#allocation4 + $0x148] ss:$16 sps:$4 sm:$0xff]  }
  0xf6   :  { %1493 = vmatpush1.bf16.msra.mxu0 %v13923_v37  ;;  %1616 = vmatpush1.bf16.msra.mxu1 %v13926_v38  ;;  %v14021_v37 = vld [vmem:[#allocation4 + $0x164] ss:$16 sps:$4 sm:$0xff]   ;;  %v14024_v38 = vld [vmem:[#allocation4 + $0x16c] ss:$16 sps:$4 sm:$0xff]  }
  0xf7   :  { %1494 = vmatprep.subr.bf16.mxu0 %v13931_v39  ;;  %1617 = vmatprep.subr.bf16.mxu1 %v13934_v40  ;;  %v14019_v39 = vld [vmem:[#allocation4 + $0x160] ss:$16 sps:$4 sm:$0xff]   ;;  %v14022_v40 = vld [vmem:[#allocation4 + $0x168] ss:$16 sps:$4 sm:$0xff]  }
  0xfa   :  { %1495 = vmatpush1.bf16.msra.mxu0 %v13929_v41  ;;  %1618 = vmatpush1.bf16.msra.mxu1 %v13932_v42  ;;  %v14027_v41 = vld [vmem:[#allocation4 + $0x184] ss:$16 sps:$4 sm:$0xff]   ;;  %v14030_v42 = vld [vmem:[#allocation4 + $0x18c] ss:$16 sps:$4 sm:$0xff]  }
  0xfb   :  { %1496 = vmatprep.subr.bf16.mxu0 %v13937_v44  ;;  %1619 = vmatprep.subr.bf16.mxu1 %v13940_v45  ;;  %v14025_v44 = vld [vmem:[#allocation4 + $0x180] ss:$16 sps:$4 sm:$0xff]   ;;  %v14028_v45 = vld [vmem:[#allocation4 + $0x188] ss:$16 sps:$4 sm:$0xff]  }
  0xfe   :  { %1497 = vmatpush1.bf16.msra.mxu0 %v13935_v46  ;;  %1620 = vmatpush1.bf16.msra.mxu1 %v13938_v47  ;;  %v14033_v46 = vld [vmem:[#allocation4 + $0x1a4] ss:$16 sps:$4 sm:$0xff]   ;;  %v14036_v47 = vld [vmem:[#allocation4 + $0x1ac] ss:$16 sps:$4 sm:$0xff]  }
  0xff   :  { %1498 = vmatprep.subr.bf16.mxu0 %v13943_v48  ;;  %1621 = vmatprep.subr.bf16.mxu1 %v13946_v52  ;;  %v14031_v48 = vld [vmem:[#allocation4 + $0x1a0] ss:$16 sps:$4 sm:$0xff]   ;;  %v14034_v52 = vld [vmem:[#allocation4 + $0x1a8] ss:$16 sps:$4 sm:$0xff]  }
 0x102   :  { %1499 = vmatpush1.bf16.msra.mxu0 %v13941_v53  ;;  %1622 = vmatpush1.bf16.msra.mxu1 %v13944_v54  ;;  %v14039_v53 = vld [vmem:[#allocation4 + $0x1c4] ss:$16 sps:$4 sm:$0xff]   ;;  %v14042_v54 = vld [vmem:[#allocation4 + $0x1cc] ss:$16 sps:$4 sm:$0xff]  }
 0x103   :  { %1500 = vmatprep.subr.bf16.mxu0 %v13949_v55  ;;  %1623 = vmatprep.subr.bf16.mxu1 %v13952_v56  ;;  %v14037_v55 = vld [vmem:[#allocation4 + $0x1c0] ss:$16 sps:$4 sm:$0xff]   ;;  %v14040_v56 = vld [vmem:[#allocation4 + $0x1c8] ss:$16 sps:$4 sm:$0xff]  }
 0x106   :  { %1501 = vmatpush1.bf16.msra.mxu0 %v13947_v58  ;;  %1624 = vmatpush1.bf16.msra.mxu1 %v13950_v59  ;;  %v14045_v58 = vld [vmem:[#allocation4 + $0x1e4] ss:$16 sps:$4 sm:$0xff]   ;;  %v14048_v59 = vld [vmem:[#allocation4 + $0x1ec] ss:$16 sps:$4 sm:$0xff]  }
 0x107   :  { %3273 = vmatprep.subr.bf16.mxu0 %v13955_v60  ;;  %3402 = vmatprep.subr.bf16.mxu1 %v13958_v61  ;;  %v14043_v60 = vld [vmem:[#allocation4 + $0x1e0] ss:$16 sps:$4 sm:$0xff]   ;;  %v14046_v61 = vld [vmem:[#allocation4 + $0x1e8] ss:$16 sps:$4 sm:$0xff]  }
 0x109   :  { %1503 = vmatmul.mubr.bf16.vlgmr.msra.gmra.mrb[0].mxu0 %v15077_v57  ;;  %1626 = vmatmul.mubr.bf16.vlgmr.msra.gmra.mrb[0].mxu1 %v15077_v57  ;;  %v13977_v57 = vld [vmem:[#allocation4 + $0x80] ss:$16 sps:$4 sm:$0xff]  }
 0x10a   :  { %3274 = vmatpush1.bf16.msra.mxu0 %v13953_v62  ;;  %3403 = vmatpush1.bf16.msra.mxu1 %v13956_v63  ;;  %v14051_v62 = vld [vmem:[#allocation4 + $0x204] ss:$16 sps:$4 sm:$0xff]   ;;  %v14054_v63 = vld [vmem:[#allocation4 + $0x20c] ss:$16 sps:$4 sm:$0xff]  }
 0x10b   :  { %3275 = vmatprep.subr.bf16.mxu0 %v13961_v50  ;;  %3404 = vmatprep.subr.bf16.mxu1 %v13964_v0  ;;  %v15086_v50 = vsub.s32 0, %v15044_v43  ;;  %v15089_v0 = vsub.s32 2, %v15044_v43 }
 0x10d   :  { %17486 = vst [vmem:[#allocation12_spill] sm:$0xff] %v15089_v0 }
 0x10e   :  { %3276 = vmatpush1.bf16.msra.mxu0 %v13959_v1  ;;  %3405 = vmatpush1.bf16.msra.mxu1 %v13962_v2  ;;  %v15092_v1 = vsub.s32 1, %v15044_v43  ;;  %v373_v2 = vld [vmem:[%s17457_s2] sm:$0xf] }
 0x10f   :  { %3277 = vmatprep.subr.bf16.mxu0 %v13967_v3  ;;  %3406 = vmatprep.subr.bf16.mxu1 %v13970_v4  ;;  %v15098_v3 = vsub.s32 3, %v15044_v43  ;;  %v14918_v4 = vmov 1966171168  }
 0x111   :  { %17487 = vst [vmem:[#allocation13_spill] sm:$0xff] %v15098_v3 }
 0x112   :  { %3278 = vmatpush1.bf16.msra.mxu0 %v13965_v5  ;;  %3407 = vmatpush1.bf16.msra.mxu1 %v13968_v51  ;;  %v1643_v5 = vunpack.c.l.s4 %v14918_v4  ;;  %v378_v51 = vrot.slane %v373_v2, %v15086_v50 }
 0x113   :  { %3279 = vmatprep.subr.bf16.mxu0 %v13973_v6  ;;  %3408 = vmatprep.subr.bf16.mxu1 %v13976_v7  ;;  %v386_v6 = vrot.slane %v373_v2, %v15089_v0  ;;  %v382_v7 = vrot.slane %v373_v2, %v15092_v1 }
 0x116   :  { %3280 = vmatpush1.bf16.msra.mxu0 %v13971_v8  ;;  %3409 = vmatpush1.bf16.msra.mxu1 %v13974_v9  ;;  %v390_v8 = vrot.slane %v373_v2, %v15098_v3 }
 0x117   :  { %3281 = vmatprep.subr.bf16.mxu0 %v13979_v10  ;;  %3410 = vmatprep.subr.bf16.mxu1 %v13982_v11  ;;  %v1644_v11 = vunpack.c.0.s8 %v1643_v5 }
 0x11a   :  { %3282 = vmatpush1.bf16.msra.mxu0 %v13977_v57  ;;  %3411 = vmatpush1.bf16.msra.mxu1 %v13980_v12 }
 0x11b   :  { %3283 = vmatprep.subr.bf16.mxu0 %v13985_v13  ;;  %3412 = vmatprep.subr.bf16.mxu1 %v13988_v14 }
 0x11e   :  { %3284 = vmatpush1.bf16.msra.mxu0 %v13983_v15  ;;  %3413 = vmatpush1.bf16.msra.mxu1 %v13986_v16 }
 0x11f   :  { %3285 = vmatprep.subr.bf16.mxu0 %v13991_v17  ;;  %3414 = vmatprep.subr.bf16.mxu1 %v13994_v18 }
 0x122   :  { %3286 = vmatpush1.bf16.msra.mxu0 %v13989_v19  ;;  %3415 = vmatpush1.bf16.msra.mxu1 %v13992_v20 }
 0x123   :  { %3287 = vmatprep.subr.bf16.mxu0 %v13997_v21  ;;  %3416 = vmatprep.subr.bf16.mxu1 %v14000_v22 }
 0x126   :  { %3288 = vmatpush1.bf16.msra.mxu0 %v13995_v23  ;;  %3417 = vmatpush1.bf16.msra.mxu1 %v13998_v24  ;;  %v15105_v24 = vsub.s32 %v1644_v11, %v15044_v43 }
 0x127   :  { %3289 = vmatprep.subr.bf16.mxu0 %v14003_v25  ;;  %3418 = vmatprep.subr.bf16.mxu1 %v14006_v26 }
 0x128   :  { %17488 = vst [vmem:[#allocation14_spill] sm:$0xff] %v15105_v24 }
 0x12a   :  { %3290 = vmatpush1.bf16.msra.mxu0 %v14001_v27  ;;  %3419 = vmatpush1.bf16.msra.mxu1 %v14004_v28 }
 0x12b   :  { %3291 = vmatprep.subr.bf16.mxu0 %v14009_v29  ;;  %3420 = vmatprep.subr.bf16.mxu1 %v14012_v30 }
 0x12e   :  { %3292 = vmatpush1.bf16.msra.mxu0 %v14007_v31  ;;  %3421 = vmatpush1.bf16.msra.mxu1 %v14010_v32 }
 0x12f   :  { %3293 = vmatprep.subr.bf16.mxu0 %v14015_v33  ;;  %3422 = vmatprep.subr.bf16.mxu1 %v14018_v34 }
 0x132   :  { %3294 = vmatpush1.bf16.msra.mxu0 %v14013_v35  ;;  %3423 = vmatpush1.bf16.msra.mxu1 %v14016_v36 }
 0x133   :  { %3295 = vmatprep.subr.bf16.mxu0 %v14021_v37  ;;  %3424 = vmatprep.subr.bf16.mxu1 %v14024_v38 }
 0x136   :  { %3296 = vmatpush1.bf16.msra.mxu0 %v14019_v39  ;;  %3425 = vmatpush1.bf16.msra.mxu1 %v14022_v40 }
 0x137   :  { %3297 = vmatprep.subr.bf16.mxu0 %v14027_v41  ;;  %3426 = vmatprep.subr.bf16.mxu1 %v14030_v42 }
 0x13a   :  { %3298 = vmatpush1.bf16.msra.mxu0 %v14025_v44  ;;  %3427 = vmatpush1.bf16.msra.mxu1 %v14028_v45 }
 0x13b   :  { %3299 = vmatprep.subr.bf16.mxu0 %v14033_v46  ;;  %3428 = vmatprep.subr.bf16.mxu1 %v14036_v47 }
 0x13e   :  { %3300 = vmatpush1.bf16.msra.mxu0 %v14031_v48  ;;  %3429 = vmatpush1.bf16.msra.mxu1 %v14034_v52 }
 0x13f   :  { %3301 = vmatprep.subr.bf16.mxu0 %v14039_v53  ;;  %3430 = vmatprep.subr.bf16.mxu1 %v14042_v54 }
 0x142   :  { %3302 = vmatpush1.bf16.msra.mxu0 %v14037_v55  ;;  %3431 = vmatpush1.bf16.msra.mxu1 %v14040_v56 }
 0x143   :  { %3303 = vmatprep.subr.bf16.mxu0 %v14045_v58  ;;  %3432 = vmatprep.subr.bf16.mxu1 %v14048_v59 }
 0x146   :  { %3304 = vmatpush1.bf16.msra.mxu0 %v14043_v60  ;;  %3433 = vmatpush1.bf16.msra.mxu1 %v14046_v61 }
 0x147   :  { %3316 = vmatprep.subr.bf16.mxu0 %v14051_v62  ;;  %3445 = vmatprep.subr.bf16.mxu1 %v14054_v63 }
 0x1dc   :  { %v1504_v9 = vpop.f32.mrb[0].mxu0  ;;  %v1627_v10 = vpop.f32.mrb[0].mxu1 }
 0x1dd   :  { %v13464_v57 = vadd.f32 %v1504_v9, %v378_v51  ;;  %v13466_v12 = vadd.f32 %v1627_v10, %v386_v6  ;;  %v1506_v13 = vpop.f32.mrb[1].mxu0  ;;  %v1629_v14 = vpop.f32.mrb[1].mxu1 }
 0x1de   :  { %v13465_v15 = vadd.f32 %v1506_v13, %v382_v7  ;;  %v13467_v16 = vadd.f32 %v1629_v14, %v390_v8  ;;  %v1508_v17 = vpop.f32.mrb[2].mxu0  ;;  %v1631_v18 = vpop.f32.mrb[2].mxu1 }
 0x1df   :  { %v1634_v19 = vmax.f32 %v13464_v57, 0.0  ;;  %v1636_v20 = vmax.f32 %v13466_v12, 0.0  ;;  %v1509_v21 = vpop.f32.mrb[3].mxu0  ;;  %v1632_v22 = vpop.f32.mrb[3].mxu1 }
 0x1e0   :  { %v1635_v23 = vmax.f32 %v13465_v15, 0.0  ;;  %v1637_v25 = vmax.f32 %v13467_v16, 0.0 }
 0x1e2   :  { %v1640_v26 = vcombine.low %v1634_v19, %v1635_v23  ;;  %v1641_v27 = vcombine.high %v1634_v19, %v1635_v23  ;;  %v1692_v28 = vcombine.low %v1636_v20, %v1637_v25  ;;  %v1693_v29 = vcombine.high %v1636_v20, %v1637_v25 }
 0x1e4   :  { %v1648_v30 = vrot.slane %v1640_v26, %v15105_v24  ;;  %v1655_v31 = vrot.slane %v1641_v27, %v15105_v24  ;;  %v1700_v32 = vrot.slane %v1692_v28, %v15105_v24  ;;  %v1707_v33 = vrot.slane %v1693_v29, %v15105_v24 }
 0x1e6   :  { %v1656_v34 = vcombine.high %v1648_v30, %v1648_v30  ;;  %v1657_v35 = vcombine.high %v1655_v31, %v1655_v31  ;;  %v1664_v36 = vrot.slane %v1648_v30, %v15105_v24  ;;  %v1671_v43 = vrot.slane %v1655_v31, %v15105_v24 }
 0x1e7   :  { %v1708_v37 = vcombine.high %v1700_v32, %v1700_v32  ;;  %v1709_v38 = vcombine.high %v1707_v33, %v1707_v33  ;;  %v1716_v39 = vrot.slane %v1700_v32, %v15105_v24  ;;  %v1723_v40 = vrot.slane %v1707_v33, %v15105_v24 }
 0x1e8   :  { %v1678_v41 = vrot.slane %v1656_v34, %v15105_v24  ;;  %v1685_v42 = vrot.slane %v1657_v35, %v15105_v24  ;;  %v1686_v44 = vcombine.high %v1664_v36, %v1664_v36  ;;  %v1687_v45 = vcombine.high %v1671_v43, %v1671_v43 }
 0x1e9   :  { %v1745_v46 = vrot.slane %v1664_v36, %v15086_v50  ;;  %v1749_v47 = vrot.slane %v1664_v36, %v15092_v1  ;;  %v1777_v48 = vrot.slane %v1671_v43, %v15086_v50  ;;  %v1781_v52 = vrot.slane %v1671_v43, %v15092_v1 }
 0x1ea   :  { %v1688_v53 = vcombine.high %v1678_v41, %v1678_v41  ;;  %v1689_v54 = vcombine.high %v1685_v42, %v1685_v42  ;;  %v1753_v55 = vrot.slane %v1678_v41, %v15086_v50  ;;  %v1757_v56 = vrot.slane %v1678_v41, %v15092_v1 }
 0x1eb   :  { %v1761_v58 = vrot.slane %v1686_v44, %v15086_v50  ;;  %v1765_v59 = vrot.slane %v1686_v44, %v15092_v1  ;;  %v1785_v60 = vrot.slane %v1685_v42, %v15086_v50  ;;  %v1789_v61 = vrot.slane %v1685_v42, %v15092_v1 }
 0x1ec   :  { %v1769_v62 = vrot.slane %v1688_v53, %v15086_v50  ;;  %v1773_v63 = vrot.slane %v1688_v53, %v15092_v1  ;;  %v1793_v2 = vrot.slane %v1687_v45, %v15086_v50  ;;  %v1797_v4 = vrot.slane %v1687_v45, %v15092_v1 }
 0x1ed   :  { %v1801_v5 = vrot.slane %v1689_v54, %v15086_v50  ;;  %v1805_v51 = vrot.slane %v1689_v54, %v15092_v1  ;;  %v1730_v6 = vrot.slane %v1708_v37, %v15105_v24  ;;  %v1737_v7 = vrot.slane %v1709_v38, %v15105_v24 }
 0x1ee   :  { %v1738_v8 = vcombine.high %v1716_v39, %v1716_v39  ;;  %v1739_v9 = vcombine.high %v1723_v40, %v1723_v40  ;;  %v1825_v10 = vrot.slane %v1716_v39, %v15086_v50  ;;  %v1829_v11 = vrot.slane %v1716_v39, %v15092_v1 }
 0x1ef   :  { %v1740_v57 = vcombine.high %v1730_v6, %v1730_v6  ;;  %v1741_v12 = vcombine.high %v1737_v7, %v1737_v7  ;;  %v1833_v13 = vrot.slane %v1730_v6, %v15086_v50  ;;  %v1837_v14 = vrot.slane %v1730_v6, %v15092_v1 }
 0x1f0   :  { %v1841_v15 = vrot.slane %v1738_v8, %v15086_v50  ;;  %v1845_v16 = vrot.slane %v1738_v8, %v15092_v1  ;;  %v1857_v17 = vrot.slane %v1723_v40, %v15086_v50  ;;  %v1861_v18 = vrot.slane %v1723_v40, %v15092_v1 }
 0x1f1   :  { %v1849_v19 = vrot.slane %v1740_v57, %v15086_v50  ;;  %v1853_v20 = vrot.slane %v1740_v57, %v15092_v1  ;;  %v1865_v21 = vrot.slane %v1737_v7, %v15086_v50  ;;  %v1869_v22 = vrot.slane %v1737_v7, %v15092_v1 }
 0x1f2   :  { %v1873_v23 = vrot.slane %v1739_v9, %v15086_v50  ;;  %v1877_v25 = vrot.slane %v1739_v9, %v15092_v1  ;;  %v1881_v26 = vrot.slane %v1741_v12, %v15086_v50  ;;  %v1885_v27 = vrot.slane %v1741_v12, %v15092_v1 }
 0x1f3   :  { %v1903_v28 = vsel %vm1902_vm0, %v1745_v46, %v1825_v10  ;;  %v1904_v29 = vsel %vm1902_vm0, %v1749_v47, %v1829_v11  ;;  %v1905_v30 = vsel %vm1902_vm0, %v1753_v55, %v1833_v13  ;;  %v1906_v31 = vsel %vm1902_vm0, %v1757_v56, %v1837_v14 }
 0x1f4   :  { %v1907_v32 = vsel %vm1902_vm0, %v1761_v58, %v1841_v15  ;;  %v1908_v33 = vsel %vm1902_vm0, %v1765_v59, %v1845_v16  ;;  %v1909_v34 = vsel %vm1902_vm0, %v1769_v62, %v1849_v19  ;;  %v1910_v35 = vsel %vm1902_vm0, %v1773_v63, %v1853_v20  ;;  %v14049_v19 = vld [vmem:[#allocation4 + $0x200] ss:$16 sps:$4 sm:$0xff]  }
 0x1f5   :  { %v1911_v36 = vsel %vm1902_vm0, %v1777_v48, %v1857_v17  ;;  %v1912_v43 = vsel %vm1902_vm0, %v1781_v52, %v1861_v18  ;;  %v1913_v37 = vsel %vm1902_vm0, %v1785_v60, %v1865_v21  ;;  %v1914_v38 = vsel %vm1902_vm0, %v1789_v61, %v1869_v22  ;;  %v14052_v21 = vld [vmem:[#allocation4 + $0x208] ss:$16 sps:$4 sm:$0xff]   ;;  %v14081_v18 = vld [vmem:[#allocation4 + $0x2a4] ss:$16 sps:$4 sm:$0xff]  }
 0x1f6   :  { %v1915_v39 = vsel %vm1902_vm0, %v1793_v2, %v1873_v23  ;;  %v1916_v40 = vsel %vm1902_vm0, %v1797_v4, %v1877_v25  ;;  %v1917_v41 = vsel %vm1902_vm0, %v1801_v5, %v1881_v26  ;;  %v1918_v42 = vsel %vm1902_vm0, %v1805_v51, %v1885_v27  ;;  %v14057_v23 = vld [vmem:[#allocation4 + $0x224] ss:$16 sps:$4 sm:$0xff]  }
 0x1f7   :  { %v1935_v44 = vcombine.low %v1903_v28, %v1904_v29  ;;  %v1943_v45 = vcombine.low %v1905_v30, %v1906_v31  ;;  %v1951_v46 = vcombine.low %v1907_v32, %v1908_v33  ;;  %v1967_v47 = vcombine.low %v1911_v36, %v1912_v43  ;;  %v14060_v31 = vld [vmem:[#allocation4 + $0x22c] ss:$16 sps:$4 sm:$0xff]   ;;  %v14055_v36 = vld [vmem:[#allocation4 + $0x220] ss:$16 sps:$4 sm:$0xff]  }
 0x1f8   :  { %v1975_v53 = vcombine.low %v1913_v37, %v1914_v38  ;;  %v1983_v48 = vcombine.low %v1915_v39, %v1916_v40  ;;  %v1959_v54 = vcombine.low %v1909_v34, %v1910_v35  ;;  %v1991_v52 = vcombine.low %v1917_v41, %v1918_v42  ;;  %v14058_v42 = vld [vmem:[#allocation4 + $0x228] ss:$16 sps:$4 sm:$0xff]  }
 0x1f9   :  { %v1942_v55 = vrot.slane %v1935_v44, %v15047_v49  ;;  %v1950_v56 = vrot.slane %v1943_v45, %v15047_v49  ;;  %v1958_v58 = vrot.slane %v1951_v46, %v15047_v49  ;;  %v1974_v59 = vrot.slane %v1967_v47, %v15047_v49  ;;  %v14063_v44 = vld [vmem:[#allocation4 + $0x244] ss:$16 sps:$4 sm:$0xff]  }
 0x1fa   :  { %v1966_v60 = vrot.slane %v1959_v54, %v15047_v49  ;;  %v1982_v61 = vrot.slane %v1975_v53, %v15047_v49  ;;  %v1990_v62 = vrot.slane %v1983_v48, %v15047_v49  ;;  %v1998_v63 = vrot.slane %v1991_v52, %v15047_v49  ;;  %v14066_v53 = vld [vmem:[#allocation4 + $0x24c] ss:$16 sps:$4 sm:$0xff]  }
 0x1fb   :  { %v1999_v2 = vcombine.low %v1942_v55, %v1950_v56 }
 0x1fc   :  { %v2000_v4 = vcombine.low %v1958_v58, %v1966_v60  ;;  %v2017_v5 = vcombine.low %v1974_v59, %v1982_v61  ;;  %v2018_v51 = vcombine.low %v1990_v62, %v1998_v63 }
 0x1fd   :  { %v2007_v6 = vrot.slane %v1999_v2, %v15047_v49  ;;  %v14061_v2 = vld [vmem:[#allocation4 + $0x240] ss:$16 sps:$4 sm:$0xff]  }
 0x1fe   :  { %v2014_v7 = vrot.slane %v2000_v4, %v15047_v49  ;;  %v2025_v8 = vrot.slane %v2017_v5, %v15047_v49  ;;  %v2032_v9 = vrot.slane %v2018_v51, %v15047_v49  ;;  %v14064_v4 = vld [vmem:[#allocation4 + $0x248] ss:$16 sps:$4 sm:$0xff]  }
 0x200   :  { %v2015_v10 = vcombine.low %v2007_v6, %v2014_v7  ;;  %v2016_v11 = vcombine.high %v2007_v6, %v2014_v7  ;;  %v2033_v57 = vcombine.low %v2025_v8, %v2032_v9  ;;  %v2034_v12 = vcombine.high %v2025_v8, %v2032_v9  ;;  %v14069_v6 = vld [vmem:[#allocation4 + $0x264] ss:$16 sps:$4 sm:$0xff]   ;;  %v14072_v7 = vld [vmem:[#allocation4 + $0x26c] ss:$16 sps:$4 sm:$0xff]  }
 0x202   :  { %v2036_v14 = vrot.slane %v2016_v11, 7  ;;  %v2038_v15 = vrot.slane %v2034_v12, 7  ;;  %v2035_v16 = vrot.slane %v2015_v10, 7  ;;  %v2037_v17 = vrot.slane %v2033_v57, 7  ;;  %v14067_v57 = vld [vmem:[#allocation4 + $0x260] ss:$16 sps:$4 sm:$0xff]  }
 0x203   :  { %v14070_v12 = vld [vmem:[#allocation4 + $0x268] ss:$16 sps:$4 sm:$0xff]  }
 0x204   :  { %v12999_v20 = vpack.c.bf16 %v2038_v15, %v2036_v14  ;;  %v13004_v22 = vpack.c.bf16 %v2037_v17, %v2035_v16  ;;  %v2044_v25 = vsel %vm1902_vm0, 0.0, %v2036_v14  ;;  %v2046_v26 = vsel %vm1902_vm0, 0.0, %v2038_v15 }
 0x205   :  { %v2048_v27 = vsel %vm1902_vm0, %v2036_v14, 0.0  ;;  %v2050_v28 = vsel %vm1902_vm0, %v2038_v15, 0.0  ;;  %v2063_v29 = vrot.slane %v2044_v25, 1  ;;  %v2069_v30 = vrot.slane %v2046_v26, 1  ;;  %v14075_v14 = vld [vmem:[#allocation4 + $0x284] ss:$16 sps:$4 sm:$0xff]  }
 0x206   :  { %13000 = vmatprep.mubr.msk.bf16.mxu0 %vm15187_vm2, %v12999_v20  ;;  %13010 = vmatprep.mubr.msk.bf16.mxu1 %vm15187_vm2, %v12999_v20  ;;  %v2064_v32 = vrot.slane %v2048_v27, 1  ;;  %v2070_v33 = vrot.slane %v2050_v28, 1  ;;  %v2043_v34 = vsel %vm1902_vm0, 0.0, %v2035_v16  ;;  %v2045_v35 = vsel %vm1902_vm0, 0.0, %v2037_v17  ;;  %v14078_v15 = vld [vmem:[#allocation4 + $0x28c] ss:$16 sps:$4 sm:$0xff]  }
 0x207   :  { %13005 = vmatmul.mubr.msk.bf16.vlgmr.msra.gmra.mrb[4].mxu0 %vm15187_vm2, %v13004_v22  ;;  %13015 = vmatmul.mubr.msk.bf16.vlgmr.msra.gmra.mrb[4].mxu1 %vm15187_vm2, %v13004_v22  ;;  %v2047_v43 = vsel %vm1902_vm0, %v2035_v16, 0.0  ;;  %v2049_v37 = vsel %vm1902_vm0, %v2037_v17, 0.0  ;;  %v2060_v38 = vrot.slane %v2043_v34, 1  ;;  %v2066_v39 = vrot.slane %v2045_v35, 1  ;;  %v14073_v16 = vld [vmem:[#allocation4 + $0x280] ss:$16 sps:$4 sm:$0xff]  }
 0x208   :  { %3317 = vmatpush1.bf16.msra.mxu0 %v14049_v19  ;;  %3446 = vmatpush1.bf16.msra.mxu1 %v14052_v21  ;;  %v2065_v40 = vsel %vm2059_vm3, %v2063_v29, %v2064_v32  ;;  %v2071_v41 = vsel %vm2059_vm3, %v2069_v30, %v2070_v33  ;;  %v2061_v45 = vrot.slane %v2047_v43, 1  ;;  %v2067_v46 = vrot.slane %v2049_v37, 1  ;;  %v14076_v17 = vld [vmem:[#allocation4 + $0x288] ss:$16 sps:$4 sm:$0xff]   ;;  %v14084_v19 = vld [vmem:[#allocation4 + $0x2ac] ss:$16 sps:$4 sm:$0xff]  }
 0x209   :  { %3318 = vmatprep.subr.bf16.mxu0 %v14057_v23  ;;  %v2096_v47 = vpack.c.bf16 %v2071_v41, %v2065_v40  ;;  %3447 = vmatprep.subr.bf16.mxu1 %v14060_v31  ;;  %v2080_v48 = vrot.slane %v2044_v25, 2  ;;  %v2081_v54 = vrot.slane %v2048_v27, 2  ;;  %v2086_v52 = vrot.slane %v2046_v26, 2  ;;  %v14079_v20 = vld [vmem:[#allocation4 + $0x2a0] ss:$16 sps:$4 sm:$0xff]  }
 0x20a   :  { %v2062_v55 = vsel %vm2059_vm3, %v2060_v38, %v2061_v45  ;;  %v2068_v56 = vsel %vm2059_vm3, %v2066_v39, %v2067_v46  ;;  %v2087_v58 = vrot.slane %v2050_v28, 2  ;;  %v2077_v59 = vrot.slane %v2043_v34, 2  ;;  %v14082_v21 = vld [vmem:[#allocation4 + $0x2a8] ss:$16 sps:$4 sm:$0xff]   ;;  %v14087_v22 = vld [vmem:[#allocation4 + $0x2c4] ss:$16 sps:$4 sm:$0xff]  }
 0x20b   :  { %3348 = vmatprep.mubr.bf16.mxu0 %v2096_v47  ;;  %3477 = vmatprep.mubr.bf16.mxu1 %v2096_v47  ;;  %v15211_v60 = vpack.c.bf16 %v2068_v56, %v2062_v55  ;;  %v2082_v61 = vsel %vm2076_vm4, %v2080_v48, %v2081_v54  ;;  %v2078_v62 = vrot.slane %v2047_v43, 2  ;;  %v2083_v63 = vrot.slane %v2045_v35, 2  ;;  %v14090_v23 = vld [vmem:[#allocation4 + $0x2cc] ss:$16 sps:$4 sm:$0xff]   ;;  %v14085_v25 = vld [vmem:[#allocation4 + $0x2c0] ss:$16 sps:$4 sm:$0xff]  }
 0x20c   :  { %3319 = vmatpush1.bf16.msra.mxu0 %v14055_v36  ;;  %3448 = vmatpush1.bf16.msra.mxu1 %v14058_v42  ;;  %v2088_v5 = vsel %vm2076_vm4, %v2086_v52, %v2087_v58  ;;  %v2084_v51 = vrot.slane %v2049_v37, 2  ;;  %v14088_v26 = vld [vmem:[#allocation4 + $0x2c8] ss:$16 sps:$4 sm:$0xff]   ;;  %v14093_v27 = vld [vmem:[#allocation4 + $0x2e4] ss:$16 sps:$4 sm:$0xff]  }
 0x20d   :  { %3320 = vmatprep.subr.bf16.mxu0 %v14063_v44  ;;  %3449 = vmatprep.subr.bf16.mxu1 %v14066_v53  ;;  %v15215_v8 = vpack.c.bf16 %v2088_v5, %v2082_v61  ;;  %v2079_v9 = vsel %vm2076_vm4, %v2077_v59, %v2078_v62  ;;  %v14096_v28 = vld [vmem:[#allocation4 + $0x2ec] ss:$16 sps:$4 sm:$0xff]   ;;  %v14091_v29 = vld [vmem:[#allocation4 + $0x2e0] ss:$16 sps:$4 sm:$0xff]   ;;  %v14094_v30 = vld [vmem:[#allocation4 + $0x2e8] ss:$16 sps:$4 sm:$0xff]  }
 0x20e   :  { %v2085_v10 = vsel %vm2076_vm4, %v2083_v63, %v2084_v51  ;;  %v14099_v31 = vld [vmem:[#allocation4 + $0x304] ss:$16 sps:$4 sm:$0xff]   ;;  %v14102_v32 = vld [vmem:[#allocation4 + $0x30c] ss:$16 sps:$4 sm:$0xff]   ;;  %v14097_v33 = vld [vmem:[#allocation4 + $0x300] ss:$16 sps:$4 sm:$0xff]  }
 0x20f   :  { %v15219_v11 = vpack.c.bf16 %v2085_v10, %v2079_v9  ;;  %v14100_v34 = vld [vmem:[#allocation4 + $0x308] ss:$16 sps:$4 sm:$0xff]   ;;  %v14105_v35 = vld [vmem:[#allocation4 + $0x324] ss:$16 sps:$4 sm:$0xff]   ;;  %v14108_v36 = vld [vmem:[#allocation4 + $0x32c] ss:$16 sps:$4 sm:$0xff]  }
 0x210   :  { %3321 = vmatpush1.bf16.msra.mxu0 %v14061_v2  ;;  %3450 = vmatpush1.bf16.msra.mxu1 %v14064_v4  ;;  %v14103_v43 = vld [vmem:[#allocation4 + $0x320] ss:$16 sps:$4 sm:$0xff]   ;;  %v14106_v37 = vld [vmem:[#allocation4 + $0x328] ss:$16 sps:$4 sm:$0xff]   ;;  %v14111_v38 = vld [vmem:[#allocation4 + $0x344] ss:$16 sps:$4 sm:$0xff]  }
 0x211   :  { %3322 = vmatprep.subr.bf16.mxu0 %v14069_v6  ;;  %3451 = vmatprep.subr.bf16.mxu1 %v14072_v7  ;;  %v14114_v39 = vld [vmem:[#allocation4 + $0x34c] ss:$16 sps:$4 sm:$0xff]   ;;  %v14109_v40 = vld [vmem:[#allocation4 + $0x340] ss:$16 sps:$4 sm:$0xff]   ;;  %v14112_v41 = vld [vmem:[#allocation4 + $0x348] ss:$16 sps:$4 sm:$0xff]  }
 0x212   :  { %v14117_v42 = vld [vmem:[#allocation4 + $0x364] ss:$16 sps:$4 sm:$0xff]   ;;  %v14120_v44 = vld [vmem:[#allocation4 + $0x36c] ss:$16 sps:$4 sm:$0xff]   ;;  %v14115_v45 = vld [vmem:[#allocation4 + $0x360] ss:$16 sps:$4 sm:$0xff]  }
 0x213   :  { %v14118_v46 = vld [vmem:[#allocation4 + $0x368] ss:$16 sps:$4 sm:$0xff]   ;;  %v14123_v47 = vld [vmem:[#allocation4 + $0x384] ss:$16 sps:$4 sm:$0xff]   ;;  %v14126_v53 = vld [vmem:[#allocation4 + $0x38c] ss:$16 sps:$4 sm:$0xff]  }
 0x214   :  { %3323 = vmatpush1.bf16.msra.mxu0 %v14067_v57  ;;  %3452 = vmatpush1.bf16.msra.mxu1 %v14070_v12  ;;  %v14121_v48 = vld [vmem:[#allocation4 + $0x380] ss:$16 sps:$4 sm:$0xff]   ;;  %v14124_v54 = vld [vmem:[#allocation4 + $0x388] ss:$16 sps:$4 sm:$0xff]   ;;  %v14129_v52 = vld [vmem:[#allocation4 + $0x3a4] ss:$16 sps:$4 sm:$0xff]  }
 0x215   :  { %3324 = vmatprep.subr.bf16.mxu0 %v14075_v14  ;;  %3453 = vmatprep.subr.bf16.mxu1 %v14078_v15  ;;  %v14132_v55 = vld [vmem:[#allocation4 + $0x3ac] ss:$16 sps:$4 sm:$0xff]   ;;  %v14127_v56 = vld [vmem:[#allocation4 + $0x3a0] ss:$16 sps:$4 sm:$0xff]   ;;  %v14130_v58 = vld [vmem:[#allocation4 + $0x3a8] ss:$16 sps:$4 sm:$0xff]  }
 0x216   :  { %v14135_v59 = vld [vmem:[#allocation4 + $0x3c4] ss:$16 sps:$4 sm:$0xff]   ;;  %v14138_v61 = vld [vmem:[#allocation4 + $0x3cc] ss:$16 sps:$4 sm:$0xff]   ;;  %v14133_v62 = vld [vmem:[#allocation4 + $0x3c0] ss:$16 sps:$4 sm:$0xff]  }
 0x217   :  { %v14136_v63 = vld [vmem:[#allocation4 + $0x3c8] ss:$16 sps:$4 sm:$0xff]   ;;  %v14141_v2 = vld [vmem:[#allocation4 + $0x3e4] ss:$16 sps:$4 sm:$0xff]   ;;  %v14144_v4 = vld [vmem:[#allocation4 + $0x3ec] ss:$16 sps:$4 sm:$0xff]  }
 0x218   :  { %3325 = vmatpush1.bf16.msra.mxu0 %v14073_v16  ;;  %3454 = vmatpush1.bf16.msra.mxu1 %v14076_v17  ;;  %v14139_v5 = vld [vmem:[#allocation4 + $0x3e0] ss:$16 sps:$4 sm:$0xff]   ;;  %v14142_v51 = vld [vmem:[#allocation4 + $0x3e8] ss:$16 sps:$4 sm:$0xff]   ;;  %v14147_v6 = vld [vmem:[#allocation4 + $0x404] ss:$16 sps:$4 sm:$0xff]  }
 0x219   :  { %3326 = vmatprep.subr.bf16.mxu0 %v14081_v18  ;;  %3455 = vmatprep.subr.bf16.mxu1 %v14084_v19  ;;  %v14150_v7 = vld [vmem:[#allocation4 + $0x40c] ss:$16 sps:$4 sm:$0xff]   ;;  %v14145_v9 = vld [vmem:[#allocation4 + $0x400] ss:$16 sps:$4 sm:$0xff]   ;;  %v14148_v10 = vld [vmem:[#allocation4 + $0x408] ss:$16 sps:$4 sm:$0xff]  }
 0x21a   :  { %v14153_v57 = vld [vmem:[#allocation4 + $0x424] ss:$16 sps:$4 sm:$0xff]   ;;  %v14156_v12 = vld [vmem:[#allocation4 + $0x42c] ss:$16 sps:$4 sm:$0xff]   ;;  %v14151_v14 = vld [vmem:[#allocation4 + $0x420] ss:$16 sps:$4 sm:$0xff]  }
 0x21b   :  { %v14154_v15 = vld [vmem:[#allocation4 + $0x428] ss:$16 sps:$4 sm:$0xff]   ;;  %v14159_v16 = vld [vmem:[#allocation4 + $0x444] ss:$16 sps:$4 sm:$0xff]   ;;  %v14162_v17 = vld [vmem:[#allocation4 + $0x44c] ss:$16 sps:$4 sm:$0xff]  }
 0x21c   :  { %3327 = vmatpush1.bf16.msra.mxu0 %v14079_v20  ;;  %3456 = vmatpush1.bf16.msra.mxu1 %v14082_v21  ;;  %v14157_v18 = vld [vmem:[#allocation4 + $0x440] ss:$16 sps:$4 sm:$0xff]   ;;  %v14160_v19 = vld [vmem:[#allocation4 + $0x448] ss:$16 sps:$4 sm:$0xff]   ;;  %v14165_v20 = vld [vmem:[#allocation4 + $0x464] ss:$16 sps:$4 sm:$0xff]  }
 0x21d   :  { %3328 = vmatprep.subr.bf16.mxu0 %v14087_v22  ;;  %3457 = vmatprep.subr.bf16.mxu1 %v14090_v23  ;;  %v14163_v21 = vld [vmem:[#allocation4 + $0x460] ss:$16 sps:$4 sm:$0xff]   ;;  %v14166_v22 = vld [vmem:[#allocation4 + $0x468] ss:$16 sps:$4 sm:$0xff]   ;;  %v14171_v23 = vld [vmem:[#allocation4 + $0x484] ss:$16 sps:$4 sm:$0xff]  }
 0x220   :  { %3329 = vmatpush1.bf16.msra.mxu0 %v14085_v25  ;;  %3458 = vmatpush1.bf16.msra.mxu1 %v14088_v26  ;;  %v14169_v25 = vld [vmem:[#allocation4 + $0x480] ss:$16 sps:$4 sm:$0xff]   ;;  %v14172_v26 = vld [vmem:[#allocation4 + $0x488] ss:$16 sps:$4 sm:$0xff]  }
 0x221   :  { %3330 = vmatprep.subr.bf16.mxu0 %v14093_v27  ;;  %3459 = vmatprep.subr.bf16.mxu1 %v14096_v28  ;;  %v14177_v27 = vld [vmem:[#allocation4 + $0x4a4] ss:$16 sps:$4 sm:$0xff]   ;;  %v14180_v28 = vld [vmem:[#allocation4 + $0x4ac] ss:$16 sps:$4 sm:$0xff]  }
 0x224   :  { %3331 = vmatpush1.bf16.msra.mxu0 %v14091_v29  ;;  %3460 = vmatpush1.bf16.msra.mxu1 %v14094_v30  ;;  %v14175_v29 = vld [vmem:[#allocation4 + $0x4a0] ss:$16 sps:$4 sm:$0xff]   ;;  %v14178_v30 = vld [vmem:[#allocation4 + $0x4a8] ss:$16 sps:$4 sm:$0xff]  }
 0x225   :  { %3332 = vmatprep.subr.bf16.mxu0 %v14099_v31  ;;  %3461 = vmatprep.subr.bf16.mxu1 %v14102_v32  ;;  %v14183_v31 = vld [vmem:[#allocation4 + $0x4c4] ss:$16 sps:$4 sm:$0xff]   ;;  %v14186_v32 = vld [vmem:[#allocation4 + $0x4cc] ss:$16 sps:$4 sm:$0xff]  }
 0x228   :  { %3333 = vmatpush1.bf16.msra.mxu0 %v14097_v33  ;;  %3462 = vmatpush1.bf16.msra.mxu1 %v14100_v34  ;;  %v14181_v33 = vld [vmem:[#allocation4 + $0x4c0] ss:$16 sps:$4 sm:$0xff]   ;;  %v14184_v34 = vld [vmem:[#allocation4 + $0x4c8] ss:$16 sps:$4 sm:$0xff]  }
 0x229   :  { %3334 = vmatprep.subr.bf16.mxu0 %v14105_v35  ;;  %3463 = vmatprep.subr.bf16.mxu1 %v14108_v36  ;;  %v14189_v35 = vld [vmem:[#allocation4 + $0x4e4] ss:$16 sps:$4 sm:$0xff]   ;;  %v14192_v36 = vld [vmem:[#allocation4 + $0x4ec] ss:$16 sps:$4 sm:$0xff]  }
 0x22c   :  { %3335 = vmatpush1.bf16.msra.mxu0 %v14103_v43  ;;  %3464 = vmatpush1.bf16.msra.mxu1 %v14106_v37  ;;  %v14187_v43 = vld [vmem:[#allocation4 + $0x4e0] ss:$16 sps:$4 sm:$0xff]   ;;  %v14190_v37 = vld [vmem:[#allocation4 + $0x4e8] ss:$16 sps:$4 sm:$0xff]  }
 0x22d   :  { %3336 = vmatprep.subr.bf16.mxu0 %v14111_v38  ;;  %3465 = vmatprep.subr.bf16.mxu1 %v14114_v39  ;;  %v14195_v38 = vld [vmem:[#allocation4 + $0x504] ss:$16 sps:$4 sm:$0xff]   ;;  %v14198_v39 = vld [vmem:[#allocation4 + $0x50c] ss:$16 sps:$4 sm:$0xff]  }
 0x230   :  { %3337 = vmatpush1.bf16.msra.mxu0 %v14109_v40  ;;  %3466 = vmatpush1.bf16.msra.mxu1 %v14112_v41  ;;  %v14193_v40 = vld [vmem:[#allocation4 + $0x500] ss:$16 sps:$4 sm:$0xff]   ;;  %v14196_v41 = vld [vmem:[#allocation4 + $0x508] ss:$16 sps:$4 sm:$0xff]  }
 0x231   :  { %3338 = vmatprep.subr.bf16.mxu0 %v14117_v42  ;;  %3467 = vmatprep.subr.bf16.mxu1 %v14120_v44  ;;  %v14201_v42 = vld [vmem:[#allocation4 + $0x524] ss:$16 sps:$4 sm:$0xff]   ;;  %v14204_v44 = vld [vmem:[#allocation4 + $0x52c] ss:$16 sps:$4 sm:$0xff]  }
 0x234   :  { %3339 = vmatpush1.bf16.msra.mxu0 %v14115_v45  ;;  %3468 = vmatpush1.bf16.msra.mxu1 %v14118_v46  ;;  %v14199_v45 = vld [vmem:[#allocation4 + $0x520] ss:$16 sps:$4 sm:$0xff]   ;;  %v14202_v46 = vld [vmem:[#allocation4 + $0x528] ss:$16 sps:$4 sm:$0xff]  }
 0x235   :  { %3340 = vmatprep.subr.bf16.mxu0 %v14123_v47  ;;  %3469 = vmatprep.subr.bf16.mxu1 %v14126_v53  ;;  %v14207_v47 = vld [vmem:[#allocation4 + $0x544] ss:$16 sps:$4 sm:$0xff]   ;;  %v14210_v53 = vld [vmem:[#allocation4 + $0x54c] ss:$16 sps:$4 sm:$0xff]  }
 0x238   :  { %3341 = vmatpush1.bf16.msra.mxu0 %v14121_v48  ;;  %3470 = vmatpush1.bf16.msra.mxu1 %v14124_v54  ;;  %v14205_v48 = vld [vmem:[#allocation4 + $0x540] ss:$16 sps:$4 sm:$0xff]   ;;  %v14208_v54 = vld [vmem:[#allocation4 + $0x548] ss:$16 sps:$4 sm:$0xff]  }
 0x239   :  { %3342 = vmatprep.subr.bf16.mxu0 %v14129_v52  ;;  %3471 = vmatprep.subr.bf16.mxu1 %v14132_v55  ;;  %v14213_v52 = vld [vmem:[#allocation4 + $0x564] ss:$16 sps:$4 sm:$0xff]   ;;  %v14216_v55 = vld [vmem:[#allocation4 + $0x56c] ss:$16 sps:$4 sm:$0xff]  }
 0x23c   :  { %3343 = vmatpush1.bf16.msra.mxu0 %v14127_v56  ;;  %3472 = vmatpush1.bf16.msra.mxu1 %v14130_v58  ;;  %v14211_v56 = vld [vmem:[#allocation4 + $0x560] ss:$16 sps:$4 sm:$0xff]   ;;  %v14214_v58 = vld [vmem:[#allocation4 + $0x568] ss:$16 sps:$4 sm:$0xff]  }
 0x23d   :  { %3344 = vmatprep.subr.bf16.mxu0 %v14135_v59  ;;  %3473 = vmatprep.subr.bf16.mxu1 %v14138_v61  ;;  %v14219_v59 = vld [vmem:[#allocation4 + $0x584] ss:$16 sps:$4 sm:$0xff]   ;;  %v14222_v61 = vld [vmem:[#allocation4 + $0x58c] ss:$16 sps:$4 sm:$0xff]  }
 0x240   :  { %3345 = vmatpush1.bf16.msra.mxu0 %v14133_v62  ;;  %3474 = vmatpush1.bf16.msra.mxu1 %v14136_v63  ;;  %v14217_v62 = vld [vmem:[#allocation4 + $0x580] ss:$16 sps:$4 sm:$0xff]   ;;  %v14220_v63 = vld [vmem:[#allocation4 + $0x588] ss:$16 sps:$4 sm:$0xff]  }
 0x241   :  { %3346 = vmatprep.subr.bf16.mxu0 %v14141_v2  ;;  %3475 = vmatprep.subr.bf16.mxu1 %v14144_v4  ;;  %v14225_v2 = vld [vmem:[#allocation4 + $0x5a4] ss:$16 sps:$4 sm:$0xff]   ;;  %v14228_v4 = vld [vmem:[#allocation4 + $0x5ac] ss:$16 sps:$4 sm:$0xff]  }
 0x244   :  { %3347 = vmatpush1.bf16.msra.mxu0 %v14139_v5  ;;  %3476 = vmatpush1.bf16.msra.mxu1 %v14142_v51  ;;  %v14223_v5 = vld [vmem:[#allocation4 + $0x5a0] ss:$16 sps:$4 sm:$0xff]   ;;  %v14226_v51 = vld [vmem:[#allocation4 + $0x5a8] ss:$16 sps:$4 sm:$0xff]  }
 0x245   :  { %3359 = vmatprep.subr.bf16.mxu0 %v14147_v6  ;;  %3488 = vmatprep.subr.bf16.mxu1 %v14150_v7  ;;  %v14231_v6 = vld [vmem:[#allocation4 + $0x5c4] ss:$16 sps:$4 sm:$0xff]   ;;  %v14234_v7 = vld [vmem:[#allocation4 + $0x5cc] ss:$16 sps:$4 sm:$0xff]  }
 0x247   :  { %3349 = vmatmul.mubr.bf16.vlgmr.msra.gmra.mrb[4].mxu0 %v15211_v60  ;;  %3478 = vmatmul.mubr.bf16.vlgmr.msra.gmra.mrb[4].mxu1 %v15211_v60  ;;  %v14168_v60 = vld [vmem:[#allocation4 + $0x46c] ss:$16 sps:$4 sm:$0xff]  }
 0x248   :  { %3360 = vmatpush1.bf16.msra.mxu0 %v14145_v9  ;;  %3391 = vmatprep.mubr.bf16.mxu0 %v15215_v8  ;;  %v14229_v9 = vld [vmem:[#allocation4 + $0x5c0] ss:$16 sps:$4 sm:$0xff]  }
 0x249   :  { %3489 = vmatpush1.bf16.msra.mxu1 %v14148_v10  ;;  %3520 = vmatprep.mubr.bf16.mxu1 %v15215_v8  ;;  %v14174_v8 = vld [vmem:[#allocation4 + $0x48c] ss:$16 sps:$4 sm:$0xff]   ;;  %v14232_v10 = vld [vmem:[#allocation4 + $0x5c8] ss:$16 sps:$4 sm:$0xff]  }
 0x24a   :  { %3361 = vmatprep.subr.bf16.mxu0 %v14153_v57  ;;  %3490 = vmatprep.subr.bf16.mxu1 %v14156_v12  ;;  %v14237_v57 = vld [vmem:[#allocation4 + $0x5e4] ss:$16 sps:$4 sm:$0xff]   ;;  %v14240_v12 = vld [vmem:[#allocation4 + $0x5ec] ss:$16 sps:$4 sm:$0xff]  }
 0x24c   :  { %3362 = vmatpush1.bf16.msra.mxu0 %v14151_v14  ;;  %v14235_v14 = vld [vmem:[#allocation4 + $0x5e0] ss:$16 sps:$4 sm:$0xff]  }
 0x24d   :  { %3491 = vmatpush1.bf16.msra.mxu1 %v14154_v15  ;;  %3363 = vmatprep.subr.bf16.mxu0 %v14159_v16  ;;  %v14238_v15 = vld [vmem:[#allocation4 + $0x5e8] ss:$16 sps:$4 sm:$0xff]   ;;  %v14243_v16 = vld [vmem:[#allocation6 + $0x4] ss:$16 sps:$4 sm:$0xff]  }
 0x24e   :  { %3492 = vmatprep.subr.bf16.mxu1 %v14162_v17  ;;  %v14246_v17 = vld [vmem:[#allocation6 + $0xc] ss:$16 sps:$4 sm:$0xff]  }
 0x250   :  { %3364 = vmatpush1.bf16.msra.mxu0 %v14157_v18  ;;  %v14241_v18 = vld [vmem:[#allocation6] ss:$16 sps:$4 sm:$0xff]  }
 0x251   :  { %3493 = vmatpush1.bf16.msra.mxu1 %v14160_v19  ;;  %3365 = vmatprep.subr.bf16.mxu0 %v14165_v20  ;;  %v14244_v19 = vld [vmem:[#allocation6 + $0x8] ss:$16 sps:$4 sm:$0xff]   ;;  %v14249_v20 = vld [vmem:[#allocation6 + $0x24] ss:$16 sps:$4 sm:$0xff]  }
 0x252   :  { %3494 = vmatprep.subr.bf16.mxu1 %v14168_v60  ;;  %v14252_v60 = vld [vmem:[#allocation6 + $0x2c] ss:$16 sps:$4 sm:$0xff]  }
 0x254   :  { %3366 = vmatpush1.bf16.msra.mxu0 %v14163_v21  ;;  %v14247_v21 = vld [vmem:[#allocation6 + $0x20] ss:$16 sps:$4 sm:$0xff]  }
 0x255   :  { %3495 = vmatpush1.bf16.msra.mxu1 %v14166_v22  ;;  %3367 = vmatprep.subr.bf16.mxu0 %v14171_v23  ;;  %v14250_v22 = vld [vmem:[#allocation6 + $0x28] ss:$16 sps:$4 sm:$0xff]   ;;  %v14255_v23 = vld [vmem:[#allocation6 + $0x44] ss:$16 sps:$4 sm:$0xff]  }
 0x256   :  { %3496 = vmatprep.subr.bf16.mxu1 %v14174_v8  ;;  %v14258_v8 = vld [vmem:[#allocation6 + $0x4c] ss:$16 sps:$4 sm:$0xff]  }
 0x258   :  { %3368 = vmatpush1.bf16.msra.mxu0 %v14169_v25  ;;  %v14253_v25 = vld [vmem:[#allocation6 + $0x40] ss:$16 sps:$4 sm:$0xff]  }
 0x259   :  { %3497 = vmatpush1.bf16.msra.mxu1 %v14172_v26  ;;  %3369 = vmatprep.subr.bf16.mxu0 %v14177_v27  ;;  %v14256_v26 = vld [vmem:[#allocation6 + $0x48] ss:$16 sps:$4 sm:$0xff]   ;;  %v14261_v27 = vld [vmem:[#allocation6 + $0x64] ss:$16 sps:$4 sm:$0xff]  }
 0x25a   :  { %3498 = vmatprep.subr.bf16.mxu1 %v14180_v28  ;;  %v14264_v28 = vld [vmem:[#allocation6 + $0x6c] ss:$16 sps:$4 sm:$0xff]  }
 0x25c   :  { %3370 = vmatpush1.bf16.msra.mxu0 %v14175_v29  ;;  %v14259_v29 = vld [vmem:[#allocation6 + $0x60] ss:$16 sps:$4 sm:$0xff]  }
 0x25d   :  { %3499 = vmatpush1.bf16.msra.mxu1 %v14178_v30  ;;  %3371 = vmatprep.subr.bf16.mxu0 %v14183_v31  ;;  %v14267_v30 = vld [vmem:[#allocation6 + $0x84] ss:$16 sps:$4 sm:$0xff]   ;;  %v14270_v31 = vld [vmem:[#allocation6 + $0x8c] ss:$16 sps:$4 sm:$0xff]  }
 0x25e   :  { %3500 = vmatprep.subr.bf16.mxu1 %v14186_v32  ;;  %v14265_v32 = vld [vmem:[#allocation6 + $0x80] ss:$16 sps:$4 sm:$0xff]  }
 0x260   :  { %3372 = vmatpush1.bf16.msra.mxu0 %v14181_v33  ;;  %v14268_v33 = vld [vmem:[#allocation6 + $0x88] ss:$16 sps:$4 sm:$0xff]  }
 0x261   :  { %3501 = vmatpush1.bf16.msra.mxu1 %v14184_v34  ;;  %3373 = vmatprep.subr.bf16.mxu0 %v14189_v35  ;;  %v14273_v34 = vld [vmem:[#allocation6 + $0xa4] ss:$16 sps:$4 sm:$0xff]   ;;  %v14276_v35 = vld [vmem:[#allocation6 + $0xac] ss:$16 sps:$4 sm:$0xff]  }
 0x262   :  { %3502 = vmatprep.subr.bf16.mxu1 %v14192_v36  ;;  %v14271_v36 = vld [vmem:[#allocation6 + $0xa0] ss:$16 sps:$4 sm:$0xff]  }
 0x264   :  { %3374 = vmatpush1.bf16.msra.mxu0 %v14187_v43  ;;  %v14274_v43 = vld [vmem:[#allocation6 + $0xa8] ss:$16 sps:$4 sm:$0xff]  }
 0x265   :  { %3503 = vmatpush1.bf16.msra.mxu1 %v14190_v37  ;;  %3375 = vmatprep.subr.bf16.mxu0 %v14195_v38  ;;  %v14279_v37 = vld [vmem:[#allocation6 + $0xc4] ss:$16 sps:$4 sm:$0xff]   ;;  %v14282_v38 = vld [vmem:[#allocation6 + $0xcc] ss:$16 sps:$4 sm:$0xff]  }
 0x266   :  { %3504 = vmatprep.subr.bf16.mxu1 %v14198_v39  ;;  %v14277_v39 = vld [vmem:[#allocation6 + $0xc0] ss:$16 sps:$4 sm:$0xff]  }
 0x268   :  { %3376 = vmatpush1.bf16.msra.mxu0 %v14193_v40  ;;  %v14280_v40 = vld [vmem:[#allocation6 + $0xc8] ss:$16 sps:$4 sm:$0xff]  }
 0x269   :  { %3505 = vmatpush1.bf16.msra.mxu1 %v14196_v41  ;;  %3377 = vmatprep.subr.bf16.mxu0 %v14201_v42  ;;  %v14285_v41 = vld [vmem:[#allocation6 + $0xe4] ss:$16 sps:$4 sm:$0xff]   ;;  %v14288_v42 = vld [vmem:[#allocation6 + $0xec] ss:$16 sps:$4 sm:$0xff]  }
 0x26a   :  { %3506 = vmatprep.subr.bf16.mxu1 %v14204_v44  ;;  %v14283_v44 = vld [vmem:[#allocation6 + $0xe0] ss:$16 sps:$4 sm:$0xff]  }
 0x26c   :  { %3378 = vmatpush1.bf16.msra.mxu0 %v14199_v45  ;;  %v14286_v45 = vld [vmem:[#allocation6 + $0xe8] ss:$16 sps:$4 sm:$0xff]  }
 0x26d   :  { %3507 = vmatpush1.bf16.msra.mxu1 %v14202_v46  ;;  %3379 = vmatprep.subr.bf16.mxu0 %v14207_v47  ;;  %v14291_v46 = vld [vmem:[#allocation6 + $0x104] ss:$16 sps:$4 sm:$0xff]   ;;  %v14294_v47 = vld [vmem:[#allocation6 + $0x10c] ss:$16 sps:$4 sm:$0xff]  }
 0x26e   :  { %3508 = vmatprep.subr.bf16.mxu1 %v14210_v53  ;;  %v14289_v53 = vld [vmem:[#allocation6 + $0x100] ss:$16 sps:$4 sm:$0xff]  }
 0x270   :  { %3380 = vmatpush1.bf16.msra.mxu0 %v14205_v48  ;;  %v14292_v48 = vld [vmem:[#allocation6 + $0x108] ss:$16 sps:$4 sm:$0xff]  }
 0x271   :  { %3509 = vmatpush1.bf16.msra.mxu1 %v14208_v54  ;;  %3381 = vmatprep.subr.bf16.mxu0 %v14213_v52  ;;  %v14297_v54 = vld [vmem:[#allocation6 + $0x124] ss:$16 sps:$4 sm:$0xff]   ;;  %v14300_v52 = vld [vmem:[#allocation6 + $0x12c] ss:$16 sps:$4 sm:$0xff]  }
 0x272   :  { %3510 = vmatprep.subr.bf16.mxu1 %v14216_v55  ;;  %v14295_v55 = vld [vmem:[#allocation6 + $0x120] ss:$16 sps:$4 sm:$0xff]  }
 0x274   :  { %3382 = vmatpush1.bf16.msra.mxu0 %v14211_v56  ;;  %v14298_v56 = vld [vmem:[#allocation6 + $0x128] ss:$16 sps:$4 sm:$0xff]  }
 0x275   :  { %3511 = vmatpush1.bf16.msra.mxu1 %v14214_v58  ;;  %3383 = vmatprep.subr.bf16.mxu0 %v14219_v59  ;;  %v14303_v58 = vld [vmem:[#allocation6 + $0x144] ss:$16 sps:$4 sm:$0xff]   ;;  %v14306_v59 = vld [vmem:[#allocation6 + $0x14c] ss:$16 sps:$4 sm:$0xff]  }
 0x276   :  { %3512 = vmatprep.subr.bf16.mxu1 %v14222_v61  ;;  %v14301_v61 = vld [vmem:[#allocation6 + $0x140] ss:$16 sps:$4 sm:$0xff]  }
 0x278   :  { %3384 = vmatpush1.bf16.msra.mxu0 %v14217_v62  ;;  %v14304_v62 = vld [vmem:[#allocation6 + $0x148] ss:$16 sps:$4 sm:$0xff]  }
 0x279   :  { %3513 = vmatpush1.bf16.msra.mxu1 %v14220_v63  ;;  %3385 = vmatprep.subr.bf16.mxu0 %v14225_v2  ;;  %v14309_v63 = vld [vmem:[#allocation6 + $0x164] ss:$16 sps:$4 sm:$0xff]   ;;  %v14312_v2 = vld [vmem:[#allocation6 + $0x16c] ss:$16 sps:$4 sm:$0xff]  }
 0x27a   :  { %3514 = vmatprep.subr.bf16.mxu1 %v14228_v4  ;;  %v14307_v4 = vld [vmem:[#allocation6 + $0x160] ss:$16 sps:$4 sm:$0xff]  }
 0x27c   :  { %3386 = vmatpush1.bf16.msra.mxu0 %v14223_v5  ;;  %v14310_v5 = vld [vmem:[#allocation6 + $0x168] ss:$16 sps:$4 sm:$0xff]  }
 0x27d   :  { %3515 = vmatpush1.bf16.msra.mxu1 %v14226_v51  ;;  %3387 = vmatprep.subr.bf16.mxu0 %v14231_v6  ;;  %v14315_v51 = vld [vmem:[#allocation6 + $0x184] ss:$16 sps:$4 sm:$0xff]   ;;  %v14318_v6 = vld [vmem:[#allocation6 + $0x18c] ss:$16 sps:$4 sm:$0xff]  }
 0x27e   :  { %3516 = vmatprep.subr.bf16.mxu1 %v14234_v7  ;;  %v14313_v7 = vld [vmem:[#allocation6 + $0x180] ss:$16 sps:$4 sm:$0xff]  }
 0x280   :  { %3388 = vmatpush1.bf16.msra.mxu0 %v14229_v9  ;;  %v14316_v9 = vld [vmem:[#allocation6 + $0x188] ss:$16 sps:$4 sm:$0xff]  }
 0x281   :  { %3517 = vmatpush1.bf16.msra.mxu1 %v14232_v10  ;;  %3389 = vmatprep.subr.bf16.mxu0 %v14237_v57  ;;  %v14319_v10 = vld [vmem:[#allocation6 + $0x1a0] ss:$16 sps:$4 sm:$0xff]   ;;  %v14321_v57 = vld [vmem:[#allocation6 + $0x1a4] ss:$16 sps:$4 sm:$0xff]  }
 0x282   :  { %3518 = vmatprep.subr.bf16.mxu1 %v14240_v12  ;;  %v14322_v12 = vld [vmem:[#allocation6 + $0x1a8] ss:$16 sps:$4 sm:$0xff]  }
 0x284   :  { %3390 = vmatpush1.bf16.msra.mxu0 %v14235_v14  ;;  %v14324_v14 = vld [vmem:[#allocation6 + $0x1ac] ss:$16 sps:$4 sm:$0xff]  }
 0x285   :  { %3519 = vmatpush1.bf16.msra.mxu1 %v14238_v15  ;;  %5613 = vmatprep.subr.bf16.mxu0 %v14243_v16  ;;  %v14327_v15 = vld [vmem:[#allocation6 + $0x1c4] ss:$16 sps:$4 sm:$0xff]   ;;  %v14330_v16 = vld [vmem:[#allocation6 + $0x1cc] ss:$16 sps:$4 sm:$0xff]  }
 0x286   :  { %5772 = vmatprep.subr.bf16.mxu1 %v14246_v17  ;;  %v14325_v17 = vld [vmem:[#allocation6 + $0x1c0] ss:$16 sps:$4 sm:$0xff]  }
 0x287   :  { %3392 = vmatmul.mubr.bf16.vlgmr.msra.gmra.mrb[4].mxu0 %v15219_v11 }
 0x288   :  { %3521 = vmatmul.mubr.bf16.vlgmr.msra.gmra.mrb[4].mxu1 %v15219_v11  ;;  %5614 = vmatpush1.bf16.msra.mxu0 %v14241_v18  ;;  %v14262_v11 = vld [vmem:[#allocation6 + $0x68] ss:$16 sps:$4 sm:$0xff]  }
 0x289   :  { %5773 = vmatpush1.bf16.msra.mxu1 %v14244_v19  ;;  %5615 = vmatprep.subr.bf16.mxu0 %v14249_v20  ;;  %v14328_v18 = vld [vmem:[#allocation6 + $0x1c8] ss:$16 sps:$4 sm:$0xff]   ;;  %v14333_v19 = vld [vmem:[#allocation6 + $0x1e4] ss:$16 sps:$4 sm:$0xff]   ;;  %v14336_v20 = vld [vmem:[#allocation6 + $0x1ec] ss:$16 sps:$4 sm:$0xff]  }
 0x28a   :  { %5774 = vmatprep.subr.bf16.mxu1 %v14252_v60  ;;  %v14331_v60 = vld [vmem:[#allocation6 + $0x1e0] ss:$16 sps:$4 sm:$0xff]  }
 0x28c   :  { %5616 = vmatpush1.bf16.msra.mxu0 %v14247_v21  ;;  %v14334_v21 = vld [vmem:[#allocation6 + $0x1e8] ss:$16 sps:$4 sm:$0xff]  }
 0x28d   :  { %5775 = vmatpush1.bf16.msra.mxu1 %v14250_v22  ;;  %5617 = vmatprep.subr.bf16.mxu0 %v14255_v23  ;;  %v14339_v22 = vld [vmem:[#allocation6 + $0x204] ss:$16 sps:$4 sm:$0xff]   ;;  %v14342_v23 = vld [vmem:[#allocation6 + $0x20c] ss:$16 sps:$4 sm:$0xff]  }
 0x28e   :  { %5776 = vmatprep.subr.bf16.mxu1 %v14258_v8  ;;  %v2291_v8 = vld [vmem:[%s17459_s4] sm:$0xf] }
 0x290   :  { %5618 = vmatpush1.bf16.msra.mxu0 %v14253_v25  ;;  %v2296_v25 = vrot.slane %v2291_v8, %v15086_v50 }
 0x291   :  { %5777 = vmatpush1.bf16.msra.mxu1 %v14256_v26  ;;  %5619 = vmatprep.subr.bf16.mxu0 %v14261_v27  ;;  %v2304_v26 = vrot.slane %v2291_v8, %v15089_v0  ;;  %v2300_v27 = vrot.slane %v2291_v8, %v15092_v1 }
 0x292   :  { %5778 = vmatprep.subr.bf16.mxu1 %v14264_v28  ;;  %v2308_v28 = vrot.slane %v2291_v8, %v15098_v3 }
 0x294   :  { %5620 = vmatpush1.bf16.msra.mxu0 %v14259_v29 }
 0x295   :  { %5779 = vmatpush1.bf16.msra.mxu1 %v14262_v11  ;;  %5621 = vmatprep.subr.bf16.mxu0 %v14267_v30 }
 0x296   :  { %5780 = vmatprep.subr.bf16.mxu1 %v14270_v31 }
 0x298   :  { %5622 = vmatpush1.bf16.msra.mxu0 %v14265_v32 }
 0x299   :  { %5781 = vmatpush1.bf16.msra.mxu1 %v14268_v33  ;;  %5623 = vmatprep.subr.bf16.mxu0 %v14273_v34 }
 0x29a   :  { %5782 = vmatprep.subr.bf16.mxu1 %v14276_v35 }
 0x29c   :  { %5624 = vmatpush1.bf16.msra.mxu0 %v14271_v36 }
 0x29d   :  { %5783 = vmatpush1.bf16.msra.mxu1 %v14274_v43  ;;  %5625 = vmatprep.subr.bf16.mxu0 %v14279_v37 }
 0x29e   :  { %5784 = vmatprep.subr.bf16.mxu1 %v14282_v38 }
 0x2a0   :  { %5626 = vmatpush1.bf16.msra.mxu0 %v14277_v39 }
 0x2a1   :  { %5785 = vmatpush1.bf16.msra.mxu1 %v14280_v40  ;;  %5627 = vmatprep.subr.bf16.mxu0 %v14285_v41 }
 0x2a2   :  { %5786 = vmatprep.subr.bf16.mxu1 %v14288_v42 }
 0x2a4   :  { %5628 = vmatpush1.bf16.msra.mxu0 %v14283_v44 }
 0x2a5   :  { %5787 = vmatpush1.bf16.msra.mxu1 %v14286_v45  ;;  %5629 = vmatprep.subr.bf16.mxu0 %v14291_v46 }
 0x2a6   :  { %5788 = vmatprep.subr.bf16.mxu1 %v14294_v47 }
 0x2a8   :  { %5630 = vmatpush1.bf16.msra.mxu0 %v14289_v53 }
 0x2a9   :  { %5789 = vmatpush1.bf16.msra.mxu1 %v14292_v48  ;;  %5631 = vmatprep.subr.bf16.mxu0 %v14297_v54 }
 0x2aa   :  { %5790 = vmatprep.subr.bf16.mxu1 %v14300_v52 }
 0x2ac   :  { %5632 = vmatpush1.bf16.msra.mxu0 %v14295_v55 }
 0x2ad   :  { %5791 = vmatpush1.bf16.msra.mxu1 %v14298_v56  ;;  %5633 = vmatprep.subr.bf16.mxu0 %v14303_v58 }
 0x2ae   :  { %5792 = vmatprep.subr.bf16.mxu1 %v14306_v59 }
 0x2b0   :  { %5634 = vmatpush1.bf16.msra.mxu0 %v14301_v61 }
 0x2b1   :  { %5793 = vmatpush1.bf16.msra.mxu1 %v14304_v62  ;;  %5635 = vmatprep.subr.bf16.mxu0 %v14309_v63 }
 0x2b2   :  { %5794 = vmatprep.subr.bf16.mxu1 %v14312_v2 }
 0x2b4   :  { %5636 = vmatpush1.bf16.msra.mxu0 %v14307_v4 }
 0x2b5   :  { %5795 = vmatpush1.bf16.msra.mxu1 %v14310_v5  ;;  %5637 = vmatprep.subr.bf16.mxu0 %v14315_v51 }
 0x2b6   :  { %5796 = vmatprep.subr.bf16.mxu1 %v14318_v6 }
 0x2b8   :  { %5638 = vmatpush1.bf16.msra.mxu0 %v14313_v7 }
 0x2b9   :  { %5797 = vmatpush1.bf16.msra.mxu1 %v14316_v9  ;;  %5639 = vmatprep.subr.bf16.mxu0 %v14321_v57 }
 0x2ba   :  { %5798 = vmatprep.subr.bf16.mxu1 %v14324_v14 }
 0x2bc   :  { %5640 = vmatpush1.bf16.msra.mxu0 %v14319_v10 }
 0x2bd   :  { %5799 = vmatpush1.bf16.msra.mxu1 %v14322_v12  ;;  %5641 = vmatprep.subr.bf16.mxu0 %v14327_v15 }
 0x2be   :  { %5800 = vmatprep.subr.bf16.mxu1 %v14330_v16 }
 0x2c0   :  { %5642 = vmatpush1.bf16.msra.mxu0 %v14325_v17 }
 0x2c1   :  { %5801 = vmatpush1.bf16.msra.mxu1 %v14328_v18  ;;  %5643 = vmatprep.subr.bf16.mxu0 %v14333_v19 }
 0x2c2   :  { %5802 = vmatprep.subr.bf16.mxu1 %v14336_v20 }
 0x2c4   :  { %5644 = vmatpush1.bf16.msra.mxu0 %v14331_v60 }
 0x2c5   :  { %5803 = vmatpush1.bf16.msra.mxu1 %v14334_v21  ;;  %5666 = vmatprep.subr.bf16.mxu0 %v14339_v22 }
 0x2c6   :  { %5825 = vmatprep.subr.bf16.mxu1 %v14342_v23 }
 0x35a   :  { %v3393_v29 = vpop.f32.mrb[4].mxu0 }
 0x35b   :  { %v13468_v11 = vadd.f32 %v3393_v29, %v2296_v25  ;;  %v3522_v30 = vpop.f32.mrb[4].mxu1  ;;  %v3395_v31 = vpop.f32.mrb[5].mxu0 }
 0x35c   :  { %v13472_v32 = vadd.f32 %v3522_v30, %v2304_v26  ;;  %v13469_v33 = vadd.f32 %v3395_v31, %v2300_v27  ;;  %v3524_v34 = vpop.f32.mrb[5].mxu1  ;;  %v3397_v35 = vpop.f32.mrb[6].mxu0 }
 0x35d   :  { %v3531_v36 = vmax.f32 %v13468_v11, 0.0  ;;  %v13473_v43 = vadd.f32 %v3524_v34, %v2308_v28  ;;  %v13470_v37 = vadd.f32 %v3397_v35, %v2296_v25  ;;  %v3526_v38 = vpop.f32.mrb[6].mxu1  ;;  %v3399_v39 = vpop.f32.mrb[7].mxu0 }
 0x35e   :  { %v3533_v40 = vmax.f32 %v13472_v32, 0.0  ;;  %v3532_v41 = vmax.f32 %v13469_v33, 0.0  ;;  %v13474_v42 = vadd.f32 %v3526_v38, %v2304_v26  ;;  %v13471_v44 = vadd.f32 %v3399_v39, %v2300_v27  ;;  %v3528_v45 = vpop.f32.mrb[7].mxu1 }
 0x35f   :  { %v3534_v46 = vmax.f32 %v13473_v43, 0.0  ;;  %v3535_v47 = vmax.f32 %v13470_v37, 0.0  ;;  %v13475_v53 = vadd.f32 %v3528_v45, %v2308_v28 }
 0x360   :  { %v3543_v48 = vcombine.low %v3531_v36, %v3532_v41  ;;  %v3544_v54 = vcombine.high %v3531_v36, %v3532_v41  ;;  %v3537_v52 = vmax.f32 %v13474_v42, 0.0  ;;  %v3536_v55 = vmax.f32 %v13471_v44, 0.0 }
 0x361   :  { %v3647_v56 = vcombine.low %v3533_v40, %v3534_v46  ;;  %v3648_v58 = vcombine.high %v3533_v40, %v3534_v46  ;;  %v3538_v59 = vmax.f32 %v13475_v53, 0.0 }
 0x362   :  { %v3551_v61 = vrot.slane %v3543_v48, %v15105_v24  ;;  %v3558_v62 = vrot.slane %v3544_v54, %v15105_v24  ;;  %v15236_v63 = vcombine.low %v3535_v47, %v3536_v55  ;;  %v15238_v2 = vcombine.high %v3535_v47, %v3536_v55 }
 0x363   :  { %v3655_v4 = vrot.slane %v3647_v56, %v15105_v24  ;;  %v3662_v5 = vrot.slane %v3648_v58, %v15105_v24  ;;  %v15242_v51 = vcombine.low %v3537_v52, %v3538_v59  ;;  %v15244_v6 = vcombine.high %v3537_v52, %v3538_v59 }
 0x364   :  { %v3559_v7 = vcombine.high %v3551_v61, %v3551_v61  ;;  %v3560_v9 = vcombine.high %v3558_v62, %v3558_v62  ;;  %v3567_v10 = vrot.slane %v3551_v61, %v15105_v24  ;;  %v3574_v57 = vrot.slane %v3558_v62, %v15105_v24 }
 0x365   :  { %v3663_v12 = vcombine.high %v3655_v4, %v3655_v4  ;;  %v3664_v14 = vcombine.high %v3662_v5, %v3662_v5  ;;  %v3671_v15 = vrot.slane %v3655_v4, %v15105_v24  ;;  %v3678_v16 = vrot.slane %v3662_v5, %v15105_v24 }
 0x366   :  { %v3581_v17 = vrot.slane %v3559_v7, %v15105_v24  ;;  %v3588_v18 = vrot.slane %v3560_v9, %v15105_v24  ;;  %v3589_v19 = vcombine.high %v3567_v10, %v3567_v10  ;;  %v3590_v20 = vcombine.high %v3574_v57, %v3574_v57 }
 0x367   :  { %v3750_v60 = vrot.slane %v3567_v10, %v15086_v50  ;;  %v3754_v21 = vrot.slane %v3567_v10, %v15092_v1  ;;  %v3782_v22 = vrot.slane %v3574_v57, %v15086_v50  ;;  %v3786_v23 = vrot.slane %v3574_v57, %v15092_v1 }
 0x368   :  { %v3591_v8 = vcombine.high %v3581_v17, %v3581_v17  ;;  %v3592_v25 = vcombine.high %v3588_v18, %v3588_v18  ;;  %v3758_v26 = vrot.slane %v3581_v17, %v15086_v50  ;;  %v3762_v27 = vrot.slane %v3581_v17, %v15092_v1 }
 0x369   :  { %v3766_v28 = vrot.slane %v3589_v19, %v15086_v50  ;;  %v3770_v29 = vrot.slane %v3589_v19, %v15092_v1  ;;  %v3790_v11 = vrot.slane %v3588_v18, %v15086_v50  ;;  %v3794_v30 = vrot.slane %v3588_v18, %v15092_v1 }
 0x36a   :  { %v3774_v31 = vrot.slane %v3591_v8, %v15086_v50  ;;  %v3778_v32 = vrot.slane %v3591_v8, %v15092_v1  ;;  %v3798_v33 = vrot.slane %v3590_v20, %v15086_v50  ;;  %v3802_v34 = vrot.slane %v3590_v20, %v15092_v1 }
 0x36b   :  { %v3806_v35 = vrot.slane %v3592_v25, %v15086_v50  ;;  %v3810_v36 = vrot.slane %v3592_v25, %v15092_v1  ;;  %v3685_v43 = vrot.slane %v3663_v12, %v15105_v24  ;;  %v3692_v37 = vrot.slane %v3664_v14, %v15105_v24 }
 0x36c   :  { %v3693_v38 = vcombine.high %v3671_v15, %v3671_v15  ;;  %v3694_v39 = vcombine.high %v3678_v16, %v3678_v16  ;;  %v3910_v40 = vrot.slane %v3671_v15, %v15086_v50  ;;  %v3914_v41 = vrot.slane %v3671_v15, %v15092_v1 }
 0x36d   :  { %v3695_v42 = vcombine.high %v3685_v43, %v3685_v43  ;;  %v3696_v44 = vcombine.high %v3692_v37, %v3692_v37  ;;  %v3918_v45 = vrot.slane %v3685_v43, %v15086_v50  ;;  %v3922_v46 = vrot.slane %v3685_v43, %v15092_v1 }
 0x36e   :  { %v3926_v47 = vrot.slane %v3693_v38, %v15086_v50  ;;  %v3930_v53 = vrot.slane %v3693_v38, %v15092_v1  ;;  %v3942_v48 = vrot.slane %v3678_v16, %v15086_v50  ;;  %v3946_v54 = vrot.slane %v3678_v16, %v15092_v1 }
 0x36f   :  { %v3934_v52 = vrot.slane %v3695_v42, %v15086_v50  ;;  %v3938_v55 = vrot.slane %v3695_v42, %v15092_v1  ;;  %v3950_v56 = vrot.slane %v3692_v37, %v15086_v50  ;;  %v3954_v58 = vrot.slane %v3692_v37, %v15092_v1 }
 0x370   :  { %v3958_v59 = vrot.slane %v3694_v39, %v15086_v50  ;;  %v3962_v61 = vrot.slane %v3694_v39, %v15092_v1  ;;  %v3966_v62 = vrot.slane %v3696_v44, %v15086_v50  ;;  %v3970_v4 = vrot.slane %v3696_v44, %v15092_v1 }
 0x371   :  { %v4067_v5 = vsel %vm1902_vm0, %v3750_v60, %v3910_v40  ;;  %v4068_v7 = vsel %vm1902_vm0, %v3754_v21, %v3914_v41  ;;  %v4069_v9 = vsel %vm1902_vm0, %v3758_v26, %v3918_v45  ;;  %v4070_v10 = vsel %vm1902_vm0, %v3762_v27, %v3922_v46 }
 0x372   :  { %v4071_v57 = vsel %vm1902_vm0, %v3766_v28, %v3926_v47  ;;  %v4072_v12 = vsel %vm1902_vm0, %v3770_v29, %v3930_v53  ;;  %v15293_v14 = vsel %vm1902_vm0, %v3774_v31, %v3934_v52  ;;  %v15296_v15 = vsel %vm1902_vm0, %v3778_v32, %v3938_v55 }
 0x373   :  { %v4075_v16 = vsel %vm1902_vm0, %v3782_v22, %v3942_v48  ;;  %v4076_v17 = vsel %vm1902_vm0, %v3786_v23, %v3946_v54  ;;  %v15301_v18 = vsel %vm1902_vm0, %v3790_v11, %v3950_v56  ;;  %v15304_v19 = vsel %vm1902_vm0, %v3794_v30, %v3954_v58 }
 0x374   :  { %v15307_v20 = vsel %vm1902_vm0, %v3798_v33, %v3958_v59  ;;  %v15310_v60 = vsel %vm1902_vm0, %v3802_v34, %v3962_v61  ;;  %v15313_v21 = vsel %vm1902_vm0, %v3806_v35, %v3966_v62  ;;  %v15316_v8 = vsel %vm1902_vm0, %v3810_v36, %v3970_v4 }
 0x375   :  { %v4131_v22 = vcombine.low %v4067_v5, %v4068_v7  ;;  %v4139_v23 = vcombine.low %v4069_v9, %v4070_v10  ;;  %v4147_v25 = vcombine.low %v4071_v57, %v4072_v12  ;;  %v4163_v26 = vcombine.low %v4075_v16, %v4076_v17 }
 0x376   :  { %v4171_v27 = vcombine.low %v15301_v18, %v15304_v19  ;;  %v4179_v28 = vcombine.low %v15307_v20, %v15310_v60  ;;  %v4187_v29 = vcombine.low %v15313_v21, %v15316_v8  ;;  %v3601_v11 = vrot.slane %v15236_v63, %v15105_v24 }
 0x377   :  { %v15327_v30 = vrot.slane %v4163_v26, %v15047_v49  ;;  %v3608_v31 = vrot.slane %v15238_v2, %v15105_v24  ;;  %v3705_v32 = vrot.slane %v15242_v51, %v15105_v24  ;;  %v3712_v33 = vrot.slane %v15244_v6, %v15105_v24 }
 0x378   :  { %v3609_v34 = vcombine.high %v3601_v11, %v3601_v11  ;;  %v3617_v35 = vrot.slane %v3601_v11, %v15105_v24  ;;  %v15337_v36 = vrot.slane %v4131_v22, %v15047_v49  ;;  %v15340_v63 = vrot.slane %v4139_v23, %v15047_v49 }
 0x379   :  { %v3610_v43 = vcombine.high %v3608_v31, %v3608_v31  ;;  %v3624_v37 = vrot.slane %v3608_v31, %v15105_v24  ;;  %v3713_v38 = vcombine.high %v3705_v32, %v3705_v32  ;;  %v3714_v2 = vcombine.high %v3712_v33, %v3712_v33 }
 0x37a   :  { %v3631_v39 = vrot.slane %v3609_v34, %v15105_v24  ;;  %v3639_v51 = vcombine.high %v3617_v35, %v3617_v35  ;;  %v3814_v40 = vrot.slane %v3617_v35, %v15086_v50  ;;  %v3818_v6 = vrot.slane %v3617_v35, %v15092_v1 }
 0x37b   :  { %v3638_v41 = vrot.slane %v3610_v43, %v15105_v24  ;;  %v3640_v42 = vcombine.high %v3624_v37, %v3624_v37  ;;  %v3846_v44 = vrot.slane %v3624_v37, %v15086_v50  ;;  %v3850_v45 = vrot.slane %v3624_v37, %v15092_v1 }
 0x37c   :  { %v3641_v46 = vcombine.high %v3631_v39, %v3631_v39  ;;  %v3822_v47 = vrot.slane %v3631_v39, %v15086_v50  ;;  %v3826_v53 = vrot.slane %v3631_v39, %v15092_v1  ;;  %v3830_v48 = vrot.slane %v3639_v51, %v15086_v50 }
 0x37d   :  { %v3642_v54 = vcombine.high %v3638_v41, %v3638_v41  ;;  %v3834_v52 = vrot.slane %v3639_v51, %v15092_v1  ;;  %v3854_v55 = vrot.slane %v3638_v41, %v15086_v50  ;;  %v3858_v56 = vrot.slane %v3638_v41, %v15092_v1 }
 0x37e   :  { %v3838_v58 = vrot.slane %v3641_v46, %v15086_v50  ;;  %v3842_v59 = vrot.slane %v3641_v46, %v15092_v1  ;;  %v3862_v61 = vrot.slane %v3640_v42, %v15086_v50  ;;  %v3866_v62 = vrot.slane %v3640_v42, %v15092_v1 }
 0x37f   :  { %v3870_v4 = vrot.slane %v3642_v54, %v15086_v50  ;;  %v3874_v5 = vrot.slane %v3642_v54, %v15092_v1  ;;  %v3721_v7 = vrot.slane %v3705_v32, %v15105_v24  ;;  %v3728_v9 = vrot.slane %v3712_v33, %v15105_v24 }
 0x380   :  { %v3735_v10 = vrot.slane %v3713_v38, %v15105_v24  ;;  %v3742_v57 = vrot.slane %v3714_v2, %v15105_v24  ;;  %v4154_v12 = vrot.slane %v4147_v25, %v15047_v49  ;;  %v4155_v16 = vcombine.low %v15293_v14, %v15296_v15 }
 0x381   :  { %v3743_v17 = vcombine.high %v3721_v7, %v3721_v7  ;;  %v3744_v22 = vcombine.high %v3728_v9, %v3728_v9  ;;  %v3974_v23 = vrot.slane %v3721_v7, %v15086_v50  ;;  %v3978_v26 = vrot.slane %v3721_v7, %v15092_v1 }
 0x382   :  { %v3745_v11 = vcombine.high %v3735_v10, %v3735_v10  ;;  %v3746_v31 = vcombine.high %v3742_v57, %v3742_v57  ;;  %v3982_v32 = vrot.slane %v3735_v10, %v15086_v50  ;;  %v3986_v33 = vrot.slane %v3735_v10, %v15092_v1 }
 0x383   :  { %v3990_v34 = vrot.slane %v3743_v17, %v15086_v50  ;;  %v3994_v35 = vrot.slane %v3743_v17, %v15092_v1  ;;  %v4006_v25 = vrot.slane %v3728_v9, %v15086_v50  ;;  %v4010_v14 = vrot.slane %v3728_v9, %v15092_v1 }
 0x384   :  { %v3998_v15 = vrot.slane %v3745_v11, %v15086_v50  ;;  %v4002_v43 = vrot.slane %v3745_v11, %v15092_v1  ;;  %v4014_v37 = vrot.slane %v3742_v57, %v15086_v50  ;;  %v4018_v38 = vrot.slane %v3742_v57, %v15092_v1 }
 0x385   :  { %v4022_v2 = vrot.slane %v3744_v22, %v15086_v50  ;;  %v4026_v39 = vrot.slane %v3744_v22, %v15092_v1  ;;  %v4030_v51 = vrot.slane %v3746_v31, %v15086_v50  ;;  %v4034_v41 = vrot.slane %v3746_v31, %v15092_v1 }
 0x386   :  { %v4083_v42 = vsel %vm1902_vm0, %v3814_v40, %v3974_v23  ;;  %v4084_v46 = vsel %vm1902_vm0, %v3818_v6, %v3978_v26  ;;  %v4085_v54 = vsel %vm1902_vm0, %v3822_v47, %v3982_v32  ;;  %v4086_v7 = vsel %vm1902_vm0, %v3826_v53, %v3986_v33 }
 0x387   :  { %v4087_v9 = vsel %vm1902_vm0, %v3830_v48, %v3990_v34  ;;  %v4088_v10 = vsel %vm1902_vm0, %v3834_v52, %v3994_v35  ;;  %v4089_v57 = vsel %vm1902_vm0, %v3838_v58, %v3998_v15  ;;  %v4090_v17 = vsel %vm1902_vm0, %v3842_v59, %v4002_v43 }
 0x388   :  { %v4091_v22 = vsel %vm1902_vm0, %v3846_v44, %v4006_v25  ;;  %v4092_v11 = vsel %vm1902_vm0, %v3850_v45, %v4010_v14  ;;  %v4093_v40 = vsel %vm1902_vm0, %v3854_v55, %v4014_v37  ;;  %v4094_v6 = vsel %vm1902_vm0, %v3858_v56, %v4018_v38 }
 0x389   :  { %v4095_v47 = vsel %vm1902_vm0, %v3862_v61, %v4022_v2  ;;  %v4096_v53 = vsel %vm1902_vm0, %v3866_v62, %v4026_v39  ;;  %v4097_v48 = vsel %vm1902_vm0, %v3870_v4, %v4030_v51  ;;  %v4098_v52 = vsel %vm1902_vm0, %v3874_v5, %v4034_v41 }
 0x38a   :  { %v4195_v23 = vcombine.low %v4083_v42, %v4084_v46  ;;  %v4203_v58 = vcombine.low %v4085_v54, %v4086_v7  ;;  %v4211_v26 = vcombine.low %v4087_v9, %v4088_v10  ;;  %v4227_v59 = vcombine.low %v4091_v22, %v4092_v11 }
 0x38b   :  { %v4235_v31 = vcombine.low %v4093_v40, %v4094_v6  ;;  %v4243_v44 = vcombine.low %v4095_v47, %v4096_v53  ;;  %v4251_v32 = vcombine.low %v4097_v48, %v4098_v52  ;;  %v4162_v45 = vrot.slane %v4155_v16, %v15047_v49  ;;  %v14337_v6 = vld [vmem:[#allocation6 + $0x200] ss:$16 sps:$4 sm:$0xff]   ;;  %v14340_v47 = vld [vmem:[#allocation6 + $0x208] ss:$16 sps:$4 sm:$0xff]  }
 0x38c   :  { %v4234_v55 = vrot.slane %v4227_v59, %v15047_v49  ;;  %v4178_v56 = vrot.slane %v4171_v27, %v15047_v49  ;;  %v4186_v61 = vrot.slane %v4179_v28, %v15047_v49  ;;  %v4194_v62 = vrot.slane %v4187_v29, %v15047_v49 }
 0x38d   :  { %v4259_v4 = vcombine.low %v15337_v36, %v15340_v63  ;;  %v4260_v5 = vcombine.low %v4154_v12, %v4162_v45  ;;  %v4202_v16 = vrot.slane %v4195_v23, %v15047_v49  ;;  %v4210_v33 = vrot.slane %v4203_v58, %v15047_v49  ;;  %v14345_v58 = vld [vmem:[#allocation6 + $0x224] ss:$16 sps:$4 sm:$0xff]  }
 0x38e   :  { %v4277_v18 = vcombine.low %v15327_v30, %v4178_v56  ;;  %v4278_v19 = vcombine.low %v4186_v61, %v4194_v62  ;;  %v4218_v27 = vrot.slane %v4211_v26, %v15047_v49  ;;  %v4219_v20 = vcombine.low %v4089_v57, %v4090_v17  ;;  %v14348_v26 = vld [vmem:[#allocation6 + $0x22c] ss:$16 sps:$4 sm:$0xff]  }
 0x38f   :  { %v4267_v60 = vrot.slane %v4259_v4, %v15047_v49  ;;  %v4274_v28 = vrot.slane %v4260_v5, %v15047_v49  ;;  %v4242_v21 = vrot.slane %v4235_v31, %v15047_v49  ;;  %v4250_v8 = vrot.slane %v4243_v44, %v15047_v49 }
 0x390   :  { %v4285_v29 = vrot.slane %v4277_v18, %v15047_v49  ;;  %v4292_v36 = vrot.slane %v4278_v19, %v15047_v49  ;;  %v4226_v63 = vrot.slane %v4219_v20, %v15047_v49  ;;  %v4258_v30 = vrot.slane %v4251_v32, %v15047_v49  ;;  %v14351_v20 = vld [vmem:[#allocation6 + $0x244] ss:$16 sps:$4 sm:$0xff]  }
 0x391   :  { %v4275_v12 = vcombine.low %v4267_v60, %v4274_v28  ;;  %v4276_v34 = vcombine.high %v4267_v60, %v4274_v28  ;;  %v4295_v35 = vcombine.low %v4202_v16, %v4210_v33  ;;  %v4313_v25 = vcombine.low %v4234_v55, %v4242_v21  ;;  %v14343_v16 = vld [vmem:[#allocation6 + $0x220] ss:$16 sps:$4 sm:$0xff]   ;;  %v14346_v33 = vld [vmem:[#allocation6 + $0x228] ss:$16 sps:$4 sm:$0xff]   ;;  %v14354_v60 = vld [vmem:[#allocation6 + $0x24c] ss:$16 sps:$4 sm:$0xff]  }
 0x392   :  { %v4293_v14 = vcombine.low %v4285_v29, %v4292_v36  ;;  %v4294_v15 = vcombine.high %v4285_v29, %v4292_v36  ;;  %v4296_v43 = vcombine.low %v4218_v27, %v4226_v63  ;;  %v4314_v37 = vcombine.low %v4250_v8, %v4258_v30 }
 0x393   :  { %v4332_v38 = vrot.slane %v4276_v34, 7  ;;  %v4331_v2 = vrot.slane %v4275_v12, 7  ;;  %v4303_v39 = vrot.slane %v4295_v35, %v15047_v49  ;;  %v4321_v51 = vrot.slane %v4313_v25, %v15047_v49  ;;  %v14349_v34 = vld [vmem:[#allocation6 + $0x240] ss:$16 sps:$4 sm:$0xff]  }
 0x394   :  { %v4335_v41 = vrot.slane %v4294_v15, 7  ;;  %v4333_v42 = vrot.slane %v4293_v14, 7  ;;  %v4310_v46 = vrot.slane %v4296_v43, %v15047_v49  ;;  %v4328_v54 = vrot.slane %v4314_v37, %v15047_v49  ;;  %v14352_v43 = vld [vmem:[#allocation6 + $0x248] ss:$16 sps:$4 sm:$0xff]  }
 0x395   :  { %v15433_v7 = vsel %vm1902_vm0, 0.0, %v4332_v38  ;;  %v15436_v9 = vsel %vm1902_vm0, 0.0, %v4331_v2  ;;  %v17493_v10 = vmov 0 }
 0x396   :  { %v17494_v10 = vsel %vm15440_vm6, 4294967295, %v17493_v10  ;;  %v15445_v57 = vsel %vm1902_vm0, %v4332_v38, %v4335_v41  ;;  %v15448_v17 = vsel %vm1902_vm0, %v4331_v2, %v4333_v42  ;;  %v4312_v22 = vcombine.high %v4303_v39, %v4310_v46 }
 0x397   :  { %17495 = vst [vmem:[#allocation15_spill] sm:$0xff] %v17494_v10  ;;  %v4330_v11 = vcombine.high %v4321_v51, %v4328_v54  ;;  %v13210_v40 = vpack.c.bf16 %v15445_v57, %v4332_v38  ;;  %v4372_v53 = vrot.slane %v15448_v17, 1  ;;  %v4400_v13 = vrot.slane %v15448_v17, 2 }
 0x398   :  { %v13214_v48 = vpack.c.bf16 %v15448_v17, %v4331_v2  ;;  %v4338_v52 = vrot.slane %v4312_v22, 7  ;;  %v4311_v59 = vcombine.low %v4303_v39, %v4310_v46  ;;  %v4329_v31 = vcombine.low %v4321_v51, %v4328_v54  ;;  %v14357_v54 = vld [vmem:[#allocation6 + $0x264] ss:$16 sps:$4 sm:$0xff]   ;;  %v14360_v22 = vld [vmem:[#allocation6 + $0x26c] ss:$16 sps:$4 sm:$0xff]  }
 0x399   :  { %v4341_v23 = vrot.slane %v4330_v11, 7  ;;  %13211 = vmatprep.mubr.msk.bf16.mxu0 %vm15440_vm6, %v13210_v40  ;;  %13227 = vmatprep.mubr.msk.bf16.mxu1 %vm15440_vm6, %v13210_v40  ;;  %v15459_v44 = vsel %vm1902_vm0, %v4335_v41, 0.0  ;;  %v4374_v32 = vrot.slane %v15433_v7, 1  ;;  %v4375_v45 = vrot.slane %v15445_v57, 1 }
 0x39a   :  { %v15464_v55 = vsel %vm1902_vm0, %v4333_v42, 0.0  ;;  %13215 = vmatmul.mubr.msk.bf16.vlgmr.msra.gmra.mrb[8].mxu0 %vm15440_vm6, %v13214_v48  ;;  %13231 = vmatmul.mubr.msk.bf16.vlgmr.msra.gmra.mrb[8].mxu1 %vm15440_vm6, %v13214_v48  ;;  %v4337_v61 = vrot.slane %v4311_v59, 7  ;;  %v4339_v62 = vrot.slane %v4329_v31, 7  ;;  %v4379_v4 = vrot.slane %v15459_v44, 1 }
 0x39b   :  { %v15471_v56 = vsel %vm1902_vm0, %v4338_v52, %v4341_v23  ;;  %5667 = vmatpush1.bf16.msra.mxu0 %v14337_v6  ;;  %5826 = vmatpush1.bf16.msra.mxu1 %v14340_v47  ;;  %v4376_v18 = vsel %vm2059_vm3, %v4374_v32, %v4375_v45  ;;  %v4371_v19 = vrot.slane %v15436_v9, 1  ;;  %v4377_v27 = vrot.slane %v15464_v55, 1  ;;  %v14366_v32 = vld [vmem:[#allocation6 + $0x28c] ss:$16 sps:$4 sm:$0xff]  }
 0x39c   :  { %v13218_v5 = vpack.c.bf16 %v15471_v56, %v4338_v52  ;;  %5668 = vmatprep.subr.bf16.mxu0 %v14345_v58  ;;  %5827 = vmatprep.subr.bf16.mxu1 %v14348_v26  ;;  %v15479_v28 = vsel %vm1902_vm0, %v4337_v61, %v4339_v62  ;;  %v4380_v21 = vsel %vm2059_vm3, %v4375_v45, %v4379_v4  ;;  %v4358_v8 = vsel %vm1902_vm0, 0.0, %v4338_v52  ;;  %v14358_v58 = vld [vmem:[#allocation6 + $0x268] ss:$16 sps:$4 sm:$0xff]  }
 0x39d   :  { %v4362_v29 = vsel %vm1902_vm0, %v4341_v23, 0.0  ;;  %v13222_v36 = vpack.c.bf16 %v15479_v28, %v4337_v61  ;;  %v4430_v63 = vpack.c.bf16 %v4380_v21, %v4376_v18  ;;  %v4373_v30 = vsel %vm2059_vm3, %v4371_v19, %v4372_v53  ;;  %v14355_v23 = vld [vmem:[#allocation6 + $0x260] ss:$16 sps:$4 sm:$0xff]   ;;  %v14364_v19 = vld [vmem:[#allocation6 + $0x288] ss:$16 sps:$4 sm:$0xff]  }
 0x39e   :  { %13219 = vmatprep.mubr.msk.bf16.mxu0 %vm15440_vm6, %v13218_v5  ;;  %13235 = vmatprep.mubr.msk.bf16.mxu1 %vm15440_vm6, %v13218_v5  ;;  %v4384_v12 = vrot.slane %v4358_v8, 1  ;;  %v4378_v35 = vsel %vm2059_vm3, %v4372_v53, %v4377_v27  ;;  %v4385_v25 = vrot.slane %v15471_v56, 1  ;;  %v4389_v14 = vrot.slane %v4362_v29, 1  ;;  %v14361_v18 = vld [vmem:[#allocation6 + $0x280] ss:$16 sps:$4 sm:$0xff]  }
 0x39f   :  { %v4357_v15 = vsel %vm1902_vm0, 0.0, %v4337_v61  ;;  %5669 = vmatpush1.bf16.msra.mxu0 %v14343_v16  ;;  %5828 = vmatpush1.bf16.msra.mxu1 %v14346_v33  ;;  %v15493_v37 = vpack.c.bf16 %v4378_v35, %v4373_v30  ;;  %v4361_v38 = vsel %vm1902_vm0, %v4339_v62, 0.0  ;;  %v4382_v39 = vrot.slane %v15479_v28, 1  ;;  %v14369_v27 = vld [vmem:[#allocation6 + $0x2a4] ss:$16 sps:$4 sm:$0xff]  }
 0x3a0   :  { %v4381_v2 = vrot.slane %v4357_v15, 1  ;;  %5670 = vmatprep.subr.bf16.mxu0 %v14351_v20  ;;  %5829 = vmatprep.subr.bf16.mxu1 %v14354_v60  ;;  %v4386_v51 = vsel %vm2059_vm3, %v4384_v12, %v4385_v25  ;;  %v4390_v41 = vsel %vm2059_vm3, %v4385_v25, %v4389_v14  ;;  %v4387_v42 = vrot.slane %v4361_v38, 1  ;;  %v14372_v20 = vld [vmem:[#allocation6 + $0x2ac] ss:$16 sps:$4 sm:$0xff]   ;;  %v14376_v30 = vld [vmem:[#allocation6 + $0x2c8] ss:$16 sps:$4 sm:$0xff]  }
 0x3a1   :  { %v4402_v46 = vrot.slane %v15433_v7, 2  ;;  %v15500_v11 = vpack.c.bf16 %v4390_v41, %v4386_v51  ;;  %v4403_v6 = vrot.slane %v15445_v57, 2  ;;  %v4407_v47 = vrot.slane %v15459_v44, 2  ;;  %v14363_v44 = vld [vmem:[#allocation6 + $0x284] ss:$16 sps:$4 sm:$0xff]  }
 0x3a2   :  { %v4383_v40 = vsel %vm2059_vm3, %v4381_v2, %v4382_v39  ;;  %13223 = vmatmul.mubr.msk.bf16.gmra.mrb[12].mxu0 %vm15440_vm6, %v13222_v36  ;;  %13239 = vmatmul.mubr.msk.bf16.gmra.mrb[12].mxu1 %vm15440_vm6, %v13222_v36  ;;  %v4388_v53 = vsel %vm2059_vm3, %v4382_v39, %v4387_v42  ;;  %v4399_v7 = vrot.slane %v15436_v9, 2  ;;  %v4405_v48 = vrot.slane %v15464_v55, 2  ;;  %v14378_v36 = vld [vmem:[#allocation6 + $0x2cc] ss:$16 sps:$4 sm:$0xff]   ;;  %v14381_v12 = vld [vmem:[#allocation6 + $0x2e4] ss:$16 sps:$4 sm:$0xff]  }
 0x3a3   :  { %v4412_v52 = vrot.slane %v4358_v8, 2  ;;  %5671 = vmatpush1.bf16.msra.mxu0 %v14349_v34  ;;  %5830 = vmatpush1.bf16.msra.mxu1 %v14352_v43  ;;  %v15512_v57 = vpack.c.bf16 %v4388_v53, %v4383_v40  ;;  %v4404_v26 = vsel %vm2076_vm4, %v4402_v46, %v4403_v6  ;;  %v4408_v59 = vsel %vm2076_vm4, %v4403_v6, %v4407_v47  ;;  %v14370_v8 = vld [vmem:[#allocation6 + $0x2a8] ss:$16 sps:$4 sm:$0xff]   ;;  %v14384_v34 = vld [vmem:[#allocation6 + $0x2ec] ss:$16 sps:$4 sm:$0xff]  }
 0x3a4   :  { %v4413_v31 = vrot.slane %v15471_v56, 2  ;;  %5698 = vmatprep.mubr.bf16.mxu0 %v4430_v63  ;;  %5857 = vmatprep.mubr.bf16.mxu1 %v4430_v63  ;;  %v15517_v9 = vpack.c.bf16 %v4408_v59, %v4404_v26  ;;  %v4401_v45 = vsel %vm2076_vm4, %v4399_v7, %v4400_v13  ;;  %v4406_v55 = vsel %vm2076_vm4, %v4400_v13, %v4405_v48  ;;  %v14373_v63 = vld [vmem:[#allocation6 + $0x2c0] ss:$16 sps:$4 sm:$0xff]   ;;  %v14382_v25 = vld [vmem:[#allocation6 + $0x2e8] ss:$16 sps:$4 sm:$0xff]  }
 0x3a5   :  { %v4417_v61 = vrot.slane %v4362_v29, 2  ;;  %5672 = vmatprep.subr.bf16.mxu0 %v14357_v54  ;;  %5831 = vmatprep.subr.bf16.mxu1 %v14360_v22  ;;  %v15525_v62 = vpack.c.bf16 %v4406_v55, %v4401_v45  ;;  %v4409_v4 = vrot.slane %v4357_v15, 2  ;;  %v4410_v5 = vrot.slane %v15479_v28, 2  ;;  %v14367_v28 = vld [vmem:[#allocation6 + $0x2a0] ss:$16 sps:$4 sm:$0xff]  }
 0x3a6   :  { %v4414_v56 = vsel %vm2076_vm4, %v4412_v52, %v4413_v31  ;;  %v4415_v33 = vrot.slane %v4361_v38, 2  ;;  %v14375_v29 = vld [vmem:[#allocation6 + $0x2c4] ss:$16 sps:$4 sm:$0xff]   ;;  %v14379_v35 = vld [vmem:[#allocation6 + $0x2e0] ss:$16 sps:$4 sm:$0xff]  }
 0x3a7   :  { %v4418_v16 = vsel %vm2076_vm4, %v4413_v31, %v4417_v61  ;;  %5673 = vmatpush1.bf16.msra.mxu0 %v14355_v23  ;;  %5832 = vmatpush1.bf16.msra.mxu1 %v14358_v58  ;;  %v4411_v13 = vsel %vm2076_vm4, %v4409_v4, %v4410_v5  ;;  %v14387_v14 = vld [vmem:[#allocation6 + $0x304] ss:$16 sps:$4 sm:$0xff]   ;;  %v14390_v15 = vld [vmem:[#allocation6 + $0x30c] ss:$16 sps:$4 sm:$0xff]   ;;  %v14385_v43 = vld [vmem:[#allocation6 + $0x300] ss:$16 sps:$4 sm:$0xff]  }
 0x3a8   :  { %v15530_v17 = vpack.c.bf16 %v4418_v16, %v4414_v56  ;;  %5674 = vmatprep.subr.bf16.mxu0 %v14363_v44  ;;  %5833 = vmatprep.subr.bf16.mxu1 %v14366_v32  ;;  %v4416_v60 = vsel %vm2076_vm4, %v4410_v5, %v4415_v33  ;;  %v14388_v38 = vld [vmem:[#allocation6 + $0x308] ss:$16 sps:$4 sm:$0xff]   ;;  %v14393_v2 = vld [vmem:[#allocation6 + $0x324] ss:$16 sps:$4 sm:$0xff]   ;;  %v14396_v39 = vld [vmem:[#allocation6 + $0x32c] ss:$16 sps:$4 sm:$0xff]  }
 0x3a9   :  { %v15534_v21 = vpack.c.bf16 %v4416_v60, %v4411_v13  ;;  %v14391_v51 = vld [vmem:[#allocation6 + $0x320] ss:$16 sps:$4 sm:$0xff]   ;;  %v14394_v41 = vld [vmem:[#allocation6 + $0x328] ss:$16 sps:$4 sm:$0xff]   ;;  %v14399_v42 = vld [vmem:[#allocation6 + $0x344] ss:$16 sps:$4 sm:$0xff]  }
 0x3aa   :  { %v14402_v46 = vld [vmem:[#allocation6 + $0x34c] ss:$16 sps:$4 sm:$0xff]   ;;  %v14397_v54 = vld [vmem:[#allocation6 + $0x340] ss:$16 sps:$4 sm:$0xff]   ;;  %v14400_v22 = vld [vmem:[#allocation6 + $0x348] ss:$16 sps:$4 sm:$0xff]  }
 0x3ab   :  { %5675 = vmatpush1.bf16.msra.mxu0 %v14361_v18  ;;  %5834 = vmatpush1.bf16.msra.mxu1 %v14364_v19  ;;  %v14405_v40 = vld [vmem:[#allocation6 + $0x364] ss:$16 sps:$4 sm:$0xff]   ;;  %v14408_v6 = vld [vmem:[#allocation6 + $0x36c] ss:$16 sps:$4 sm:$0xff]   ;;  %v14403_v47 = vld [vmem:[#allocation6 + $0x360] ss:$16 sps:$4 sm:$0xff]  }
 0x3ac   :  { %5676 = vmatprep.subr.bf16.mxu0 %v14369_v27  ;;  %5835 = vmatprep.subr.bf16.mxu1 %v14372_v20  ;;  %v14406_v53 = vld [vmem:[#allocation6 + $0x368] ss:$16 sps:$4 sm:$0xff]   ;;  %v14411_v7 = vld [vmem:[#allocation6 + $0x384] ss:$16 sps:$4 sm:$0xff]   ;;  %v14414_v48 = vld [vmem:[#allocation6 + $0x38c] ss:$16 sps:$4 sm:$0xff]  }
 0x3ad   :  { %v14409_v52 = vld [vmem:[#allocation6 + $0x380] ss:$16 sps:$4 sm:$0xff]   ;;  %v14412_v23 = vld [vmem:[#allocation6 + $0x388] ss:$16 sps:$4 sm:$0xff]   ;;  %v14417_v58 = vld [vmem:[#allocation6 + $0x3a4] ss:$16 sps:$4 sm:$0xff]  }
 0x3ae   :  { %v14420_v26 = vld [vmem:[#allocation6 + $0x3ac] ss:$16 sps:$4 sm:$0xff]   ;;  %v14415_v59 = vld [vmem:[#allocation6 + $0x3a0] ss:$16 sps:$4 sm:$0xff]   ;;  %v14418_v31 = vld [vmem:[#allocation6 + $0x3a8] ss:$16 sps:$4 sm:$0xff]  }
 0x3af   :  { %5677 = vmatpush1.bf16.msra.mxu0 %v14367_v28  ;;  %5836 = vmatpush1.bf16.msra.mxu1 %v14370_v8  ;;  %v14423_v44 = vld [vmem:[#allocation6 + $0x3c4] ss:$16 sps:$4 sm:$0xff]   ;;  %v14426_v32 = vld [vmem:[#allocation6 + $0x3cc] ss:$16 sps:$4 sm:$0xff]   ;;  %v14421_v45 = vld [vmem:[#allocation6 + $0x3c0] ss:$16 sps:$4 sm:$0xff]  }
 0x3b0   :  { %5678 = vmatprep.subr.bf16.mxu0 %v14375_v29  ;;  %5837 = vmatprep.subr.bf16.mxu1 %v14378_v36  ;;  %v14424_v55 = vld [vmem:[#allocation6 + $0x3c8] ss:$16 sps:$4 sm:$0xff]   ;;  %v14429_v61 = vld [vmem:[#allocation6 + $0x3e4] ss:$16 sps:$4 sm:$0xff]   ;;  %v14432_v56 = vld [vmem:[#allocation6 + $0x3ec] ss:$16 sps:$4 sm:$0xff]  }
 0x3b1   :  { %v14427_v4 = vld [vmem:[#allocation6 + $0x3e0] ss:$16 sps:$4 sm:$0xff]   ;;  %v14430_v5 = vld [vmem:[#allocation6 + $0x3e8] ss:$16 sps:$4 sm:$0xff]   ;;  %v14435_v16 = vld [vmem:[#allocation6 + $0x404] ss:$16 sps:$4 sm:$0xff]  }
 0x3b2   :  { %v14438_v33 = vld [vmem:[#allocation6 + $0x40c] ss:$16 sps:$4 sm:$0xff]   ;;  %v14433_v18 = vld [vmem:[#allocation6 + $0x400] ss:$16 sps:$4 sm:$0xff]   ;;  %v14436_v19 = vld [vmem:[#allocation6 + $0x408] ss:$16 sps:$4 sm:$0xff]  }
 0x3b3   :  { %5679 = vmatpush1.bf16.msra.mxu0 %v14373_v63  ;;  %5838 = vmatpush1.bf16.msra.mxu1 %v14376_v30  ;;  %v14441_v13 = vld [vmem:[#allocation6 + $0x424] ss:$16 sps:$4 sm:$0xff]   ;;  %v14444_v27 = vld [vmem:[#allocation6 + $0x42c] ss:$16 sps:$4 sm:$0xff]   ;;  %v14439_v20 = vld [vmem:[#allocation6 + $0x420] ss:$16 sps:$4 sm:$0xff]  }
 0x3b4   :  { %5680 = vmatprep.subr.bf16.mxu0 %v14381_v12  ;;  %5839 = vmatprep.subr.bf16.mxu1 %v14384_v34  ;;  %v14442_v60 = vld [vmem:[#allocation6 + $0x428] ss:$16 sps:$4 sm:$0xff]   ;;  %v14447_v28 = vld [vmem:[#allocation6 + $0x444] ss:$16 sps:$4 sm:$0xff]   ;;  %v14450_v8 = vld [vmem:[#allocation6 + $0x44c] ss:$16 sps:$4 sm:$0xff]  }
 0x3b5   :  { %v14445_v29 = vld [vmem:[#allocation6 + $0x440] ss:$16 sps:$4 sm:$0xff]   ;;  %v14448_v36 = vld [vmem:[#allocation6 + $0x448] ss:$16 sps:$4 sm:$0xff]   ;;  %v14453_v63 = vld [vmem:[#allocation6 + $0x464] ss:$16 sps:$4 sm:$0xff]  }
 0x3b6   :  { %v14454_v30 = vld [vmem:[#allocation6 + $0x468] ss:$16 sps:$4 sm:$0xff]   ;;  %v14459_v12 = vld [vmem:[#allocation6 + $0x484] ss:$16 sps:$4 sm:$0xff]   ;;  %v14462_v34 = vld [vmem:[#allocation6 + $0x48c] ss:$16 sps:$4 sm:$0xff]  }
 0x3b7   :  { %5681 = vmatpush1.bf16.msra.mxu0 %v14379_v35  ;;  %5840 = vmatpush1.bf16.msra.mxu1 %v14382_v25  ;;  %v14457_v35 = vld [vmem:[#allocation6 + $0x480] ss:$16 sps:$4 sm:$0xff]   ;;  %v14460_v25 = vld [vmem:[#allocation6 + $0x488] ss:$16 sps:$4 sm:$0xff]  }
 0x3b8   :  { %5682 = vmatprep.subr.bf16.mxu0 %v14387_v14  ;;  %5841 = vmatprep.subr.bf16.mxu1 %v14390_v15  ;;  %v14465_v14 = vld [vmem:[#allocation6 + $0x4a4] ss:$16 sps:$4 sm:$0xff]   ;;  %v14463_v15 = vld [vmem:[#allocation6 + $0x4a0] ss:$16 sps:$4 sm:$0xff]  }
 0x3bb   :  { %5683 = vmatpush1.bf16.msra.mxu0 %v14385_v43  ;;  %5842 = vmatpush1.bf16.msra.mxu1 %v14388_v38  ;;  %v14466_v43 = vld [vmem:[#allocation6 + $0x4a8] ss:$16 sps:$4 sm:$0xff]   ;;  %v14471_v38 = vld [vmem:[#allocation6 + $0x4c4] ss:$16 sps:$4 sm:$0xff]  }
 0x3bc   :  { %5684 = vmatprep.subr.bf16.mxu0 %v14393_v2  ;;  %5843 = vmatprep.subr.bf16.mxu1 %v14396_v39  ;;  %v14469_v2 = vld [vmem:[#allocation6 + $0x4c0] ss:$16 sps:$4 sm:$0xff]   ;;  %v14472_v39 = vld [vmem:[#allocation6 + $0x4c8] ss:$16 sps:$4 sm:$0xff]  }
 0x3bf   :  { %5685 = vmatpush1.bf16.msra.mxu0 %v14391_v51  ;;  %5844 = vmatpush1.bf16.msra.mxu1 %v14394_v41  ;;  %v14477_v51 = vld [vmem:[#allocation6 + $0x4e4] ss:$16 sps:$4 sm:$0xff]   ;;  %v14480_v41 = vld [vmem:[#allocation6 + $0x4ec] ss:$16 sps:$4 sm:$0xff]  }
 0x3c0   :  { %5686 = vmatprep.subr.bf16.mxu0 %v14399_v42  ;;  %5845 = vmatprep.subr.bf16.mxu1 %v14402_v46  ;;  %v14475_v42 = vld [vmem:[#allocation6 + $0x4e0] ss:$16 sps:$4 sm:$0xff]   ;;  %v14478_v46 = vld [vmem:[#allocation6 + $0x4e8] ss:$16 sps:$4 sm:$0xff]  }
 0x3c3   :  { %5687 = vmatpush1.bf16.msra.mxu0 %v14397_v54  ;;  %5846 = vmatpush1.bf16.msra.mxu1 %v14400_v22  ;;  %v14483_v54 = vld [vmem:[#allocation6 + $0x504] ss:$16 sps:$4 sm:$0xff]   ;;  %v14486_v22 = vld [vmem:[#allocation6 + $0x50c] ss:$16 sps:$4 sm:$0xff]  }
 0x3c4   :  { %5688 = vmatprep.subr.bf16.mxu0 %v14405_v40  ;;  %5847 = vmatprep.subr.bf16.mxu1 %v14408_v6  ;;  %v14481_v40 = vld [vmem:[#allocation6 + $0x500] ss:$16 sps:$4 sm:$0xff]   ;;  %v14484_v6 = vld [vmem:[#allocation6 + $0x508] ss:$16 sps:$4 sm:$0xff]  }
 0x3c7   :  { %5689 = vmatpush1.bf16.msra.mxu0 %v14403_v47  ;;  %5848 = vmatpush1.bf16.msra.mxu1 %v14406_v53  ;;  %v14489_v47 = vld [vmem:[#allocation6 + $0x524] ss:$16 sps:$4 sm:$0xff]   ;;  %v14492_v53 = vld [vmem:[#allocation6 + $0x52c] ss:$16 sps:$4 sm:$0xff]  }
 0x3c8   :  { %5690 = vmatprep.subr.bf16.mxu0 %v14411_v7  ;;  %5849 = vmatprep.subr.bf16.mxu1 %v14414_v48  ;;  %v14487_v7 = vld [vmem:[#allocation6 + $0x520] ss:$16 sps:$4 sm:$0xff]   ;;  %v14490_v48 = vld [vmem:[#allocation6 + $0x528] ss:$16 sps:$4 sm:$0xff]  }
 0x3cb   :  { %5691 = vmatpush1.bf16.msra.mxu0 %v14409_v52  ;;  %5850 = vmatpush1.bf16.msra.mxu1 %v14412_v23  ;;  %v14495_v52 = vld [vmem:[#allocation6 + $0x544] ss:$16 sps:$4 sm:$0xff]   ;;  %v14498_v23 = vld [vmem:[#allocation6 + $0x54c] ss:$16 sps:$4 sm:$0xff]  }
 0x3cc   :  { %5692 = vmatprep.subr.bf16.mxu0 %v14417_v58  ;;  %5851 = vmatprep.subr.bf16.mxu1 %v14420_v26  ;;  %v14493_v58 = vld [vmem:[#allocation6 + $0x540] ss:$16 sps:$4 sm:$0xff]   ;;  %v14496_v26 = vld [vmem:[#allocation6 + $0x548] ss:$16 sps:$4 sm:$0xff]  }
 0x3cf   :  { %5693 = vmatpush1.bf16.msra.mxu0 %v14415_v59  ;;  %5852 = vmatpush1.bf16.msra.mxu1 %v14418_v31  ;;  %v14501_v59 = vld [vmem:[#allocation6 + $0x564] ss:$16 sps:$4 sm:$0xff]   ;;  %v14504_v31 = vld [vmem:[#allocation6 + $0x56c] ss:$16 sps:$4 sm:$0xff]  }
 0x3d0   :  { %5694 = vmatprep.subr.bf16.mxu0 %v14423_v44  ;;  %5853 = vmatprep.subr.bf16.mxu1 %v14426_v32  ;;  %v14499_v44 = vld [vmem:[#allocation6 + $0x560] ss:$16 sps:$4 sm:$0xff]   ;;  %v14502_v32 = vld [vmem:[#allocation6 + $0x568] ss:$16 sps:$4 sm:$0xff]  }
 0x3d3   :  { %5695 = vmatpush1.bf16.msra.mxu0 %v14421_v45  ;;  %5854 = vmatpush1.bf16.msra.mxu1 %v14424_v55  ;;  %v14507_v45 = vld [vmem:[#allocation6 + $0x584] ss:$16 sps:$4 sm:$0xff]   ;;  %v14510_v55 = vld [vmem:[#allocation6 + $0x58c] ss:$16 sps:$4 sm:$0xff]  }
 0x3d4   :  { %5696 = vmatprep.subr.bf16.mxu0 %v14429_v61  ;;  %5855 = vmatprep.subr.bf16.mxu1 %v14432_v56  ;;  %v14505_v61 = vld [vmem:[#allocation6 + $0x580] ss:$16 sps:$4 sm:$0xff]   ;;  %v14508_v56 = vld [vmem:[#allocation6 + $0x588] ss:$16 sps:$4 sm:$0xff]  }
 0x3d7   :  { %5697 = vmatpush1.bf16.msra.mxu0 %v14427_v4  ;;  %5856 = vmatpush1.bf16.msra.mxu1 %v14430_v5  ;;  %v14513_v4 = vld [vmem:[#allocation6 + $0x5a4] ss:$16 sps:$4 sm:$0xff]   ;;  %v14516_v5 = vld [vmem:[#allocation6 + $0x5ac] ss:$16 sps:$4 sm:$0xff]  }
 0x3d8   :  { %5719 = vmatprep.subr.bf16.mxu0 %v14435_v16  ;;  %5878 = vmatprep.subr.bf16.mxu1 %v14438_v33  ;;  %v14511_v16 = vld [vmem:[#allocation6 + $0x5a0] ss:$16 sps:$4 sm:$0xff]   ;;  %v14514_v33 = vld [vmem:[#allocation6 + $0x5a8] ss:$16 sps:$4 sm:$0xff]  }
 0x3da   :  { %5699 = vmatmul.mubr.bf16.vlgmr.msra.gmra.mrb[8].mxu0 %v15493_v37  ;;  %5858 = vmatmul.mubr.bf16.vlgmr.msra.gmra.mrb[8].mxu1 %v15493_v37  ;;  %v14456_v37 = vld [vmem:[#allocation6 + $0x46c] ss:$16 sps:$4 sm:$0xff]  }
 0x3db   :  { %5708 = vmatprep.mubr.bf16.mxu0 %v15500_v11  ;;  %5720 = vmatpush1.bf16.msra.mxu0 %v14433_v18  ;;  %v14519_v18 = vld [vmem:[#allocation6 + $0x5c4] ss:$16 sps:$4 sm:$0xff]  }
 0x3dc   :  { %5867 = vmatprep.mubr.bf16.mxu1 %v15500_v11  ;;  %5879 = vmatpush1.bf16.msra.mxu1 %v14436_v19  ;;  %v14451_v11 = vld [vmem:[#allocation6 + $0x460] ss:$16 sps:$4 sm:$0xff]   ;;  %v14522_v19 = vld [vmem:[#allocation6 + $0x5cc] ss:$16 sps:$4 sm:$0xff]  }
 0x3dd   :  { %5721 = vmatprep.subr.bf16.mxu0 %v14441_v13  ;;  %5880 = vmatprep.subr.bf16.mxu1 %v14444_v27  ;;  %v14517_v13 = vld [vmem:[#allocation6 + $0x5c0] ss:$16 sps:$4 sm:$0xff]   ;;  %v14520_v27 = vld [vmem:[#allocation6 + $0x5c8] ss:$16 sps:$4 sm:$0xff]  }
 0x3df   :  { %5722 = vmatpush1.bf16.msra.mxu0 %v14439_v20  ;;  %v14525_v20 = vld [vmem:[#allocation6 + $0x5e4] ss:$16 sps:$4 sm:$0xff]  }
 0x3e0   :  { %5881 = vmatpush1.bf16.msra.mxu1 %v14442_v60  ;;  %5723 = vmatprep.subr.bf16.mxu0 %v14447_v28  ;;  %v14528_v60 = vld [vmem:[#allocation6 + $0x5ec] ss:$16 sps:$4 sm:$0xff]   ;;  %v14523_v28 = vld [vmem:[#allocation6 + $0x5e0] ss:$16 sps:$4 sm:$0xff]  }
 0x3e1   :  { %5882 = vmatprep.subr.bf16.mxu1 %v14450_v8  ;;  %v14526_v8 = vld [vmem:[#allocation6 + $0x5e8] ss:$16 sps:$4 sm:$0xff]  }
 0x3e2   :  { %5709 = vmatmul.mubr.bf16.gmra.mrb[12].mxu0 %v15512_v57  ;;  %5868 = vmatmul.mubr.bf16.gmra.mrb[12].mxu1 %v15512_v57  ;;  %v14468_v57 = vld [vmem:[#allocation6 + $0x4ac] ss:$16 sps:$4 sm:$0xff]  }
 0x3e3   :  { %5724 = vmatpush1.bf16.msra.mxu0 %v14445_v29  ;;  %5751 = vmatprep.mubr.bf16.mxu0 %v15517_v9  ;;  %v14531_v29 = vld [vmem:[#allocation7 + $0x4] ss:$16 sps:$4 sm:$0xff]  }
 0x3e4   :  { %5883 = vmatpush1.bf16.msra.mxu1 %v14448_v36  ;;  %5910 = vmatprep.mubr.bf16.mxu1 %v15517_v9  ;;  %v14474_v9 = vld [vmem:[#allocation6 + $0x4cc] ss:$16 sps:$4 sm:$0xff]  }
 0x3e5   :  { %5725 = vmatprep.subr.bf16.mxu0 %v14453_v63  ;;  %5884 = vmatprep.subr.bf16.mxu1 %v14456_v37  ;;  %v14534_v36 = vld [vmem:[#allocation7 + $0xc] ss:$16 sps:$4 sm:$0xff]   ;;  %v14529_v63 = vld [vmem:[#allocation7] ss:$16 sps:$4 sm:$0xff]   ;;  %v14532_v37 = vld [vmem:[#allocation7 + $0x8] ss:$16 sps:$4 sm:$0xff]  }
 0x3e7   :  { %5726 = vmatpush1.bf16.msra.mxu0 %v14451_v11  ;;  %v14537_v11 = vld [vmem:[#allocation7 + $0x24] ss:$16 sps:$4 sm:$0xff]  }
 0x3e8   :  { %5885 = vmatpush1.bf16.msra.mxu1 %v14454_v30  ;;  %5727 = vmatprep.subr.bf16.mxu0 %v14459_v12  ;;  %v14540_v30 = vld [vmem:[#allocation7 + $0x2c] ss:$16 sps:$4 sm:$0xff]   ;;  %v14535_v12 = vld [vmem:[#allocation7 + $0x20] ss:$16 sps:$4 sm:$0xff]  }
 0x3e9   :  { %5886 = vmatprep.subr.bf16.mxu1 %v14462_v34  ;;  %v14538_v34 = vld [vmem:[#allocation7 + $0x28] ss:$16 sps:$4 sm:$0xff]  }
 0x3eb   :  { %5728 = vmatpush1.bf16.msra.mxu0 %v14457_v35  ;;  %v14543_v35 = vld [vmem:[#allocation7 + $0x44] ss:$16 sps:$4 sm:$0xff]  }
 0x3ec   :  { %5887 = vmatpush1.bf16.msra.mxu1 %v14460_v25  ;;  %5729 = vmatprep.subr.bf16.mxu0 %v14465_v14  ;;  %v14546_v25 = vld [vmem:[#allocation7 + $0x4c] ss:$16 sps:$4 sm:$0xff]   ;;  %v14541_v14 = vld [vmem:[#allocation7 + $0x40] ss:$16 sps:$4 sm:$0xff]  }
 0x3ed   :  { %5888 = vmatprep.subr.bf16.mxu1 %v14468_v57  ;;  %v14544_v57 = vld [vmem:[#allocation7 + $0x48] ss:$16 sps:$4 sm:$0xff]  }
 0x3ef   :  { %5730 = vmatpush1.bf16.msra.mxu0 %v14463_v15  ;;  %v14549_v15 = vld [vmem:[#allocation7 + $0x64] ss:$16 sps:$4 sm:$0xff]  }
 0x3f0   :  { %5889 = vmatpush1.bf16.msra.mxu1 %v14466_v43  ;;  %5731 = vmatprep.subr.bf16.mxu0 %v14471_v38  ;;  %v14550_v43 = vld [vmem:[#allocation7 + $0x68] ss:$16 sps:$4 sm:$0xff]   ;;  %v14555_v38 = vld [vmem:[#allocation7 + $0x84] ss:$16 sps:$4 sm:$0xff]  }
 0x3f1   :  { %5890 = vmatprep.subr.bf16.mxu1 %v14474_v9  ;;  %v14558_v9 = vld [vmem:[#allocation7 + $0x8c] ss:$16 sps:$4 sm:$0xff]  }
 0x3f3   :  { %5732 = vmatpush1.bf16.msra.mxu0 %v14469_v2  ;;  %v14553_v2 = vld [vmem:[#allocation7 + $0x80] ss:$16 sps:$4 sm:$0xff]  }
 0x3f4   :  { %5891 = vmatpush1.bf16.msra.mxu1 %v14472_v39  ;;  %5733 = vmatprep.subr.bf16.mxu0 %v14477_v51  ;;  %v14556_v39 = vld [vmem:[#allocation7 + $0x88] ss:$16 sps:$4 sm:$0xff]   ;;  %v14561_v51 = vld [vmem:[#allocation7 + $0xa4] ss:$16 sps:$4 sm:$0xff]  }
 0x3f5   :  { %5892 = vmatprep.subr.bf16.mxu1 %v14480_v41  ;;  %v14564_v41 = vld [vmem:[#allocation7 + $0xac] ss:$16 sps:$4 sm:$0xff]  }
 0x3f7   :  { %5734 = vmatpush1.bf16.msra.mxu0 %v14475_v42  ;;  %v14559_v42 = vld [vmem:[#allocation7 + $0xa0] ss:$16 sps:$4 sm:$0xff]  }
 0x3f8   :  { %5893 = vmatpush1.bf16.msra.mxu1 %v14478_v46  ;;  %5735 = vmatprep.subr.bf16.mxu0 %v14483_v54  ;;  %v14567_v46 = vld [vmem:[#allocation7 + $0xc4] ss:$16 sps:$4 sm:$0xff]   ;;  %v14570_v54 = vld [vmem:[#allocation7 + $0xcc] ss:$16 sps:$4 sm:$0xff]  }
 0x3f9   :  { %5894 = vmatprep.subr.bf16.mxu1 %v14486_v22  ;;  %v14565_v22 = vld [vmem:[#allocation7 + $0xc0] ss:$16 sps:$4 sm:$0xff]  }
 0x3fb   :  { %5736 = vmatpush1.bf16.msra.mxu0 %v14481_v40  ;;  %v14568_v40 = vld [vmem:[#allocation7 + $0xc8] ss:$16 sps:$4 sm:$0xff]  }
 0x3fc   :  { %5895 = vmatpush1.bf16.msra.mxu1 %v14484_v6  ;;  %5737 = vmatprep.subr.bf16.mxu0 %v14489_v47  ;;  %v14573_v6 = vld [vmem:[#allocation7 + $0xe4] ss:$16 sps:$4 sm:$0xff]   ;;  %v14576_v47 = vld [vmem:[#allocation7 + $0xec] ss:$16 sps:$4 sm:$0xff]  }
 0x3fd   :  { %5896 = vmatprep.subr.bf16.mxu1 %v14492_v53  ;;  %v14571_v53 = vld [vmem:[#allocation7 + $0xe0] ss:$16 sps:$4 sm:$0xff]  }
 0x3ff   :  { %5738 = vmatpush1.bf16.msra.mxu0 %v14487_v7  ;;  %v14574_v7 = vld [vmem:[#allocation7 + $0xe8] ss:$16 sps:$4 sm:$0xff]  }
 0x400   :  { %5897 = vmatpush1.bf16.msra.mxu1 %v14490_v48  ;;  %5739 = vmatprep.subr.bf16.mxu0 %v14495_v52  ;;  %v14579_v48 = vld [vmem:[#allocation7 + $0x104] ss:$16 sps:$4 sm:$0xff]   ;;  %v14582_v52 = vld [vmem:[#allocation7 + $0x10c] ss:$16 sps:$4 sm:$0xff]  }
 0x401   :  { %5898 = vmatprep.subr.bf16.mxu1 %v14498_v23  ;;  %v14577_v23 = vld [vmem:[#allocation7 + $0x100] ss:$16 sps:$4 sm:$0xff]  }
 0x403   :  { %5740 = vmatpush1.bf16.msra.mxu0 %v14493_v58  ;;  %v14580_v58 = vld [vmem:[#allocation7 + $0x108] ss:$16 sps:$4 sm:$0xff]  }
 0x404   :  { %5899 = vmatpush1.bf16.msra.mxu1 %v14496_v26  ;;  %5741 = vmatprep.subr.bf16.mxu0 %v14501_v59  ;;  %v14585_v26 = vld [vmem:[#allocation7 + $0x124] ss:$16 sps:$4 sm:$0xff]   ;;  %v14588_v59 = vld [vmem:[#allocation7 + $0x12c] ss:$16 sps:$4 sm:$0xff]  }
 0x405   :  { %5900 = vmatprep.subr.bf16.mxu1 %v14504_v31  ;;  %v14583_v31 = vld [vmem:[#allocation7 + $0x120] ss:$16 sps:$4 sm:$0xff]  }
 0x407   :  { %5742 = vmatpush1.bf16.msra.mxu0 %v14499_v44  ;;  %v14586_v44 = vld [vmem:[#allocation7 + $0x128] ss:$16 sps:$4 sm:$0xff]  }
 0x408   :  { %5901 = vmatpush1.bf16.msra.mxu1 %v14502_v32  ;;  %5743 = vmatprep.subr.bf16.mxu0 %v14507_v45  ;;  %v14591_v32 = vld [vmem:[#allocation7 + $0x144] ss:$16 sps:$4 sm:$0xff]   ;;  %v14594_v45 = vld [vmem:[#allocation7 + $0x14c] ss:$16 sps:$4 sm:$0xff]  }
 0x409   :  { %5902 = vmatprep.subr.bf16.mxu1 %v14510_v55  ;;  %v14589_v55 = vld [vmem:[#allocation7 + $0x140] ss:$16 sps:$4 sm:$0xff]  }
 0x40b   :  { %5744 = vmatpush1.bf16.msra.mxu0 %v14505_v61  ;;  %v14592_v61 = vld [vmem:[#allocation7 + $0x148] ss:$16 sps:$4 sm:$0xff]  }
 0x40c   :  { %5903 = vmatpush1.bf16.msra.mxu1 %v14508_v56  ;;  %5745 = vmatprep.subr.bf16.mxu0 %v14513_v4  ;;  %v14597_v56 = vld [vmem:[#allocation7 + $0x164] ss:$16 sps:$4 sm:$0xff]   ;;  %v14600_v4 = vld [vmem:[#allocation7 + $0x16c] ss:$16 sps:$4 sm:$0xff]  }
 0x40d   :  { %5904 = vmatprep.subr.bf16.mxu1 %v14516_v5  ;;  %v14595_v5 = vld [vmem:[#allocation7 + $0x160] ss:$16 sps:$4 sm:$0xff]  }
 0x40f   :  { %5746 = vmatpush1.bf16.msra.mxu0 %v14511_v16  ;;  %v14598_v16 = vld [vmem:[#allocation7 + $0x168] ss:$16 sps:$4 sm:$0xff]  }
 0x410   :  { %5905 = vmatpush1.bf16.msra.mxu1 %v14514_v33  ;;  %5747 = vmatprep.subr.bf16.mxu0 %v14519_v18  ;;  %v14603_v33 = vld [vmem:[#allocation7 + $0x184] ss:$16 sps:$4 sm:$0xff]   ;;  %v14606_v18 = vld [vmem:[#allocation7 + $0x18c] ss:$16 sps:$4 sm:$0xff]  }
 0x411   :  { %5906 = vmatprep.subr.bf16.mxu1 %v14522_v19  ;;  %v14601_v19 = vld [vmem:[#allocation7 + $0x180] ss:$16 sps:$4 sm:$0xff]  }
 0x413   :  { %5748 = vmatpush1.bf16.msra.mxu0 %v14517_v13  ;;  %v14604_v13 = vld [vmem:[#allocation7 + $0x188] ss:$16 sps:$4 sm:$0xff]  }
 0x414   :  { %5907 = vmatpush1.bf16.msra.mxu1 %v14520_v27  ;;  %5749 = vmatprep.subr.bf16.mxu0 %v14525_v20  ;;  %v14609_v27 = vld [vmem:[#allocation7 + $0x1a4] ss:$16 sps:$4 sm:$0xff]   ;;  %v14612_v20 = vld [vmem:[#allocation7 + $0x1ac] ss:$16 sps:$4 sm:$0xff]  }
 0x415   :  { %5908 = vmatprep.subr.bf16.mxu1 %v14528_v60  ;;  %v14607_v60 = vld [vmem:[#allocation7 + $0x1a0] ss:$16 sps:$4 sm:$0xff]  }
 0x417   :  { %5750 = vmatpush1.bf16.msra.mxu0 %v14523_v28  ;;  %v14610_v28 = vld [vmem:[#allocation7 + $0x1a8] ss:$16 sps:$4 sm:$0xff]  }
 0x418   :  { %5909 = vmatpush1.bf16.msra.mxu1 %v14526_v8  ;;  %8897 = vmatprep.subr.bf16.mxu0 %v14531_v29  ;;  %v14615_v8 = vld [vmem:[#allocation7 + $0x1c4] ss:$16 sps:$4 sm:$0xff]   ;;  %v14618_v29 = vld [vmem:[#allocation7 + $0x1cc] ss:$16 sps:$4 sm:$0xff]  }
 0x419   :  { %9116 = vmatprep.subr.bf16.mxu1 %v14534_v36  ;;  %v14613_v36 = vld [vmem:[#allocation7 + $0x1c0] ss:$16 sps:$4 sm:$0xff]  }
 0x41a   :  { %5752 = vmatmul.mubr.bf16.vlgmr.msra.gmra.mrb[8].mxu0 %v15525_v62 }
 0x41b   :  { %5911 = vmatmul.mubr.bf16.vlgmr.msra.gmra.mrb[8].mxu1 %v15525_v62  ;;  %5761 = vmatprep.mubr.bf16.mxu0 %v15530_v17  ;;  %v14552_v62 = vld [vmem:[#allocation7 + $0x6c] ss:$16 sps:$4 sm:$0xff]  }
 0x41c   :  { %5920 = vmatprep.mubr.bf16.mxu1 %v15530_v17  ;;  %8898 = vmatpush1.bf16.msra.mxu0 %v14529_v63  ;;  %v14547_v17 = vld [vmem:[#allocation7 + $0x60] ss:$16 sps:$4 sm:$0xff]   ;;  %v14616_v63 = vld [vmem:[#allocation7 + $0x1c8] ss:$16 sps:$4 sm:$0xff]  }
 0x41d   :  { %9117 = vmatpush1.bf16.msra.mxu1 %v14532_v37  ;;  %8899 = vmatprep.subr.bf16.mxu0 %v14537_v11  ;;  %v14621_v37 = vld [vmem:[#allocation7 + $0x1e4] ss:$16 sps:$4 sm:$0xff]   ;;  %v14624_v11 = vld [vmem:[#allocation7 + $0x1ec] ss:$16 sps:$4 sm:$0xff]  }
 0x41e   :  { %9118 = vmatprep.subr.bf16.mxu1 %v14540_v30  ;;  %v14619_v30 = vld [vmem:[#allocation7 + $0x1e0] ss:$16 sps:$4 sm:$0xff]  }
 0x420   :  { %8900 = vmatpush1.bf16.msra.mxu0 %v14535_v12  ;;  %v14622_v12 = vld [vmem:[#allocation7 + $0x1e8] ss:$16 sps:$4 sm:$0xff]  }
 0x421   :  { %9119 = vmatpush1.bf16.msra.mxu1 %v14538_v34  ;;  %8901 = vmatprep.subr.bf16.mxu0 %v14543_v35  ;;  %v14627_v34 = vld [vmem:[#allocation7 + $0x204] ss:$16 sps:$4 sm:$0xff]   ;;  %v14630_v35 = vld [vmem:[#allocation7 + $0x20c] ss:$16 sps:$4 sm:$0xff]  }
 0x422   :  { %5762 = vmatmul.mubr.bf16.gmra.mrb[12].mxu0 %v15534_v21  ;;  %9120 = vmatprep.subr.bf16.mxu1 %v14546_v25  ;;  %v4631_v25 = vld [vmem:[%s17461_s6] sm:$0xf] }
 0x423   :  { %5921 = vmatmul.mubr.bf16.gmra.mrb[12].mxu1 %v15534_v21  ;;  %v14562_v21 = vld [vmem:[#allocation7 + $0xa8] ss:$16 sps:$4 sm:$0xff]  }
 0x424   :  { %8902 = vmatpush1.bf16.msra.mxu0 %v14541_v14  ;;  %v15554_v14 = vrot.slane %v4631_v25, %v15086_v50 }
 0x425   :  { %9121 = vmatpush1.bf16.msra.mxu1 %v14544_v57  ;;  %8903 = vmatprep.subr.bf16.mxu0 %v14549_v15  ;;  %v15557_v57 = vrot.slane %v4631_v25, %v15089_v0  ;;  %v15560_v15 = vrot.slane %v4631_v25, %v15092_v1 }
 0x426   :  { %9122 = vmatprep.subr.bf16.mxu1 %v14552_v62  ;;  %v15563_v62 = vrot.slane %v4631_v25, %v15098_v3 }
 0x428   :  { %8904 = vmatpush1.bf16.msra.mxu0 %v14547_v17 }
 0x429   :  { %9123 = vmatpush1.bf16.msra.mxu1 %v14550_v43  ;;  %8905 = vmatprep.subr.bf16.mxu0 %v14555_v38 }
 0x42a   :  { %9124 = vmatprep.subr.bf16.mxu1 %v14558_v9 }
 0x42c   :  { %8906 = vmatpush1.bf16.msra.mxu0 %v14553_v2 }
 0x42d   :  { %9125 = vmatpush1.bf16.msra.mxu1 %v14556_v39  ;;  %8907 = vmatprep.subr.bf16.mxu0 %v14561_v51 }
 0x42e   :  { %9126 = vmatprep.subr.bf16.mxu1 %v14564_v41 }
 0x430   :  { %8908 = vmatpush1.bf16.msra.mxu0 %v14559_v42 }
 0x431   :  { %9127 = vmatpush1.bf16.msra.mxu1 %v14562_v21  ;;  %8909 = vmatprep.subr.bf16.mxu0 %v14567_v46 }
 0x432   :  { %9128 = vmatprep.subr.bf16.mxu1 %v14570_v54 }
 0x434   :  { %8910 = vmatpush1.bf16.msra.mxu0 %v14565_v22 }
 0x435   :  { %9129 = vmatpush1.bf16.msra.mxu1 %v14568_v40  ;;  %8911 = vmatprep.subr.bf16.mxu0 %v14573_v6 }
 0x436   :  { %9130 = vmatprep.subr.bf16.mxu1 %v14576_v47 }
 0x438   :  { %8912 = vmatpush1.bf16.msra.mxu0 %v14571_v53 }
 0x439   :  { %9131 = vmatpush1.bf16.msra.mxu1 %v14574_v7  ;;  %8913 = vmatprep.subr.bf16.mxu0 %v14579_v48 }
 0x43a   :  { %9132 = vmatprep.subr.bf16.mxu1 %v14582_v52 }
 0x43c   :  { %8914 = vmatpush1.bf16.msra.mxu0 %v14577_v23 }
 0x43d   :  { %9133 = vmatpush1.bf16.msra.mxu1 %v14580_v58  ;;  %8915 = vmatprep.subr.bf16.mxu0 %v14585_v26 }
 0x43e   :  { %9134 = vmatprep.subr.bf16.mxu1 %v14588_v59 }
 0x440   :  { %8916 = vmatpush1.bf16.msra.mxu0 %v14583_v31 }
 0x441   :  { %9135 = vmatpush1.bf16.msra.mxu1 %v14586_v44  ;;  %8917 = vmatprep.subr.bf16.mxu0 %v14591_v32 }
 0x442   :  { %9136 = vmatprep.subr.bf16.mxu1 %v14594_v45 }
 0x444   :  { %8918 = vmatpush1.bf16.msra.mxu0 %v14589_v55 }
 0x445   :  { %9137 = vmatpush1.bf16.msra.mxu1 %v14592_v61  ;;  %8919 = vmatprep.subr.bf16.mxu0 %v14597_v56 }
 0x446   :  { %9138 = vmatprep.subr.bf16.mxu1 %v14600_v4 }
 0x448   :  { %8920 = vmatpush1.bf16.msra.mxu0 %v14595_v5 }
 0x449   :  { %9139 = vmatpush1.bf16.msra.mxu1 %v14598_v16  ;;  %8921 = vmatprep.subr.bf16.mxu0 %v14603_v33 }
 0x44a   :  { %9140 = vmatprep.subr.bf16.mxu1 %v14606_v18 }
 0x44c   :  { %8922 = vmatpush1.bf16.msra.mxu0 %v14601_v19 }
 0x44d   :  { %9141 = vmatpush1.bf16.msra.mxu1 %v14604_v13  ;;  %8923 = vmatprep.subr.bf16.mxu0 %v14609_v27 }
 0x44e   :  { %9142 = vmatprep.subr.bf16.mxu1 %v14612_v20 }
 0x450   :  { %8924 = vmatpush1.bf16.msra.mxu0 %v14607_v60 }
 0x451   :  { %9143 = vmatpush1.bf16.msra.mxu1 %v14610_v28  ;;  %8925 = vmatprep.subr.bf16.mxu0 %v14615_v8 }
 0x452   :  { %9144 = vmatprep.subr.bf16.mxu1 %v14618_v29 }
 0x454   :  { %8926 = vmatpush1.bf16.msra.mxu0 %v14613_v36 }
 0x455   :  { %9145 = vmatpush1.bf16.msra.mxu1 %v14616_v63  ;;  %8927 = vmatprep.subr.bf16.mxu0 %v14621_v37 }
 0x456   :  { %9146 = vmatprep.subr.bf16.mxu1 %v14624_v11 }
 0x458   :  { %8928 = vmatpush1.bf16.msra.mxu0 %v14619_v30 }
 0x459   :  { %9147 = vmatpush1.bf16.msra.mxu1 %v14622_v12  ;;  %8970 = vmatprep.subr.bf16.mxu0 %v14627_v34 }
 0x45a   :  { %9189 = vmatprep.subr.bf16.mxu1 %v14630_v35 }
 0x4ed   :  { %v5753_v17 = vpop.f32.mrb[8].mxu0 }
 0x4ee   :  { %v13476_v43 = vadd.f32 %v5753_v17, %v15554_v14  ;;  %v5912_v38 = vpop.f32.mrb[8].mxu1  ;;  %v5755_v9 = vpop.f32.mrb[9].mxu0 }
 0x4ef   :  { %v13484_v2 = vadd.f32 %v5912_v38, %v15557_v57  ;;  %v13477_v39 = vadd.f32 %v5755_v9, %v15560_v15  ;;  %v5914_v51 = vpop.f32.mrb[9].mxu1  ;;  %v5757_v41 = vpop.f32.mrb[10].mxu0 }
 0x4f0   :  { %v5931_v42 = vmax.f32 %v13476_v43, 0.0  ;;  %v13485_v21 = vadd.f32 %v5914_v51, %v15563_v62  ;;  %v13478_v46 = vadd.f32 %v5757_v41, %v15554_v14  ;;  %v5916_v54 = vpop.f32.mrb[10].mxu1  ;;  %v5759_v22 = vpop.f32.mrb[11].mxu0 }
 0x4f1   :  { %v5933_v40 = vmax.f32 %v13484_v2, 0.0  ;;  %v5932_v6 = vmax.f32 %v13477_v39, 0.0  ;;  %v13486_v47 = vadd.f32 %v5916_v54, %v15557_v57  ;;  %v13479_v53 = vadd.f32 %v5759_v22, %v15560_v15  ;;  %v5918_v7 = vpop.f32.mrb[11].mxu1 }
 0x4f2   :  { %v5934_v48 = vmax.f32 %v13485_v21, 0.0  ;;  %v5935_v52 = vmax.f32 %v13478_v46, 0.0  ;;  %v13487_v23 = vadd.f32 %v5918_v7, %v15563_v62 }
 0x4f3   :  { %v5955_v58 = vcombine.low %v5931_v42, %v5932_v6  ;;  %v5956_v26 = vcombine.high %v5931_v42, %v5932_v6  ;;  %v5937_v59 = vmax.f32 %v13486_v47, 0.0  ;;  %v5936_v31 = vmax.f32 %v13479_v53, 0.0 }
 0x4f4   :  { %v6163_v44 = vcombine.low %v5933_v40, %v5934_v48  ;;  %v6164_v32 = vcombine.high %v5933_v40, %v5934_v48  ;;  %v5938_v45 = vmax.f32 %v13487_v23, 0.0 }
 0x4f5   :  { %v5963_v55 = vrot.slane %v5955_v58, %v15105_v24  ;;  %v5970_v61 = vrot.slane %v5956_v26, %v15105_v24  ;;  %v15575_v56 = vcombine.low %v5935_v52, %v5936_v31  ;;  %v15577_v4 = vcombine.high %v5935_v52, %v5936_v31  ;;  %v15579_v5 = vpop.f32.mrb[12].mxu0 }
 0x4f6   :  { %v6171_v16 = vrot.slane %v6163_v44, %v15105_v24  ;;  %v6178_v33 = vrot.slane %v6164_v32, %v15105_v24  ;;  %v15583_v18 = vcombine.low %v5937_v59, %v5938_v45  ;;  %v15585_v19 = vcombine.high %v5937_v59, %v5938_v45  ;;  %v15587_v13 = vpop.f32.mrb[12].mxu1  ;;  %v15589_v27 = vpop.f32.mrb[13].mxu0 }
 0x4f7   :  { %v5971_v20 = vcombine.high %v5963_v55, %v5963_v55  ;;  %v5972_v60 = vcombine.high %v5970_v61, %v5970_v61  ;;  %v5979_v28 = vrot.slane %v5963_v55, %v15105_v24  ;;  %v15593_v8 = vrot.slane %v5970_v61, %v15105_v24  ;;  %v15595_v29 = vpop.f32.mrb[13].mxu1  ;;  %v15597_v36 = vpop.f32.mrb[14].mxu0 }
 0x4f8   :  { %v6179_v63 = vcombine.high %v6171_v16, %v6171_v16  ;;  %v6180_v37 = vcombine.high %v6178_v33, %v6178_v33  ;;  %v6187_v11 = vrot.slane %v6171_v16, %v15105_v24  ;;  %v6194_v30 = vrot.slane %v6178_v33, %v15105_v24  ;;  %v15601_v12 = vpop.f32.mrb[14].mxu1  ;;  %v15603_v34 = vpop.f32.mrb[15].mxu0 }
 0x4f9   :  { %v5993_v35 = vrot.slane %v5971_v20, %v15105_v24  ;;  %v6000_v25 = vrot.slane %v5972_v60, %v15105_v24  ;;  %v6001_v17 = vcombine.high %v5979_v28, %v5979_v28  ;;  %v6002_v43 = vcombine.high %v15593_v8, %v15593_v8  ;;  %v15609_v38 = vpop.f32.mrb[15].mxu1 }
 0x4fa   :  { %v6366_v9 = vrot.slane %v5979_v28, %v15086_v50  ;;  %v6370_v2 = vrot.slane %v5979_v28, %v15092_v1  ;;  %v6398_v39 = vrot.slane %v15593_v8, %v15086_v50  ;;  %v6402_v51 = vrot.slane %v15593_v8, %v15092_v1 }
 0x4fb   :  { %v6003_v41 = vcombine.high %v5993_v35, %v5993_v35  ;;  %v6004_v42 = vcombine.high %v6000_v25, %v6000_v25  ;;  %v6374_v21 = vrot.slane %v5993_v35, %v15086_v50  ;;  %v6378_v46 = vrot.slane %v5993_v35, %v15092_v1 }
 0x4fc   :  { %v6382_v54 = vrot.slane %v6001_v17, %v15086_v50  ;;  %v6386_v22 = vrot.slane %v6001_v17, %v15092_v1  ;;  %v6406_v40 = vrot.slane %v6000_v25, %v15086_v50  ;;  %v6410_v6 = vrot.slane %v6000_v25, %v15092_v1 }
 0x4fd   :  { %v6390_v47 = vrot.slane %v6003_v41, %v15086_v50  ;;  %v6394_v53 = vrot.slane %v6003_v41, %v15092_v1  ;;  %v6414_v7 = vrot.slane %v6002_v43, %v15086_v50  ;;  %v6418_v48 = vrot.slane %v6002_v43, %v15092_v1 }
 0x4fe   :  { %v6422_v52 = vrot.slane %v6004_v42, %v15086_v50  ;;  %v6426_v23 = vrot.slane %v6004_v42, %v15092_v1  ;;  %v6201_v58 = vrot.slane %v6179_v63, %v15105_v24  ;;  %v6208_v26 = vrot.slane %v6180_v37, %v15105_v24 }
 0x4ff   :  { %v6209_v59 = vcombine.high %v6187_v11, %v6187_v11  ;;  %v6210_v31 = vcombine.high %v6194_v30, %v6194_v30  ;;  %v6686_v44 = vrot.slane %v6187_v11, %v15086_v50  ;;  %v6690_v32 = vrot.slane %v6187_v11, %v15092_v1 }
 0x500   :  { %v6211_v45 = vcombine.high %v6201_v58, %v6201_v58  ;;  %v6212_v55 = vcombine.high %v6208_v26, %v6208_v26  ;;  %v6694_v61 = vrot.slane %v6201_v58, %v15086_v50  ;;  %v6698_v16 = vrot.slane %v6201_v58, %v15092_v1 }
 0x501   :  { %v6702_v33 = vrot.slane %v6209_v59, %v15086_v50  ;;  %v6706_v20 = vrot.slane %v6209_v59, %v15092_v1  ;;  %v6718_v60 = vrot.slane %v6194_v30, %v15086_v50  ;;  %v6722_v28 = vrot.slane %v6194_v30, %v15092_v1 }
 0x502   :  { %v6710_v8 = vrot.slane %v6211_v45, %v15086_v50  ;;  %v6714_v63 = vrot.slane %v6211_v45, %v15092_v1  ;;  %v6726_v37 = vrot.slane %v6208_v26, %v15086_v50  ;;  %v6730_v11 = vrot.slane %v6208_v26, %v15092_v1 }
 0x503   :  { %v6734_v35 = vrot.slane %v6210_v31, %v15086_v50  ;;  %v6738_v25 = vrot.slane %v6210_v31, %v15092_v1  ;;  %v6742_v17 = vrot.slane %v6212_v55, %v15086_v50  ;;  %v6746_v43 = vrot.slane %v6212_v55, %v15092_v1 }
 0x504   :  { %v15648_v41 = vsel %vm1902_vm0, %v6366_v9, %v6686_v44  ;;  %v15651_v30 = vsel %vm1902_vm0, %v6370_v2, %v6690_v32  ;;  %v15654_v42 = vsel %vm1902_vm0, %v6374_v21, %v6694_v61  ;;  %v15657_v58 = vsel %vm1902_vm0, %v6378_v46, %v6698_v16 }
 0x505   :  { %v15660_v26 = vsel %vm1902_vm0, %v6382_v54, %v6702_v33  ;;  %v15663_v59 = vsel %vm1902_vm0, %v6386_v22, %v6706_v20  ;;  %v15666_v31 = vsel %vm1902_vm0, %v6390_v47, %v6710_v8  ;;  %v15669_v9 = vsel %vm1902_vm0, %v6394_v53, %v6714_v63 }
 0x506   :  { %v7011_v2 = vsel %vm1902_vm0, %v6398_v39, %v6718_v60  ;;  %v7012_v21 = vsel %vm1902_vm0, %v6402_v51, %v6722_v28  ;;  %v15674_v44 = vsel %vm1902_vm0, %v6406_v40, %v6726_v37  ;;  %v15677_v46 = vsel %vm1902_vm0, %v6410_v6, %v6730_v11 }
 0x507   :  { %17496 = vst [vmem:[#allocation16_spill] sm:$0xff] %v15677_v46  ;;  %v15680_v54 = vsel %vm1902_vm0, %v6414_v7, %v6734_v35  ;;  %v15683_v22 = vsel %vm1902_vm0, %v6418_v48, %v6738_v25  ;;  %v15686_v47 = vsel %vm1902_vm0, %v6422_v52, %v6742_v17  ;;  %v15689_v53 = vsel %vm1902_vm0, %v6426_v23, %v6746_v43 }
 0x508   :  { %17497 = vst [vmem:[#allocation17_spill] sm:$0xff] %v15680_v54  ;;  %17498 = vst [vmem:[#allocation18_spill] sm:$0xff] %v15683_v22  ;;  %v7163_v6 = vcombine.low %v7011_v2, %v7012_v21  ;;  %v6013_v23 = vrot.slane %v15575_v56, %v15105_v24  ;;  %v6020_v45 = vrot.slane %v15577_v4, %v15105_v24 }
 0x509   :  { %17499 = vst [vmem:[#allocation19_spill] sm:$0xff] %v15686_v47  ;;  %17500 = vst [vmem:[#allocation20_spill] sm:$0xff] %v15689_v53  ;;  %v6221_v55 = vrot.slane %v15583_v18, %v15105_v24  ;;  %v6228_v61 = vrot.slane %v15585_v19, %v15105_v24  ;;  %v15717_v20 = vadd.f32 %v15579_v5, %v15554_v14 }
 0x50a   :  { %v15706_v32 = vrot.slane %v7163_v6, %v15047_v49  ;;  %v6021_v16 = vcombine.high %v6013_v23, %v6013_v23  ;;  %v6029_v33 = vrot.slane %v6013_v23, %v15105_v24  ;;  %v15721_v56 = vadd.f32 %v15587_v13, %v15557_v57 }
 0x50b   :  { %v6022_v60 = vcombine.high %v6020_v45, %v6020_v45  ;;  %v6036_v4 = vrot.slane %v6020_v45, %v15105_v24  ;;  %v6229_v28 = vcombine.high %v6221_v55, %v6221_v55  ;;  %v6230_v8 = vcombine.high %v6228_v61, %v6228_v61 }
 0x50c   :  { %17501 = vst [vmem:[#allocation21_spill] sm:$0xff] %v15706_v32  ;;  %v6043_v18 = vrot.slane %v6021_v16, %v15105_v24  ;;  %v6051_v63 = vcombine.high %v6029_v33, %v6029_v33  ;;  %v6430_v19 = vrot.slane %v6029_v33, %v15086_v50  ;;  %v6434_v37 = vrot.slane %v6029_v33, %v15092_v1 }
 0x50d   :  { %v6050_v11 = vrot.slane %v6022_v60, %v15105_v24  ;;  %v6052_v5 = vcombine.high %v6036_v4, %v6036_v4  ;;  %v6462_v35 = vrot.slane %v6036_v4, %v15086_v50  ;;  %v6466_v13 = vrot.slane %v6036_v4, %v15092_v1 }
 0x50e   :  { %v6053_v25 = vcombine.high %v6043_v18, %v6043_v18  ;;  %v6438_v17 = vrot.slane %v6043_v18, %v15086_v50  ;;  %v6442_v43 = vrot.slane %v6043_v18, %v15092_v1  ;;  %v6446_v2 = vrot.slane %v6051_v63, %v15086_v50 }
 0x50f   :  { %v6054_v21 = vcombine.high %v6050_v11, %v6050_v11  ;;  %v6450_v6 = vrot.slane %v6051_v63, %v15092_v1  ;;  %v6470_v23 = vrot.slane %v6050_v11, %v15086_v50  ;;  %v6474_v45 = vrot.slane %v6050_v11, %v15092_v1 }
 0x510   :  { %v6454_v16 = vrot.slane %v6053_v25, %v15086_v50  ;;  %v6458_v33 = vrot.slane %v6053_v25, %v15092_v1  ;;  %v6478_v60 = vrot.slane %v6052_v5, %v15086_v50  ;;  %v6482_v4 = vrot.slane %v6052_v5, %v15092_v1 }
 0x511   :  { %v6486_v52 = vrot.slane %v6054_v21, %v15086_v50  ;;  %v6490_v18 = vrot.slane %v6054_v21, %v15092_v1  ;;  %v6237_v48 = vrot.slane %v6221_v55, %v15105_v24  ;;  %v6244_v63 = vrot.slane %v6228_v61, %v15105_v24 }
 0x512   :  { %v6251_v7 = vrot.slane %v6229_v28, %v15105_v24  ;;  %v6258_v11 = vrot.slane %v6230_v8, %v15105_v24  ;;  %v5939_v40 = vmax.f32 %v15717_v20, 0.0  ;;  %v5941_v25 = vmax.f32 %v15721_v56, 0.0 }
 0x513   :  { %v6259_v51 = vcombine.high %v6237_v48, %v6237_v48  ;;  %v6260_v39 = vcombine.high %v6244_v63, %v6244_v63  ;;  %v6750_v5 = vrot.slane %v6237_v48, %v15086_v50  ;;  %v6754_v3 = vrot.slane %v6237_v48, %v15092_v1 }
 0x514   :  { %v6261_v0 = vcombine.high %v6251_v7, %v6251_v7  ;;  %v6262_v21 = vcombine.high %v6258_v11, %v6258_v11  ;;  %v6758_v55 = vrot.slane %v6251_v7, %v15086_v50  ;;  %v6762_v61 = vrot.slane %v6251_v7, %v15092_v1 }
 0x515   :  { %v6766_v28 = vrot.slane %v6259_v51, %v15086_v50  ;;  %v6770_v8 = vrot.slane %v6259_v51, %v15092_v1  ;;  %v6782_v20 = vrot.slane %v6244_v63, %v15086_v50  ;;  %v6786_v56 = vrot.slane %v6244_v63, %v15092_v1 }
 0x516   :  { %v6774_v10 = vrot.slane %v6261_v0, %v15086_v50  ;;  %v6778_v32 = vrot.slane %v6261_v0, %v15092_v1  ;;  %v6790_v48 = vrot.slane %v6258_v11, %v15086_v50  ;;  %v6794_v53 = vrot.slane %v6258_v11, %v15092_v1 }
 0x517   :  { %v6798_v47 = vrot.slane %v6260_v39, %v15086_v50  ;;  %v6802_v7 = vrot.slane %v6260_v39, %v15092_v1  ;;  %v6806_v22 = vrot.slane %v6262_v21, %v15086_v50  ;;  %v6810_v51 = vrot.slane %v6262_v21, %v15092_v1 }
 0x518   :  { %v15765_v54 = vsel %vm1902_vm0, %v6430_v19, %v6750_v5  ;;  %v15768_v63 = vsel %vm1902_vm0, %v6434_v37, %v6754_v3  ;;  %v15771_v0 = vsel %vm1902_vm0, %v6438_v17, %v6758_v55  ;;  %v15774_v46 = vsel %vm1902_vm0, %v6442_v43, %v6762_v61 }
 0x519   :  { %v15777_v11 = vsel %vm1902_vm0, %v6446_v2, %v6766_v28  ;;  %v15780_v39 = vsel %vm1902_vm0, %v6450_v6, %v6770_v8  ;;  %v15783_v21 = vsel %vm1902_vm0, %v6454_v16, %v6774_v10  ;;  %v15786_v19 = vsel %vm1902_vm0, %v6458_v33, %v6778_v32 }
 0x51a   :  { %v15789_v3 = vsel %vm1902_vm0, %v6462_v35, %v6782_v20  ;;  %v15792_v37 = vsel %vm1902_vm0, %v6466_v13, %v6786_v56  ;;  %v15795_v17 = vsel %vm1902_vm0, %v6470_v23, %v6790_v48  ;;  %v15798_v43 = vsel %vm1902_vm0, %v6474_v45, %v6794_v53 }
 0x51b   :  { %17502 = vst [vmem:[#allocation22_spill] sm:$0xff] %v15795_v17  ;;  %17503 = vst [vmem:[#allocation23_spill] sm:$0xff] %v15798_v43  ;;  %v15801_v2 = vsel %vm1902_vm0, %v6478_v60, %v6798_v47  ;;  %v15804_v10 = vsel %vm1902_vm0, %v6482_v4, %v6802_v7  ;;  %v15807_v32 = vsel %vm1902_vm0, %v6486_v52, %v6806_v22 }
 0x51c   :  { %17504 = vst [vmem:[#allocation24_spill] sm:$0xff] %v15801_v2  ;;  %17505 = vst [vmem:[#allocation25_spill] sm:$0xff] %v15804_v10  ;;  %v15810_v35 = vsel %vm1902_vm0, %v6490_v18, %v6810_v51  ;;  %v13481_v52 = vadd.f32 %v15589_v27, %v15560_v15  ;;  %v13489_v45 = vadd.f32 %v15595_v29, %v15563_v62 }
 0x51d   :  { %17506 = vst [vmem:[#allocation26_spill] sm:$0xff] %v15807_v32  ;;  %17507 = vst [vmem:[#allocation27_spill] sm:$0xff] %v15810_v35  ;;  %v13482_v16 = vadd.f32 %v15597_v36, %v15554_v14  ;;  %v13490_v33 = vadd.f32 %v15601_v12, %v15557_v57  ;;  %v13483_v60 = vadd.f32 %v15603_v34, %v15560_v15 }
 0x51e   :  { %v13491_v4 = vadd.f32 %v15609_v38, %v15563_v62  ;;  %v5940_v18 = vmax.f32 %v13481_v52, 0.0  ;;  %v5942_v5 = vmax.f32 %v13489_v45, 0.0  ;;  %v17508_v27 = vcombine.low %v15648_v41, %v15651_v30 }
 0x51f   :  { %v17509_v14 = vcombine.low %v15654_v42, %v15657_v58  ;;  %v5943_v57 = vmax.f32 %v13482_v16, 0.0  ;;  %v5945_v36 = vmax.f32 %v13490_v33, 0.0  ;;  %v5944_v15 = vmax.f32 %v13483_v60, 0.0 }
 0x520   :  { %v15840_v55 = vrot.slane %v17508_v27, %v15047_v49  ;;  %v5946_v12 = vmax.f32 %v13491_v4, 0.0  ;;  %v6055_v34 = vcombine.low %v5939_v40, %v5940_v18  ;;  %v6056_v62 = vcombine.high %v5939_v40, %v5940_v18 }
 0x521   :  { %v15846_v29 = vrot.slane %v17509_v14, %v15047_v49  ;;  %v6263_v38 = vcombine.low %v5941_v25, %v5942_v5  ;;  %v6264_v61 = vcombine.high %v5941_v25, %v5942_v5  ;;  %v6105_v28 = vcombine.low %v5943_v57, %v5944_v15 }
 0x522   :  { %v6106_v8 = vcombine.high %v5943_v57, %v5944_v15  ;;  %v6313_v20 = vcombine.low %v5945_v36, %v5946_v12  ;;  %v6314_v41 = vcombine.high %v5945_v36, %v5946_v12  ;;  %v6063_v30 = vrot.slane %v6055_v34, %v15105_v24 }
 0x523   :  { %v6070_v56 = vrot.slane %v6056_v62, %v15105_v24  ;;  %v6271_v42 = vrot.slane %v6263_v38, %v15105_v24  ;;  %v6278_v58 = vrot.slane %v6264_v61, %v15105_v24  ;;  %v15853_v48 = vrot.slane %v6105_v28, %v15105_v24 }
 0x524   :  { %v15856_v7 = vrot.slane %v6106_v8, %v15105_v24  ;;  %v15859_v40 = vrot.slane %v6313_v20, %v15105_v24  ;;  %v15862_v25 = vrot.slane %v6314_v41, %v15105_v24  ;;  %v6071_v51 = vcombine.high %v6063_v30, %v6063_v30 }
 0x525   :  { %v6072_v52 = vcombine.high %v6070_v56, %v6070_v56  ;;  %v6079_v45 = vrot.slane %v6063_v30, %v15105_v24  ;;  %v6086_v16 = vrot.slane %v6070_v56, %v15105_v24  ;;  %v6279_v33 = vcombine.high %v6271_v42, %v6271_v42 }
 0x526   :  { %v6280_v60 = vcombine.high %v6278_v58, %v6278_v58  ;;  %v6287_v4 = vrot.slane %v6271_v42, %v15105_v24  ;;  %v6294_v18 = vrot.slane %v6278_v58, %v15105_v24  ;;  %v6093_v5 = vrot.slane %v6071_v51, %v15105_v24 }
 0x527   :  { %v6100_v27 = vrot.slane %v6072_v52, %v15105_v24  ;;  %v6101_v14 = vcombine.high %v6079_v45, %v6079_v45  ;;  %v6102_v57 = vcombine.high %v6086_v16, %v6086_v16  ;;  %v6494_v36 = vrot.slane %v6079_v45, %v15086_v50 }
 0x528   :  { %v6498_v15 = vrot.slane %v6079_v45, %v15092_v1  ;;  %v6526_v12 = vrot.slane %v6086_v16, %v15086_v50  ;;  %v6530_v34 = vrot.slane %v6086_v16, %v15092_v1  ;;  %v6103_v62 = vcombine.high %v6093_v5, %v6093_v5 }
 0x529   :  { %v6104_v38 = vcombine.high %v6100_v27, %v6100_v27  ;;  %v6502_v61 = vrot.slane %v6093_v5, %v15086_v50  ;;  %v6506_v28 = vrot.slane %v6093_v5, %v15092_v1  ;;  %v6510_v8 = vrot.slane %v6101_v14, %v15086_v50 }
 0x52a   :  { %v6514_v20 = vrot.slane %v6101_v14, %v15092_v1  ;;  %v6534_v41 = vrot.slane %v6100_v27, %v15086_v50  ;;  %v6538_v30 = vrot.slane %v6100_v27, %v15092_v1  ;;  %v6518_v56 = vrot.slane %v6103_v62, %v15086_v50 }
 0x52b   :  { %v6522_v42 = vrot.slane %v6103_v62, %v15092_v1  ;;  %v6542_v58 = vrot.slane %v6102_v57, %v15086_v50  ;;  %v6546_v51 = vrot.slane %v6102_v57, %v15092_v1  ;;  %v6550_v52 = vrot.slane %v6104_v38, %v15086_v50 }
 0x52c   :  { %v6554_v45 = vrot.slane %v6104_v38, %v15092_v1  ;;  %v6301_v16 = vrot.slane %v6279_v33, %v15105_v24  ;;  %v6308_v5 = vrot.slane %v6280_v60, %v15105_v24  ;;  %v6309_v14 = vcombine.high %v6287_v4, %v6287_v4 }
 0x52d   :  { %v6310_v22 = vcombine.high %v6294_v18, %v6294_v18  ;;  %v6814_v27 = vrot.slane %v6287_v4, %v15086_v50  ;;  %v6818_v23 = vrot.slane %v6287_v4, %v15092_v1  ;;  %v6846_v33 = vrot.slane %v6294_v18, %v15086_v50 }
 0x52e   :  { %v6311_v47 = vcombine.high %v6301_v16, %v6301_v16  ;;  %v6312_v62 = vcombine.high %v6308_v5, %v6308_v5  ;;  %v6822_v53 = vrot.slane %v6301_v16, %v15086_v50  ;;  %v6826_v57 = vrot.slane %v6301_v16, %v15092_v1 }
 0x52f   :  { %v6830_v6 = vrot.slane %v6309_v14, %v15086_v50  ;;  %v6834_v38 = vrot.slane %v6309_v14, %v15092_v1  ;;  %v6850_v60 = vrot.slane %v6294_v18, %v15092_v1  ;;  %v6854_v4 = vrot.slane %v6308_v5, %v15086_v50 }
 0x530   :  { %v6838_v13 = vrot.slane %v6311_v47, %v15086_v50  ;;  %v6842_v32 = vrot.slane %v6311_v47, %v15092_v1  ;;  %v6858_v35 = vrot.slane %v6308_v5, %v15092_v1  ;;  %v6862_v10 = vrot.slane %v6310_v22, %v15086_v50 }
 0x531   :  { %v6866_v16 = vrot.slane %v6310_v22, %v15092_v1  ;;  %v6870_v2 = vrot.slane %v6312_v62, %v15086_v50  ;;  %v6874_v14 = vrot.slane %v6312_v62, %v15092_v1  ;;  %v15905_v43 = vsel %vm1902_vm0, %v6494_v36, %v6814_v27 }
 0x532   :  { %v15908_v18 = vsel %vm1902_vm0, %v6498_v15, %v6818_v23  ;;  %v15911_v47 = vsel %vm1902_vm0, %v6502_v61, %v6822_v53  ;;  %v15914_v17 = vsel %vm1902_vm0, %v6506_v28, %v6826_v57  ;;  %v15917_v5 = vsel %vm1902_vm0, %v6510_v8, %v6830_v6 }
 0x533   :  { %v15920_v22 = vsel %vm1902_vm0, %v6514_v20, %v6834_v38  ;;  %v15923_v62 = vsel %vm1902_vm0, %v6518_v56, %v6838_v13  ;;  %v15926_v36 = vsel %vm1902_vm0, %v6522_v42, %v6842_v32  ;;  %v7043_v23 = vsel %vm1902_vm0, %v6526_v12, %v6846_v33 }
 0x534   :  { %17510 = vst [vmem:[#allocation28_spill] sm:$0xff] %v15923_v62  ;;  %17511 = vst [vmem:[#allocation29_spill] sm:$0xff] %v15926_v36  ;;  %v7044_v53 = vsel %vm1902_vm0, %v6530_v34, %v6850_v60  ;;  %v15931_v15 = vsel %vm1902_vm0, %v6534_v41, %v6854_v4  ;;  %v15934_v61 = vsel %vm1902_vm0, %v6538_v30, %v6858_v35 }
 0x535   :  { %17512 = vst [vmem:[#allocation30_spill] sm:$0xff] %v15931_v15  ;;  %17513 = vst [vmem:[#allocation31_spill] sm:$0xff] %v15934_v61  ;;  %v15937_v6 = vsel %vm1902_vm0, %v6542_v58, %v6862_v10  ;;  %v15940_v28 = vsel %vm1902_vm0, %v6546_v51, %v6866_v16  ;;  %v15943_v13 = vsel %vm1902_vm0, %v6550_v52, %v6870_v2 }
 0x536   :  { %17514 = vst [vmem:[#allocation32_spill] sm:$0xff] %v15937_v6  ;;  %17515 = vst [vmem:[#allocation33_spill] sm:$0xff] %v15940_v28  ;;  %v15946_v32 = vsel %vm1902_vm0, %v6554_v45, %v6874_v14  ;;  %v7291_v10 = vcombine.low %v7043_v23, %v7044_v53  ;;  %v6121_v41 = vcombine.high %v15853_v48, %v15853_v48 }
 0x537   :  { %17516 = vst [vmem:[#allocation34_spill] sm:$0xff] %v15943_v13  ;;  %17517 = vst [vmem:[#allocation35_spill] sm:$0xff] %v15946_v32  ;;  %v6122_v56 = vcombine.high %v15856_v7, %v15856_v7  ;;  %v6129_v42 = vrot.slane %v15853_v48, %v15105_v24  ;;  %v6136_v58 = vrot.slane %v15856_v7, %v15105_v24 }
 0x538   :  { %v15963_v30 = vrot.slane %v7291_v10, %v15047_v49  ;;  %v6143_v51 = vrot.slane %v6121_v41, %v15105_v24  ;;  %v6329_v52 = vcombine.high %v15859_v40, %v15859_v40  ;;  %v6330_v45 = vcombine.high %v15862_v25, %v15862_v25 }
 0x539   :  { %v6337_v27 = vrot.slane %v15859_v40, %v15105_v24  ;;  %v6150_v57 = vrot.slane %v6122_v56, %v15105_v24  ;;  %v6151_v38 = vcombine.high %v6129_v42, %v6129_v42  ;;  %v6152_v33 = vcombine.high %v6136_v58, %v6136_v58 }
 0x53a   :  { %17518 = vst [vmem:[#allocation36_spill] sm:$0xff] %v15963_v30  ;;  %v6558_v48 = vrot.slane %v6129_v42, %v15086_v50  ;;  %v6153_v60 = vcombine.high %v6143_v51, %v6143_v51  ;;  %v6562_v7 = vrot.slane %v6129_v42, %v15092_v1  ;;  %v6566_v4 = vrot.slane %v6143_v51, %v15086_v50 }
 0x53b   :  { %v6570_v16 = vrot.slane %v6143_v51, %v15092_v1  ;;  %v6154_v14 = vcombine.high %v6150_v57, %v6150_v57  ;;  %v6574_v23 = vrot.slane %v6151_v38, %v15086_v50  ;;  %v6578_v53 = vrot.slane %v6151_v38, %v15092_v1 }
 0x53c   :  { %v6590_v40 = vrot.slane %v6136_v58, %v15086_v50  ;;  %v6582_v10 = vrot.slane %v6153_v60, %v15086_v50  ;;  %v6586_v41 = vrot.slane %v6153_v60, %v15092_v1  ;;  %v6594_v56 = vrot.slane %v6136_v58, %v15092_v1 }
 0x53d   :  { %v6598_v20 = vrot.slane %v6150_v57, %v15086_v50  ;;  %v6602_v42 = vrot.slane %v6150_v57, %v15092_v1  ;;  %v6606_v2 = vrot.slane %v6152_v33, %v15086_v50  ;;  %v6610_v51 = vrot.slane %v6152_v33, %v15092_v1 }
 0x53e   :  { %v6614_v8 = vrot.slane %v6154_v14, %v15086_v50  ;;  %v6618_v38 = vrot.slane %v6154_v14, %v15092_v1  ;;  %v6344_v35 = vrot.slane %v15862_v25, %v15105_v24  ;;  %v6351_v34 = vrot.slane %v6329_v52, %v15105_v24 }
 0x53f   :  { %v6358_v60 = vrot.slane %v6330_v45, %v15105_v24  ;;  %v6359_v58 = vcombine.high %v6337_v27, %v6337_v27  ;;  %v6878_v12 = vrot.slane %v6337_v27, %v15086_v50  ;;  %v6882_v57 = vrot.slane %v6337_v27, %v15092_v1 }
 0x540   :  { %v17519_v33 = vcombine.low %v15660_v26, %v15663_v59  ;;  %v6360_v32 = vcombine.high %v6344_v35, %v6344_v35  ;;  %v6361_v13 = vcombine.high %v6351_v34, %v6351_v34  ;;  %v6886_v28 = vrot.slane %v6351_v34, %v15086_v50 }
 0x541   :  { %v6362_v14 = vcombine.high %v6358_v60, %v6358_v60  ;;  %v6890_v25 = vrot.slane %v6351_v34, %v15092_v1  ;;  %v6894_v52 = vrot.slane %v6359_v58, %v15086_v50  ;;  %v6898_v45 = vrot.slane %v6359_v58, %v15092_v1 }
 0x542   :  { %v7154_v30 = vrot.slane %v17519_v33, %v15047_v49  ;;  %v6910_v24 = vrot.slane %v6344_v35, %v15086_v50  ;;  %v6902_v27 = vrot.slane %v6361_v13, %v15086_v50  ;;  %v6906_v6 = vrot.slane %v6361_v13, %v15092_v1 }
 0x543   :  { %v6914_v26 = vrot.slane %v6344_v35, %v15092_v1  ;;  %v6918_v59 = vrot.slane %v6358_v60, %v15086_v50  ;;  %v6922_v33 = vrot.slane %v6358_v60, %v15092_v1  ;;  %v6926_v61 = vrot.slane %v6360_v32, %v15086_v50 }
 0x544   :  { %v6930_v34 = vrot.slane %v6360_v32, %v15092_v1  ;;  %v6934_v15 = vrot.slane %v6362_v14, %v15086_v50  ;;  %v6938_v58 = vrot.slane %v6362_v14, %v15092_v1  ;;  %v16020_v62 = vsel %vm1902_vm0, %v6558_v48, %v6878_v12 }
 0x545   :  { %v16023_v36 = vsel %vm1902_vm0, %v6562_v7, %v6882_v57  ;;  %v16026_v13 = vsel %vm1902_vm0, %v6566_v4, %v6886_v28  ;;  %v16029_v35 = vsel %vm1902_vm0, %v6570_v16, %v6890_v25  ;;  %v16032_v60 = vsel %vm1902_vm0, %v6574_v23, %v6894_v52  ;;  %v17525_v25 = vld [vmem:[#allocation19_spill] sm:$0xff]  ;;  %v17526_v52 = vld [vmem:[#allocation20_spill] sm:$0xff] }
 0x546   :  { %v16035_v32 = vsel %vm1902_vm0, %v6578_v53, %v6898_v45  ;;  %v16038_v14 = vsel %vm1902_vm0, %v6582_v10, %v6902_v27  ;;  %v16041_v12 = vsel %vm1902_vm0, %v6586_v41, %v6906_v6  ;;  %v16044_v48 = vsel %vm1902_vm0, %v6590_v40, %v6910_v24  ;;  %v17520_v10 = vld [vmem:[#allocation16_spill] sm:$0xff] }
 0x547   :  { %v16047_v28 = vsel %vm1902_vm0, %v6594_v56, %v6914_v26  ;;  %v16050_v7 = vsel %vm1902_vm0, %v6598_v20, %v6918_v59  ;;  %v16053_v4 = vsel %vm1902_vm0, %v6602_v42, %v6922_v33  ;;  %v16056_v16 = vsel %vm1902_vm0, %v6606_v2, %v6926_v61  ;;  %v17522_v42 = vld [vmem:[#allocation17_spill] sm:$0xff] }
 0x548   :  { %v16059_v23 = vsel %vm1902_vm0, %v6610_v51, %v6930_v34  ;;  %v16062_v6 = vsel %vm1902_vm0, %v6614_v8, %v6934_v15  ;;  %v16065_v24 = vsel %vm1902_vm0, %v6618_v38, %v6938_v58  ;;  %v7323_v53 = vcombine.low %v16020_v62, %v16023_v36  ;;  %v17523_v51 = vld [vmem:[#allocation18_spill] sm:$0xff]  ;;  %v14648_v62 = vld [vmem:[#allocation7 + $0x26c] ss:$16 sps:$4 sm:$0xff]  }
 0x549   :  { %v7331_v20 = vcombine.low %v16026_v13, %v16029_v35  ;;  %v7339_v40 = vcombine.low %v16032_v60, %v16035_v32  ;;  %v7355_v61 = vcombine.low %v16044_v48, %v16047_v28  ;;  %v7363_v2 = vcombine.low %v16050_v7, %v16053_v4  ;;  %v14643_v48 = vld [vmem:[#allocation7 + $0x260] ss:$16 sps:$4 sm:$0xff]   ;;  %v14646_v28 = vld [vmem:[#allocation7 + $0x268] ss:$16 sps:$4 sm:$0xff]  }
 0x54a   :  { %v7371_v15 = vcombine.low %v16056_v16, %v16059_v23  ;;  %v7155_v8 = vcombine.low %v15666_v31, %v15669_v9  ;;  %v17521_v41 = vcombine.low %v15674_v44, %v17520_v10  ;;  %v17524_v38 = vcombine.low %v17522_v42, %v17523_v51  ;;  %v17534_v42 = vld [vmem:[#allocation23_spill] sm:$0xff] }
 0x54b   :  { %v17527_v45 = vcombine.low %v17525_v25, %v17526_v52  ;;  %v7387_v26 = vcombine.low %v15840_v55, %v15846_v29  ;;  %v17528_v9 = vcombine.low %v15765_v54, %v15768_v63  ;;  %v17529_v59 = vcombine.low %v15771_v0, %v15774_v46  ;;  %v17531_v55 = vld [vmem:[#allocation21_spill] sm:$0xff]  ;;  %v17533_v0 = vld [vmem:[#allocation22_spill] sm:$0xff] }
 0x54c   :  { %v7178_v56 = vrot.slane %v17521_v41, %v15047_v49  ;;  %v7186_v57 = vrot.slane %v17524_v38, %v15047_v49  ;;  %v7162_v31 = vrot.slane %v7155_v8, %v15047_v49  ;;  %v17530_v34 = vcombine.low %v15777_v11, %v15780_v39  ;;  %v17536_v39 = vld [vmem:[#allocation24_spill] sm:$0xff]  ;;  %v17537_v38 = vld [vmem:[#allocation25_spill] sm:$0xff]  ;;  %v17540_v52 = vld [vmem:[#allocation26_spill] sm:$0xff] }
 0x54d   :  { %v7194_v27 = vrot.slane %v17527_v45, %v15047_v49  ;;  %v7202_v44 = vrot.slane %v17528_v9, %v15047_v49  ;;  %v7210_v33 = vrot.slane %v17529_v59, %v15047_v49  ;;  %v7395_v10 = vrot.slane %v7387_v26, %v15047_v49 }
 0x54e   :  { %v7218_v58 = vrot.slane %v17530_v34, %v15047_v49  ;;  %v7405_v29 = vcombine.low %v17531_v55, %v7178_v56  ;;  %v7219_v41 = vcombine.low %v15783_v21, %v15786_v19  ;;  %v7388_v54 = vcombine.low %v7154_v30, %v7162_v31  ;;  %v17539_v30 = vld [vmem:[#allocation27_spill] sm:$0xff] }
 0x54f   :  { %v7406_v8 = vcombine.low %v7186_v57, %v7194_v27  ;;  %v17532_v63 = vcombine.low %v15789_v3, %v15792_v37  ;;  %v17535_v51 = vcombine.low %v17533_v0, %v17534_v42  ;;  %v17538_v25 = vcombine.low %v17536_v39, %v17537_v38  ;;  %v17544_v38 = vld [vmem:[#allocation29_spill] sm:$0xff] }
 0x550   :  { %v7413_v57 = vrot.slane %v7405_v29, %v15047_v49  ;;  %v7226_v19 = vrot.slane %v7219_v41, %v15047_v49  ;;  %v7251_v3 = vcombine.low %v17540_v52, %v17539_v30  ;;  %v7402_v37 = vrot.slane %v7388_v54, %v15047_v49  ;;  %v17550_v30 = vld [vmem:[#allocation33_spill] sm:$0xff] }
 0x551   :  { %v7234_v46 = vrot.slane %v17532_v63, %v15047_v49  ;;  %v7242_v11 = vrot.slane %v17535_v51, %v15047_v49  ;;  %v7250_v56 = vrot.slane %v17538_v25, %v15047_v49  ;;  %v7420_v21 = vrot.slane %v7406_v8, %v15047_v49  ;;  %v17545_v25 = vld [vmem:[#allocation28_spill] sm:$0xff] }
 0x552   :  { %v7423_v45 = vcombine.low %v7202_v44, %v7210_v33  ;;  %v17541_v26 = vcombine.low %v15905_v43, %v15908_v18  ;;  %v7258_v34 = vrot.slane %v7251_v3, %v15047_v49  ;;  %v7424_v55 = vcombine.low %v7218_v58, %v7226_v19 }
 0x553   :  { %v7441_v27 = vcombine.low %v7234_v46, %v7242_v11  ;;  %v7421_v9 = vcombine.low %v7413_v57, %v7420_v21  ;;  %v7422_v59 = vcombine.high %v7413_v57, %v7420_v21  ;;  %v7403_v29 = vcombine.low %v7395_v10, %v7402_v37 }
 0x554   :  { %v16134_v31 = vrot.slane %v17541_v26, %v15047_v49  ;;  %v7404_v8 = vcombine.high %v7395_v10, %v7402_v37  ;;  %v7431_v41 = vrot.slane %v7423_v45, %v15047_v49  ;;  %v7438_v33 = vrot.slane %v7424_v55, %v15047_v49  ;;  %v14625_v45 = vld [vmem:[#allocation7 + $0x200] ss:$16 sps:$4 sm:$0xff]   ;;  %v14636_v55 = vld [vmem:[#allocation7 + $0x22c] ss:$16 sps:$4 sm:$0xff]  }
 0x555   :  { %v7449_v63 = vrot.slane %v7441_v27, %v15047_v49  ;;  %v7533_v54 = vrot.slane %v7421_v9, 7  ;;  %v7535_v44 = vrot.slane %v7422_v59, 7  ;;  %v7442_v46 = vcombine.low %v7250_v56, %v7258_v34  ;;  %v14628_v27 = vld [vmem:[#allocation7 + $0x208] ss:$16 sps:$4 sm:$0xff]   ;;  %v14633_v34 = vld [vmem:[#allocation7 + $0x224] ss:$16 sps:$4 sm:$0xff]  }
 0x556   :  { %v16140_v0 = vrot.slane %v7403_v29, 7  ;;  %v7532_v43 = vrot.slane %v7404_v8, 7  ;;  %v17542_v18 = vcombine.low %v15911_v47, %v15914_v17  ;;  %v17543_v58 = vcombine.low %v15917_v5, %v15920_v22  ;;  %v17546_v17 = vld [vmem:[#allocation30_spill] sm:$0xff]  ;;  %v17547_v47 = vld [vmem:[#allocation31_spill] sm:$0xff]  ;;  %v17549_v22 = vld [vmem:[#allocation32_spill] sm:$0xff] }
 0x557   :  { %v7440_v51 = vcombine.high %v7431_v41, %v7438_v33  ;;  %v7456_v11 = vrot.slane %v7442_v46, %v15047_v49  ;;  %v7439_v39 = vcombine.low %v7431_v41, %v7438_v33  ;;  %v7283_v56 = vcombine.low %v17545_v25, %v17544_v38  ;;  %v17552_v33 = vld [vmem:[#allocation34_spill] sm:$0xff]  ;;  %v17553_v46 = vld [vmem:[#allocation35_spill] sm:$0xff] }
 0x558   :  { %v7274_v42 = vrot.slane %v17542_v18, %v15047_v49  ;;  %v7282_v10 = vrot.slane %v17543_v58, %v15047_v49  ;;  %v16154_v57 = vsel %vm1902_vm0, %v7532_v43, %v7535_v44  ;;  %v16158_v21 = vsel %vm1902_vm0, %v16140_v0, %v7533_v54 }
 0x559   :  { %v17548_v19 = vcombine.low %v17546_v17, %v17547_v47  ;;  %v17551_v52 = vcombine.low %v17549_v22, %v17550_v30  ;;  %v13434_v37 = vpack.c.bf16 %v16154_v57, %v7532_v43  ;;  %v13438_v26 = vpack.c.bf16 %v16158_v21, %v16140_v0 }
 0x55a   :  { %v7458_v9 = vcombine.high %v7449_v63, %v7456_v11  ;;  %v7539_v59 = vrot.slane %v7440_v51, 7  ;;  %v7457_v29 = vcombine.low %v7449_v63, %v7456_v11  ;;  %v7537_v8 = vrot.slane %v7439_v39, 7  ;;  %v17556_v11 = vld [vmem:[#allocation36_spill] sm:$0xff] }
 0x55b   :  { %v7306_v5 = vrot.slane %v17548_v19, %v15047_v49  ;;  %v16168_v3 = vrot.slane %v17551_v52, %v15047_v49  ;;  %v7290_v41 = vrot.slane %v7283_v56, %v15047_v49  ;;  %v17554_v18 = vcombine.low %v17552_v33, %v17553_v46  ;;  %13435 = vmatprep.mubr.msk.bf16.mxu0 %vm15440_vm6, %v13434_v37  ;;  %v14634_v19 = vld [vmem:[#allocation7 + $0x228] ss:$16 sps:$4 sm:$0xff]   ;;  %v14637_v33 = vld [vmem:[#allocation7 + $0x240] ss:$16 sps:$4 sm:$0xff]  }
 0x55c   :  { %13451 = vmatprep.mubr.msk.bf16.mxu1 %vm15440_vm6, %v13434_v37  ;;  %v16183_v25 = vsel %vm1902_vm0, %v7535_v44, %v7539_v59  ;;  %v16185_v51 = vrot.slane %v7458_v9, 7  ;;  %v7459_v63 = vcombine.low %v16134_v31, %v7274_v42  ;;  %13439 = vmatmul.mubr.msk.bf16.vlgmr.msra.gmra.mrb[16].mxu0 %vm15440_vm6, %v13438_v26  ;;  %v16196_v47 = vsel %vm1902_vm0, %v7533_v54, %v7537_v8  ;;  %v14631_v42 = vld [vmem:[#allocation7 + $0x220] ss:$16 sps:$4 sm:$0xff]   ;;  %v14640_v46 = vld [vmem:[#allocation7 + $0x248] ss:$16 sps:$4 sm:$0xff]  }
 0x55d   :  { %v7322_v58 = vrot.slane %v17554_v18, %v15047_v49  ;;  %v7477_v39 = vcombine.low %v17556_v11, %v7306_v5  ;;  %13455 = vmatmul.mubr.msk.bf16.vlgmr.msra.gmra.mrb[16].mxu1 %vm15440_vm6, %v13438_v26  ;;  %v7603_v56 = vrot.slane %v16183_v25, 1  ;;  %v7655_v17 = vrot.slane %v16183_v25, 2  ;;  %8971 = vmatpush1.bf16.msra.mxu0 %v14625_v45  ;;  %v14639_v45 = vld [vmem:[#allocation7 + $0x244] ss:$16 sps:$4 sm:$0xff]  }
 0x55e   :  { %v16198_v44 = vrot.slane %v7457_v29, 7  ;;  %9190 = vmatpush1.bf16.msra.mxu1 %v14628_v27  ;;  %v16202_v31 = vsel %vm1902_vm0, %v7539_v59, %v16185_v51  ;;  %v7601_v5 = vrot.slane %v16196_v47, 1  ;;  %v7653_v22 = vrot.slane %v16196_v47, 2  ;;  %8972 = vmatprep.subr.bf16.mxu0 %v14633_v34  ;;  %v14642_v27 = vld [vmem:[#allocation7 + $0x24c] ss:$16 sps:$4 sm:$0xff]  }
 0x55f   :  { %v7460_v30 = vcombine.low %v7282_v10, %v7290_v41  ;;  %v7607_v52 = vrot.slane %v16202_v31, 1  ;;  %v7659_v54 = vrot.slane %v16202_v31, 2  ;;  %v7706_v37 = vpack.c.bf16 %v16202_v31, %v16183_v25  ;;  %9191 = vmatprep.subr.bf16.mxu1 %v14636_v55  ;;  %v14681_v25 = vld [vmem:[#allocation7 + $0x324] ss:$16 sps:$4 sm:$0xff]  }
 0x560   :  { %v16212_v26 = vsel %vm1902_vm0, %v7537_v8, %v16198_v44  ;;  %v7467_v29 = vrot.slane %v7459_v63, %v15047_v49  ;;  %v7478_v55 = vcombine.low %v16168_v3, %v7322_v58  ;;  %v7485_v41 = vrot.slane %v7477_v39, %v15047_v49  ;;  %v14645_v39 = vld [vmem:[#allocation7 + $0x264] ss:$16 sps:$4 sm:$0xff]  }
 0x561   :  { %v7605_v9 = vrot.slane %v16212_v26, 1  ;;  %v7657_v59 = vrot.slane %v16212_v26, 2  ;;  %v7705_v10 = vpack.c.bf16 %v16212_v26, %v16196_v47  ;;  %8939 = vmatprep.mubr.bf16.mxu0 %v7706_v37  ;;  %9158 = vmatprep.mubr.bf16.mxu1 %v7706_v37  ;;  %v7474_v34 = vrot.slane %v7460_v30, %v15047_v49  ;;  %v14679_v26 = vld [vmem:[#allocation7 + $0x320] ss:$16 sps:$4 sm:$0xff]  }
 0x562   :  { %v16223_v8 = vsel %vm1902_vm0, 0.0, %v7532_v43  ;;  %8973 = vmatpush1.bf16.msra.mxu0 %v14631_v42  ;;  %9192 = vmatpush1.bf16.msra.mxu1 %v14634_v19  ;;  %v7330_v18 = vrot.slane %v7323_v53, %v15047_v49  ;;  %v7338_v63 = vrot.slane %v7331_v20, %v15047_v49  ;;  %v7346_v43 = vrot.slane %v7339_v40, %v15047_v49 }
 0x563   :  { %v7598_v3 = vrot.slane %v16223_v8, 1  ;;  %8974 = vmatprep.subr.bf16.mxu0 %v14639_v45  ;;  %9193 = vmatprep.subr.bf16.mxu1 %v14642_v27  ;;  %v7476_v58 = vcombine.high %v7467_v29, %v7474_v34  ;;  %v7492_v11 = vrot.slane %v7478_v55, %v15047_v49  ;;  %v7475_v36 = vcombine.low %v7467_v29, %v7474_v34  ;;  %v14649_v55 = vld [vmem:[#allocation7 + $0x280] ss:$16 sps:$4 sm:$0xff]  }
 0x564   :  { %v7599_v53 = vrot.slane %v16154_v57, 1  ;;  %v7347_v13 = vcombine.low %v16038_v14, %v16041_v12  ;;  %v7362_v35 = vrot.slane %v7355_v61, %v15047_v49  ;;  %v7370_v60 = vrot.slane %v7363_v2, %v15047_v49  ;;  %8940 = vmatmul.mubr.bf16.gmra.mrb[20].mxu0 %v7705_v10  ;;  %v14651_v2 = vld [vmem:[#allocation7 + $0x284] ss:$16 sps:$4 sm:$0xff]  }
 0x565   :  { %v7378_v32 = vrot.slane %v7371_v15, %v15047_v49  ;;  %9159 = vmatmul.mubr.bf16.gmra.mrb[20].mxu1 %v7705_v10  ;;  %v7494_v20 = vcombine.high %v7485_v41, %v7492_v11  ;;  %v16254_v40 = vrot.slane %v7476_v58, 7  ;;  %v7493_v14 = vcombine.low %v7485_v41, %v7492_v11  ;;  %v14654_v15 = vld [vmem:[#allocation7 + $0x28c] ss:$16 sps:$4 sm:$0xff]   ;;  %v14652_v41 = vld [vmem:[#allocation7 + $0x288] ss:$16 sps:$4 sm:$0xff]  }
 0x566   :  { %v16256_v12 = vrot.slane %v7475_v36, 7  ;;  %8975 = vmatpush1.bf16.msra.mxu0 %v14637_v33  ;;  %9194 = vmatpush1.bf16.msra.mxu1 %v14640_v46  ;;  %v7354_v7 = vrot.slane %v7347_v13, %v15047_v49  ;;  %v7379_v4 = vcombine.low %v16062_v6, %v16065_v24  ;;  %v7495_v61 = vcombine.low %v7330_v18, %v7338_v63 }
 0x567   :  { %v16263_v16 = vsel %vm1902_vm0, 0.0, %v16140_v0  ;;  %v7549_v23 = vrot.slane %v7494_v20, 7  ;;  %8976 = vmatprep.subr.bf16.mxu0 %v14645_v39  ;;  %9195 = vmatprep.subr.bf16.mxu1 %v14648_v62  ;;  %v7547_v42 = vrot.slane %v7493_v14, 7  ;;  %v7513_v19 = vcombine.low %v7362_v35, %v7370_v60  ;;  %v14658_v20 = vld [vmem:[#allocation7 + $0x2a8] ss:$16 sps:$4 sm:$0xff]  }
 0x568   :  { %v7600_v30 = vsel %vm2059_vm3, %v7598_v3, %v7599_v53  ;;  %v7386_v37 = vrot.slane %v7379_v4, %v15047_v49  ;;  %v7496_v45 = vcombine.low %v7346_v43, %v7354_v7  ;;  %v7503_v27 = vrot.slane %v7495_v61, %v15047_v49  ;;  %v14657_v43 = vld [vmem:[#allocation7 + $0x2a4] ss:$16 sps:$4 sm:$0xff]   ;;  %v14660_v3 = vld [vmem:[#allocation7 + $0x2ac] ss:$16 sps:$4 sm:$0xff]  }
 0x569   :  { %v7604_v6 = vsel %vm2059_vm3, %v7599_v53, %v7603_v56  ;;  %v16273_v24 = vsel %vm1902_vm0, %v16254_v40, %v7549_v23  ;;  %v16277_v0 = vsel %vm1902_vm0, %v16256_v12, %v7547_v42  ;;  %v7521_v10 = vrot.slane %v7513_v19, %v15047_v49  ;;  %v14663_v7 = vld [vmem:[#allocation7 + $0x2c4] ss:$16 sps:$4 sm:$0xff]   ;;  %v14666_v4 = vld [vmem:[#allocation7 + $0x2cc] ss:$16 sps:$4 sm:$0xff]  }
 0x56a   :  { %v16280_v29 = vpack.c.bf16 %v7604_v6, %v7600_v30  ;;  %v13442_v34 = vpack.c.bf16 %v16273_v24, %v16254_v40  ;;  %8977 = vmatpush1.bf16.msra.mxu0 %v14643_v48  ;;  %9196 = vmatpush1.bf16.msra.mxu1 %v14646_v28  ;;  %v13446_v33 = vpack.c.bf16 %v16277_v0, %v16256_v12  ;;  %v7595_v18 = vrot.slane %v16263_v16, 1 }
 0x56b   :  { %v7510_v46 = vrot.slane %v7496_v45, %v15047_v49  ;;  %8978 = vmatprep.subr.bf16.mxu0 %v14651_v2  ;;  %9197 = vmatprep.subr.bf16.mxu1 %v14654_v15  ;;  %v7514_v63 = vcombine.low %v7378_v32, %v7386_v37  ;;  %v7596_v58 = vrot.slane %v16158_v21, 1  ;;  %v16291_v11 = vsel %vm1902_vm0, %v16185_v51, 0.0  ;;  %v14655_v32 = vld [vmem:[#allocation7 + $0x2a0] ss:$16 sps:$4 sm:$0xff]  }
 0x56c   :  { %v7608_v39 = vsel %vm2059_vm3, %v7603_v56, %v7607_v52  ;;  %13443 = vmatprep.mubr.msk.bf16.mxu0 %vm15440_vm6, %v13442_v34  ;;  %13459 = vmatprep.mubr.msk.bf16.mxu1 %vm15440_vm6, %v13442_v34  ;;  %v7611_v53 = vrot.slane %v16291_v11, 1  ;;  %v16305_v51 = vsel %vm1902_vm0, %v16198_v44, 0.0  ;;  %v16326_v15 = vsel %vm1902_vm0, 0.0, %v16254_v40 }
 0x56d   :  { %v7512_v62 = vcombine.high %v7503_v27, %v7510_v46  ;;  %v7511_v36 = vcombine.low %v7503_v27, %v7510_v46  ;;  %13447 = vmatmul.mubr.msk.bf16.gmra.mrb[24].mxu0 %vm15440_vm6, %v13446_v33  ;;  %13463 = vmatmul.mubr.msk.bf16.gmra.mrb[24].mxu1 %vm15440_vm6, %v13446_v33  ;;  %v7528_v56 = vrot.slane %v7514_v63, %v15047_v49  ;;  %v7609_v60 = vrot.slane %v16305_v51, 1 }
 0x56e   :  { %v7597_v13 = vsel %vm2059_vm3, %v7595_v18, %v7596_v58  ;;  %v7602_v35 = vsel %vm2059_vm3, %v7596_v58, %v7601_v5  ;;  %8979 = vmatpush1.bf16.msra.mxu0 %v14649_v55  ;;  %9198 = vmatpush1.bf16.msra.mxu1 %v14652_v41  ;;  %v7612_v38 = vsel %vm2059_vm3, %v7607_v52, %v7611_v53  ;;  %v7617_v41 = vrot.slane %v16273_v24, 1  ;;  %v14672_v53 = vld [vmem:[#allocation7 + $0x2ec] ss:$16 sps:$4 sm:$0xff]  }
 0x56f   :  { %v7553_v44 = vrot.slane %v7512_v62, 7  ;;  %v7551_v14 = vrot.slane %v7511_v36, 7  ;;  %v16317_v48 = vpack.c.bf16 %v7602_v35, %v7597_v13  ;;  %v7530_v28 = vcombine.high %v7521_v10, %v7528_v56  ;;  %8980 = vmatprep.subr.bf16.mxu0 %v14657_v43  ;;  %9199 = vmatprep.subr.bf16.mxu1 %v14660_v3  ;;  %v14664_v43 = vld [vmem:[#allocation7 + $0x2c8] ss:$16 sps:$4 sm:$0xff]   ;;  %v14669_v62 = vld [vmem:[#allocation7 + $0x2e4] ss:$16 sps:$4 sm:$0xff]  }
 0x570   :  { %v7529_v61 = vcombine.low %v7521_v10, %v7528_v56  ;;  %v16322_v2 = vpack.c.bf16 %v7612_v38, %v7608_v39  ;;  %v7606_v52 = vsel %vm2059_vm3, %v7601_v5, %v7605_v9  ;;  %v7610_v37 = vsel %vm2059_vm3, %v7605_v9, %v7609_v60  ;;  %v14661_v9 = vld [vmem:[#allocation7 + $0x2c0] ss:$16 sps:$4 sm:$0xff]  }
 0x571   :  { %v16329_v19 = vsel %vm1902_vm0, %v7549_v23, %v7553_v44  ;;  %v16332_v30 = vsel %vm1902_vm0, %v7547_v42, %v7551_v14  ;;  %v7557_v45 = vrot.slane %v7530_v28, 7  ;;  %v16346_v10 = vpack.c.bf16 %v7610_v37, %v7606_v52  ;;  %v14667_v38 = vld [vmem:[#allocation7 + $0x2e0] ss:$16 sps:$4 sm:$0xff]   ;;  %v14670_v28 = vld [vmem:[#allocation7 + $0x2e8] ss:$16 sps:$4 sm:$0xff]  }
 0x572   :  { %v7621_v40 = vrot.slane %v16329_v19, 1  ;;  %v7673_v27 = vrot.slane %v16329_v19, 2  ;;  %v7555_v23 = vrot.slane %v7529_v61, 7  ;;  %8981 = vmatpush1.bf16.msra.mxu0 %v14655_v32  ;;  %9200 = vmatpush1.bf16.msra.mxu1 %v14658_v20  ;;  %v7619_v42 = vrot.slane %v16332_v30, 1  ;;  %v14675_v37 = vld [vmem:[#allocation7 + $0x304] ss:$16 sps:$4 sm:$0xff]  }
 0x573   :  { %v7671_v6 = vrot.slane %v16332_v30, 2  ;;  %v7616_v5 = vrot.slane %v16326_v15, 1  ;;  %v16350_v34 = vsel %vm1902_vm0, %v7553_v44, %v7557_v45  ;;  %8982 = vmatprep.subr.bf16.mxu0 %v14663_v7  ;;  %9201 = vmatprep.subr.bf16.mxu1 %v14666_v4  ;;  %v16358_v33 = vsel %vm1902_vm0, 0.0, %v16256_v12 }
 0x574   :  { %v16353_v55 = vsel %vm1902_vm0, %v7551_v14, %v7555_v23  ;;  %v7625_v46 = vrot.slane %v16350_v34, 1  ;;  %v7677_v18 = vrot.slane %v16350_v34, 2  ;;  %v7718_v63 = vpack.c.bf16 %v16350_v34, %v16329_v19  ;;  %v14691_v34 = vld [vmem:[#allocation7 + $0x360] ss:$16 sps:$4 sm:$0xff]  }
 0x575   :  { %v7623_v3 = vrot.slane %v16353_v55, 1  ;;  %v7675_v58 = vrot.slane %v16353_v55, 2  ;;  %v7717_v39 = vpack.c.bf16 %v16353_v55, %v16332_v30  ;;  %v7618_v36 = vsel %vm2059_vm3, %v7616_v5, %v7617_v41  ;;  %v14688_v30 = vld [vmem:[#allocation7 + $0x348] ss:$16 sps:$4 sm:$0xff]   ;;  %v14699_v55 = vld [vmem:[#allocation7 + $0x384] ss:$16 sps:$4 sm:$0xff]  }
 0x576   :  { %v7622_v12 = vsel %vm2059_vm3, %v7617_v41, %v7621_v40  ;;  %8959 = vmatprep.mubr.bf16.mxu0 %v7718_v63  ;;  %9178 = vmatprep.mubr.bf16.mxu1 %v7718_v63  ;;  %v7613_v13 = vrot.slane %v16358_v33, 1  ;;  %v7614_v35 = vrot.slane %v16277_v0, 1  ;;  %v16375_v60 = vsel %vm1902_vm0, %v7557_v45, 0.0  ;;  %v14678_v45 = vld [vmem:[#allocation7 + $0x30c] ss:$16 sps:$4 sm:$0xff]  }
 0x577   :  { %v16370_v56 = vpack.c.bf16 %v7622_v12, %v7618_v36  ;;  %8960 = vmatmul.mubr.bf16.gmra.mrb[28].mxu0 %v7717_v39  ;;  %9179 = vmatmul.mubr.bf16.gmra.mrb[28].mxu1 %v7717_v39  ;;  %v7626_v44 = vsel %vm2059_vm3, %v7621_v40, %v7625_v46  ;;  %v7629_v32 = vrot.slane %v16375_v60, 1  ;;  %v16380_v20 = vsel %vm1902_vm0, %v7555_v23, 0.0 }
 0x578   :  { %v7624_v14 = vsel %vm2059_vm3, %v7619_v42, %v7623_v3  ;;  %8983 = vmatpush1.bf16.msra.mxu0 %v14661_v9  ;;  %9202 = vmatpush1.bf16.msra.mxu1 %v14664_v43  ;;  %v7615_v7 = vsel %vm2059_vm3, %v7613_v13, %v7614_v35  ;;  %v7620_v4 = vsel %vm2059_vm3, %v7614_v35, %v7619_v42  ;;  %v7627_v61 = vrot.slane %v16380_v20, 1  ;;  %v14673_v43 = vld [vmem:[#allocation7 + $0x300] ss:$16 sps:$4 sm:$0xff]  }
 0x579   :  { %v7650_v52 = vrot.slane %v16223_v8, 2  ;;  %9002 = vmatprep.mubr.bf16.mxu0 %v16280_v29  ;;  %9221 = vmatprep.mubr.bf16.mxu1 %v16280_v29  ;;  %v16389_v40 = vpack.c.bf16 %v7620_v4, %v7615_v7  ;;  %v7630_v23 = vsel %vm2059_vm3, %v7625_v46, %v7629_v32  ;;  %v7651_v5 = vrot.slane %v16154_v57, 2 }
 0x57a   :  { %v7647_v9 = vrot.slane %v16263_v16, 2  ;;  %8984 = vmatprep.subr.bf16.mxu0 %v14669_v62  ;;  %9203 = vmatprep.subr.bf16.mxu1 %v14672_v53  ;;  %v16394_v42 = vpack.c.bf16 %v7630_v23, %v7626_v44  ;;  %v7628_v8 = vsel %vm2059_vm3, %v7623_v3, %v7627_v61  ;;  %v7648_v41 = vrot.slane %v16158_v21, 2  ;;  %v14676_v21 = vld [vmem:[#allocation7 + $0x308] ss:$16 sps:$4 sm:$0xff]  }
 0x57b   :  { %v7660_v29 = vsel %vm2076_vm4, %v7655_v17, %v7659_v54  ;;  %v16403_v63 = vpack.c.bf16 %v7628_v8, %v7624_v14  ;;  %v7652_v57 = vsel %vm2076_vm4, %v7650_v52, %v7651_v5  ;;  %v7656_v16 = vsel %vm2076_vm4, %v7651_v5, %v7655_v17  ;;  %v14684_v17 = vld [vmem:[#allocation7 + $0x32c] ss:$16 sps:$4 sm:$0xff]   ;;  %v14685_v52 = vld [vmem:[#allocation7 + $0x340] ss:$16 sps:$4 sm:$0xff]   ;;  %v14700_v23 = vld [vmem:[#allocation7 + $0x388] ss:$16 sps:$4 sm:$0xff]  }
 0x57c   :  { %v7663_v46 = vrot.slane %v16291_v11, 2  ;;  %8985 = vmatpush1.bf16.msra.mxu0 %v14667_v38  ;;  %9204 = vmatpush1.bf16.msra.mxu1 %v14670_v28  ;;  %v16410_v3 = vpack.c.bf16 %v7656_v16, %v7652_v57  ;;  %v7649_v39 = vsel %vm2076_vm4, %v7647_v9, %v7648_v41  ;;  %v7654_v62 = vsel %vm2076_vm4, %v7648_v41, %v7653_v22  ;;  %v14690_v14 = vld [vmem:[#allocation7 + $0x34c] ss:$16 sps:$4 sm:$0xff]   ;;  %v14705_v5 = vld [vmem:[#allocation7 + $0x3a4] ss:$16 sps:$4 sm:$0xff]  }
 0x57d   :  { %v7661_v36 = vrot.slane %v16305_v51, 2  ;;  %8986 = vmatprep.subr.bf16.mxu0 %v14675_v37  ;;  %9205 = vmatprep.subr.bf16.mxu1 %v14678_v45  ;;  %v16417_v12 = vpack.c.bf16 %v7654_v62, %v7649_v39  ;;  %v7658_v53 = vsel %vm2076_vm4, %v7653_v22, %v7657_v59  ;;  %v7668_v13 = vrot.slane %v16326_v15, 2  ;;  %v14696_v37 = vld [vmem:[#allocation7 + $0x36c] ss:$16 sps:$4 sm:$0xff]   ;;  %v14697_v45 = vld [vmem:[#allocation7 + $0x380] ss:$16 sps:$4 sm:$0xff]  }
 0x57e   :  { %v7664_v11 = vsel %vm2076_vm4, %v7659_v54, %v7663_v46  ;;  %v7669_v44 = vrot.slane %v16273_v24, 2  ;;  %v7665_v31 = vrot.slane %v16358_v33, 2  ;;  %v7666_v54 = vrot.slane %v16277_v0, 2  ;;  %v14708_v9 = vld [vmem:[#allocation7 + $0x3ac] ss:$16 sps:$4 sm:$0xff]  }
 0x57f   :  { %v16428_v35 = vpack.c.bf16 %v7664_v11, %v7660_v29  ;;  %v7662_v51 = vsel %vm2076_vm4, %v7657_v59, %v7661_v36  ;;  %v7678_v47 = vsel %vm2076_vm4, %v7673_v27, %v7677_v18  ;;  %v7681_v22 = vrot.slane %v16375_v60, 2  ;;  %v14682_v59 = vld [vmem:[#allocation7 + $0x328] ss:$16 sps:$4 sm:$0xff]   ;;  %v14687_v60 = vld [vmem:[#allocation7 + $0x344] ss:$16 sps:$4 sm:$0xff]  }
 0x580   :  { %v16435_v32 = vpack.c.bf16 %v7662_v51, %v7658_v53  ;;  %8987 = vmatpush1.bf16.msra.mxu0 %v14673_v43  ;;  %9206 = vmatpush1.bf16.msra.mxu1 %v14676_v21  ;;  %v7670_v24 = vsel %vm2076_vm4, %v7668_v13, %v7669_v44  ;;  %v7674_v15 = vsel %vm2076_vm4, %v7669_v44, %v7673_v27  ;;  %v7679_v33 = vrot.slane %v16380_v20, 2  ;;  %v14703_v8 = vld [vmem:[#allocation7 + $0x3a0] ss:$16 sps:$4 sm:$0xff]   ;;  %v14706_v41 = vld [vmem:[#allocation7 + $0x3a8] ss:$16 sps:$4 sm:$0xff]  }
 0x581   :  { %v7676_v0 = vsel %vm2076_vm4, %v7671_v6, %v7675_v58  ;;  %8988 = vmatprep.subr.bf16.mxu0 %v14681_v25  ;;  %9207 = vmatprep.subr.bf16.mxu1 %v14684_v17  ;;  %v16454_v38 = vpack.c.bf16 %v7674_v15, %v7670_v24  ;;  %v7667_v28 = vsel %vm2076_vm4, %v7665_v31, %v7666_v54  ;;  %v14711_v29 = vld [vmem:[#allocation7 + $0x3c4] ss:$16 sps:$4 sm:$0xff]   ;;  %v14714_v57 = vld [vmem:[#allocation7 + $0x3cc] ss:$16 sps:$4 sm:$0xff]   ;;  %v14709_v16 = vld [vmem:[#allocation7 + $0x3c0] ss:$16 sps:$4 sm:$0xff]  }
 0x582   :  { %v7672_v19 = vsel %vm2076_vm4, %v7666_v54, %v7671_v6  ;;  %v7682_v7 = vsel %vm2076_vm4, %v7677_v18, %v7681_v22  ;;  %v7680_v20 = vsel %vm2076_vm4, %v7675_v58, %v7679_v33  ;;  %v14693_v6 = vld [vmem:[#allocation7 + $0x364] ss:$16 sps:$4 sm:$0xff]   ;;  %v14694_v18 = vld [vmem:[#allocation7 + $0x368] ss:$16 sps:$4 sm:$0xff]   ;;  %v14702_v58 = vld [vmem:[#allocation7 + $0x38c] ss:$16 sps:$4 sm:$0xff]  }
 0x583   :  { %v16460_v27 = vpack.c.bf16 %v7672_v19, %v7667_v28  ;;  %v16468_v4 = vpack.c.bf16 %v7682_v7, %v7678_v47  ;;  %v16470_v61 = vpack.c.bf16 %v7680_v20, %v7676_v0  ;;  %v14712_v46 = vld [vmem:[#allocation7 + $0x3c8] ss:$16 sps:$4 sm:$0xff]   ;;  %v14717_v43 = vld [vmem:[#allocation7 + $0x3e4] ss:$16 sps:$4 sm:$0xff]   ;;  %v14720_v21 = vld [vmem:[#allocation7 + $0x3ec] ss:$16 sps:$4 sm:$0xff]  }
 0x584   :  { %8989 = vmatpush1.bf16.msra.mxu0 %v14679_v26  ;;  %9208 = vmatpush1.bf16.msra.mxu1 %v14682_v59  ;;  %v14715_v39 = vld [vmem:[#allocation7 + $0x3e0] ss:$16 sps:$4 sm:$0xff]   ;;  %v14718_v62 = vld [vmem:[#allocation7 + $0x3e8] ss:$16 sps:$4 sm:$0xff]   ;;  %v14723_v36 = vld [vmem:[#allocation7 + $0x404] ss:$16 sps:$4 sm:$0xff]  }
 0x585   :  { %8990 = vmatprep.subr.bf16.mxu0 %v14687_v60  ;;  %9209 = vmatprep.subr.bf16.mxu1 %v14690_v14  ;;  %v14726_v25 = vld [vmem:[#allocation7 + $0x40c] ss:$16 sps:$4 sm:$0xff]   ;;  %v14721_v17 = vld [vmem:[#allocation7 + $0x400] ss:$16 sps:$4 sm:$0xff]   ;;  %v14724_v11 = vld [vmem:[#allocation7 + $0x408] ss:$16 sps:$4 sm:$0xff]  }
 0x586   :  { %v14729_v53 = vld [vmem:[#allocation7 + $0x424] ss:$16 sps:$4 sm:$0xff]   ;;  %v14732_v13 = vld [vmem:[#allocation7 + $0x42c] ss:$16 sps:$4 sm:$0xff]   ;;  %v14727_v51 = vld [vmem:[#allocation7 + $0x420] ss:$16 sps:$4 sm:$0xff]  }
 0x587   :  { %v14730_v44 = vld [vmem:[#allocation7 + $0x428] ss:$16 sps:$4 sm:$0xff]   ;;  %v14735_v31 = vld [vmem:[#allocation7 + $0x444] ss:$16 sps:$4 sm:$0xff]   ;;  %v14738_v54 = vld [vmem:[#allocation7 + $0x44c] ss:$16 sps:$4 sm:$0xff]  }
 0x588   :  { %8991 = vmatpush1.bf16.msra.mxu0 %v14685_v52  ;;  %9210 = vmatpush1.bf16.msra.mxu1 %v14688_v30  ;;  %v14733_v47 = vld [vmem:[#allocation7 + $0x440] ss:$16 sps:$4 sm:$0xff]   ;;  %v14736_v22 = vld [vmem:[#allocation7 + $0x448] ss:$16 sps:$4 sm:$0xff]   ;;  %v14741_v26 = vld [vmem:[#allocation7 + $0x464] ss:$16 sps:$4 sm:$0xff]  }
 0x589   :  { %8992 = vmatprep.subr.bf16.mxu0 %v14693_v6  ;;  %9211 = vmatprep.subr.bf16.mxu1 %v14696_v37  ;;  %v14742_v59 = vld [vmem:[#allocation7 + $0x468] ss:$16 sps:$4 sm:$0xff]   ;;  %v14747_v24 = vld [vmem:[#allocation7 + $0x484] ss:$16 sps:$4 sm:$0xff]   ;;  %v14750_v15 = vld [vmem:[#allocation7 + $0x48c] ss:$16 sps:$4 sm:$0xff]  }
 0x58a   :  { %v14745_v0 = vld [vmem:[#allocation7 + $0x480] ss:$16 sps:$4 sm:$0xff]   ;;  %v14748_v33 = vld [vmem:[#allocation7 + $0x488] ss:$16 sps:$4 sm:$0xff]   ;;  %v14753_v60 = vld [vmem:[#allocation7 + $0x4a4] ss:$16 sps:$4 sm:$0xff]  }
 0x58b   :  { %v14754_v14 = vld [vmem:[#allocation7 + $0x4a8] ss:$16 sps:$4 sm:$0xff]   ;;  %v14759_v28 = vld [vmem:[#allocation7 + $0x4c4] ss:$16 sps:$4 sm:$0xff]   ;;  %v14762_v19 = vld [vmem:[#allocation7 + $0x4cc] ss:$16 sps:$4 sm:$0xff]  }
 0x58c   :  { %8993 = vmatpush1.bf16.msra.mxu0 %v14691_v34  ;;  %9212 = vmatpush1.bf16.msra.mxu1 %v14694_v18  ;;  %v14757_v7 = vld [vmem:[#allocation7 + $0x4c0] ss:$16 sps:$4 sm:$0xff]   ;;  %v14760_v20 = vld [vmem:[#allocation7 + $0x4c8] ss:$16 sps:$4 sm:$0xff]   ;;  %v14765_v52 = vld [vmem:[#allocation7 + $0x4e4] ss:$16 sps:$4 sm:$0xff]  }
 0x58d   :  { %8994 = vmatprep.subr.bf16.mxu0 %v14699_v55  ;;  %9213 = vmatprep.subr.bf16.mxu1 %v14702_v58  ;;  %v14766_v30 = vld [vmem:[#allocation7 + $0x4e8] ss:$16 sps:$4 sm:$0xff]   ;;  %v14771_v6 = vld [vmem:[#allocation7 + $0x504] ss:$16 sps:$4 sm:$0xff]   ;;  %v14774_v37 = vld [vmem:[#allocation7 + $0x50c] ss:$16 sps:$4 sm:$0xff]  }
 0x58e   :  { %v14769_v34 = vld [vmem:[#allocation7 + $0x500] ss:$16 sps:$4 sm:$0xff]   ;;  %v14772_v18 = vld [vmem:[#allocation7 + $0x508] ss:$16 sps:$4 sm:$0xff]   ;;  %v14777_v55 = vld [vmem:[#allocation7 + $0x524] ss:$16 sps:$4 sm:$0xff]  }
 0x58f   :  { %v14775_v58 = vld [vmem:[#allocation7 + $0x520] ss:$16 sps:$4 sm:$0xff]  }
 0x590   :  { %8995 = vmatpush1.bf16.msra.mxu0 %v14697_v45  ;;  %9214 = vmatpush1.bf16.msra.mxu1 %v14700_v23  ;;  %v14778_v45 = vld [vmem:[#allocation7 + $0x528] ss:$16 sps:$4 sm:$0xff]   ;;  %v14783_v23 = vld [vmem:[#allocation7 + $0x544] ss:$16 sps:$4 sm:$0xff]  }
 0x591   :  { %8996 = vmatprep.subr.bf16.mxu0 %v14705_v5  ;;  %9215 = vmatprep.subr.bf16.mxu1 %v14708_v9  ;;  %v14781_v5 = vld [vmem:[#allocation7 + $0x540] ss:$16 sps:$4 sm:$0xff]   ;;  %v14784_v9 = vld [vmem:[#allocation7 + $0x548] ss:$16 sps:$4 sm:$0xff]  }
 0x594   :  { %8997 = vmatpush1.bf16.msra.mxu0 %v14703_v8  ;;  %9216 = vmatpush1.bf16.msra.mxu1 %v14706_v41  ;;  %v14789_v8 = vld [vmem:[#allocation7 + $0x564] ss:$16 sps:$4 sm:$0xff]   ;;  %v14792_v41 = vld [vmem:[#allocation7 + $0x56c] ss:$16 sps:$4 sm:$0xff]  }
 0x595   :  { %8998 = vmatprep.subr.bf16.mxu0 %v14711_v29  ;;  %9217 = vmatprep.subr.bf16.mxu1 %v14714_v57  ;;  %v14787_v29 = vld [vmem:[#allocation7 + $0x560] ss:$16 sps:$4 sm:$0xff]   ;;  %v14790_v57 = vld [vmem:[#allocation7 + $0x568] ss:$16 sps:$4 sm:$0xff]  }
 0x598   :  { %8999 = vmatpush1.bf16.msra.mxu0 %v14709_v16  ;;  %9218 = vmatpush1.bf16.msra.mxu1 %v14712_v46  ;;  %v14795_v16 = vld [vmem:[#allocation7 + $0x584] ss:$16 sps:$4 sm:$0xff]   ;;  %v14798_v46 = vld [vmem:[#allocation7 + $0x58c] ss:$16 sps:$4 sm:$0xff]  }
 0x599   :  { %9000 = vmatprep.subr.bf16.mxu0 %v14717_v43  ;;  %9219 = vmatprep.subr.bf16.mxu1 %v14720_v21  ;;  %v14793_v43 = vld [vmem:[#allocation7 + $0x580] ss:$16 sps:$4 sm:$0xff]   ;;  %v14796_v21 = vld [vmem:[#allocation7 + $0x588] ss:$16 sps:$4 sm:$0xff]  }
 0x59c   :  { %9001 = vmatpush1.bf16.msra.mxu0 %v14715_v39  ;;  %9220 = vmatpush1.bf16.msra.mxu1 %v14718_v62  ;;  %v14801_v39 = vld [vmem:[#allocation7 + $0x5a4] ss:$16 sps:$4 sm:$0xff]   ;;  %v14804_v62 = vld [vmem:[#allocation7 + $0x5ac] ss:$16 sps:$4 sm:$0xff]  }
 0x59d   :  { %9043 = vmatprep.subr.bf16.mxu0 %v14723_v36  ;;  %9262 = vmatprep.subr.bf16.mxu1 %v14726_v25  ;;  %v14799_v36 = vld [vmem:[#allocation7 + $0x5a0] ss:$16 sps:$4 sm:$0xff]   ;;  %v14802_v25 = vld [vmem:[#allocation7 + $0x5a8] ss:$16 sps:$4 sm:$0xff]  }
 0x59f   :  { %9003 = vmatmul.mubr.bf16.vlgmr.msra.gmra.mrb[16].mxu0 %v16317_v48  ;;  %9222 = vmatmul.mubr.bf16.vlgmr.msra.gmra.mrb[16].mxu1 %v16317_v48  ;;  %v14744_v48 = vld [vmem:[#allocation7 + $0x46c] ss:$16 sps:$4 sm:$0xff]  }
 0x5a0   :  { %9012 = vmatprep.mubr.bf16.mxu0 %v16322_v2  ;;  %9044 = vmatpush1.bf16.msra.mxu0 %v14721_v17  ;;  %v14807_v17 = vld [vmem:[#allocation7 + $0x5c4] ss:$16 sps:$4 sm:$0xff]  }
 0x5a1   :  { %9231 = vmatprep.mubr.bf16.mxu1 %v16322_v2  ;;  %9263 = vmatpush1.bf16.msra.mxu1 %v14724_v11  ;;  %v14739_v2 = vld [vmem:[#allocation7 + $0x460] ss:$16 sps:$4 sm:$0xff]   ;;  %v14810_v11 = vld [vmem:[#allocation7 + $0x5cc] ss:$16 sps:$4 sm:$0xff]  }
 0x5a2   :  { %9045 = vmatprep.subr.bf16.mxu0 %v14729_v53  ;;  %9264 = vmatprep.subr.bf16.mxu1 %v14732_v13  ;;  %v14805_v53 = vld [vmem:[#allocation7 + $0x5c0] ss:$16 sps:$4 sm:$0xff]   ;;  %v14808_v13 = vld [vmem:[#allocation7 + $0x5c8] ss:$16 sps:$4 sm:$0xff]  }
 0x5a4   :  { %9046 = vmatpush1.bf16.msra.mxu0 %v14727_v51  ;;  %v14813_v51 = vld [vmem:[#allocation7 + $0x5e4] ss:$16 sps:$4 sm:$0xff]  }
 0x5a5   :  { %9265 = vmatpush1.bf16.msra.mxu1 %v14730_v44  ;;  %9047 = vmatprep.subr.bf16.mxu0 %v14735_v31  ;;  %v14816_v44 = vld [vmem:[#allocation7 + $0x5ec] ss:$16 sps:$4 sm:$0xff]   ;;  %v14811_v31 = vld [vmem:[#allocation7 + $0x5e0] ss:$16 sps:$4 sm:$0xff]  }
 0x5a6   :  { %9266 = vmatprep.subr.bf16.mxu1 %v14738_v54  ;;  %v14814_v54 = vld [vmem:[#allocation7 + $0x5e8] ss:$16 sps:$4 sm:$0xff]  }
 0x5a7   :  { %9013 = vmatmul.mubr.bf16.gmra.mrb[20].mxu0 %v16346_v10  ;;  %9232 = vmatmul.mubr.bf16.gmra.mrb[20].mxu1 %v16346_v10  ;;  %v14756_v10 = vld [vmem:[#allocation7 + $0x4ac] ss:$16 sps:$4 sm:$0xff]  }
 0x5a8   :  { %9022 = vmatprep.mubr.bf16.mxu0 %v16370_v56  ;;  %9048 = vmatpush1.bf16.msra.mxu0 %v14733_v47  ;;  %v17558_v47 = vld [vmem:[#allocation13_spill] sm:$0xff] }
 0x5a9   :  { %9241 = vmatprep.mubr.bf16.mxu1 %v16370_v56  ;;  %9267 = vmatpush1.bf16.msra.mxu1 %v14736_v22  ;;  %v14751_v56 = vld [vmem:[#allocation7 + $0x4a0] ss:$16 sps:$4 sm:$0xff]  }
 0x5aa   :  { %9049 = vmatprep.subr.bf16.mxu0 %v14741_v26  ;;  %9268 = vmatprep.subr.bf16.mxu1 %v14744_v48 }
 0x5ac   :  { %9050 = vmatpush1.bf16.msra.mxu0 %v14739_v2 }
 0x5ad   :  { %9269 = vmatpush1.bf16.msra.mxu1 %v14742_v59  ;;  %9051 = vmatprep.subr.bf16.mxu0 %v14747_v24 }
 0x5ae   :  { %9270 = vmatprep.subr.bf16.mxu1 %v14750_v15 }
 0x5af   :  { %9023 = vmatmul.mubr.bf16.gmra.mrb[24].mxu0 %v16389_v40  ;;  %9242 = vmatmul.mubr.bf16.gmra.mrb[24].mxu1 %v16389_v40  ;;  %v14768_v40 = vld [vmem:[#allocation7 + $0x4ec] ss:$16 sps:$4 sm:$0xff]  }
 0x5b0   :  { %9032 = vmatprep.mubr.bf16.mxu0 %v16394_v42  ;;  %9052 = vmatpush1.bf16.msra.mxu0 %v14745_v0 }
 0x5b1   :  { %9251 = vmatprep.mubr.bf16.mxu1 %v16394_v42  ;;  %9271 = vmatpush1.bf16.msra.mxu1 %v14748_v33  ;;  %v14763_v42 = vld [vmem:[#allocation7 + $0x4e0] ss:$16 sps:$4 sm:$0xff]  }
 0x5b2   :  { %9053 = vmatprep.subr.bf16.mxu0 %v14753_v60  ;;  %9272 = vmatprep.subr.bf16.mxu1 %v14756_v10 }
 0x5b4   :  { %9054 = vmatpush1.bf16.msra.mxu0 %v14751_v56 }
 0x5b5   :  { %9273 = vmatpush1.bf16.msra.mxu1 %v14754_v14  ;;  %9055 = vmatprep.subr.bf16.mxu0 %v14759_v28 }
 0x5b6   :  { %9274 = vmatprep.subr.bf16.mxu1 %v14762_v19 }
 0x5b7   :  { %9033 = vmatmul.mubr.bf16.gmra.mrb[28].mxu0 %v16403_v63  ;;  %9252 = vmatmul.mubr.bf16.gmra.mrb[28].mxu1 %v16403_v63  ;;  %v14780_v63 = vld [vmem:[#allocation7 + $0x52c] ss:$16 sps:$4 sm:$0xff]  }
 0x5b8   :  { %9056 = vmatpush1.bf16.msra.mxu0 %v14757_v7  ;;  %9075 = vmatprep.mubr.bf16.mxu0 %v16410_v3 }
 0x5b9   :  { %9275 = vmatpush1.bf16.msra.mxu1 %v14760_v20  ;;  %9294 = vmatprep.mubr.bf16.mxu1 %v16410_v3  ;;  %v14786_v3 = vld [vmem:[#allocation7 + $0x54c] ss:$16 sps:$4 sm:$0xff]  }
 0x5ba   :  { %9057 = vmatprep.subr.bf16.mxu0 %v14765_v52  ;;  %9276 = vmatprep.subr.bf16.mxu1 %v14768_v40 }
 0x5bc   :  { %9058 = vmatpush1.bf16.msra.mxu0 %v14763_v42 }
 0x5bd   :  { %9277 = vmatpush1.bf16.msra.mxu1 %v14766_v30  ;;  %9059 = vmatprep.subr.bf16.mxu0 %v14771_v6 }
 0x5be   :  { %9278 = vmatprep.subr.bf16.mxu1 %v14774_v37 }
 0x5c0   :  { %9060 = vmatpush1.bf16.msra.mxu0 %v14769_v34 }
 0x5c1   :  { %9279 = vmatpush1.bf16.msra.mxu1 %v14772_v18  ;;  %9061 = vmatprep.subr.bf16.mxu0 %v14777_v55 }
 0x5c2   :  { %9280 = vmatprep.subr.bf16.mxu1 %v14780_v63 }
 0x5c4   :  { %9062 = vmatpush1.bf16.msra.mxu0 %v14775_v58  ;;  %v17559_v58 = vld [vmem:[#allocation14_spill] sm:$0xff] }
 0x5c5   :  { %9281 = vmatpush1.bf16.msra.mxu1 %v14778_v45  ;;  %9063 = vmatprep.subr.bf16.mxu0 %v14783_v23 }
 0x5c6   :  { %9282 = vmatprep.subr.bf16.mxu1 %v14786_v3 }
 0x5c8   :  { %9064 = vmatpush1.bf16.msra.mxu0 %v14781_v5 }
 0x5c9   :  { %9283 = vmatpush1.bf16.msra.mxu1 %v14784_v9  ;;  %9065 = vmatprep.subr.bf16.mxu0 %v14789_v8 }
 0x5ca   :  { %9284 = vmatprep.subr.bf16.mxu1 %v14792_v41 }
 0x5cc   :  { %9066 = vmatpush1.bf16.msra.mxu0 %v14787_v29 }
 0x5cd   :  { %9285 = vmatpush1.bf16.msra.mxu1 %v14790_v57  ;;  %9067 = vmatprep.subr.bf16.mxu0 %v14795_v16 }
 0x5ce   :  { %9286 = vmatprep.subr.bf16.mxu1 %v14798_v46 }
 0x5d0   :  { %9068 = vmatpush1.bf16.msra.mxu0 %v14793_v43 }
 0x5d1   :  { %9287 = vmatpush1.bf16.msra.mxu1 %v14796_v21  ;;  %9069 = vmatprep.subr.bf16.mxu0 %v14801_v39 }
 0x5d2   :  { %9288 = vmatprep.subr.bf16.mxu1 %v14804_v62 }
 0x5d4   :  { %9070 = vmatpush1.bf16.msra.mxu0 %v14799_v36 }
 0x5d5   :  { %9289 = vmatpush1.bf16.msra.mxu1 %v14802_v25  ;;  %9071 = vmatprep.subr.bf16.mxu0 %v14807_v17 }
 0x5d6   :  { %9290 = vmatprep.subr.bf16.mxu1 %v14810_v11 }
 0x5d8   :  { %9072 = vmatpush1.bf16.msra.mxu0 %v14805_v53 }
 0x5d9   :  { %9291 = vmatpush1.bf16.msra.mxu1 %v14808_v13  ;;  %9073 = vmatprep.subr.bf16.mxu0 %v14813_v51 }
 0x5da   :  { %9292 = vmatprep.subr.bf16.mxu1 %v14816_v44 }
 0x5dc   :  { %9074 = vmatpush1.bf16.msra.mxu0 %v14811_v31 }
 0x5dd   :  { %9293 = vmatpush1.bf16.msra.mxu1 %v14814_v54 }
 0x5df   :  { %9076 = vmatmul.mubr.bf16.vlgmr.msra.gmra.mrb[16].mxu0 %v16417_v12 }
 0x5e0   :  { %9295 = vmatmul.mubr.bf16.vlgmr.msra.gmra.mrb[16].mxu1 %v16417_v12  ;;  %9085 = vmatprep.mubr.bf16.mxu0 %v16428_v35  ;;  %v7915_v12 = vld [vmem:[%s17463_s8] sm:$0xf] }
 0x5e1   :  { %9304 = vmatprep.mubr.bf16.mxu1 %v16428_v35  ;;  %v16506_v35 = vrot.slane %v7915_v12, %v15086_v50  ;;  %v16515_v22 = vrot.slane %v7915_v12, %v17558_v47 }
 0x5e7   :  { %9086 = vmatmul.mubr.bf16.gmra.mrb[20].mxu0 %v16435_v32 }
 0x5e8   :  { %9305 = vmatmul.mubr.bf16.gmra.mrb[20].mxu1 %v16435_v32  ;;  %9095 = vmatprep.mubr.bf16.mxu0 %v16454_v38  ;;  %v17557_v32 = vld [vmem:[#allocation12_spill] sm:$0xff] }
 0x5e9   :  { %9314 = vmatprep.mubr.bf16.mxu1 %v16454_v38  ;;  %v16509_v38 = vrot.slane %v7915_v12, %v17557_v32 }
 0x5ef   :  { %9096 = vmatmul.mubr.bf16.gmra.mrb[24].mxu0 %v16460_v27 }
 0x5f0   :  { %9315 = vmatmul.mubr.bf16.gmra.mrb[24].mxu1 %v16460_v27  ;;  %9105 = vmatprep.mubr.bf16.mxu0 %v16468_v4  ;;  %v16512_v27 = vrot.slane %v7915_v12, %v15092_v1 }
 0x5f1   :  { %9324 = vmatprep.mubr.bf16.mxu1 %v16468_v4 }
 0x5f7   :  { %9106 = vmatmul.mubr.bf16.gmra.mrb[28].mxu0 %v16470_v61 }
 0x5f8   :  { %9325 = vmatmul.mubr.bf16.gmra.mrb[28].mxu1 %v16470_v61 }
 0x6b2   :  { %v9077_v4 = vpop.f32.mrb[16].mxu0 }
 0x6b3   :  { %v13492_v26 = vadd.f32 %v9077_v4, %v16506_v35  ;;  %v9296_v61 = vpop.f32.mrb[16].mxu1  ;;  %v9079_v48 = vpop.f32.mrb[17].mxu0 }
 0x6b4   :  { %v13508_v2 = vadd.f32 %v9296_v61, %v16509_v38  ;;  %v13493_v59 = vadd.f32 %v9079_v48, %v16512_v27  ;;  %v9298_v24 = vpop.f32.mrb[17].mxu1  ;;  %v9081_v15 = vpop.f32.mrb[18].mxu0 }
 0x6b5   :  { %v9335_v0 = vmax.f32 %v13492_v26, 0.0  ;;  %v13509_v33 = vadd.f32 %v9298_v24, %v16515_v22  ;;  %v13494_v60 = vadd.f32 %v9081_v15, %v16506_v35  ;;  %v9300_v10 = vpop.f32.mrb[18].mxu1  ;;  %v9083_v56 = vpop.f32.mrb[19].mxu0 }
 0x6b6   :  { %v9337_v14 = vmax.f32 %v13508_v2, 0.0  ;;  %v9336_v28 = vmax.f32 %v13493_v59, 0.0  ;;  %v13510_v19 = vadd.f32 %v9300_v10, %v16509_v38  ;;  %v13495_v7 = vadd.f32 %v9083_v56, %v16512_v27  ;;  %v9302_v20 = vpop.f32.mrb[19].mxu1 }
 0x6b7   :  { %v9338_v52 = vmax.f32 %v13509_v33, 0.0  ;;  %v9339_v40 = vmax.f32 %v13494_v60, 0.0  ;;  %v13511_v42 = vadd.f32 %v9302_v20, %v16515_v22 }
 0x6b8   :  { %v9383_v30 = vcombine.low %v9335_v0, %v9336_v28  ;;  %v9384_v6 = vcombine.high %v9335_v0, %v9336_v28  ;;  %v9341_v37 = vmax.f32 %v13510_v19, 0.0  ;;  %v9340_v34 = vmax.f32 %v13495_v7, 0.0 }
 0x6b9   :  { %v9799_v18 = vcombine.low %v9337_v14, %v9338_v52  ;;  %v9800_v55 = vcombine.high %v9337_v14, %v9338_v52  ;;  %v9342_v63 = vmax.f32 %v13511_v42, 0.0 }
 0x6ba   :  { %v9391_v45 = vrot.slane %v9383_v30, %v17559_v58  ;;  %v9398_v23 = vrot.slane %v9384_v6, %v17559_v58  ;;  %v16527_v3 = vcombine.low %v9339_v40, %v9340_v34  ;;  %v16529_v5 = vcombine.high %v9339_v40, %v9340_v34  ;;  %v16531_v9 = vpop.f32.mrb[20].mxu0 }
 0x6bb   :  { %v9807_v8 = vrot.slane %v9799_v18, %v17559_v58  ;;  %v9814_v41 = vrot.slane %v9800_v55, %v17559_v58  ;;  %v16535_v29 = vcombine.low %v9341_v37, %v9342_v63  ;;  %v16537_v57 = vcombine.high %v9341_v37, %v9342_v63  ;;  %v16539_v16 = vpop.f32.mrb[20].mxu1  ;;  %v16541_v46 = vpop.f32.mrb[21].mxu0 }
 0x6bc   :  { %v9399_v43 = vcombine.high %v9391_v45, %v9391_v45  ;;  %v9400_v21 = vcombine.high %v9398_v23, %v9398_v23  ;;  %v16544_v39 = vrot.slane %v9391_v45, %v17559_v58  ;;  %v16547_v62 = vrot.slane %v9398_v23, %v17559_v58  ;;  %v16549_v36 = vpop.f32.mrb[21].mxu1  ;;  %v16551_v25 = vpop.f32.mrb[22].mxu0 }
 0x6bd   :  { %v9815_v17 = vcombine.high %v9807_v8, %v9807_v8  ;;  %v9816_v11 = vcombine.high %v9814_v41, %v9814_v41  ;;  %v9823_v53 = vrot.slane %v9807_v8, %v17559_v58  ;;  %v16555_v13 = vrot.slane %v9814_v41, %v17559_v58  ;;  %v16557_v51 = vpop.f32.mrb[22].mxu1  ;;  %v16559_v44 = vpop.f32.mrb[23].mxu0 }
 0x6be   :  { %v9421_v31 = vrot.slane %v9399_v43, %v17559_v58  ;;  %v16563_v54 = vrot.slane %v9400_v21, %v17559_v58  ;;  %v9429_v12 = vcombine.high %v16544_v39, %v16544_v39  ;;  %v16569_v32 = vcombine.high %v16547_v62, %v16547_v62  ;;  %v16571_v47 = vpop.f32.mrb[23].mxu1 }
 0x6bf   :  { %v10202_v4 = vrot.slane %v16544_v39, %v15086_v50  ;;  %v10206_v26 = vrot.slane %v16544_v39, %v15092_v1  ;;  %v10234_v61 = vrot.slane %v16547_v62, %v15086_v50  ;;  %v10238_v48 = vrot.slane %v16547_v62, %v15092_v1 }
 0x6c0   :  { %v9431_v2 = vcombine.high %v9421_v31, %v9421_v31  ;;  %v9432_v59 = vcombine.high %v16563_v54, %v16563_v54  ;;  %v10210_v24 = vrot.slane %v9421_v31, %v15086_v50  ;;  %v10214_v15 = vrot.slane %v9421_v31, %v15092_v1 }
 0x6c1   :  { %v10218_v0 = vrot.slane %v9429_v12, %v15086_v50  ;;  %v10222_v33 = vrot.slane %v9429_v12, %v15092_v1  ;;  %v10242_v60 = vrot.slane %v16563_v54, %v15086_v50  ;;  %v10246_v10 = vrot.slane %v16563_v54, %v15092_v1 }
 0x6c2   :  { %v10226_v56 = vrot.slane %v9431_v2, %v15086_v50  ;;  %v10230_v14 = vrot.slane %v9431_v2, %v15092_v1  ;;  %v10250_v28 = vrot.slane %v16569_v32, %v15086_v50  ;;  %v10254_v19 = vrot.slane %v16569_v32, %v15092_v1  ;;  %v16597_v7 = vpop.f32.mrb[24].mxu0 }
 0x6c3   :  { %v10258_v20 = vrot.slane %v9432_v59, %v15086_v50  ;;  %v10262_v52 = vrot.slane %v9432_v59, %v15092_v1  ;;  %v9837_v40 = vrot.slane %v9815_v17, %v17559_v58  ;;  %v9844_v42 = vrot.slane %v9816_v11, %v17559_v58  ;;  %v16603_v30 = vpop.f32.mrb[24].mxu1  ;;  %v16605_v6 = vpop.f32.mrb[25].mxu0 }
 0x6c4   :  { %17560 = vst [vmem:[#allocation16_spill] sm:$0xff] %v16605_v6  ;;  %v9845_v37 = vcombine.high %v9823_v53, %v9823_v53  ;;  %v9846_v34 = vcombine.high %v16555_v13, %v16555_v13  ;;  %v10842_v18 = vrot.slane %v9823_v53, %v15086_v50  ;;  %v10846_v55 = vrot.slane %v9823_v53, %v15092_v1  ;;  %v16611_v63 = vpop.f32.mrb[25].mxu1  ;;  %v16613_v45 = vpop.f32.mrb[26].mxu0 }
 0x6c5   :  { %17561 = vst [vmem:[#allocation17_spill] sm:$0xff] %v16611_v63  ;;  %17562 = vst [vmem:[#allocation18_spill] sm:$0xff] %v16613_v45  ;;  %v9847_v23 = vcombine.high %v9837_v40, %v9837_v40  ;;  %v9848_v8 = vcombine.high %v9844_v42, %v9844_v42  ;;  %v10850_v41 = vrot.slane %v9837_v40, %v15086_v50  ;;  %v16617_v21 = vpop.f32.mrb[26].mxu1  ;;  %v16619_v39 = vpop.f32.mrb[27].mxu0 }
 0x6c6   :  { %v10854_v43 = vrot.slane %v9837_v40, %v15092_v1  ;;  %17563 = vst [vmem:[#allocation19_spill] sm:$0xff] %v16617_v21  ;;  %17564 = vst [vmem:[#allocation20_spill] sm:$0xff] %v16619_v39  ;;  %v10858_v62 = vrot.slane %v9845_v37, %v15086_v50  ;;  %v10862_v17 = vrot.slane %v9845_v37, %v15092_v1  ;;  %v16627_v31 = vpop.f32.mrb[27].mxu1 }
 0x6c7   :  { %v10874_v11 = vrot.slane %v16555_v13, %v15086_v50  ;;  %v10878_v53 = vrot.slane %v16555_v13, %v15092_v1  ;;  %17565 = vst [vmem:[#allocation21_spill] sm:$0xff] %v16627_v31  ;;  %v10866_v54 = vrot.slane %v9847_v23, %v15086_v50  ;;  %v10870_v12 = vrot.slane %v9847_v23, %v15092_v1 }
 0x6c8   :  { %v10882_v32 = vrot.slane %v9844_v42, %v15086_v50  ;;  %v10886_v2 = vrot.slane %v9844_v42, %v15092_v1  ;;  %v10890_v59 = vrot.slane %v9846_v34, %v15086_v50  ;;  %v10894_v40 = vrot.slane %v9846_v34, %v15092_v1 }
 0x6c9   :  { %v10898_v37 = vrot.slane %v9848_v8, %v15086_v50  ;;  %v10902_v39 = vrot.slane %v9848_v8, %v15092_v1  ;;  %v11479_v13 = vsel %vm1902_vm0, %v10202_v4, %v10842_v18  ;;  %v11480_v31 = vsel %vm1902_vm0, %v10206_v26, %v10846_v55 }
 0x6ca   :  { %v11481_v21 = vsel %vm1902_vm0, %v10210_v24, %v10850_v41  ;;  %v11482_v23 = vsel %vm1902_vm0, %v10214_v15, %v10854_v43  ;;  %v11483_v45 = vsel %vm1902_vm0, %v10218_v0, %v10858_v62  ;;  %v11484_v42 = vsel %vm1902_vm0, %v10222_v33, %v10862_v17 }
 0x6cb   :  { %v11485_v63 = vsel %vm1902_vm0, %v10226_v56, %v10866_v54  ;;  %v11486_v34 = vsel %vm1902_vm0, %v10230_v14, %v10870_v12  ;;  %v11487_v6 = vsel %vm1902_vm0, %v10234_v61, %v10874_v11  ;;  %v11488_v8 = vsel %vm1902_vm0, %v10238_v48, %v10878_v53 }
 0x6cc   :  { %v11489_v4 = vsel %vm1902_vm0, %v10242_v60, %v10882_v32  ;;  %v11490_v26 = vsel %vm1902_vm0, %v10246_v10, %v10886_v2  ;;  %v11491_v24 = vsel %vm1902_vm0, %v10250_v28, %v10890_v59  ;;  %v11492_v15 = vsel %vm1902_vm0, %v10254_v19, %v10894_v40 }
 0x6cd   :  { %v11493_v0 = vsel %vm1902_vm0, %v10258_v20, %v10898_v37  ;;  %v11494_v33 = vsel %vm1902_vm0, %v10262_v52, %v10902_v39  ;;  %v11735_v18 = vcombine.low %v11479_v13, %v11480_v31  ;;  %v11743_v56 = vcombine.low %v11481_v21, %v11482_v23 }
 0x6ce   :  { %v11751_v55 = vcombine.low %v11483_v45, %v11484_v42  ;;  %v11759_v14 = vcombine.low %v11485_v63, %v11486_v34  ;;  %v11767_v41 = vcombine.low %v11487_v6, %v11488_v8  ;;  %v11775_v61 = vcombine.low %v11489_v4, %v11490_v26  ;;  %v16661_v6 = vpop.f32.mrb[28].mxu0  ;;  %v16663_v45 = vpop.f32.mrb[28].mxu1 }
 0x6cf   :  { %v11783_v43 = vcombine.low %v11491_v24, %v11492_v15  ;;  %v11791_v48 = vcombine.low %v11493_v0, %v11494_v33  ;;  %v11742_v60 = vrot.slane %v11735_v18, %v15047_v49  ;;  %v11750_v10 = vrot.slane %v11743_v56, %v15047_v49  ;;  %v16669_v53 = vpop.f32.mrb[29].mxu0 }
 0x6d0   :  { %v11758_v28 = vrot.slane %v11751_v55, %v15047_v49  ;;  %v11766_v19 = vrot.slane %v11759_v14, %v15047_v49  ;;  %v11774_v20 = vrot.slane %v11767_v41, %v15047_v49  ;;  %v11782_v52 = vrot.slane %v11775_v61, %v15047_v49 }
 0x6d1   :  { %v11790_v21 = vrot.slane %v11783_v43, %v15047_v49  ;;  %v11798_v63 = vrot.slane %v11791_v48, %v15047_v49  ;;  %v12247_v39 = vcombine.low %v11742_v60, %v11750_v10  ;;  %v9441_v17 = vrot.slane %v16527_v3, %v17559_v58 }
 0x6d2   :  { %v12248_v62 = vcombine.low %v11758_v28, %v11766_v19  ;;  %v9448_v11 = vrot.slane %v16529_v5, %v17559_v58  ;;  %v12265_v31 = vcombine.low %v11774_v20, %v11782_v52  ;;  %v9857_v12 = vrot.slane %v16535_v29, %v17559_v58 }
 0x6d3   :  { %v12266_v54 = vcombine.low %v11790_v21, %v11798_v63  ;;  %v9864_v32 = vrot.slane %v16537_v57, %v17559_v58  ;;  %v12255_v2 = vrot.slane %v12247_v39, %v15047_v49  ;;  %v9449_v40 = vcombine.high %v9441_v17, %v9441_v17 }
 0x6d4   :  { %v12262_v59 = vrot.slane %v12248_v62, %v15047_v49  ;;  %v9450_v37 = vcombine.high %v9448_v11, %v9448_v11  ;;  %v12273_v3 = vrot.slane %v12265_v31, %v15047_v49  ;;  %v16680_v13 = vrot.slane %v9441_v17, %v17559_v58  ;;  %v16743_v62 = vpop.f32.mrb[29].mxu1 }
 0x6d5   :  { %v12280_v5 = vrot.slane %v12266_v54, %v15047_v49  ;;  %v16683_v23 = vrot.slane %v9448_v11, %v17559_v58  ;;  %v16686_v57 = vrot.slane %v9449_v40, %v17559_v58  ;;  %v9865_v63 = vcombine.high %v9857_v12, %v9857_v12 }
 0x6d6   :  { %v12263_v29 = vcombine.low %v12255_v2, %v12262_v59  ;;  %v12264_v42 = vcombine.high %v12255_v2, %v12262_v59  ;;  %v16689_v34 = vrot.slane %v9450_v37, %v17559_v58  ;;  %v9479_v26 = vcombine.high %v16680_v13, %v16680_v13 }
 0x6d7   :  { %v12281_v8 = vcombine.low %v12273_v3, %v12280_v5  ;;  %v12282_v4 = vcombine.high %v12273_v3, %v12280_v5  ;;  %v16695_v24 = vcombine.high %v16683_v23, %v16683_v23  ;;  %v9481_v15 = vcombine.high %v16686_v57, %v16686_v57 }
 0x6d8   :  { %12567 = vst [vmem:[%s17464_s9] sm:$0xff] %v12263_v29  ;;  %12568 = vst [vmem:[%s17464_s9 + $0x8] sm:$0xff] %v12264_v42  ;;  %v16707_v0 = vcombine.high %v16689_v34, %v16689_v34  ;;  %v10266_v33 = vrot.slane %v16680_v13, %v15086_v50  ;;  %v10270_v18 = vrot.slane %v16680_v13, %v15092_v1 }
 0x6d9   :  { %12569 = vst [vmem:[%s17464_s9 + $0x10] sm:$0xff] %v12281_v8  ;;  %12570 = vst [vmem:[%s17464_s9 + $0x18] sm:$0xff] %v12282_v4  ;;  %v10274_v56 = vrot.slane %v16686_v57, %v15086_v50  ;;  %v10278_v55 = vrot.slane %v16686_v57, %v15092_v1  ;;  %v10282_v14 = vrot.slane %v9479_v26, %v15086_v50 }
 0x6da   :  { %v10286_v41 = vrot.slane %v9479_v26, %v15092_v1  ;;  %v10290_v61 = vrot.slane %v9481_v15, %v15086_v50  ;;  %v10294_v43 = vrot.slane %v9481_v15, %v15092_v1  ;;  %v10298_v48 = vrot.slane %v16683_v23, %v15086_v50 }
 0x6db   :  { %v10302_v60 = vrot.slane %v16683_v23, %v15092_v1  ;;  %v10306_v10 = vrot.slane %v16689_v34, %v15086_v50  ;;  %v10310_v28 = vrot.slane %v16689_v34, %v15092_v1  ;;  %v10314_v19 = vrot.slane %v16695_v24, %v15086_v50 }
 0x6dc   :  { %v10318_v20 = vrot.slane %v16695_v24, %v15092_v1  ;;  %v10322_v52 = vrot.slane %v16707_v0, %v15086_v50  ;;  %v10326_v21 = vrot.slane %v16707_v0, %v15092_v1  ;;  %v9866_v39 = vcombine.high %v9864_v32, %v9864_v32 }
 0x6dd   :  { %v9873_v17 = vrot.slane %v9857_v12, %v17559_v58  ;;  %v9880_v11 = vrot.slane %v9864_v32, %v17559_v58  ;;  %v16749_v31 = vadd.f32 %v16531_v9, %v16506_v35  ;;  %v16753_v54 = vadd.f32 %v16539_v16, %v16509_v38 }
 0x6de   :  { %v9887_v2 = vrot.slane %v9865_v63, %v17559_v58  ;;  %v9894_v59 = vrot.slane %v9866_v39, %v17559_v58  ;;  %v16759_v40 = vadd.f32 %v16541_v46, %v16512_v27  ;;  %v16763_v12 = vadd.f32 %v16549_v36, %v16515_v22 }
 0x6df   :  { %v9895_v32 = vcombine.high %v9873_v17, %v9873_v17  ;;  %v9896_v37 = vcombine.high %v9880_v11, %v9880_v11  ;;  %v10906_v9 = vrot.slane %v9873_v17, %v15086_v50  ;;  %v10910_v3 = vrot.slane %v9873_v17, %v15092_v1 }
 0x6e0   :  { %v9897_v16 = vcombine.high %v9887_v2, %v9887_v2  ;;  %v9898_v5 = vcombine.high %v9894_v59, %v9894_v59  ;;  %v10914_v13 = vrot.slane %v9887_v2, %v15086_v50  ;;  %v10918_v23 = vrot.slane %v9887_v2, %v15092_v1 }
 0x6e1   :  { %v10922_v29 = vrot.slane %v9895_v32, %v15086_v50  ;;  %v10926_v46 = vrot.slane %v9895_v32, %v15092_v1  ;;  %v10938_v42 = vrot.slane %v9880_v11, %v15086_v50  ;;  %v10942_v36 = vrot.slane %v9880_v11, %v15092_v1 }
 0x6e2   :  { %v10930_v57 = vrot.slane %v9897_v16, %v15086_v50  ;;  %v10934_v34 = vrot.slane %v9897_v16, %v15092_v1  ;;  %v10946_v8 = vrot.slane %v9894_v59, %v15086_v50  ;;  %v10950_v4 = vrot.slane %v9894_v59, %v15092_v1 }
 0x6e3   :  { %v10954_v26 = vrot.slane %v9896_v37, %v15086_v50  ;;  %v10958_v24 = vrot.slane %v9896_v37, %v15092_v1  ;;  %v10962_v15 = vrot.slane %v9898_v5, %v15086_v50  ;;  %v10966_v0 = vrot.slane %v9898_v5, %v15092_v1 }
 0x6e4   :  { %v11495_v63 = vsel %vm1902_vm0, %v10266_v33, %v10906_v9  ;;  %v11496_v39 = vsel %vm1902_vm0, %v10270_v18, %v10910_v3  ;;  %v11497_v17 = vsel %vm1902_vm0, %v10274_v56, %v10914_v13  ;;  %v11498_v11 = vsel %vm1902_vm0, %v10278_v55, %v10918_v23  ;;  %v16797_v13 = vpop.f32.mrb[30].mxu0 }
 0x6e5   :  { %v11499_v2 = vsel %vm1902_vm0, %v10282_v14, %v10922_v29  ;;  %v11500_v59 = vsel %vm1902_vm0, %v10286_v41, %v10926_v46  ;;  %v11501_v32 = vsel %vm1902_vm0, %v10290_v61, %v10930_v57  ;;  %v11502_v37 = vsel %vm1902_vm0, %v10294_v43, %v10934_v34  ;;  %v16801_v29 = vpop.f32.mrb[31].mxu0 }
 0x6e6   :  { %v11503_v16 = vsel %vm1902_vm0, %v10298_v48, %v10938_v42  ;;  %v11504_v5 = vsel %vm1902_vm0, %v10302_v60, %v10942_v36  ;;  %v11505_v33 = vsel %vm1902_vm0, %v10306_v10, %v10946_v8  ;;  %v11506_v18 = vsel %vm1902_vm0, %v10310_v28, %v10950_v4  ;;  %v16799_v48 = vpop.f32.mrb[30].mxu1 }
 0x6e7   :  { %v11507_v56 = vsel %vm1902_vm0, %v10314_v19, %v10954_v26  ;;  %v11508_v55 = vsel %vm1902_vm0, %v10318_v20, %v10958_v24  ;;  %v11509_v14 = vsel %vm1902_vm0, %v10322_v52, %v10962_v15  ;;  %v11510_v41 = vsel %vm1902_vm0, %v10326_v21, %v10966_v0 }
 0x6e8   :  { %v11799_v9 = vcombine.low %v11495_v63, %v11496_v39  ;;  %v11807_v61 = vcombine.low %v11497_v17, %v11498_v11  ;;  %v11815_v3 = vcombine.low %v11499_v2, %v11500_v59  ;;  %v11823_v43 = vcombine.low %v11501_v32, %v11502_v37 }
 0x6e9   :  { %v11831_v60 = vcombine.low %v11503_v16, %v11504_v5  ;;  %v11839_v10 = vcombine.low %v11505_v33, %v11506_v18  ;;  %v11847_v23 = vcombine.low %v11507_v56, %v11508_v55  ;;  %v11855_v28 = vcombine.low %v11509_v14, %v11510_v41 }
 0x6ea   :  { %v11806_v19 = vrot.slane %v11799_v9, %v15047_v49  ;;  %v11814_v20 = vrot.slane %v11807_v61, %v15047_v49  ;;  %v11822_v52 = vrot.slane %v11815_v3, %v15047_v49  ;;  %v11830_v21 = vrot.slane %v11823_v43, %v15047_v49 }
 0x6eb   :  { %v11838_v46 = vrot.slane %v11831_v60, %v15047_v49  ;;  %v11846_v42 = vrot.slane %v11839_v10, %v15047_v49  ;;  %v11854_v36 = vrot.slane %v11847_v23, %v15047_v49  ;;  %v11862_v57 = vrot.slane %v11855_v28, %v15047_v49 }
 0x6ec   :  { %v12283_v34 = vcombine.low %v11806_v19, %v11814_v20  ;;  %v12284_v8 = vcombine.low %v11822_v52, %v11830_v21  ;;  %v9343_v4 = vmax.f32 %v16749_v31, 0.0  ;;  %v9345_v26 = vmax.f32 %v16753_v54, 0.0 }
 0x6ed   :  { %v12301_v24 = vcombine.low %v11838_v46, %v11846_v42  ;;  %v12302_v15 = vcombine.low %v11854_v36, %v11862_v57  ;;  %v9344_v0 = vmax.f32 %v16759_v40, 0.0  ;;  %v9346_v63 = vmax.f32 %v16763_v12, 0.0 }
 0x6ee   :  { %v12291_v39 = vrot.slane %v12283_v34, %v15047_v49  ;;  %v12298_v17 = vrot.slane %v12284_v8, %v15047_v49  ;;  %v16819_v11 = vadd.f32 %v16551_v25, %v16506_v35  ;;  %v16823_v2 = vadd.f32 %v16557_v51, %v16509_v38 }
 0x6ef   :  { %v12309_v31 = vrot.slane %v12301_v24, %v15047_v49  ;;  %v12316_v54 = vrot.slane %v12302_v15, %v15047_v49  ;;  %v9483_v59 = vcombine.low %v9343_v4, %v9344_v0  ;;  %v9484_v40 = vcombine.high %v9343_v4, %v9344_v0 }
 0x6f0   :  { %v12299_v32 = vcombine.low %v12291_v39, %v12298_v17  ;;  %v12300_v12 = vcombine.high %v12291_v39, %v12298_v17  ;;  %v9899_v37 = vcombine.low %v9345_v26, %v9346_v63  ;;  %v9900_v16 = vcombine.high %v9345_v26, %v9346_v63 }
 0x6f1   :  { %v12317_v5 = vcombine.low %v12309_v31, %v12316_v54  ;;  %v12318_v33 = vcombine.high %v12309_v31, %v12316_v54  ;;  %v9491_v18 = vrot.slane %v9483_v59, %v17559_v58  ;;  %v9498_v25 = vrot.slane %v9484_v40, %v17559_v58  ;;  %v16865_v54 = vpop.f32.mrb[31].mxu1 }
 0x6f2   :  { %12571 = vst [vmem:[%s17464_s9 + $0x20] sm:$0xff] %v12299_v32  ;;  %12572 = vst [vmem:[%s17464_s9 + $0x28] sm:$0xff] %v12300_v12  ;;  %v9907_v51 = vrot.slane %v9899_v37, %v17559_v58  ;;  %v9914_v56 = vrot.slane %v9900_v16, %v17559_v58 }
 0x6f3   :  { %12573 = vst [vmem:[%s17464_s9 + $0x30] sm:$0xff] %v12317_v5  ;;  %12574 = vst [vmem:[%s17464_s9 + $0x38] sm:$0xff] %v12318_v33  ;;  %v9499_v41 = vcombine.high %v9491_v18, %v9491_v18  ;;  %v9500_v9 = vcombine.high %v9498_v25, %v9498_v25  ;;  %v9507_v61 = vrot.slane %v9491_v18, %v17559_v58 }
 0x6f4   :  { %v9514_v3 = vrot.slane %v9498_v25, %v17559_v58  ;;  %v9915_v43 = vcombine.high %v9907_v51, %v9907_v51  ;;  %v9916_v60 = vcombine.high %v9914_v56, %v9914_v56  ;;  %v9923_v10 = vrot.slane %v9907_v51, %v17559_v58 }
 0x6f5   :  { %v9930_v23 = vrot.slane %v9914_v56, %v17559_v58  ;;  %v9521_v28 = vrot.slane %v9499_v41, %v17559_v58  ;;  %v9528_v19 = vrot.slane %v9500_v9, %v17559_v58  ;;  %v9529_v20 = vcombine.high %v9507_v61, %v9507_v61 }
 0x6f6   :  { %v9530_v52 = vcombine.high %v9514_v3, %v9514_v3  ;;  %v10330_v21 = vrot.slane %v9507_v61, %v15086_v50  ;;  %v10334_v46 = vrot.slane %v9507_v61, %v15092_v1  ;;  %v10362_v42 = vrot.slane %v9514_v3, %v15086_v50 }
 0x6f7   :  { %v10366_v36 = vrot.slane %v9514_v3, %v15092_v1  ;;  %v9531_v57 = vcombine.high %v9521_v28, %v9521_v28  ;;  %v9532_v34 = vcombine.high %v9528_v19, %v9528_v19  ;;  %v10338_v8 = vrot.slane %v9521_v28, %v15086_v50 }
 0x6f8   :  { %v10342_v4 = vrot.slane %v9521_v28, %v15092_v1  ;;  %v10346_v26 = vrot.slane %v9529_v20, %v15086_v50  ;;  %v10350_v24 = vrot.slane %v9529_v20, %v15092_v1  ;;  %v10370_v15 = vrot.slane %v9528_v19, %v15086_v50 }
 0x6f9   :  { %v10374_v0 = vrot.slane %v9528_v19, %v15092_v1  ;;  %v10354_v63 = vrot.slane %v9531_v57, %v15086_v50  ;;  %v10358_v39 = vrot.slane %v9531_v57, %v15092_v1  ;;  %v10378_v17 = vrot.slane %v9530_v52, %v15086_v50 }
 0x6fa   :  { %v10382_v31 = vrot.slane %v9530_v52, %v15092_v1  ;;  %v10386_v59 = vrot.slane %v9532_v34, %v15086_v50  ;;  %v10390_v40 = vrot.slane %v9532_v34, %v15092_v1  ;;  %v9937_v32 = vrot.slane %v9915_v43, %v17559_v58 }
 0x6fb   :  { %v9944_v12 = vrot.slane %v9916_v60, %v17559_v58  ;;  %v9945_v37 = vcombine.high %v9923_v10, %v9923_v10  ;;  %v9946_v16 = vcombine.high %v9930_v23, %v9930_v23  ;;  %v10970_v5 = vrot.slane %v9923_v10, %v15086_v50 }
 0x6fc   :  { %v10974_v33 = vrot.slane %v9923_v10, %v15092_v1  ;;  %v9947_v18 = vcombine.high %v9937_v32, %v9937_v32  ;;  %v10978_v51 = vrot.slane %v9937_v32, %v15086_v50  ;;  %v10982_v56 = vrot.slane %v9937_v32, %v15092_v1 }
 0x6fd   :  { %v9948_v25 = vcombine.high %v9944_v12, %v9944_v12  ;;  %v10986_v41 = vrot.slane %v9945_v37, %v15086_v50  ;;  %v10990_v9 = vrot.slane %v9945_v37, %v15092_v1  ;;  %v11002_v61 = vrot.slane %v9930_v23, %v15086_v50 }
 0x6fe   :  { %v11006_v3 = vrot.slane %v9930_v23, %v15092_v1  ;;  %v10994_v43 = vrot.slane %v9947_v18, %v15086_v50  ;;  %v10998_v60 = vrot.slane %v9947_v18, %v15092_v1  ;;  %v11010_v10 = vrot.slane %v9944_v12, %v15086_v50 }
 0x6ff   :  { %v11014_v28 = vrot.slane %v9944_v12, %v15092_v1  ;;  %v11018_v19 = vrot.slane %v9946_v16, %v15086_v50  ;;  %v11022_v20 = vrot.slane %v9946_v16, %v15092_v1  ;;  %v11026_v52 = vrot.slane %v9948_v25, %v15086_v50 }
 0x700   :  { %v11030_v57 = vrot.slane %v9948_v25, %v15092_v1  ;;  %v11511_v34 = vsel %vm1902_vm0, %v10330_v21, %v10970_v5  ;;  %v11512_v23 = vsel %vm1902_vm0, %v10334_v46, %v10974_v33  ;;  %v11513_v32 = vsel %vm1902_vm0, %v10338_v8, %v10978_v51 }
 0x701   :  { %v11514_v37 = vsel %vm1902_vm0, %v10342_v4, %v10982_v56  ;;  %v11515_v18 = vsel %vm1902_vm0, %v10346_v26, %v10986_v41  ;;  %v11516_v12 = vsel %vm1902_vm0, %v10350_v24, %v10990_v9  ;;  %v11517_v14 = vsel %vm1902_vm0, %v10354_v63, %v10994_v43 }
 0x702   :  { %v11518_v16 = vsel %vm1902_vm0, %v10358_v39, %v10998_v60  ;;  %v11519_v55 = vsel %vm1902_vm0, %v10362_v42, %v11002_v61  ;;  %v11520_v25 = vsel %vm1902_vm0, %v10366_v36, %v11006_v3  ;;  %v11521_v21 = vsel %vm1902_vm0, %v10370_v15, %v11010_v10 }
 0x703   :  { %v11522_v46 = vsel %vm1902_vm0, %v10374_v0, %v11014_v28  ;;  %v11523_v8 = vsel %vm1902_vm0, %v10378_v17, %v11018_v19  ;;  %v11524_v4 = vsel %vm1902_vm0, %v10382_v31, %v11022_v20  ;;  %v11525_v26 = vsel %vm1902_vm0, %v10386_v59, %v11026_v52 }
 0x704   :  { %v11526_v24 = vsel %vm1902_vm0, %v10390_v40, %v11030_v57  ;;  %v11863_v5 = vcombine.low %v11511_v34, %v11512_v23  ;;  %v11871_v63 = vcombine.low %v11513_v32, %v11514_v37  ;;  %v11879_v33 = vcombine.low %v11515_v18, %v11516_v12 }
 0x705   :  { %v11887_v39 = vcombine.low %v11517_v14, %v11518_v16  ;;  %v11895_v51 = vcombine.low %v11519_v55, %v11520_v25  ;;  %v11903_v42 = vcombine.low %v11521_v21, %v11522_v46  ;;  %v11911_v56 = vcombine.low %v11523_v8, %v11524_v4 }
 0x706   :  { %v11919_v36 = vcombine.low %v11525_v26, %v11526_v24  ;;  %v11870_v15 = vrot.slane %v11863_v5, %v15047_v49  ;;  %v11878_v0 = vrot.slane %v11871_v63, %v15047_v49  ;;  %v11886_v17 = vrot.slane %v11879_v33, %v15047_v49  ;;  %v17570_v24 = vld [vmem:[#allocation16_spill] sm:$0xff]  ;;  %v17571_v63 = vld [vmem:[#allocation17_spill] sm:$0xff] }
 0x707   :  { %v11894_v31 = vrot.slane %v11887_v39, %v15047_v49  ;;  %v11902_v59 = vrot.slane %v11895_v51, %v15047_v49  ;;  %v11910_v40 = vrot.slane %v11903_v42, %v15047_v49  ;;  %v11918_v41 = vrot.slane %v11911_v56, %v15047_v49  ;;  %v17572_v51 = vld [vmem:[#allocation18_spill] sm:$0xff]  ;;  %v17573_v56 = vld [vmem:[#allocation19_spill] sm:$0xff] }
 0x708   :  { %v11926_v14 = vrot.slane %v11919_v36, %v15047_v49  ;;  %v12319_v55 = vcombine.low %v11870_v15, %v11878_v0  ;;  %v13499_v61 = vadd.f32 %v16559_v44, %v16512_v27  ;;  %v13515_v3 = vadd.f32 %v16571_v47, %v16515_v22 }
 0x709   :  { %v12320_v9 = vcombine.low %v11886_v17, %v11894_v31  ;;  %v12337_v43 = vcombine.low %v11902_v59, %v11910_v40  ;;  %v16917_v10 = vadd.f32 %v16597_v7, %v16506_v35  ;;  %v16921_v28 = vadd.f32 %v16603_v30, %v16509_v38 }
 0x70a   :  { %v12338_v60 = vcombine.low %v11918_v41, %v11926_v14  ;;  %v12327_v19 = vrot.slane %v12319_v55, %v15047_v49  ;;  %v9348_v52 = vmax.f32 %v13499_v61, 0.0  ;;  %v9350_v57 = vmax.f32 %v13515_v3, 0.0 }
 0x70b   :  { %v12334_v20 = vrot.slane %v12320_v9, %v15047_v49  ;;  %v12345_v44 = vrot.slane %v12337_v43, %v15047_v49  ;;  %v17566_v37 = vmax.f32 %v16819_v11, 0.0  ;;  %v17568_v21 = vmax.f32 %v16823_v2, 0.0 }
 0x70c   :  { %v12352_v47 = vrot.slane %v12338_v60, %v15047_v49  ;;  %v16947_v5 = vadd.f32 %v17570_v24, %v16512_v27  ;;  %v16951_v2 = vadd.f32 %v17571_v63, %v16515_v22  ;;  %v16963_v42 = vadd.f32 %v17572_v51, %v16506_v35 }
 0x70d   :  { %v12335_v7 = vcombine.low %v12327_v19, %v12334_v20  ;;  %v12336_v32 = vcombine.high %v12327_v19, %v12334_v20  ;;  %v9533_v30 = vcombine.low %v17566_v37, %v9348_v52  ;;  %v17567_v18 = vmov %v17566_v37 }
 0x70e   :  { %v9534_v12 = vcombine.high %v17567_v18, %v9348_v52  ;;  %v12353_v16 = vcombine.low %v12345_v44, %v12352_v47  ;;  %v12354_v25 = vcombine.high %v12345_v44, %v12352_v47  ;;  %v9949_v46 = vcombine.low %v17568_v21, %v9350_v57 }
 0x70f   :  { %v17569_v8 = vmov %v17568_v21  ;;  %12575 = vst [vmem:[%s17464_s9 + $0x40] sm:$0xff] %v12335_v7  ;;  %12576 = vst [vmem:[%s17464_s9 + $0x48] sm:$0xff] %v12336_v32  ;;  %v9541_v26 = vrot.slane %v9533_v30, %v17559_v58  ;;  %v16967_v36 = vadd.f32 %v17573_v56, %v16509_v38 }
 0x710   :  { %v9950_v4 = vcombine.high %v17569_v8, %v9350_v57  ;;  %v9548_v11 = vrot.slane %v9534_v12, %v17559_v58  ;;  %12577 = vst [vmem:[%s17464_s9 + $0x50] sm:$0xff] %v12353_v16  ;;  %12578 = vst [vmem:[%s17464_s9 + $0x58] sm:$0xff] %v12354_v25  ;;  %v9957_v33 = vrot.slane %v9949_v46, %v17559_v58 }
 0x711   :  { %v9549_v15 = vcombine.high %v9541_v26, %v9541_v26  ;;  %v9557_v17 = vrot.slane %v9541_v26, %v17559_v58 }
 0x712   :  { %v9964_v39 = vrot.slane %v9950_v4, %v17559_v58  ;;  %v9550_v0 = vcombine.high %v9548_v11, %v9548_v11  ;;  %v9564_v31 = vrot.slane %v9548_v11, %v17559_v58  ;;  %v9965_v59 = vcombine.high %v9957_v33, %v9957_v33 }
 0x713   :  { %v9973_v41 = vrot.slane %v9957_v33, %v17559_v58  ;;  %v9571_v55 = vrot.slane %v9549_v15, %v17559_v58  ;;  %v9579_v61 = vcombine.high %v9557_v17, %v9557_v17  ;;  %v10394_v43 = vrot.slane %v9557_v17, %v15086_v50 }
 0x714   :  { %v9966_v40 = vcombine.high %v9964_v39, %v9964_v39  ;;  %v9980_v14 = vrot.slane %v9964_v39, %v17559_v58  ;;  %v9578_v9 = vrot.slane %v9550_v0, %v17559_v58  ;;  %v9580_v3 = vcombine.high %v9564_v31, %v9564_v31 }
 0x715   :  { %v10398_v60 = vrot.slane %v9557_v17, %v15092_v1  ;;  %v10426_v19 = vrot.slane %v9564_v31, %v15086_v50  ;;  %v10430_v20 = vrot.slane %v9564_v31, %v15092_v1  ;;  %v9581_v52 = vcombine.high %v9571_v55, %v9571_v55 }
 0x716   :  { %v9582_v57 = vcombine.high %v9578_v9, %v9578_v9  ;;  %v10402_v44 = vrot.slane %v9571_v55, %v15086_v50  ;;  %v10406_v47 = vrot.slane %v9571_v55, %v15092_v1  ;;  %v10410_v7 = vrot.slane %v9579_v61, %v15086_v50 }
 0x717   :  { %v10414_v32 = vrot.slane %v9579_v61, %v15092_v1  ;;  %v10434_v37 = vrot.slane %v9578_v9, %v15086_v50  ;;  %v10438_v30 = vrot.slane %v9578_v9, %v15092_v1  ;;  %v10418_v18 = vrot.slane %v9581_v52, %v15086_v50 }
 0x718   :  { %v10422_v12 = vrot.slane %v9581_v52, %v15092_v1  ;;  %v10442_v16 = vrot.slane %v9580_v3, %v15086_v50  ;;  %v10446_v25 = vrot.slane %v9580_v3, %v15092_v1  ;;  %v10450_v21 = vrot.slane %v9582_v57, %v15086_v50 }
 0x719   :  { %v10454_v46 = vrot.slane %v9582_v57, %v15092_v1  ;;  %v9987_v8 = vrot.slane %v9965_v59, %v17559_v58  ;;  %v9994_v4 = vrot.slane %v9966_v40, %v17559_v58  ;;  %v9995_v26 = vcombine.high %v9973_v41, %v9973_v41 }
 0x71a   :  { %v9996_v11 = vcombine.high %v9980_v14, %v9980_v14  ;;  %v11034_v24 = vrot.slane %v9973_v41, %v15086_v50  ;;  %v11038_v63 = vrot.slane %v9973_v41, %v15092_v1  ;;  %v11066_v17 = vrot.slane %v9980_v14, %v15086_v50 }
 0x71b   :  { %v9997_v33 = vcombine.high %v9987_v8, %v9987_v8  ;;  %v9998_v39 = vcombine.high %v9994_v4, %v9994_v4  ;;  %v11042_v51 = vrot.slane %v9987_v8, %v15086_v50  ;;  %v11046_v56 = vrot.slane %v9987_v8, %v15092_v1 }
 0x71c   :  { %v11050_v15 = vrot.slane %v9995_v26, %v15086_v50  ;;  %v11054_v0 = vrot.slane %v9995_v26, %v15092_v1  ;;  %v11070_v31 = vrot.slane %v9980_v14, %v15092_v1  ;;  %v11074_v41 = vrot.slane %v9994_v4, %v15086_v50 }
 0x71d   :  { %v11058_v59 = vrot.slane %v9997_v33, %v15086_v50  ;;  %v11062_v40 = vrot.slane %v9997_v33, %v15092_v1  ;;  %v11078_v55 = vrot.slane %v9994_v4, %v15092_v1  ;;  %v11082_v9 = vrot.slane %v9996_v11, %v15086_v50 }
 0x71e   :  { %v11086_v61 = vrot.slane %v9996_v11, %v15092_v1  ;;  %v11090_v3 = vrot.slane %v9998_v39, %v15086_v50  ;;  %v11094_v52 = vrot.slane %v9998_v39, %v15092_v1  ;;  %v11527_v57 = vsel %vm1902_vm0, %v10394_v43, %v11034_v24 }
 0x71f   :  { %v11528_v14 = vsel %vm1902_vm0, %v10398_v60, %v11038_v63  ;;  %v11529_v8 = vsel %vm1902_vm0, %v10402_v44, %v11042_v51  ;;  %v11530_v26 = vsel %vm1902_vm0, %v10406_v47, %v11046_v56  ;;  %v11531_v33 = vsel %vm1902_vm0, %v10410_v7, %v11050_v15 }
 0x720   :  { %v11532_v4 = vsel %vm1902_vm0, %v10414_v32, %v11054_v0  ;;  %v11533_v23 = vsel %vm1902_vm0, %v10418_v18, %v11058_v59  ;;  %v11534_v11 = vsel %vm1902_vm0, %v10422_v12, %v11062_v40  ;;  %v11535_v34 = vsel %vm1902_vm0, %v10426_v19, %v11066_v17 }
 0x721   :  { %v11536_v39 = vsel %vm1902_vm0, %v10430_v20, %v11070_v31  ;;  %v11537_v43 = vsel %vm1902_vm0, %v10434_v37, %v11074_v41  ;;  %v11538_v60 = vsel %vm1902_vm0, %v10438_v30, %v11078_v55  ;;  %v11539_v44 = vsel %vm1902_vm0, %v10442_v16, %v11082_v9 }
 0x722   :  { %v11540_v47 = vsel %vm1902_vm0, %v10446_v25, %v11086_v61  ;;  %v11541_v7 = vsel %vm1902_vm0, %v10450_v21, %v11090_v3  ;;  %v11542_v32 = vsel %vm1902_vm0, %v10454_v46, %v11094_v52  ;;  %v11927_v24 = vcombine.low %v11527_v57, %v11528_v14 }
 0x723   :  { %v11935_v18 = vcombine.low %v11529_v8, %v11530_v26  ;;  %v11943_v63 = vcombine.low %v11531_v33, %v11532_v4  ;;  %v11951_v12 = vcombine.low %v11533_v23, %v11534_v11  ;;  %v11959_v51 = vcombine.low %v11535_v34, %v11536_v39 }
 0x724   :  { %v11967_v19 = vcombine.low %v11537_v43, %v11538_v60  ;;  %v11975_v56 = vcombine.low %v11539_v44, %v11540_v47  ;;  %v11983_v20 = vcombine.low %v11541_v7, %v11542_v32  ;;  %v11934_v37 = vrot.slane %v11927_v24, %v15047_v49 }
 0x725   :  { %v11942_v30 = vrot.slane %v11935_v18, %v15047_v49  ;;  %v11950_v16 = vrot.slane %v11943_v63, %v15047_v49  ;;  %v11958_v25 = vrot.slane %v11951_v12, %v15047_v49  ;;  %v11966_v21 = vrot.slane %v11959_v51, %v15047_v49 }
 0x726   :  { %v11974_v46 = vrot.slane %v11967_v19, %v15047_v49  ;;  %v11982_v15 = vrot.slane %v11975_v56, %v15047_v49  ;;  %v11990_v23 = vrot.slane %v11983_v20, %v15047_v49  ;;  %v9352_v17 = vmax.f32 %v16947_v5, 0.0 }
 0x727   :  { %v12355_v34 = vcombine.low %v11934_v37, %v11942_v30  ;;  %v12356_v0 = vcombine.low %v11950_v16, %v11958_v25  ;;  %v9354_v31 = vmax.f32 %v16951_v2, 0.0  ;;  %v9355_v41 = vmax.f32 %v16963_v42, 0.0 }
 0x728   :  { %v12373_v59 = vcombine.low %v11966_v21, %v11974_v46  ;;  %v12374_v40 = vcombine.low %v11982_v15, %v11990_v23  ;;  %v9357_v55 = vmax.f32 %v16967_v36, 0.0  ;;  %v17574_v3 = vmax.f32 %v16917_v10, 0.0 }
 0x729   :  { %v12363_v9 = vrot.slane %v12355_v34, %v15047_v49  ;;  %v12370_v61 = vrot.slane %v12356_v0, %v15047_v49  ;;  %v17576_v8 = vmax.f32 %v16921_v28, 0.0 }
 0x72a   :  { %v9583_v52 = vcombine.low %v17574_v3, %v9352_v17  ;;  %v17575_v57 = vmov %v17574_v3  ;;  %v12381_v5 = vrot.slane %v12373_v59, %v15047_v49  ;;  %v12388_v2 = vrot.slane %v12374_v40, %v15047_v49 }
 0x72b   :  { %v9584_v14 = vcombine.high %v17575_v57, %v9352_v17  ;;  %v9999_v26 = vcombine.low %v17576_v8, %v9354_v31  ;;  %v17577_v33 = vmov %v17576_v8  ;;  %v12371_v11 = vcombine.low %v12363_v9, %v12370_v61 }
 0x72c   :  { %v10000_v4 = vcombine.high %v17577_v33, %v9354_v31  ;;  %v12372_v39 = vcombine.high %v12363_v9, %v12370_v61  ;;  %v9591_v43 = vrot.slane %v9583_v52, %v17559_v58  ;;  %v12389_v44 = vcombine.low %v12381_v5, %v12388_v2 }
 0x72d   :  { %v9598_v60 = vrot.slane %v9584_v14, %v17559_v58  ;;  %v12390_v47 = vcombine.high %v12381_v5, %v12388_v2  ;;  %v10007_v10 = vrot.slane %v9999_v26, %v17559_v58  ;;  %12579 = vst [vmem:[%s17464_s9 + $0x60] sm:$0xff] %v12371_v11 }
 0x72e   :  { %v10014_v7 = vrot.slane %v10000_v4, %v17559_v58  ;;  %12580 = vst [vmem:[%s17464_s9 + $0x68] sm:$0xff] %v12372_v39  ;;  %v9599_v28 = vcombine.high %v9591_v43, %v9591_v43  ;;  %v9607_v24 = vrot.slane %v9591_v43, %v17559_v58  ;;  %12581 = vst [vmem:[%s17464_s9 + $0x70] sm:$0xff] %v12389_v44 }
 0x72f   :  { %v9600_v32 = vcombine.high %v9598_v60, %v9598_v60  ;;  %v9614_v18 = vrot.slane %v9598_v60, %v17559_v58  ;;  %12582 = vst [vmem:[%s17464_s9 + $0x78] sm:$0xff] %v12390_v47  ;;  %v10015_v63 = vcombine.high %v10007_v10, %v10007_v10  ;;  %v10023_v51 = vrot.slane %v10007_v10, %v17559_v58 }
 0x730   :  { %v10016_v12 = vcombine.high %v10014_v7, %v10014_v7  ;;  %v10030_v19 = vrot.slane %v10014_v7, %v17559_v58  ;;  %v9621_v56 = vrot.slane %v9599_v28, %v17559_v58  ;;  %v9629_v37 = vcombine.high %v9607_v24, %v9607_v24 }
 0x731   :  { %v9628_v20 = vrot.slane %v9600_v32, %v17559_v58  ;;  %v9630_v30 = vcombine.high %v9614_v18, %v9614_v18  ;;  %v10458_v16 = vrot.slane %v9607_v24, %v15086_v50  ;;  %v10462_v25 = vrot.slane %v9607_v24, %v15092_v1 }
 0x732   :  { %v10490_v21 = vrot.slane %v9614_v18, %v15086_v50  ;;  %v10494_v46 = vrot.slane %v9614_v18, %v15092_v1  ;;  %v9631_v15 = vcombine.high %v9621_v56, %v9621_v56  ;;  %v10466_v34 = vrot.slane %v9621_v56, %v15086_v50 }
 0x733   :  { %v9632_v23 = vcombine.high %v9628_v20, %v9628_v20  ;;  %v10470_v0 = vrot.slane %v9621_v56, %v15092_v1  ;;  %v10474_v17 = vrot.slane %v9629_v37, %v15086_v50  ;;  %v10478_v31 = vrot.slane %v9629_v37, %v15092_v1 }
 0x734   :  { %v10498_v59 = vrot.slane %v9628_v20, %v15086_v50  ;;  %v10502_v40 = vrot.slane %v9628_v20, %v15092_v1  ;;  %v10482_v9 = vrot.slane %v9631_v15, %v15086_v50  ;;  %v10486_v61 = vrot.slane %v9631_v15, %v15092_v1 }
 0x735   :  { %v10506_v3 = vrot.slane %v9630_v30, %v15086_v50  ;;  %v10510_v52 = vrot.slane %v9630_v30, %v15092_v1  ;;  %v10514_v57 = vrot.slane %v9632_v23, %v15086_v50  ;;  %v10518_v14 = vrot.slane %v9632_v23, %v15092_v1 }
 0x736   :  { %v10037_v5 = vrot.slane %v10015_v63, %v17559_v58  ;;  %v10044_v2 = vrot.slane %v10016_v12, %v17559_v58  ;;  %v10045_v8 = vcombine.high %v10023_v51, %v10023_v51  ;;  %v10046_v26 = vcombine.high %v10030_v19, %v10030_v19 }
 0x737   :  { %v11098_v33 = vrot.slane %v10023_v51, %v15086_v50  ;;  %v11102_v4 = vrot.slane %v10023_v51, %v15092_v1  ;;  %v11130_v10 = vrot.slane %v10030_v19, %v15086_v50  ;;  %v11134_v7 = vrot.slane %v10030_v19, %v15092_v1 }
 0x738   :  { %v10047_v11 = vcombine.high %v10037_v5, %v10037_v5  ;;  %v10048_v39 = vcombine.high %v10044_v2, %v10044_v2  ;;  %v11106_v43 = vrot.slane %v10037_v5, %v15086_v50  ;;  %v11110_v60 = vrot.slane %v10037_v5, %v15092_v1 }
 0x739   :  { %v11114_v44 = vrot.slane %v10045_v8, %v15086_v50  ;;  %v11118_v47 = vrot.slane %v10045_v8, %v15092_v1  ;;  %v11138_v24 = vrot.slane %v10044_v2, %v15086_v50  ;;  %v11142_v18 = vrot.slane %v10044_v2, %v15092_v1 }
 0x73a   :  { %v11122_v28 = vrot.slane %v10047_v11, %v15086_v50  ;;  %v11126_v32 = vrot.slane %v10047_v11, %v15092_v1  ;;  %v11146_v63 = vrot.slane %v10046_v26, %v15086_v50  ;;  %v11150_v12 = vrot.slane %v10046_v26, %v15092_v1 }
 0x73b   :  { %v11154_v51 = vrot.slane %v10048_v39, %v15086_v50  ;;  %v11158_v56 = vrot.slane %v10048_v39, %v15092_v1  ;;  %v11543_v20 = vsel %vm1902_vm0, %v10458_v16, %v11098_v33  ;;  %v11544_v19 = vsel %vm1902_vm0, %v10462_v25, %v11102_v4 }
 0x73c   :  { %v11545_v37 = vsel %vm1902_vm0, %v10466_v34, %v11106_v43  ;;  %v11546_v30 = vsel %vm1902_vm0, %v10470_v0, %v11110_v60  ;;  %v11547_v15 = vsel %vm1902_vm0, %v10474_v17, %v11114_v44  ;;  %v11548_v23 = vsel %vm1902_vm0, %v10478_v31, %v11118_v47 }
 0x73d   :  { %v11549_v5 = vsel %vm1902_vm0, %v10482_v9, %v11122_v28  ;;  %v11550_v2 = vsel %vm1902_vm0, %v10486_v61, %v11126_v32  ;;  %v11551_v8 = vsel %vm1902_vm0, %v10490_v21, %v11130_v10  ;;  %v11552_v26 = vsel %vm1902_vm0, %v10494_v46, %v11134_v7  ;;  %v17578_v10 = vld [vmem:[#allocation20_spill] sm:$0xff]  ;;  %v17579_v28 = vld [vmem:[#allocation21_spill] sm:$0xff] }
 0x73e   :  { %v11553_v16 = vsel %vm1902_vm0, %v10498_v59, %v11138_v24  ;;  %v11554_v25 = vsel %vm1902_vm0, %v10502_v40, %v11142_v18  ;;  %v11555_v34 = vsel %vm1902_vm0, %v10506_v3, %v11146_v63  ;;  %v11556_v0 = vsel %vm1902_vm0, %v10510_v52, %v11150_v12 }
 0x73f   :  { %v11557_v17 = vsel %vm1902_vm0, %v10514_v57, %v11154_v51  ;;  %v11558_v31 = vsel %vm1902_vm0, %v10518_v14, %v11158_v56  ;;  %v11991_v33 = vcombine.low %v11543_v20, %v11544_v19  ;;  %v11999_v9 = vcombine.low %v11545_v37, %v11546_v30 }
 0x740   :  { %v12007_v4 = vcombine.low %v11547_v15, %v11548_v23  ;;  %v12015_v61 = vcombine.low %v11549_v5, %v11550_v2  ;;  %v12023_v11 = vcombine.low %v11551_v8, %v11552_v26  ;;  %v12031_v21 = vcombine.low %v11553_v16, %v11554_v25 }
 0x741   :  { %v12039_v39 = vcombine.low %v11555_v34, %v11556_v0  ;;  %v12047_v46 = vcombine.low %v11557_v17, %v11558_v31  ;;  %v11998_v59 = vrot.slane %v11991_v33, %v15047_v49  ;;  %v12006_v40 = vrot.slane %v11999_v9, %v15047_v49 }
 0x742   :  { %v12014_v3 = vrot.slane %v12007_v4, %v15047_v49  ;;  %v12022_v52 = vrot.slane %v12015_v61, %v15047_v49  ;;  %v12030_v57 = vrot.slane %v12023_v11, %v15047_v49  ;;  %v12038_v14 = vrot.slane %v12031_v21, %v15047_v49 }
 0x743   :  { %v12046_v43 = vrot.slane %v12039_v39, %v15047_v49  ;;  %v12054_v60 = vrot.slane %v12047_v46, %v15047_v49  ;;  %v12391_v44 = vcombine.low %v11998_v59, %v12006_v40  ;;  %v13503_v7 = vadd.f32 %v17578_v10, %v16512_v27 }
 0x744   :  { %v12392_v47 = vcombine.low %v12014_v3, %v12022_v52  ;;  %v13519_v32 = vadd.f32 %v17579_v28, %v16515_v22  ;;  %v12409_v24 = vcombine.low %v12030_v57, %v12038_v14  ;;  %v17135_v63 = vadd.f32 %v16661_v6, %v16506_v35 }
 0x745   :  { %v12410_v18 = vcombine.low %v12046_v43, %v12054_v60  ;;  %v17139_v12 = vadd.f32 %v16663_v45, %v16509_v38  ;;  %v12399_v51 = vrot.slane %v12391_v44, %v15047_v49  ;;  %v9356_v20 = vmax.f32 %v13503_v7, 0.0 }
 0x746   :  { %v12406_v56 = vrot.slane %v12392_v47, %v15047_v49  ;;  %v9358_v19 = vmax.f32 %v13519_v32, 0.0  ;;  %v12417_v37 = vrot.slane %v12409_v24, %v15047_v49  ;;  %v9359_v15 = vmax.f32 %v17135_v63, 0.0 }
 0x747   :  { %v12424_v30 = vrot.slane %v12410_v18, %v15047_v49  ;;  %v9633_v6 = vcombine.low %v9355_v41, %v9356_v20  ;;  %v9634_v45 = vcombine.high %v9355_v41, %v9356_v20  ;;  %v9361_v41 = vmax.f32 %v17139_v12, 0.0 }
 0x748   :  { %v12407_v23 = vcombine.low %v12399_v51, %v12406_v56  ;;  %v12408_v5 = vcombine.high %v12399_v51, %v12406_v56  ;;  %v10049_v26 = vcombine.low %v9357_v55, %v9358_v19  ;;  %v10050_v16 = vcombine.high %v9357_v55, %v9358_v19 }
 0x749   :  { %v12425_v2 = vcombine.low %v12417_v37, %v12424_v30  ;;  %v12426_v8 = vcombine.high %v12417_v37, %v12424_v30  ;;  %v9641_v25 = vrot.slane %v9633_v6, %v17559_v58  ;;  %v9648_v42 = vrot.slane %v9634_v45, %v17559_v58 }
 0x74a   :  { %12583 = vst [vmem:[%s17464_s9 + $0x80] sm:$0xff] %v12407_v23  ;;  %12584 = vst [vmem:[%s17464_s9 + $0x88] sm:$0xff] %v12408_v5  ;;  %v17165_v34 = vadd.f32 %v16669_v53, %v16512_v27  ;;  %v10057_v36 = vrot.slane %v10049_v26, %v17559_v58  ;;  %v10064_v55 = vrot.slane %v10050_v16, %v17559_v58 }
 0x74b   :  { %12585 = vst [vmem:[%s17464_s9 + $0x90] sm:$0xff] %v12425_v2  ;;  %12586 = vst [vmem:[%s17464_s9 + $0x98] sm:$0xff] %v12426_v8  ;;  %v17177_v0 = vadd.f32 %v16743_v62, %v16515_v22  ;;  %v17181_v53 = vadd.f32 %v16797_v13, %v16506_v35  ;;  %v9649_v17 = vcombine.high %v9641_v25, %v9641_v25 }
 0x74c   :  { %v9650_v31 = vcombine.high %v9648_v42, %v9648_v42  ;;  %v9657_v33 = vrot.slane %v9641_v25, %v17559_v58  ;;  %v9664_v9 = vrot.slane %v9648_v42, %v17559_v58  ;;  %v10065_v4 = vcombine.high %v10057_v36, %v10057_v36 }
 0x74d   :  { %v10066_v61 = vcombine.high %v10064_v55, %v10064_v55  ;;  %v10073_v11 = vrot.slane %v10057_v36, %v17559_v58  ;;  %v10080_v21 = vrot.slane %v10064_v55, %v17559_v58  ;;  %v9671_v39 = vrot.slane %v9649_v17, %v17559_v58 }
 0x74e   :  { %v9678_v62 = vrot.slane %v9650_v31, %v17559_v58  ;;  %v9679_v46 = vcombine.high %v9657_v33, %v9657_v33  ;;  %v9680_v59 = vcombine.high %v9664_v9, %v9664_v9  ;;  %v10522_v35 = vrot.slane %v9657_v33, %v15086_v50 }
 0x74f   :  { %v10526_v13 = vrot.slane %v9657_v33, %v15092_v1  ;;  %v10554_v40 = vrot.slane %v9664_v9, %v15086_v50  ;;  %v10558_v3 = vrot.slane %v9664_v9, %v15092_v1  ;;  %v9681_v52 = vcombine.high %v9671_v39, %v9671_v39 }
 0x750   :  { %v9682_v57 = vcombine.high %v9678_v62, %v9678_v62  ;;  %v10530_v14 = vrot.slane %v9671_v39, %v15086_v50  ;;  %v10534_v43 = vrot.slane %v9671_v39, %v15092_v1  ;;  %v10538_v60 = vrot.slane %v9679_v46, %v15086_v50 }
 0x751   :  { %v10542_v44 = vrot.slane %v9679_v46, %v15092_v1  ;;  %v10562_v47 = vrot.slane %v9678_v62, %v15086_v50  ;;  %v10566_v10 = vrot.slane %v9678_v62, %v15092_v1  ;;  %v10546_v7 = vrot.slane %v9681_v52, %v15086_v50 }
 0x752   :  { %v10550_v28 = vrot.slane %v9681_v52, %v15092_v1  ;;  %v10570_v32 = vrot.slane %v9680_v59, %v15086_v50  ;;  %v10574_v24 = vrot.slane %v9680_v59, %v15092_v1  ;;  %v10578_v18 = vrot.slane %v9682_v57, %v15086_v50 }
 0x753   :  { %v10582_v51 = vrot.slane %v9682_v57, %v15092_v1  ;;  %v10087_v56 = vrot.slane %v10065_v4, %v17559_v58  ;;  %v10094_v20 = vrot.slane %v10066_v61, %v17559_v58  ;;  %v10095_v19 = vcombine.high %v10073_v11, %v10073_v11 }
 0x754   :  { %v10096_v37 = vcombine.high %v10080_v21, %v10080_v21  ;;  %v11162_v30 = vrot.slane %v10073_v11, %v15086_v50  ;;  %v11166_v23 = vrot.slane %v10073_v11, %v15092_v1  ;;  %v11194_v16 = vrot.slane %v10080_v21, %v15086_v50 }
 0x755   :  { %v10097_v5 = vcombine.high %v10087_v56, %v10087_v56  ;;  %v10098_v6 = vcombine.high %v10094_v20, %v10094_v20  ;;  %v11170_v45 = vrot.slane %v10087_v56, %v15086_v50  ;;  %v11174_v2 = vrot.slane %v10087_v56, %v15092_v1 }
 0x756   :  { %v11178_v8 = vrot.slane %v10095_v19, %v15086_v50  ;;  %v11182_v26 = vrot.slane %v10095_v19, %v15092_v1  ;;  %v11198_v25 = vrot.slane %v10080_v21, %v15092_v1  ;;  %v11202_v55 = vrot.slane %v10094_v20, %v15086_v50 }
 0x757   :  { %v11186_v42 = vrot.slane %v10097_v5, %v15086_v50  ;;  %v11190_v36 = vrot.slane %v10097_v5, %v15092_v1  ;;  %v11206_v17 = vrot.slane %v10094_v20, %v15092_v1  ;;  %v11210_v31 = vrot.slane %v10096_v37, %v15086_v50 }
 0x758   :  { %v11214_v33 = vrot.slane %v10096_v37, %v15092_v1  ;;  %v11218_v9 = vrot.slane %v10098_v6, %v15086_v50  ;;  %v11222_v4 = vrot.slane %v10098_v6, %v15092_v1  ;;  %v11559_v61 = vsel %vm1902_vm0, %v10522_v35, %v11162_v30 }
 0x759   :  { %v11560_v11 = vsel %vm1902_vm0, %v10526_v13, %v11166_v23  ;;  %v11561_v21 = vsel %vm1902_vm0, %v10530_v14, %v11170_v45  ;;  %v11562_v39 = vsel %vm1902_vm0, %v10534_v43, %v11174_v2  ;;  %v11563_v62 = vsel %vm1902_vm0, %v10538_v60, %v11178_v8 }
 0x75a   :  { %v11564_v46 = vsel %vm1902_vm0, %v10542_v44, %v11182_v26  ;;  %v11565_v59 = vsel %vm1902_vm0, %v10546_v7, %v11186_v42  ;;  %v11566_v52 = vsel %vm1902_vm0, %v10550_v28, %v11190_v36  ;;  %v11567_v57 = vsel %vm1902_vm0, %v10554_v40, %v11194_v16 }
 0x75b   :  { %v11568_v56 = vsel %vm1902_vm0, %v10558_v3, %v11198_v25  ;;  %v11569_v35 = vsel %vm1902_vm0, %v10562_v47, %v11202_v55  ;;  %v11570_v13 = vsel %vm1902_vm0, %v10566_v10, %v11206_v17  ;;  %v11571_v14 = vsel %vm1902_vm0, %v10570_v32, %v11210_v31 }
 0x75c   :  { %v11572_v43 = vsel %vm1902_vm0, %v10574_v24, %v11214_v33  ;;  %v11573_v60 = vsel %vm1902_vm0, %v10578_v18, %v11218_v9  ;;  %v11574_v44 = vsel %vm1902_vm0, %v10582_v51, %v11222_v4  ;;  %v12055_v20 = vcombine.low %v11559_v61, %v11560_v11 }
 0x75d   :  { %v12063_v7 = vcombine.low %v11561_v21, %v11562_v39  ;;  %v12071_v19 = vcombine.low %v11563_v62, %v11564_v46  ;;  %v12079_v28 = vcombine.low %v11565_v59, %v11566_v52  ;;  %v12087_v37 = vcombine.low %v11567_v57, %v11568_v56 }
 0x75e   :  { %v12095_v40 = vcombine.low %v11569_v35, %v11570_v13  ;;  %v12103_v30 = vcombine.low %v11571_v14, %v11572_v43  ;;  %v12111_v3 = vcombine.low %v11573_v60, %v11574_v44  ;;  %v12062_v47 = vrot.slane %v12055_v20, %v15047_v49 }
 0x75f   :  { %v12070_v10 = vrot.slane %v12063_v7, %v15047_v49  ;;  %v12078_v32 = vrot.slane %v12071_v19, %v15047_v49  ;;  %v12086_v24 = vrot.slane %v12079_v28, %v15047_v49  ;;  %v12094_v18 = vrot.slane %v12087_v37, %v15047_v49 }
 0x760   :  { %v12102_v51 = vrot.slane %v12095_v40, %v15047_v49  ;;  %v12110_v23 = vrot.slane %v12103_v30, %v15047_v49  ;;  %v12118_v5 = vrot.slane %v12111_v3, %v15047_v49  ;;  %v9360_v2 = vmax.f32 %v17165_v34, 0.0 }
 0x761   :  { %v12427_v6 = vcombine.low %v12062_v47, %v12070_v10  ;;  %v12428_v45 = vcombine.low %v12078_v32, %v12086_v24  ;;  %v9362_v8 = vmax.f32 %v17177_v0, 0.0  ;;  %v9363_v25 = vmax.f32 %v17181_v53, 0.0 }
 0x762   :  { %v12445_v26 = vcombine.low %v12094_v18, %v12102_v51  ;;  %v12446_v16 = vcombine.low %v12110_v23, %v12118_v5  ;;  %v17252_v42 = vadd.f32 %v16799_v48, %v16509_v38  ;;  %v9683_v17 = vcombine.low %v9359_v15, %v9360_v2 }
 0x763   :  { %v12435_v36 = vrot.slane %v12427_v6, %v15047_v49  ;;  %v12442_v55 = vrot.slane %v12428_v45, %v15047_v49  ;;  %v9684_v34 = vcombine.high %v9359_v15, %v9360_v2  ;;  %v10099_v33 = vcombine.low %v9361_v41, %v9362_v8 }
 0x764   :  { %v12453_v0 = vrot.slane %v12445_v26, %v15047_v49  ;;  %v12460_v31 = vrot.slane %v12446_v16, %v15047_v49  ;;  %v10100_v38 = vcombine.high %v9361_v41, %v9362_v8  ;;  %v9691_v4 = vrot.slane %v9683_v17, %v17559_v58 }
 0x765   :  { %v12443_v48 = vcombine.low %v12435_v36, %v12442_v55  ;;  %v12444_v9 = vcombine.high %v12435_v36, %v12442_v55  ;;  %v9698_v61 = vrot.slane %v9684_v34, %v17559_v58  ;;  %v10107_v63 = vrot.slane %v10099_v33, %v17559_v58 }
 0x766   :  { %v12461_v11 = vcombine.low %v12453_v0, %v12460_v31  ;;  %v12462_v21 = vcombine.high %v12453_v0, %v12460_v31  ;;  %v10114_v15 = vrot.slane %v10100_v38, %v17559_v58  ;;  %v9699_v12 = vcombine.high %v9691_v4, %v9691_v4 }
 0x767   :  { %12587 = vst [vmem:[%s17464_s9 + $0xa0] sm:$0xff] %v12443_v48  ;;  %12588 = vst [vmem:[%s17464_s9 + $0xa8] sm:$0xff] %v12444_v9  ;;  %v9700_v41 = vcombine.high %v9698_v61, %v9698_v61  ;;  %v9707_v39 = vrot.slane %v9691_v4, %v17559_v58  ;;  %v9714_v62 = vrot.slane %v9698_v61, %v17559_v58 }
 0x768   :  { %12589 = vst [vmem:[%s17464_s9 + $0xb0] sm:$0xff] %v12461_v11  ;;  %12590 = vst [vmem:[%s17464_s9 + $0xb8] sm:$0xff] %v12462_v21  ;;  %v10115_v46 = vcombine.high %v10107_v63, %v10107_v63  ;;  %v10116_v59 = vcombine.high %v10114_v15, %v10114_v15  ;;  %v10123_v52 = vrot.slane %v10107_v63, %v17559_v58 }
 0x769   :  { %v10130_v57 = vrot.slane %v10114_v15, %v17559_v58  ;;  %v9721_v56 = vrot.slane %v9699_v12, %v17559_v58  ;;  %v9728_v35 = vrot.slane %v9700_v41, %v17559_v58  ;;  %v9729_v13 = vcombine.high %v9707_v39, %v9707_v39 }
 0x76a   :  { %v9730_v14 = vcombine.high %v9714_v62, %v9714_v62  ;;  %v10586_v43 = vrot.slane %v9707_v39, %v15086_v50  ;;  %v10590_v60 = vrot.slane %v9707_v39, %v15092_v1  ;;  %v10618_v44 = vrot.slane %v9714_v62, %v15086_v50 }
 0x76b   :  { %v10622_v20 = vrot.slane %v9714_v62, %v15092_v1  ;;  %v9731_v7 = vcombine.high %v9721_v56, %v9721_v56  ;;  %v9732_v19 = vcombine.high %v9728_v35, %v9728_v35  ;;  %v10594_v28 = vrot.slane %v9721_v56, %v15086_v50 }
 0x76c   :  { %v10598_v37 = vrot.slane %v9721_v56, %v15092_v1  ;;  %v10602_v40 = vrot.slane %v9729_v13, %v15086_v50  ;;  %v10606_v30 = vrot.slane %v9729_v13, %v15092_v1  ;;  %v10626_v3 = vrot.slane %v9728_v35, %v15086_v50 }
 0x76d   :  { %v10630_v47 = vrot.slane %v9728_v35, %v15092_v1  ;;  %v10610_v10 = vrot.slane %v9731_v7, %v15086_v50  ;;  %v10614_v32 = vrot.slane %v9731_v7, %v15092_v1  ;;  %v10634_v24 = vrot.slane %v9730_v14, %v15086_v50 }
 0x76e   :  { %v10638_v18 = vrot.slane %v9730_v14, %v15092_v1  ;;  %v10642_v51 = vrot.slane %v9732_v19, %v15086_v50  ;;  %v10646_v23 = vrot.slane %v9732_v19, %v15092_v1  ;;  %v10137_v5 = vrot.slane %v10115_v46, %v17559_v58 }
 0x76f   :  { %v10144_v6 = vrot.slane %v10116_v59, %v17559_v58  ;;  %v10145_v45 = vcombine.high %v10123_v52, %v10123_v52  ;;  %v10146_v2 = vcombine.high %v10130_v57, %v10130_v57  ;;  %v11226_v8 = vrot.slane %v10123_v52, %v15086_v50 }
 0x770   :  { %v11230_v26 = vrot.slane %v10123_v52, %v15092_v1  ;;  %v10147_v16 = vcombine.high %v10137_v5, %v10137_v5  ;;  %v11234_v55 = vrot.slane %v10137_v5, %v15086_v50  ;;  %v11238_v17 = vrot.slane %v10137_v5, %v15092_v1 }
 0x771   :  { %v10148_v36 = vcombine.high %v10144_v6, %v10144_v6  ;;  %v11242_v34 = vrot.slane %v10145_v45, %v15086_v50  ;;  %v11246_v0 = vrot.slane %v10145_v45, %v15092_v1  ;;  %v11258_v31 = vrot.slane %v10130_v57, %v15086_v50 }
 0x772   :  { %v11262_v33 = vrot.slane %v10130_v57, %v15092_v1  ;;  %v11250_v38 = vrot.slane %v10147_v16, %v15086_v50  ;;  %v11254_v48 = vrot.slane %v10147_v16, %v15092_v1  ;;  %v11266_v9 = vrot.slane %v10144_v6, %v15086_v50 }
 0x773   :  { %v11270_v4 = vrot.slane %v10144_v6, %v15092_v1  ;;  %v11274_v61 = vrot.slane %v10146_v2, %v15086_v50  ;;  %v11278_v11 = vrot.slane %v10146_v2, %v15092_v1  ;;  %v11282_v21 = vrot.slane %v10148_v36, %v15086_v50 }
 0x774   :  { %v11286_v63 = vrot.slane %v10148_v36, %v15092_v1  ;;  %v11575_v15 = vsel %vm1902_vm0, %v10586_v43, %v11226_v8  ;;  %v11576_v12 = vsel %vm1902_vm0, %v10590_v60, %v11230_v26  ;;  %v11577_v41 = vsel %vm1902_vm0, %v10594_v28, %v11234_v55 }
 0x775   :  { %v11578_v39 = vsel %vm1902_vm0, %v10598_v37, %v11238_v17  ;;  %v11579_v62 = vsel %vm1902_vm0, %v10602_v40, %v11242_v34  ;;  %v11580_v46 = vsel %vm1902_vm0, %v10606_v30, %v11246_v0  ;;  %v11581_v59 = vsel %vm1902_vm0, %v10610_v10, %v11250_v38 }
 0x776   :  { %v11582_v52 = vsel %vm1902_vm0, %v10614_v32, %v11254_v48  ;;  %v11583_v57 = vsel %vm1902_vm0, %v10618_v44, %v11258_v31  ;;  %v11584_v56 = vsel %vm1902_vm0, %v10622_v20, %v11262_v33  ;;  %v11585_v35 = vsel %vm1902_vm0, %v10626_v3, %v11266_v9 }
 0x777   :  { %v11586_v13 = vsel %vm1902_vm0, %v10630_v47, %v11270_v4  ;;  %v11587_v14 = vsel %vm1902_vm0, %v10634_v24, %v11274_v61  ;;  %v11588_v43 = vsel %vm1902_vm0, %v10638_v18, %v11278_v11  ;;  %v11589_v60 = vsel %vm1902_vm0, %v10642_v51, %v11282_v21 }
 0x778   :  { %v11590_v7 = vsel %vm1902_vm0, %v10646_v23, %v11286_v63  ;;  %v12119_v19 = vcombine.low %v11575_v15, %v11576_v12  ;;  %v12127_v28 = vcombine.low %v11577_v41, %v11578_v39  ;;  %v12135_v37 = vcombine.low %v11579_v62, %v11580_v46 }
 0x779   :  { %v12143_v40 = vcombine.low %v11581_v59, %v11582_v52  ;;  %v12151_v30 = vcombine.low %v11583_v57, %v11584_v56  ;;  %v12159_v44 = vcombine.low %v11585_v35, %v11586_v13  ;;  %v12167_v10 = vcombine.low %v11587_v14, %v11588_v43 }
 0x77a   :  { %v12175_v20 = vcombine.low %v11589_v60, %v11590_v7  ;;  %v12126_v3 = vrot.slane %v12119_v19, %v15047_v49  ;;  %v12134_v47 = vrot.slane %v12127_v28, %v15047_v49  ;;  %v12142_v32 = vrot.slane %v12135_v37, %v15047_v49 }
 0x77b   :  { %v12150_v24 = vrot.slane %v12143_v40, %v15047_v49  ;;  %v12158_v18 = vrot.slane %v12151_v30, %v15047_v49  ;;  %v12166_v51 = vrot.slane %v12159_v44, %v15047_v49  ;;  %v12174_v23 = vrot.slane %v12167_v10, %v15047_v49 }
 0x77c   :  { %v12182_v5 = vrot.slane %v12175_v20, %v15047_v49  ;;  %v12463_v6 = vcombine.low %v12126_v3, %v12134_v47  ;;  %v13507_v2 = vadd.f32 %v16801_v29, %v16512_v27  ;;  %v13523_v8 = vadd.f32 %v16865_v54, %v16515_v22 }
 0x77d   :  { %v12464_v45 = vcombine.low %v12142_v32, %v12150_v24  ;;  %v12481_v26 = vcombine.low %v12158_v18, %v12166_v51  ;;  %v9365_v36 = vmax.f32 %v17252_v42, 0.0 }
 0x77e   :  { %v12482_v16 = vcombine.low %v12174_v23, %v12182_v5  ;;  %v12471_v55 = vrot.slane %v12463_v6, %v15047_v49  ;;  %v9364_v34 = vmax.f32 %v13507_v2, 0.0  ;;  %v9366_v0 = vmax.f32 %v13523_v8, 0.0 }
 0x77f   :  { %v12478_v17 = vrot.slane %v12464_v45, %v15047_v49  ;;  %v12489_v31 = vrot.slane %v12481_v26, %v15047_v49 }
 0x780   :  { %v12496_v33 = vrot.slane %v12482_v16, %v15047_v49  ;;  %v9733_v27 = vcombine.low %v9363_v25, %v9364_v34  ;;  %v9734_v22 = vcombine.high %v9363_v25, %v9364_v34  ;;  %v10149_v42 = vcombine.low %v9365_v36, %v9366_v0 }
 0x781   :  { %v12479_v38 = vcombine.low %v12471_v55, %v12478_v17  ;;  %v12480_v48 = vcombine.high %v12471_v55, %v12478_v17  ;;  %v10150_v9 = vcombine.high %v9365_v36, %v9366_v0 }
 0x782   :  { %v12497_v29 = vcombine.low %v12489_v31, %v12496_v33  ;;  %v12498_v54 = vcombine.high %v12489_v31, %v12496_v33  ;;  %v9741_v4 = vrot.slane %v9733_v27, %v17559_v58  ;;  %v9748_v61 = vrot.slane %v9734_v22, %v17559_v58 }
 0x783   :  { %12591 = vst [vmem:[%s17464_s9 + $0xc0] sm:$0xff] %v12479_v38  ;;  %12592 = vst [vmem:[%s17464_s9 + $0xc8] sm:$0xff] %v12480_v48  ;;  %v10157_v53 = vrot.slane %v10149_v42, %v17559_v58  ;;  %v10164_v25 = vrot.slane %v10150_v9, %v17559_v58 }
 0x784   :  { %12593 = vst [vmem:[%s17464_s9 + $0xd0] sm:$0xff] %v12497_v29  ;;  %12594 = vst [vmem:[%s17464_s9 + $0xd8] sm:$0xff] %v12498_v54  ;;  %v9749_v11 = vcombine.high %v9741_v4, %v9741_v4  ;;  %v9750_v21 = vcombine.high %v9748_v61, %v9748_v61  ;;  %v9757_v63 = vrot.slane %v9741_v4, %v17559_v58 }
 0x785   :  { %v9764_v15 = vrot.slane %v9748_v61, %v17559_v58  ;;  %v10165_v12 = vcombine.high %v10157_v53, %v10157_v53  ;;  %v10166_v41 = vcombine.high %v10164_v25, %v10164_v25  ;;  %v10173_v39 = vrot.slane %v10157_v53, %v17559_v58 }
 0x786   :  { %v10180_v62 = vrot.slane %v10164_v25, %v17559_v58  ;;  %v9771_v46 = vrot.slane %v9749_v11, %v17559_v58  ;;  %v9778_v59 = vrot.slane %v9750_v21, %v17559_v58  ;;  %v9779_v52 = vcombine.high %v9757_v63, %v9757_v63 }
 0x787   :  { %v9780_v57 = vcombine.high %v9764_v15, %v9764_v15  ;;  %v10650_v56 = vrot.slane %v9757_v63, %v15086_v50  ;;  %v10654_v35 = vrot.slane %v9757_v63, %v15092_v1  ;;  %v10682_v13 = vrot.slane %v9764_v15, %v15086_v50 }
 0x788   :  { %v10686_v14 = vrot.slane %v9764_v15, %v15092_v1  ;;  %v9781_v43 = vcombine.high %v9771_v46, %v9771_v46  ;;  %v9782_v60 = vcombine.high %v9778_v59, %v9778_v59  ;;  %v10658_v7 = vrot.slane %v9771_v46, %v15086_v50 }
 0x789   :  { %v10662_v19 = vrot.slane %v9771_v46, %v15092_v1  ;;  %v10666_v28 = vrot.slane %v9779_v52, %v15086_v50  ;;  %v10670_v37 = vrot.slane %v9779_v52, %v15092_v1  ;;  %v10690_v40 = vrot.slane %v9778_v59, %v15086_v50 }
 0x78a   :  { %v10694_v30 = vrot.slane %v9778_v59, %v15092_v1  ;;  %v10674_v44 = vrot.slane %v9781_v43, %v15086_v50  ;;  %v10678_v10 = vrot.slane %v9781_v43, %v15092_v1  ;;  %v10698_v20 = vrot.slane %v9780_v57, %v15086_v50 }
 0x78b   :  { %v10702_v3 = vrot.slane %v9780_v57, %v15092_v1  ;;  %v10706_v47 = vrot.slane %v9782_v60, %v15086_v50  ;;  %v10710_v32 = vrot.slane %v9782_v60, %v15092_v1  ;;  %v10187_v24 = vrot.slane %v10165_v12, %v17559_v58 }
 0x78c   :  { %v10194_v18 = vrot.slane %v10166_v41, %v17559_v58  ;;  %v10195_v51 = vcombine.high %v10173_v39, %v10173_v39  ;;  %v10196_v23 = vcombine.high %v10180_v62, %v10180_v62  ;;  %v11290_v5 = vrot.slane %v10173_v39, %v15086_v50 }
 0x78d   :  { %v11294_v6 = vrot.slane %v10173_v39, %v15092_v1  ;;  %v10197_v45 = vcombine.high %v10187_v24, %v10187_v24  ;;  %v11298_v8 = vrot.slane %v10187_v24, %v15086_v50  ;;  %v11302_v26 = vrot.slane %v10187_v24, %v15092_v1 }
 0x78e   :  { %v10198_v2 = vcombine.high %v10194_v18, %v10194_v18  ;;  %v11306_v16 = vrot.slane %v10195_v51, %v15086_v50  ;;  %v11310_v36 = vrot.slane %v10195_v51, %v15092_v1  ;;  %v11322_v55 = vrot.slane %v10180_v62, %v15086_v50 }
 0x78f   :  { %v11326_v58 = vrot.slane %v10180_v62, %v15092_v1  ;;  %v11314_v17 = vrot.slane %v10197_v45, %v15086_v50  ;;  %v11318_v34 = vrot.slane %v10197_v45, %v15092_v1  ;;  %v11330_v0 = vrot.slane %v10194_v18, %v15086_v50 }
 0x790   :  { %v11334_v31 = vrot.slane %v10194_v18, %v15092_v1  ;;  %v11338_v33 = vrot.slane %v10196_v23, %v15086_v50  ;;  %v11342_v38 = vrot.slane %v10196_v23, %v15092_v1  ;;  %v11346_v48 = vrot.slane %v10198_v2, %v15086_v50 }
 0x791   :  { %v11350_v27 = vrot.slane %v10198_v2, %v15092_v1  ;;  %v11591_v22 = vsel %vm1902_vm0, %v10650_v56, %v11290_v5  ;;  %v11592_v29 = vsel %vm1902_vm0, %v10654_v35, %v11294_v6  ;;  %v11593_v54 = vsel %vm1902_vm0, %v10658_v7, %v11298_v8 }
 0x792   :  { %v11594_v42 = vsel %vm1902_vm0, %v10662_v19, %v11302_v26  ;;  %v11595_v9 = vsel %vm1902_vm0, %v10666_v28, %v11306_v16  ;;  %v11596_v4 = vsel %vm1902_vm0, %v10670_v37, %v11310_v36  ;;  %v11597_v61 = vsel %vm1902_vm0, %v10674_v44, %v11314_v17 }
 0x793   :  { %v11598_v53 = vsel %vm1902_vm0, %v10678_v10, %v11318_v34  ;;  %v11599_v50 = vsel %vm1902_vm0, %v10682_v13, %v11322_v55  ;;  %v11600_v1 = vsel %vm1902_vm0, %v10686_v14, %v11326_v58  ;;  %v11601_v25 = vsel %vm1902_vm0, %v10690_v40, %v11330_v0 }
 0x794   :  { %v11602_v11 = vsel %vm1902_vm0, %v10694_v30, %v11334_v31  ;;  %v11603_v21 = vsel %vm1902_vm0, %v10698_v20, %v11338_v33  ;;  %v11604_v63 = vsel %vm1902_vm0, %v10702_v3, %v11342_v38  ;;  %v11605_v15 = vsel %vm1902_vm0, %v10706_v47, %v11346_v48 }
 0x795   :  { %v11606_v12 = vsel %vm1902_vm0, %v10710_v32, %v11350_v27  ;;  %v12183_v41 = vcombine.low %v11591_v22, %v11592_v29  ;;  %v12191_v39 = vcombine.low %v11593_v54, %v11594_v42  ;;  %v12199_v62 = vcombine.low %v11595_v9, %v11596_v4 }
 0x796   :  { %v12207_v46 = vcombine.low %v11597_v61, %v11598_v53  ;;  %v12215_v59 = vcombine.low %v11599_v50, %v11600_v1  ;;  %v12223_v52 = vcombine.low %v11601_v25, %v11602_v11  ;;  %v12231_v57 = vcombine.low %v11603_v21, %v11604_v63 }
 0x797   :  { %v12239_v56 = vcombine.low %v11605_v15, %v11606_v12  ;;  %v12190_v35 = vrot.slane %v12183_v41, %v15047_v49  ;;  %v12198_v13 = vrot.slane %v12191_v39, %v15047_v49  ;;  %v12206_v14 = vrot.slane %v12199_v62, %v15047_v49 }
 0x798   :  { %v12214_v43 = vrot.slane %v12207_v46, %v15047_v49  ;;  %v12222_v60 = vrot.slane %v12215_v59, %v15047_v49  ;;  %v12230_v7 = vrot.slane %v12223_v52, %v15047_v49  ;;  %v12238_v19 = vrot.slane %v12231_v57, %v15047_v49 }
 0x799   :  { %v12246_v28 = vrot.slane %v12239_v56, %v15047_v49  ;;  %v12499_v37 = vcombine.low %v12190_v35, %v12198_v13 }
 0x79a   :  { %v12500_v40 = vcombine.low %v12206_v14, %v12214_v43  ;;  %v12517_v30 = vcombine.low %v12222_v60, %v12230_v7 }
 0x79b   :  { %v12518_v44 = vcombine.low %v12238_v19, %v12246_v28  ;;  %v12507_v10 = vrot.slane %v12499_v37, %v15047_v49 }
 0x79c   :  { %v12514_v20 = vrot.slane %v12500_v40, %v15047_v49  ;;  %v12525_v3 = vrot.slane %v12517_v30, %v15047_v49 }
 0x79d   :  { %v12532_v47 = vrot.slane %v12518_v44, %v15047_v49 }
 0x79e   :  { %v12515_v32 = vcombine.low %v12507_v10, %v12514_v20  ;;  %v12516_v24 = vcombine.high %v12507_v10, %v12514_v20 }
 0x79f   :  { %v12533_v18 = vcombine.low %v12525_v3, %v12532_v47  ;;  %v12534_v51 = vcombine.high %v12525_v3, %v12532_v47 }
 0x7a0   :  { %12595 = vst [vmem:[%s17464_s9 + $0xe0] sm:$0xff] %v12515_v32  ;;  %12596 = vst [vmem:[%s17464_s9 + $0xe8] sm:$0xff] %v12516_v24 }
 0x7a1   :  { %12597 = vst [vmem:[%s17464_s9 + $0xf0] sm:$0xff] %v12533_v18  ;;  %12598 = vst [vmem:[%s17464_s9 + $0xf8] sm:$0xff] %v12534_v51 }
 0x7a2   :  { %12603 = vsyncpa [#allocation3], 1 }
 0x7a3   :  { %12604 = vsyncpa [#allocation5], 1 }
 0x7a4   :  { %12605 = vsyncpa [#allocation8], 1 }

</bundles_post_ra>
